<compile_context>
chip_gen: v5e
topology: v5e:2x2
jax: 0.10.0
libtpu: 0.0.40
codegen_flags: <defaults>
</compile_context>

<pallas_src>
import functools

import jax
import jax.numpy as jnp
from jax.experimental import pallas as pl
from jax.experimental.pallas import tpu as pltpu


# ---------------------------------------------------------------------------
# Pallas kernel: per-image hierarchical SSI-MAE (medians precomputed).
# ---------------------------------------------------------------------------
def _hdsn_kernel(med_t_ref, med_p_ref, pred_ref, targ_ref, mask_ref,
                 num_ref, cnt_ref, *, d0, divisions):
    """One grid step == one batch image.

    med_*_ref : SMEM (B, L*d0*d0) f32 -- per-level masked medians, replicated
                onto the finest (d0 x d0) tile grid.
    pred/targ/mask_ref : VMEM (1, H, W) f32 blocks (full image, lane-dense).
    num_ref / cnt_ref  : VMEM (1, 1, 1) f32 -- per-image loss numerator and
                         valid-pixel count (reduced in the wrapper).
    """
    b = pl.program_id(0)
    num_levels = len(divisions)
    _, H, W = pred_ref.shape
    Hf, Wf = H // d0, W // d0

    p = pred_ref[0]          # (H, W) f32
    t = targ_ref[0]
    m = mask_ref[0]          # 1.0 valid / 0.0 invalid

    def median_at(ref, lvl, th, tw):
        return ref[b, lvl * d0 * d0 + th * d0 + tw]     # scalar SMEM read

    # ---- slice the fine (d0 x d0) tiles once; reused by both passes ----
    tiles = {}
    cnt = {}
    for th in range(d0):
        for tw in range(d0):
            ts = t[th * Hf:(th + 1) * Hf, tw * Wf:(tw + 1) * Wf]
            ps = p[th * Hf:(th + 1) * Hf, tw * Wf:(tw + 1) * Wf]
            ms = m[th * Hf:(th + 1) * Hf, tw * Wf:(tw + 1) * Wf]
            tiles[(th, tw)] = (ts, ps, ms)
            cnt[(th, tw)] = jnp.sum(ms)

    # ---- pass 1 (VMEM resident): per-fine-tile |x - median| sums per level ----
    sdiff_t = {}
    sdiff_p = {}
    for th in range(d0):
        for tw in range(d0):
            ts, ps, ms = tiles[(th, tw)]
            for lvl in range(num_levels):
                mt = median_at(med_t_ref, lvl, th, tw)
                mp = median_at(med_p_ref, lvl, th, tw)
                sdiff_t[(lvl, th, tw)] = jnp.sum(jnp.abs(ts - mt) * ms)
                sdiff_p[(lvl, th, tw)] = jnp.sum(jnp.abs(ps - mp) * ms)

    # ---- per-group scale inverses 1/(s+eps), broadcast back to fine tiles ----
    # (scalar divides here -> the per-pixel work below is a multiply on the VPU)
    inv_s_t = {}
    inv_s_p = {}
    for lvl, d in enumerate(divisions):
        r = d0 // d
        for ch in range(d):
            for cw in range(d):
                fine = [(ch * r + i, cw * r + j) for i in range(r) for j in range(r)]
                c = sum(cnt[k] for k in fine)
                st = sum(sdiff_t[(lvl,) + k] for k in fine)
                sp = sum(sdiff_p[(lvl,) + k] for k in fine)
                valid = c + 1e-10
                ist = 1.0 / (st / valid + 1e-8)
                isp = 1.0 / (sp / valid + 1e-8)
                for k in fine:
                    inv_s_t[(lvl,) + k] = ist
                    inv_s_p[(lvl,) + k] = isp

    # ---- pass 2: masked MAE between spatially-normalized depths ----
    total = jnp.float32(0.0)
    valid_total = jnp.float32(0.0)
    for th in range(d0):
        for tw in range(d0):
            ts, ps, ms = tiles[(th, tw)]
            acc = jnp.zeros_like(ts)       # vector accumulator; one reduce per tile
            for lvl in range(num_levels):
                mt = median_at(med_t_ref, lvl, th, tw)
                mp = median_at(med_p_ref, lvl, th, tw)
                gt_trans = (ts - mt) * inv_s_t[(lvl, th, tw)]
                pr_trans = (ps - mp) * inv_s_p[(lvl, th, tw)]
                acc = acc + jnp.abs(gt_trans - pr_trans)
            total = total + jnp.sum(acc * ms)     # mask applied once per tile
            valid_total = valid_total + cnt[(th, tw)]

    num_ref[...] = jnp.reshape(total, (1, 1, 1))
    cnt_ref[...] = jnp.reshape(valid_total, (1, 1, 1))


# ---------------------------------------------------------------------------
# Wrapper glue
# ---------------------------------------------------------------------------
def _masked_lower_median_per_tile(x, mask_bool, d):
    """torch.nanmedian-style (lower) median of x over each (H/d x W/d) tile,
    restricted to mask; 0 where the tile has no valid pixel.  (B,H,W)->(B,d,d)."""
    B, H, W = x.shape
    Ht, Wt = H // d, W // d
    xt = jnp.transpose(x.reshape(B, d, Ht, d, Wt), (0, 1, 3, 2, 4)).reshape(B, d, d, Ht * Wt)
    mt = jnp.transpose(mask_bool.reshape(B, d, Ht, d, Wt), (0, 1, 3, 2, 4)).reshape(B, d, d, Ht * Wt)
    xs = jnp.sort(jnp.where(mt, xt, jnp.inf), axis=-1)
    n = jnp.sum(mt, axis=-1)
    idx = jnp.maximum(n - 1, 0) // 2            # lower median (torch convention)
    med = jnp.take_along_axis(xs, idx[..., None], axis=-1)[..., 0]
    return jnp.where(n > 0, med, 0.0)


def hdsn_loss(prediction, target, mask, grid_levels=3, loss_weight=1.0):
    """prediction/target: (B, 1, H, W); mask: (B, 1, H, W) or (B, H, W)."""
    B, C, H, W = target.shape
    assert C == 1, "HDSNLoss expects single-channel depth (C == 1)"
    num_levels = grid_levels
    d0 = 2 ** (num_levels - 1)                                   # finest tile grid
    divisions = [2 ** (num_levels - 1 - i) for i in range(num_levels)]   # e.g. [4,2,1]
    # TODO(synk): PyTorch uses int() flooring for ragged H/W tile borders; here we
    # require exact divisibility instead.
    assert H % d0 == 0 and W % d0 == 0, "H and W must be divisible by 2**(grid-1)"

    pred = jnp.reshape(prediction, (B, H, W)).astype(jnp.float32)   # free reshape
    targ = jnp.reshape(target, (B, H, W)).astype(jnp.float32)
    mask_b = jnp.reshape(mask, (B, H, W)).astype(bool)
    mask_f = mask_b.astype(jnp.float32)

    # --- masked per-tile medians (needs a sort -> plain JAX glue) ---
    # TODO(synk): no sort/selection primitive in Pallas TPU; the median stays in XLA.
    med_t_lv, med_p_lv = [], []
    for d in divisions:
        r = d0 // d
        mt = _masked_lower_median_per_tile(targ, mask_b, d)
        mp = _masked_lower_median_per_tile(pred, mask_b, d)
        med_t_lv.append(jnp.repeat(jnp.repeat(mt, r, axis=1), r, axis=2))
        med_p_lv.append(jnp.repeat(jnp.repeat(mp, r, axis=1), r, axis=2))
    med_t = jnp.stack(med_t_lv, axis=1).reshape(B, num_levels * d0 * d0)
    med_p = jnp.stack(med_p_lv, axis=1).reshape(B, num_levels * d0 * d0)

    kernel = functools.partial(_hdsn_kernel, d0=d0, divisions=tuple(divisions))

    img_spec = pl.BlockSpec((1, H, W), lambda b: (b, 0, 0))
    smem_spec = pl.BlockSpec(memory_space=pltpu.MemorySpace.SMEM)
    out_spec = pl.BlockSpec((1, 1, 1), lambda b: (b, 0, 0))

    num, cnt = pl.pallas_call(
        kernel,
        out_shape=(jax.ShapeDtypeStruct((B, 1, 1), jnp.float32),
                   jax.ShapeDtypeStruct((B, 1, 1), jnp.float32)),
        grid=(B,),
        in_specs=[smem_spec, smem_spec, img_spec, img_spec, img_spec],
        out_specs=(out_spec, out_spec),
        compiler_params=pltpu.CompilerParams(
            dimension_semantics=("parallel",),     # batch images are independent
            vmem_limit_bytes=64 * 1024 * 1024),    # headroom for large H*W images
    )(med_t, med_p, pred, targ, mask_f)

    # denominator == sum over all hierarchy masks == grid_levels * sum(mask)
    denom = num_levels * jnp.sum(cnt) + 1e-8
    loss = jnp.sum(num) / denom
    return loss * loss_weight


# ---------------------------------------------------------------------------
# Pure-JAX reference mirroring the PyTorch module
# ---------------------------------------------------------------------------
def _ssi_mae_ref(prediction, target, mask_valid):
    Bh, C, H, W = target.shape
    mvf = mask_valid.astype(jnp.float32)
    valid_pixs = mvf.reshape(Bh, C, -1).sum(axis=2)[:, :, None, None] + 1e-10

    def lower_median(x):
        xs = jnp.sort(jnp.where(mask_valid, x, jnp.inf).reshape(Bh, C, -1), axis=-1)
        n = mask_valid.reshape(Bh, C, -1).sum(axis=-1)
        idx = jnp.maximum(n - 1, 0) // 2
        med = jnp.take_along_axis(xs, idx[..., None], axis=-1)[..., 0]
        return jnp.where(n > 0, med, 0.0)[:, :, None, None]

    gt_med = lower_median(target)
    gt_s = (jnp.abs(target - gt_med) * mvf).reshape(Bh, C, -1).sum(axis=2)[:, :, None, None] / valid_pixs
    gt_trans = (target - gt_med) / (gt_s + 1e-8)

    pr_med = lower_median(prediction)
    pr_s = (jnp.abs(prediction - pr_med) * mvf).reshape(Bh, C, -1).sum(axis=2)[:, :, None, None] / valid_pixs
    pr_trans = (prediction - pr_med) / (pr_s + 1e-8)

    return jnp.sum(jnp.abs(gt_trans - pr_trans) * mvf) / (jnp.sum(mvf) + 1e-8)


def hdsn_loss_ref(prediction, target, mask, grid_levels=3, loss_weight=1.0):
    B, C, H, W = target.shape
    mask_b = jnp.reshape(mask, (B, 1, H, W)).astype(bool)
    anchors = [(1.0 / 2.0) ** i for i in range(grid_levels)]
    anchors.reverse()
    group_masks = []
    for a in anchors:
        n = int(1.0 / a)
        for h in range(n):
            for w in range(n):
                region = jnp.zeros((B, 1, H, W), dtype=bool)
                region = region.at[:, :,
                                   int(h * a * H):int((h + 1) * a * H),
                                   int(w * a * W):int((w + 1) * a * W)].set(True)
                group_masks.append(mask_b & region)
    G = len(group_masks)
    hm = jnp.stack(group_masks, axis=0).reshape(-1, C, H, W)
    pred_h = jnp.broadcast_to(prediction[None], (G,) + prediction.shape).reshape(-1, C, H, W)
    targ_h = jnp.broadcast_to(target[None], (G,) + target.shape).reshape(-1, C, H, W)
    loss = _ssi_mae_ref(pred_h, targ_h, hm)
    return loss * loss_weight


if __name__ == "__main__":
    key = jax.random.PRNGKey(0)
    k1, k2, k3 = jax.random.split(key, 3)

    B, C, H, W = 2, 1, 16, 16
    pred = jax.random.uniform(k1, (B, C, H, W), jnp.float32, minval=0.5, maxval=5.0)
    targ = jax.random.uniform(k2, (B, C, H, W), jnp.float32, minval=0.5, maxval=5.0)
    mask = jax.random.uniform(k3, (B, C, H, W)) > 0.3

    loss_fn = jax.jit(hdsn_loss)
    loss = jax.block_until_ready(loss_fn(pred, targ, mask))
    ref = jax.block_until_ready(hdsn_loss_ref(pred, targ, mask))

    assert jnp.allclose(loss, ref, rtol=1e-4, atol=1e-5), (loss, ref)
    print("KERNEL_OK")
</pallas_src>

<mosaic_0001>
module attributes {stable_mosaic.version = 11 : i64} {
  func.func @_hdsn_kernel(%arg0: i32, %arg1: memref<2x48xf32, #tpu.memory_space<smem>>, %arg2: memref<2x48xf32, #tpu.memory_space<smem>>, %arg3: memref<1x16x16xf32, #tpu.memory_space<vmem>>, %arg4: memref<1x16x16xf32, #tpu.memory_space<vmem>>, %arg5: memref<1x16x16xf32, #tpu.memory_space<vmem>>, %arg6: memref<1x1x1xf32, #tpu.memory_space<vmem>>, %arg7: memref<1x1x1xf32, #tpu.memory_space<vmem>>) attributes {dimension_semantics = [#tpu.dimension_semantics<parallel>], iteration_bounds = array<i64: 2>, scalar_prefetch = 0 : i64, scratch_operands = 0 : i64, tpu.core_type = #tpu.core_type<tc>, window_params = [{transform_indices = @transform_0, window_bounds = array<i64: 2, 48>}, {transform_indices = @transform_1, window_bounds = array<i64: 2, 48>}, {transform_indices = @transform_2, window_bounds = array<i64: 1, 16, 16>}, {transform_indices = @transform_3, window_bounds = array<i64: 1, 16, 16>}, {transform_indices = @transform_4, window_bounds = array<i64: 1, 16, 16>}, {transform_indices = @transform_5, window_bounds = array<i64: 1, 1, 1>}, {transform_indices = @transform_6, window_bounds = array<i64: 1, 1, 1>}]} {
    %c0 = arith.constant 0 : index
    %c0_0 = arith.constant 0 : index
    %c0_1 = arith.constant 0 : index
    %0 = vector.load %arg3[%c0, %c0_0, %c0_1] : memref<1x16x16xf32, #tpu.memory_space<vmem>>, vector<1x16x16xf32>
    %1 = vector.shape_cast %0 : vector<1x16x16xf32> to vector<16x16xf32>
    %c0_2 = arith.constant 0 : index
    %c0_3 = arith.constant 0 : index
    %c0_4 = arith.constant 0 : index
    %2 = vector.load %arg4[%c0_2, %c0_3, %c0_4] : memref<1x16x16xf32, #tpu.memory_space<vmem>>, vector<1x16x16xf32>
    %3 = vector.shape_cast %2 : vector<1x16x16xf32> to vector<16x16xf32>
    %c0_5 = arith.constant 0 : index
    %c0_6 = arith.constant 0 : index
    %c0_7 = arith.constant 0 : index
    %4 = vector.load %arg5[%c0_5, %c0_6, %c0_7] : memref<1x16x16xf32, #tpu.memory_space<vmem>>, vector<1x16x16xf32>
    %5 = vector.shape_cast %4 : vector<1x16x16xf32> to vector<16x16xf32>
    %6 = vector.extract_strided_slice %3 {offsets = [0, 0], sizes = [4, 4], strides = [1, 1]} : vector<16x16xf32> to vector<4x4xf32>
    %7 = vector.extract_strided_slice %1 {offsets = [0, 0], sizes = [4, 4], strides = [1, 1]} : vector<16x16xf32> to vector<4x4xf32>
    %8 = vector.extract_strided_slice %5 {offsets = [0, 0], sizes = [4, 4], strides = [1, 1]} : vector<16x16xf32> to vector<4x4xf32>
    %9 = vector.shape_cast %8 : vector<4x4xf32> to vector<1x4x4xf32>
    %cst = arith.constant dense<0.000000e+00> : vector<1xf32>
    %10 = vector.multi_reduction <add>, %9, %cst [1, 2] : vector<1x4x4xf32> to vector<1xf32>
    %11 = vector.shape_cast %10 : vector<1xf32> to vector<1x1x1xf32>
    %12 = vector.extract %11[0, 0, 0] : f32 from vector<1x1x1xf32>
    %13 = vector.extract_strided_slice %3 {offsets = [0, 4], sizes = [4, 4], strides = [1, 1]} : vector<16x16xf32> to vector<4x4xf32>
    %14 = vector.extract_strided_slice %1 {offsets = [0, 4], sizes = [4, 4], strides = [1, 1]} : vector<16x16xf32> to vector<4x4xf32>
    %15 = vector.extract_strided_slice %5 {offsets = [0, 4], sizes = [4, 4], strides = [1, 1]} : vector<16x16xf32> to vector<4x4xf32>
    %16 = vector.shape_cast %15 : vector<4x4xf32> to vector<1x4x4xf32>
    %cst_8 = arith.constant dense<0.000000e+00> : vector<1xf32>
    %17 = vector.multi_reduction <add>, %16, %cst_8 [1, 2] : vector<1x4x4xf32> to vector<1xf32>
    %18 = vector.shape_cast %17 : vector<1xf32> to vector<1x1x1xf32>
    %19 = vector.extract %18[0, 0, 0] : f32 from vector<1x1x1xf32>
    %20 = vector.extract_strided_slice %3 {offsets = [0, 8], sizes = [4, 4], strides = [1, 1]} : vector<16x16xf32> to vector<4x4xf32>
    %21 = vector.extract_strided_slice %1 {offsets = [0, 8], sizes = [4, 4], strides = [1, 1]} : vector<16x16xf32> to vector<4x4xf32>
    %22 = vector.extract_strided_slice %5 {offsets = [0, 8], sizes = [4, 4], strides = [1, 1]} : vector<16x16xf32> to vector<4x4xf32>
    %23 = vector.shape_cast %22 : vector<4x4xf32> to vector<1x4x4xf32>
    %cst_9 = arith.constant dense<0.000000e+00> : vector<1xf32>
    %24 = vector.multi_reduction <add>, %23, %cst_9 [1, 2] : vector<1x4x4xf32> to vector<1xf32>
    %25 = vector.shape_cast %24 : vector<1xf32> to vector<1x1x1xf32>
    %26 = vector.extract %25[0, 0, 0] : f32 from vector<1x1x1xf32>
    %27 = vector.extract_strided_slice %3 {offsets = [0, 12], sizes = [4, 4], strides = [1, 1]} : vector<16x16xf32> to vector<4x4xf32>
    %28 = vector.extract_strided_slice %1 {offsets = [0, 12], sizes = [4, 4], strides = [1, 1]} : vector<16x16xf32> to vector<4x4xf32>
    %29 = vector.extract_strided_slice %5 {offsets = [0, 12], sizes = [4, 4], strides = [1, 1]} : vector<16x16xf32> to vector<4x4xf32>
    %30 = vector.shape_cast %29 : vector<4x4xf32> to vector<1x4x4xf32>
    %cst_10 = arith.constant dense<0.000000e+00> : vector<1xf32>
    %31 = vector.multi_reduction <add>, %30, %cst_10 [1, 2] : vector<1x4x4xf32> to vector<1xf32>
    %32 = vector.shape_cast %31 : vector<1xf32> to vector<1x1x1xf32>
    %33 = vector.extract %32[0, 0, 0] : f32 from vector<1x1x1xf32>
    %34 = vector.extract_strided_slice %3 {offsets = [4, 0], sizes = [4, 4], strides = [1, 1]} : vector<16x16xf32> to vector<4x4xf32>
    %35 = vector.extract_strided_slice %1 {offsets = [4, 0], sizes = [4, 4], strides = [1, 1]} : vector<16x16xf32> to vector<4x4xf32>
    %36 = vector.extract_strided_slice %5 {offsets = [4, 0], sizes = [4, 4], strides = [1, 1]} : vector<16x16xf32> to vector<4x4xf32>
    %37 = vector.shape_cast %36 : vector<4x4xf32> to vector<1x4x4xf32>
    %cst_11 = arith.constant dense<0.000000e+00> : vector<1xf32>
    %38 = vector.multi_reduction <add>, %37, %cst_11 [1, 2] : vector<1x4x4xf32> to vector<1xf32>
    %39 = vector.shape_cast %38 : vector<1xf32> to vector<1x1x1xf32>
    %40 = vector.extract %39[0, 0, 0] : f32 from vector<1x1x1xf32>
    %41 = vector.extract_strided_slice %3 {offsets = [4, 4], sizes = [4, 4], strides = [1, 1]} : vector<16x16xf32> to vector<4x4xf32>
    %42 = vector.extract_strided_slice %1 {offsets = [4, 4], sizes = [4, 4], strides = [1, 1]} : vector<16x16xf32> to vector<4x4xf32>
    %43 = vector.extract_strided_slice %5 {offsets = [4, 4], sizes = [4, 4], strides = [1, 1]} : vector<16x16xf32> to vector<4x4xf32>
    %44 = vector.shape_cast %43 : vector<4x4xf32> to vector<1x4x4xf32>
    %cst_12 = arith.constant dense<0.000000e+00> : vector<1xf32>
    %45 = vector.multi_reduction <add>, %44, %cst_12 [1, 2] : vector<1x4x4xf32> to vector<1xf32>
    %46 = vector.shape_cast %45 : vector<1xf32> to vector<1x1x1xf32>
    %47 = vector.extract %46[0, 0, 0] : f32 from vector<1x1x1xf32>
    %48 = vector.extract_strided_slice %3 {offsets = [4, 8], sizes = [4, 4], strides = [1, 1]} : vector<16x16xf32> to vector<4x4xf32>
    %49 = vector.extract_strided_slice %1 {offsets = [4, 8], sizes = [4, 4], strides = [1, 1]} : vector<16x16xf32> to vector<4x4xf32>
    %50 = vector.extract_strided_slice %5 {offsets = [4, 8], sizes = [4, 4], strides = [1, 1]} : vector<16x16xf32> to vector<4x4xf32>
    %51 = vector.shape_cast %50 : vector<4x4xf32> to vector<1x4x4xf32>
    %cst_13 = arith.constant dense<0.000000e+00> : vector<1xf32>
    %52 = vector.multi_reduction <add>, %51, %cst_13 [1, 2] : vector<1x4x4xf32> to vector<1xf32>
    %53 = vector.shape_cast %52 : vector<1xf32> to vector<1x1x1xf32>
    %54 = vector.extract %53[0, 0, 0] : f32 from vector<1x1x1xf32>
    %55 = vector.extract_strided_slice %3 {offsets = [4, 12], sizes = [4, 4], strides = [1, 1]} : vector<16x16xf32> to vector<4x4xf32>
    %56 = vector.extract_strided_slice %1 {offsets = [4, 12], sizes = [4, 4], strides = [1, 1]} : vector<16x16xf32> to vector<4x4xf32>
    %57 = vector.extract_strided_slice %5 {offsets = [4, 12], sizes = [4, 4], strides = [1, 1]} : vector<16x16xf32> to vector<4x4xf32>
    %58 = vector.shape_cast %57 : vector<4x4xf32> to vector<1x4x4xf32>
    %cst_14 = arith.constant dense<0.000000e+00> : vector<1xf32>
    %59 = vector.multi_reduction <add>, %58, %cst_14 [1, 2] : vector<1x4x4xf32> to vector<1xf32>
    %60 = vector.shape_cast %59 : vector<1xf32> to vector<1x1x1xf32>
    %61 = vector.extract %60[0, 0, 0] : f32 from vector<1x1x1xf32>
    %62 = vector.extract_strided_slice %3 {offsets = [8, 0], sizes = [4, 4], strides = [1, 1]} : vector<16x16xf32> to vector<4x4xf32>
    %63 = vector.extract_strided_slice %1 {offsets = [8, 0], sizes = [4, 4], strides = [1, 1]} : vector<16x16xf32> to vector<4x4xf32>
    %64 = vector.extract_strided_slice %5 {offsets = [8, 0], sizes = [4, 4], strides = [1, 1]} : vector<16x16xf32> to vector<4x4xf32>
    %65 = vector.shape_cast %64 : vector<4x4xf32> to vector<1x4x4xf32>
    %cst_15 = arith.constant dense<0.000000e+00> : vector<1xf32>
    %66 = vector.multi_reduction <add>, %65, %cst_15 [1, 2] : vector<1x4x4xf32> to vector<1xf32>
    %67 = vector.shape_cast %66 : vector<1xf32> to vector<1x1x1xf32>
    %68 = vector.extract %67[0, 0, 0] : f32 from vector<1x1x1xf32>
    %69 = vector.extract_strided_slice %3 {offsets = [8, 4], sizes = [4, 4], strides = [1, 1]} : vector<16x16xf32> to vector<4x4xf32>
    %70 = vector.extract_strided_slice %1 {offsets = [8, 4], sizes = [4, 4], strides = [1, 1]} : vector<16x16xf32> to vector<4x4xf32>
    %71 = vector.extract_strided_slice %5 {offsets = [8, 4], sizes = [4, 4], strides = [1, 1]} : vector<16x16xf32> to vector<4x4xf32>
    %72 = vector.shape_cast %71 : vector<4x4xf32> to vector<1x4x4xf32>
    %cst_16 = arith.constant dense<0.000000e+00> : vector<1xf32>
    %73 = vector.multi_reduction <add>, %72, %cst_16 [1, 2] : vector<1x4x4xf32> to vector<1xf32>
    %74 = vector.shape_cast %73 : vector<1xf32> to vector<1x1x1xf32>
    %75 = vector.extract %74[0, 0, 0] : f32 from vector<1x1x1xf32>
    %76 = vector.extract_strided_slice %3 {offsets = [8, 8], sizes = [4, 4], strides = [1, 1]} : vector<16x16xf32> to vector<4x4xf32>
    %77 = vector.extract_strided_slice %1 {offsets = [8, 8], sizes = [4, 4], strides = [1, 1]} : vector<16x16xf32> to vector<4x4xf32>
    %78 = vector.extract_strided_slice %5 {offsets = [8, 8], sizes = [4, 4], strides = [1, 1]} : vector<16x16xf32> to vector<4x4xf32>
    %79 = vector.shape_cast %78 : vector<4x4xf32> to vector<1x4x4xf32>
    %cst_17 = arith.constant dense<0.000000e+00> : vector<1xf32>
    %80 = vector.multi_reduction <add>, %79, %cst_17 [1, 2] : vector<1x4x4xf32> to vector<1xf32>
    %81 = vector.shape_cast %80 : vector<1xf32> to vector<1x1x1xf32>
    %82 = vector.extract %81[0, 0, 0] : f32 from vector<1x1x1xf32>
    %83 = vector.extract_strided_slice %3 {offsets = [8, 12], sizes = [4, 4], strides = [1, 1]} : vector<16x16xf32> to vector<4x4xf32>
    %84 = vector.extract_strided_slice %1 {offsets = [8, 12], sizes = [4, 4], strides = [1, 1]} : vector<16x16xf32> to vector<4x4xf32>
    %85 = vector.extract_strided_slice %5 {offsets = [8, 12], sizes = [4, 4], strides = [1, 1]} : vector<16x16xf32> to vector<4x4xf32>
    %86 = vector.shape_cast %85 : vector<4x4xf32> to vector<1x4x4xf32>
    %cst_18 = arith.constant dense<0.000000e+00> : vector<1xf32>
    %87 = vector.multi_reduction <add>, %86, %cst_18 [1, 2] : vector<1x4x4xf32> to vector<1xf32>
    %88 = vector.shape_cast %87 : vector<1xf32> to vector<1x1x1xf32>
    %89 = vector.extract %88[0, 0, 0] : f32 from vector<1x1x1xf32>
    %90 = vector.extract_strided_slice %3 {offsets = [12, 0], sizes = [4, 4], strides = [1, 1]} : vector<16x16xf32> to vector<4x4xf32>
    %91 = vector.extract_strided_slice %1 {offsets = [12, 0], sizes = [4, 4], strides = [1, 1]} : vector<16x16xf32> to vector<4x4xf32>
    %92 = vector.extract_strided_slice %5 {offsets = [12, 0], sizes = [4, 4], strides = [1, 1]} : vector<16x16xf32> to vector<4x4xf32>
    %93 = vector.shape_cast %92 : vector<4x4xf32> to vector<1x4x4xf32>
    %cst_19 = arith.constant dense<0.000000e+00> : vector<1xf32>
    %94 = vector.multi_reduction <add>, %93, %cst_19 [1, 2] : vector<1x4x4xf32> to vector<1xf32>
    %95 = vector.shape_cast %94 : vector<1xf32> to vector<1x1x1xf32>
    %96 = vector.extract %95[0, 0, 0] : f32 from vector<1x1x1xf32>
    %97 = vector.extract_strided_slice %3 {offsets = [12, 4], sizes = [4, 4], strides = [1, 1]} : vector<16x16xf32> to vector<4x4xf32>
    %98 = vector.extract_strided_slice %1 {offsets = [12, 4], sizes = [4, 4], strides = [1, 1]} : vector<16x16xf32> to vector<4x4xf32>
    %99 = vector.extract_strided_slice %5 {offsets = [12, 4], sizes = [4, 4], strides = [1, 1]} : vector<16x16xf32> to vector<4x4xf32>
    %100 = vector.shape_cast %99 : vector<4x4xf32> to vector<1x4x4xf32>
    %cst_20 = arith.constant dense<0.000000e+00> : vector<1xf32>
    %101 = vector.multi_reduction <add>, %100, %cst_20 [1, 2] : vector<1x4x4xf32> to vector<1xf32>
    %102 = vector.shape_cast %101 : vector<1xf32> to vector<1x1x1xf32>
    %103 = vector.extract %102[0, 0, 0] : f32 from vector<1x1x1xf32>
    %104 = vector.extract_strided_slice %3 {offsets = [12, 8], sizes = [4, 4], strides = [1, 1]} : vector<16x16xf32> to vector<4x4xf32>
    %105 = vector.extract_strided_slice %1 {offsets = [12, 8], sizes = [4, 4], strides = [1, 1]} : vector<16x16xf32> to vector<4x4xf32>
    %106 = vector.extract_strided_slice %5 {offsets = [12, 8], sizes = [4, 4], strides = [1, 1]} : vector<16x16xf32> to vector<4x4xf32>
    %107 = vector.shape_cast %106 : vector<4x4xf32> to vector<1x4x4xf32>
    %cst_21 = arith.constant dense<0.000000e+00> : vector<1xf32>
    %108 = vector.multi_reduction <add>, %107, %cst_21 [1, 2] : vector<1x4x4xf32> to vector<1xf32>
    %109 = vector.shape_cast %108 : vector<1xf32> to vector<1x1x1xf32>
    %110 = vector.extract %109[0, 0, 0] : f32 from vector<1x1x1xf32>
    %111 = vector.extract_strided_slice %3 {offsets = [12, 12], sizes = [4, 4], strides = [1, 1]} : vector<16x16xf32> to vector<4x4xf32>
    %112 = vector.extract_strided_slice %1 {offsets = [12, 12], sizes = [4, 4], strides = [1, 1]} : vector<16x16xf32> to vector<4x4xf32>
    %113 = vector.extract_strided_slice %5 {offsets = [12, 12], sizes = [4, 4], strides = [1, 1]} : vector<16x16xf32> to vector<4x4xf32>
    %114 = vector.shape_cast %113 : vector<4x4xf32> to vector<1x4x4xf32>
    %cst_22 = arith.constant dense<0.000000e+00> : vector<1xf32>
    %115 = vector.multi_reduction <add>, %114, %cst_22 [1, 2] : vector<1x4x4xf32> to vector<1xf32>
    %116 = vector.shape_cast %115 : vector<1xf32> to vector<1x1x1xf32>
    %117 = vector.extract %116[0, 0, 0] : f32 from vector<1x1x1xf32>
    %118 = arith.index_cast %arg0 : i32 to index
    %c0_23 = arith.constant 0 : index
    %119 = memref.load %arg1[%118, %c0_23] : memref<2x48xf32, #tpu.memory_space<smem>>
    %120 = arith.index_cast %arg0 : i32 to index
    %c0_24 = arith.constant 0 : index
    %121 = memref.load %arg2[%120, %c0_24] : memref<2x48xf32, #tpu.memory_space<smem>>
    %122 = vector.broadcast %119 : f32 to vector<4x4xf32>
    %123 = arith.subf %6, %122 : vector<4x4xf32>
    %124 = math.absf %123 : vector<4x4xf32>
    %125 = arith.mulf %124, %8 : vector<4x4xf32>
    %126 = vector.shape_cast %125 : vector<4x4xf32> to vector<1x4x4xf32>
    %cst_25 = arith.constant dense<0.000000e+00> : vector<1xf32>
    %127 = vector.multi_reduction <add>, %126, %cst_25 [1, 2] : vector<1x4x4xf32> to vector<1xf32>
    %128 = vector.shape_cast %127 : vector<1xf32> to vector<1x1x1xf32>
    %129 = vector.extract %128[0, 0, 0] : f32 from vector<1x1x1xf32>
    %130 = vector.broadcast %121 : f32 to vector<4x4xf32>
    %131 = arith.subf %7, %130 : vector<4x4xf32>
    %132 = math.absf %131 : vector<4x4xf32>
    %133 = arith.mulf %132, %8 : vector<4x4xf32>
    %134 = vector.shape_cast %133 : vector<4x4xf32> to vector<1x4x4xf32>
    %cst_26 = arith.constant dense<0.000000e+00> : vector<1xf32>
    %135 = vector.multi_reduction <add>, %134, %cst_26 [1, 2] : vector<1x4x4xf32> to vector<1xf32>
    %136 = vector.shape_cast %135 : vector<1xf32> to vector<1x1x1xf32>
    %137 = vector.extract %136[0, 0, 0] : f32 from vector<1x1x1xf32>
    %138 = arith.index_cast %arg0 : i32 to index
    %c16 = arith.constant 16 : index
    %139 = memref.load %arg1[%138, %c16] : memref<2x48xf32, #tpu.memory_space<smem>>
    %140 = arith.index_cast %arg0 : i32 to index
    %c16_27 = arith.constant 16 : index
    %141 = memref.load %arg2[%140, %c16_27] : memref<2x48xf32, #tpu.memory_space<smem>>
    %142 = vector.broadcast %139 : f32 to vector<4x4xf32>
    %143 = arith.subf %6, %142 : vector<4x4xf32>
    %144 = math.absf %143 : vector<4x4xf32>
    %145 = arith.mulf %144, %8 : vector<4x4xf32>
    %146 = vector.shape_cast %145 : vector<4x4xf32> to vector<1x4x4xf32>
    %cst_28 = arith.constant dense<0.000000e+00> : vector<1xf32>
    %147 = vector.multi_reduction <add>, %146, %cst_28 [1, 2] : vector<1x4x4xf32> to vector<1xf32>
    %148 = vector.shape_cast %147 : vector<1xf32> to vector<1x1x1xf32>
    %149 = vector.extract %148[0, 0, 0] : f32 from vector<1x1x1xf32>
    %150 = vector.broadcast %141 : f32 to vector<4x4xf32>
    %151 = arith.subf %7, %150 : vector<4x4xf32>
    %152 = math.absf %151 : vector<4x4xf32>
    %153 = arith.mulf %152, %8 : vector<4x4xf32>
    %154 = vector.shape_cast %153 : vector<4x4xf32> to vector<1x4x4xf32>
    %cst_29 = arith.constant dense<0.000000e+00> : vector<1xf32>
    %155 = vector.multi_reduction <add>, %154, %cst_29 [1, 2] : vector<1x4x4xf32> to vector<1xf32>
    %156 = vector.shape_cast %155 : vector<1xf32> to vector<1x1x1xf32>
    %157 = vector.extract %156[0, 0, 0] : f32 from vector<1x1x1xf32>
    %158 = arith.index_cast %arg0 : i32 to index
    %c32 = arith.constant 32 : index
    %159 = memref.load %arg1[%158, %c32] : memref<2x48xf32, #tpu.memory_space<smem>>
    %160 = arith.index_cast %arg0 : i32 to index
    %c32_30 = arith.constant 32 : index
    %161 = memref.load %arg2[%160, %c32_30] : memref<2x48xf32, #tpu.memory_space<smem>>
    %162 = vector.broadcast %159 : f32 to vector<4x4xf32>
    %163 = arith.subf %6, %162 : vector<4x4xf32>
    %164 = math.absf %163 : vector<4x4xf32>
    %165 = arith.mulf %164, %8 : vector<4x4xf32>
    %166 = vector.shape_cast %165 : vector<4x4xf32> to vector<1x4x4xf32>
    %cst_31 = arith.constant dense<0.000000e+00> : vector<1xf32>
    %167 = vector.multi_reduction <add>, %166, %cst_31 [1, 2] : vector<1x4x4xf32> to vector<1xf32>
    %168 = vector.shape_cast %167 : vector<1xf32> to vector<1x1x1xf32>
    %169 = vector.extract %168[0, 0, 0] : f32 from vector<1x1x1xf32>
    %170 = vector.broadcast %161 : f32 to vector<4x4xf32>
    %171 = arith.subf %7, %170 : vector<4x4xf32>
    %172 = math.absf %171 : vector<4x4xf32>
    %173 = arith.mulf %172, %8 : vector<4x4xf32>
    %174 = vector.shape_cast %173 : vector<4x4xf32> to vector<1x4x4xf32>
    %cst_32 = arith.constant dense<0.000000e+00> : vector<1xf32>
    %175 = vector.multi_reduction <add>, %174, %cst_32 [1, 2] : vector<1x4x4xf32> to vector<1xf32>
    %176 = vector.shape_cast %175 : vector<1xf32> to vector<1x1x1xf32>
    %177 = vector.extract %176[0, 0, 0] : f32 from vector<1x1x1xf32>
    %178 = arith.index_cast %arg0 : i32 to index
    %c1 = arith.constant 1 : index
    %179 = memref.load %arg1[%178, %c1] : memref<2x48xf32, #tpu.memory_space<smem>>
    %180 = arith.index_cast %arg0 : i32 to index
    %c1_33 = arith.constant 1 : index
    %181 = memref.load %arg2[%180, %c1_33] : memref<2x48xf32, #tpu.memory_space<smem>>
    %182 = vector.broadcast %179 : f32 to vector<4x4xf32>
    %183 = arith.subf %13, %182 : vector<4x4xf32>
    %184 = math.absf %183 : vector<4x4xf32>
    %185 = arith.mulf %184, %15 : vector<4x4xf32>
    %186 = vector.shape_cast %185 : vector<4x4xf32> to vector<1x4x4xf32>
    %cst_34 = arith.constant dense<0.000000e+00> : vector<1xf32>
    %187 = vector.multi_reduction <add>, %186, %cst_34 [1, 2] : vector<1x4x4xf32> to vector<1xf32>
    %188 = vector.shape_cast %187 : vector<1xf32> to vector<1x1x1xf32>
    %189 = vector.extract %188[0, 0, 0] : f32 from vector<1x1x1xf32>
    %190 = vector.broadcast %181 : f32 to vector<4x4xf32>
    %191 = arith.subf %14, %190 : vector<4x4xf32>
    %192 = math.absf %191 : vector<4x4xf32>
    %193 = arith.mulf %192, %15 : vector<4x4xf32>
    %194 = vector.shape_cast %193 : vector<4x4xf32> to vector<1x4x4xf32>
    %cst_35 = arith.constant dense<0.000000e+00> : vector<1xf32>
    %195 = vector.multi_reduction <add>, %194, %cst_35 [1, 2] : vector<1x4x4xf32> to vector<1xf32>
    %196 = vector.shape_cast %195 : vector<1xf32> to vector<1x1x1xf32>
    %197 = vector.extract %196[0, 0, 0] : f32 from vector<1x1x1xf32>
    %198 = arith.index_cast %arg0 : i32 to index
    %c17 = arith.constant 17 : index
    %199 = memref.load %arg1[%198, %c17] : memref<2x48xf32, #tpu.memory_space<smem>>
    %200 = arith.index_cast %arg0 : i32 to index
    %c17_36 = arith.constant 17 : index
    %201 = memref.load %arg2[%200, %c17_36] : memref<2x48xf32, #tpu.memory_space<smem>>
    %202 = vector.broadcast %199 : f32 to vector<4x4xf32>
    %203 = arith.subf %13, %202 : vector<4x4xf32>
    %204 = math.absf %203 : vector<4x4xf32>
    %205 = arith.mulf %204, %15 : vector<4x4xf32>
    %206 = vector.shape_cast %205 : vector<4x4xf32> to vector<1x4x4xf32>
    %cst_37 = arith.constant dense<0.000000e+00> : vector<1xf32>
    %207 = vector.multi_reduction <add>, %206, %cst_37 [1, 2] : vector<1x4x4xf32> to vector<1xf32>
    %208 = vector.shape_cast %207 : vector<1xf32> to vector<1x1x1xf32>
    %209 = vector.extract %208[0, 0, 0] : f32 from vector<1x1x1xf32>
    %210 = vector.broadcast %201 : f32 to vector<4x4xf32>
    %211 = arith.subf %14, %210 : vector<4x4xf32>
    %212 = math.absf %211 : vector<4x4xf32>
    %213 = arith.mulf %212, %15 : vector<4x4xf32>
    %214 = vector.shape_cast %213 : vector<4x4xf32> to vector<1x4x4xf32>
    %cst_38 = arith.constant dense<0.000000e+00> : vector<1xf32>
    %215 = vector.multi_reduction <add>, %214, %cst_38 [1, 2] : vector<1x4x4xf32> to vector<1xf32>
    %216 = vector.shape_cast %215 : vector<1xf32> to vector<1x1x1xf32>
    %217 = vector.extract %216[0, 0, 0] : f32 from vector<1x1x1xf32>
    %218 = arith.index_cast %arg0 : i32 to index
    %c33 = arith.constant 33 : index
    %219 = memref.load %arg1[%218, %c33] : memref<2x48xf32, #tpu.memory_space<smem>>
    %220 = arith.index_cast %arg0 : i32 to index
    %c33_39 = arith.constant 33 : index
    %221 = memref.load %arg2[%220, %c33_39] : memref<2x48xf32, #tpu.memory_space<smem>>
    %222 = vector.broadcast %219 : f32 to vector<4x4xf32>
    %223 = arith.subf %13, %222 : vector<4x4xf32>
    %224 = math.absf %223 : vector<4x4xf32>
    %225 = arith.mulf %224, %15 : vector<4x4xf32>
    %226 = vector.shape_cast %225 : vector<4x4xf32> to vector<1x4x4xf32>
    %cst_40 = arith.constant dense<0.000000e+00> : vector<1xf32>
    %227 = vector.multi_reduction <add>, %226, %cst_40 [1, 2] : vector<1x4x4xf32> to vector<1xf32>
    %228 = vector.shape_cast %227 : vector<1xf32> to vector<1x1x1xf32>
    %229 = vector.extract %228[0, 0, 0] : f32 from vector<1x1x1xf32>
    %230 = vector.broadcast %221 : f32 to vector<4x4xf32>
    %231 = arith.subf %14, %230 : vector<4x4xf32>
    %232 = math.absf %231 : vector<4x4xf32>
    %233 = arith.mulf %232, %15 : vector<4x4xf32>
    %234 = vector.shape_cast %233 : vector<4x4xf32> to vector<1x4x4xf32>
    %cst_41 = arith.constant dense<0.000000e+00> : vector<1xf32>
    %235 = vector.multi_reduction <add>, %234, %cst_41 [1, 2] : vector<1x4x4xf32> to vector<1xf32>
    %236 = vector.shape_cast %235 : vector<1xf32> to vector<1x1x1xf32>
    %237 = vector.extract %236[0, 0, 0] : f32 from vector<1x1x1xf32>
    %238 = arith.index_cast %arg0 : i32 to index
    %c2 = arith.constant 2 : index
    %239 = memref.load %arg1[%238, %c2] : memref<2x48xf32, #tpu.memory_space<smem>>
    %240 = arith.index_cast %arg0 : i32 to index
    %c2_42 = arith.constant 2 : index
    %241 = memref.load %arg2[%240, %c2_42] : memref<2x48xf32, #tpu.memory_space<smem>>
    %242 = vector.broadcast %239 : f32 to vector<4x4xf32>
    %243 = arith.subf %20, %242 : vector<4x4xf32>
    %244 = math.absf %243 : vector<4x4xf32>
    %245 = arith.mulf %244, %22 : vector<4x4xf32>
    %246 = vector.shape_cast %245 : vector<4x4xf32> to vector<1x4x4xf32>
    %cst_43 = arith.constant dense<0.000000e+00> : vector<1xf32>
    %247 = vector.multi_reduction <add>, %246, %cst_43 [1, 2] : vector<1x4x4xf32> to vector<1xf32>
    %248 = vector.shape_cast %247 : vector<1xf32> to vector<1x1x1xf32>
    %249 = vector.extract %248[0, 0, 0] : f32 from vector<1x1x1xf32>
    %250 = vector.broadcast %241 : f32 to vector<4x4xf32>
    %251 = arith.subf %21, %250 : vector<4x4xf32>
    %252 = math.absf %251 : vector<4x4xf32>
    %253 = arith.mulf %252, %22 : vector<4x4xf32>
    %254 = vector.shape_cast %253 : vector<4x4xf32> to vector<1x4x4xf32>
    %cst_44 = arith.constant dense<0.000000e+00> : vector<1xf32>
    %255 = vector.multi_reduction <add>, %254, %cst_44 [1, 2] : vector<1x4x4xf32> to vector<1xf32>
    %256 = vector.shape_cast %255 : vector<1xf32> to vector<1x1x1xf32>
    %257 = vector.extract %256[0, 0, 0] : f32 from vector<1x1x1xf32>
    %258 = arith.index_cast %arg0 : i32 to index
    %c18 = arith.constant 18 : index
    %259 = memref.load %arg1[%258, %c18] : memref<2x48xf32, #tpu.memory_space<smem>>
    %260 = arith.index_cast %arg0 : i32 to index
    %c18_45 = arith.constant 18 : index
    %261 = memref.load %arg2[%260, %c18_45] : memref<2x48xf32, #tpu.memory_space<smem>>
    %262 = vector.broadcast %259 : f32 to vector<4x4xf32>
    %263 = arith.subf %20, %262 : vector<4x4xf32>
    %264 = math.absf %263 : vector<4x4xf32>
    %265 = arith.mulf %264, %22 : vector<4x4xf32>
    %266 = vector.shape_cast %265 : vector<4x4xf32> to vector<1x4x4xf32>
    %cst_46 = arith.constant dense<0.000000e+00> : vector<1xf32>
    %267 = vector.multi_reduction <add>, %266, %cst_46 [1, 2] : vector<1x4x4xf32> to vector<1xf32>
    %268 = vector.shape_cast %267 : vector<1xf32> to vector<1x1x1xf32>
    %269 = vector.extract %268[0, 0, 0] : f32 from vector<1x1x1xf32>
    %270 = vector.broadcast %261 : f32 to vector<4x4xf32>
    %271 = arith.subf %21, %270 : vector<4x4xf32>
    %272 = math.absf %271 : vector<4x4xf32>
    %273 = arith.mulf %272, %22 : vector<4x4xf32>
    %274 = vector.shape_cast %273 : vector<4x4xf32> to vector<1x4x4xf32>
    %cst_47 = arith.constant dense<0.000000e+00> : vector<1xf32>
    %275 = vector.multi_reduction <add>, %274, %cst_47 [1, 2] : vector<1x4x4xf32> to vector<1xf32>
    %276 = vector.shape_cast %275 : vector<1xf32> to vector<1x1x1xf32>
    %277 = vector.extract %276[0, 0, 0] : f32 from vector<1x1x1xf32>
    %278 = arith.index_cast %arg0 : i32 to index
    %c34 = arith.constant 34 : index
    %279 = memref.load %arg1[%278, %c34] : memref<2x48xf32, #tpu.memory_space<smem>>
    %280 = arith.index_cast %arg0 : i32 to index
    %c34_48 = arith.constant 34 : index
    %281 = memref.load %arg2[%280, %c34_48] : memref<2x48xf32, #tpu.memory_space<smem>>
    %282 = vector.broadcast %279 : f32 to vector<4x4xf32>
    %283 = arith.subf %20, %282 : vector<4x4xf32>
    %284 = math.absf %283 : vector<4x4xf32>
    %285 = arith.mulf %284, %22 : vector<4x4xf32>
    %286 = vector.shape_cast %285 : vector<4x4xf32> to vector<1x4x4xf32>
    %cst_49 = arith.constant dense<0.000000e+00> : vector<1xf32>
    %287 = vector.multi_reduction <add>, %286, %cst_49 [1, 2] : vector<1x4x4xf32> to vector<1xf32>
    %288 = vector.shape_cast %287 : vector<1xf32> to vector<1x1x1xf32>
    %289 = vector.extract %288[0, 0, 0] : f32 from vector<1x1x1xf32>
    %290 = vector.broadcast %281 : f32 to vector<4x4xf32>
    %291 = arith.subf %21, %290 : vector<4x4xf32>
    %292 = math.absf %291 : vector<4x4xf32>
    %293 = arith.mulf %292, %22 : vector<4x4xf32>
    %294 = vector.shape_cast %293 : vector<4x4xf32> to vector<1x4x4xf32>
    %cst_50 = arith.constant dense<0.000000e+00> : vector<1xf32>
    %295 = vector.multi_reduction <add>, %294, %cst_50 [1, 2] : vector<1x4x4xf32> to vector<1xf32>
    %296 = vector.shape_cast %295 : vector<1xf32> to vector<1x1x1xf32>
    %297 = vector.extract %296[0, 0, 0] : f32 from vector<1x1x1xf32>
    %298 = arith.index_cast %arg0 : i32 to index
    %c3 = arith.constant 3 : index
    %299 = memref.load %arg1[%298, %c3] : memref<2x48xf32, #tpu.memory_space<smem>>
    %300 = arith.index_cast %arg0 : i32 to index
    %c3_51 = arith.constant 3 : index
    %301 = memref.load %arg2[%300, %c3_51] : memref<2x48xf32, #tpu.memory_space<smem>>
    %302 = vector.broadcast %299 : f32 to vector<4x4xf32>
    %303 = arith.subf %27, %302 : vector<4x4xf32>
    %304 = math.absf %303 : vector<4x4xf32>
    %305 = arith.mulf %304, %29 : vector<4x4xf32>
    %306 = vector.shape_cast %305 : vector<4x4xf32> to vector<1x4x4xf32>
    %cst_52 = arith.constant dense<0.000000e+00> : vector<1xf32>
    %307 = vector.multi_reduction <add>, %306, %cst_52 [1, 2] : vector<1x4x4xf32> to vector<1xf32>
    %308 = vector.shape_cast %307 : vector<1xf32> to vector<1x1x1xf32>
    %309 = vector.extract %308[0, 0, 0] : f32 from vector<1x1x1xf32>
    %310 = vector.broadcast %301 : f32 to vector<4x4xf32>
    %311 = arith.subf %28, %310 : vector<4x4xf32>
    %312 = math.absf %311 : vector<4x4xf32>
    %313 = arith.mulf %312, %29 : vector<4x4xf32>
    %314 = vector.shape_cast %313 : vector<4x4xf32> to vector<1x4x4xf32>
    %cst_53 = arith.constant dense<0.000000e+00> : vector<1xf32>
    %315 = vector.multi_reduction <add>, %314, %cst_53 [1, 2] : vector<1x4x4xf32> to vector<1xf32>
    %316 = vector.shape_cast %315 : vector<1xf32> to vector<1x1x1xf32>
    %317 = vector.extract %316[0, 0, 0] : f32 from vector<1x1x1xf32>
    %318 = arith.index_cast %arg0 : i32 to index
    %c19 = arith.constant 19 : index
    %319 = memref.load %arg1[%318, %c19] : memref<2x48xf32, #tpu.memory_space<smem>>
    %320 = arith.index_cast %arg0 : i32 to index
    %c19_54 = arith.constant 19 : index
    %321 = memref.load %arg2[%320, %c19_54] : memref<2x48xf32, #tpu.memory_space<smem>>
    %322 = vector.broadcast %319 : f32 to vector<4x4xf32>
    %323 = arith.subf %27, %322 : vector<4x4xf32>
    %324 = math.absf %323 : vector<4x4xf32>
    %325 = arith.mulf %324, %29 : vector<4x4xf32>
    %326 = vector.shape_cast %325 : vector<4x4xf32> to vector<1x4x4xf32>
    %cst_55 = arith.constant dense<0.000000e+00> : vector<1xf32>
    %327 = vector.multi_reduction <add>, %326, %cst_55 [1, 2] : vector<1x4x4xf32> to vector<1xf32>
    %328 = vector.shape_cast %327 : vector<1xf32> to vector<1x1x1xf32>
    %329 = vector.extract %328[0, 0, 0] : f32 from vector<1x1x1xf32>
    %330 = vector.broadcast %321 : f32 to vector<4x4xf32>
    %331 = arith.subf %28, %330 : vector<4x4xf32>
    %332 = math.absf %331 : vector<4x4xf32>
    %333 = arith.mulf %332, %29 : vector<4x4xf32>
    %334 = vector.shape_cast %333 : vector<4x4xf32> to vector<1x4x4xf32>
    %cst_56 = arith.constant dense<0.000000e+00> : vector<1xf32>
    %335 = vector.multi_reduction <add>, %334, %cst_56 [1, 2] : vector<1x4x4xf32> to vector<1xf32>
    %336 = vector.shape_cast %335 : vector<1xf32> to vector<1x1x1xf32>
    %337 = vector.extract %336[0, 0, 0] : f32 from vector<1x1x1xf32>
    %338 = arith.index_cast %arg0 : i32 to index
    %c35 = arith.constant 35 : index
    %339 = memref.load %arg1[%338, %c35] : memref<2x48xf32, #tpu.memory_space<smem>>
    %340 = arith.index_cast %arg0 : i32 to index
    %c35_57 = arith.constant 35 : index
    %341 = memref.load %arg2[%340, %c35_57] : memref<2x48xf32, #tpu.memory_space<smem>>
    %342 = vector.broadcast %339 : f32 to vector<4x4xf32>
    %343 = arith.subf %27, %342 : vector<4x4xf32>
    %344 = math.absf %343 : vector<4x4xf32>
    %345 = arith.mulf %344, %29 : vector<4x4xf32>
    %346 = vector.shape_cast %345 : vector<4x4xf32> to vector<1x4x4xf32>
    %cst_58 = arith.constant dense<0.000000e+00> : vector<1xf32>
    %347 = vector.multi_reduction <add>, %346, %cst_58 [1, 2] : vector<1x4x4xf32> to vector<1xf32>
    %348 = vector.shape_cast %347 : vector<1xf32> to vector<1x1x1xf32>
    %349 = vector.extract %348[0, 0, 0] : f32 from vector<1x1x1xf32>
    %350 = vector.broadcast %341 : f32 to vector<4x4xf32>
    %351 = arith.subf %28, %350 : vector<4x4xf32>
    %352 = math.absf %351 : vector<4x4xf32>
    %353 = arith.mulf %352, %29 : vector<4x4xf32>
    %354 = vector.shape_cast %353 : vector<4x4xf32> to vector<1x4x4xf32>
    %cst_59 = arith.constant dense<0.000000e+00> : vector<1xf32>
    %355 = vector.multi_reduction <add>, %354, %cst_59 [1, 2] : vector<1x4x4xf32> to vector<1xf32>
    %356 = vector.shape_cast %355 : vector<1xf32> to vector<1x1x1xf32>
    %357 = vector.extract %356[0, 0, 0] : f32 from vector<1x1x1xf32>
    %358 = arith.index_cast %arg0 : i32 to index
    %c4 = arith.constant 4 : index
    %359 = memref.load %arg1[%358, %c4] : memref<2x48xf32, #tpu.memory_space<smem>>
    %360 = arith.index_cast %arg0 : i32 to index
    %c4_60 = arith.constant 4 : index
    %361 = memref.load %arg2[%360, %c4_60] : memref<2x48xf32, #tpu.memory_space<smem>>
    %362 = vector.broadcast %359 : f32 to vector<4x4xf32>
    %363 = arith.subf %34, %362 : vector<4x4xf32>
    %364 = math.absf %363 : vector<4x4xf32>
    %365 = arith.mulf %364, %36 : vector<4x4xf32>
    %366 = vector.shape_cast %365 : vector<4x4xf32> to vector<1x4x4xf32>
    %cst_61 = arith.constant dense<0.000000e+00> : vector<1xf32>
    %367 = vector.multi_reduction <add>, %366, %cst_61 [1, 2] : vector<1x4x4xf32> to vector<1xf32>
    %368 = vector.shape_cast %367 : vector<1xf32> to vector<1x1x1xf32>
    %369 = vector.extract %368[0, 0, 0] : f32 from vector<1x1x1xf32>
    %370 = vector.broadcast %361 : f32 to vector<4x4xf32>
    %371 = arith.subf %35, %370 : vector<4x4xf32>
    %372 = math.absf %371 : vector<4x4xf32>
    %373 = arith.mulf %372, %36 : vector<4x4xf32>
    %374 = vector.shape_cast %373 : vector<4x4xf32> to vector<1x4x4xf32>
    %cst_62 = arith.constant dense<0.000000e+00> : vector<1xf32>
    %375 = vector.multi_reduction <add>, %374, %cst_62 [1, 2] : vector<1x4x4xf32> to vector<1xf32>
    %376 = vector.shape_cast %375 : vector<1xf32> to vector<1x1x1xf32>
    %377 = vector.extract %376[0, 0, 0] : f32 from vector<1x1x1xf32>
    %378 = arith.index_cast %arg0 : i32 to index
    %c20 = arith.constant 20 : index
    %379 = memref.load %arg1[%378, %c20] : memref<2x48xf32, #tpu.memory_space<smem>>
    %380 = arith.index_cast %arg0 : i32 to index
    %c20_63 = arith.constant 20 : index
    %381 = memref.load %arg2[%380, %c20_63] : memref<2x48xf32, #tpu.memory_space<smem>>
    %382 = vector.broadcast %379 : f32 to vector<4x4xf32>
    %383 = arith.subf %34, %382 : vector<4x4xf32>
    %384 = math.absf %383 : vector<4x4xf32>
    %385 = arith.mulf %384, %36 : vector<4x4xf32>
    %386 = vector.shape_cast %385 : vector<4x4xf32> to vector<1x4x4xf32>
    %cst_64 = arith.constant dense<0.000000e+00> : vector<1xf32>
    %387 = vector.multi_reduction <add>, %386, %cst_64 [1, 2] : vector<1x4x4xf32> to vector<1xf32>
    %388 = vector.shape_cast %387 : vector<1xf32> to vector<1x1x1xf32>
    %389 = vector.extract %388[0, 0, 0] : f32 from vector<1x1x1xf32>
    %390 = vector.broadcast %381 : f32 to vector<4x4xf32>
    %391 = arith.subf %35, %390 : vector<4x4xf32>
    %392 = math.absf %391 : vector<4x4xf32>
    %393 = arith.mulf %392, %36 : vector<4x4xf32>
    %394 = vector.shape_cast %393 : vector<4x4xf32> to vector<1x4x4xf32>
    %cst_65 = arith.constant dense<0.000000e+00> : vector<1xf32>
    %395 = vector.multi_reduction <add>, %394, %cst_65 [1, 2] : vector<1x4x4xf32> to vector<1xf32>
    %396 = vector.shape_cast %395 : vector<1xf32> to vector<1x1x1xf32>
    %397 = vector.extract %396[0, 0, 0] : f32 from vector<1x1x1xf32>
    %398 = arith.index_cast %arg0 : i32 to index
    %c36 = arith.constant 36 : index
    %399 = memref.load %arg1[%398, %c36] : memref<2x48xf32, #tpu.memory_space<smem>>
    %400 = arith.index_cast %arg0 : i32 to index
    %c36_66 = arith.constant 36 : index
    %401 = memref.load %arg2[%400, %c36_66] : memref<2x48xf32, #tpu.memory_space<smem>>
    %402 = vector.broadcast %399 : f32 to vector<4x4xf32>
    %403 = arith.subf %34, %402 : vector<4x4xf32>
    %404 = math.absf %403 : vector<4x4xf32>
    %405 = arith.mulf %404, %36 : vector<4x4xf32>
    %406 = vector.shape_cast %405 : vector<4x4xf32> to vector<1x4x4xf32>
    %cst_67 = arith.constant dense<0.000000e+00> : vector<1xf32>
    %407 = vector.multi_reduction <add>, %406, %cst_67 [1, 2] : vector<1x4x4xf32> to vector<1xf32>
    %408 = vector.shape_cast %407 : vector<1xf32> to vector<1x1x1xf32>
    %409 = vector.extract %408[0, 0, 0] : f32 from vector<1x1x1xf32>
    %410 = vector.broadcast %401 : f32 to vector<4x4xf32>
    %411 = arith.subf %35, %410 : vector<4x4xf32>
    %412 = math.absf %411 : vector<4x4xf32>
    %413 = arith.mulf %412, %36 : vector<4x4xf32>
    %414 = vector.shape_cast %413 : vector<4x4xf32> to vector<1x4x4xf32>
    %cst_68 = arith.constant dense<0.000000e+00> : vector<1xf32>
    %415 = vector.multi_reduction <add>, %414, %cst_68 [1, 2] : vector<1x4x4xf32> to vector<1xf32>
    %416 = vector.shape_cast %415 : vector<1xf32> to vector<1x1x1xf32>
    %417 = vector.extract %416[0, 0, 0] : f32 from vector<1x1x1xf32>
    %418 = arith.index_cast %arg0 : i32 to index
    %c5 = arith.constant 5 : index
    %419 = memref.load %arg1[%418, %c5] : memref<2x48xf32, #tpu.memory_space<smem>>
    %420 = arith.index_cast %arg0 : i32 to index
    %c5_69 = arith.constant 5 : index
    %421 = memref.load %arg2[%420, %c5_69] : memref<2x48xf32, #tpu.memory_space<smem>>
    %422 = vector.broadcast %419 : f32 to vector<4x4xf32>
    %423 = arith.subf %41, %422 : vector<4x4xf32>
    %424 = math.absf %423 : vector<4x4xf32>
    %425 = arith.mulf %424, %43 : vector<4x4xf32>
    %426 = vector.shape_cast %425 : vector<4x4xf32> to vector<1x4x4xf32>
    %cst_70 = arith.constant dense<0.000000e+00> : vector<1xf32>
    %427 = vector.multi_reduction <add>, %426, %cst_70 [1, 2] : vector<1x4x4xf32> to vector<1xf32>
    %428 = vector.shape_cast %427 : vector<1xf32> to vector<1x1x1xf32>
    %429 = vector.extract %428[0, 0, 0] : f32 from vector<1x1x1xf32>
    %430 = vector.broadcast %421 : f32 to vector<4x4xf32>
    %431 = arith.subf %42, %430 : vector<4x4xf32>
    %432 = math.absf %431 : vector<4x4xf32>
    %433 = arith.mulf %432, %43 : vector<4x4xf32>
    %434 = vector.shape_cast %433 : vector<4x4xf32> to vector<1x4x4xf32>
    %cst_71 = arith.constant dense<0.000000e+00> : vector<1xf32>
    %435 = vector.multi_reduction <add>, %434, %cst_71 [1, 2] : vector<1x4x4xf32> to vector<1xf32>
    %436 = vector.shape_cast %435 : vector<1xf32> to vector<1x1x1xf32>
    %437 = vector.extract %436[0, 0, 0] : f32 from vector<1x1x1xf32>
    %438 = arith.index_cast %arg0 : i32 to index
    %c21 = arith.constant 21 : index
    %439 = memref.load %arg1[%438, %c21] : memref<2x48xf32, #tpu.memory_space<smem>>
    %440 = arith.index_cast %arg0 : i32 to index
    %c21_72 = arith.constant 21 : index
    %441 = memref.load %arg2[%440, %c21_72] : memref<2x48xf32, #tpu.memory_space<smem>>
    %442 = vector.broadcast %439 : f32 to vector<4x4xf32>
    %443 = arith.subf %41, %442 : vector<4x4xf32>
    %444 = math.absf %443 : vector<4x4xf32>
    %445 = arith.mulf %444, %43 : vector<4x4xf32>
    %446 = vector.shape_cast %445 : vector<4x4xf32> to vector<1x4x4xf32>
    %cst_73 = arith.constant dense<0.000000e+00> : vector<1xf32>
    %447 = vector.multi_reduction <add>, %446, %cst_73 [1, 2] : vector<1x4x4xf32> to vector<1xf32>
    %448 = vector.shape_cast %447 : vector<1xf32> to vector<1x1x1xf32>
    %449 = vector.extract %448[0, 0, 0] : f32 from vector<1x1x1xf32>
    %450 = vector.broadcast %441 : f32 to vector<4x4xf32>
    %451 = arith.subf %42, %450 : vector<4x4xf32>
    %452 = math.absf %451 : vector<4x4xf32>
    %453 = arith.mulf %452, %43 : vector<4x4xf32>
    %454 = vector.shape_cast %453 : vector<4x4xf32> to vector<1x4x4xf32>
    %cst_74 = arith.constant dense<0.000000e+00> : vector<1xf32>
    %455 = vector.multi_reduction <add>, %454, %cst_74 [1, 2] : vector<1x4x4xf32> to vector<1xf32>
    %456 = vector.shape_cast %455 : vector<1xf32> to vector<1x1x1xf32>
    %457 = vector.extract %456[0, 0, 0] : f32 from vector<1x1x1xf32>
    %458 = arith.index_cast %arg0 : i32 to index
    %c37 = arith.constant 37 : index
    %459 = memref.load %arg1[%458, %c37] : memref<2x48xf32, #tpu.memory_space<smem>>
    %460 = arith.index_cast %arg0 : i32 to index
    %c37_75 = arith.constant 37 : index
    %461 = memref.load %arg2[%460, %c37_75] : memref<2x48xf32, #tpu.memory_space<smem>>
    %462 = vector.broadcast %459 : f32 to vector<4x4xf32>
    %463 = arith.subf %41, %462 : vector<4x4xf32>
    %464 = math.absf %463 : vector<4x4xf32>
    %465 = arith.mulf %464, %43 : vector<4x4xf32>
    %466 = vector.shape_cast %465 : vector<4x4xf32> to vector<1x4x4xf32>
    %cst_76 = arith.constant dense<0.000000e+00> : vector<1xf32>
    %467 = vector.multi_reduction <add>, %466, %cst_76 [1, 2] : vector<1x4x4xf32> to vector<1xf32>
    %468 = vector.shape_cast %467 : vector<1xf32> to vector<1x1x1xf32>
    %469 = vector.extract %468[0, 0, 0] : f32 from vector<1x1x1xf32>
    %470 = vector.broadcast %461 : f32 to vector<4x4xf32>
    %471 = arith.subf %42, %470 : vector<4x4xf32>
    %472 = math.absf %471 : vector<4x4xf32>
    %473 = arith.mulf %472, %43 : vector<4x4xf32>
    %474 = vector.shape_cast %473 : vector<4x4xf32> to vector<1x4x4xf32>
    %cst_77 = arith.constant dense<0.000000e+00> : vector<1xf32>
    %475 = vector.multi_reduction <add>, %474, %cst_77 [1, 2] : vector<1x4x4xf32> to vector<1xf32>
    %476 = vector.shape_cast %475 : vector<1xf32> to vector<1x1x1xf32>
    %477 = vector.extract %476[0, 0, 0] : f32 from vector<1x1x1xf32>
    %478 = arith.index_cast %arg0 : i32 to index
    %c6 = arith.constant 6 : index
    %479 = memref.load %arg1[%478, %c6] : memref<2x48xf32, #tpu.memory_space<smem>>
    %480 = arith.index_cast %arg0 : i32 to index
    %c6_78 = arith.constant 6 : index
    %481 = memref.load %arg2[%480, %c6_78] : memref<2x48xf32, #tpu.memory_space<smem>>
    %482 = vector.broadcast %479 : f32 to vector<4x4xf32>
    %483 = arith.subf %48, %482 : vector<4x4xf32>
    %484 = math.absf %483 : vector<4x4xf32>
    %485 = arith.mulf %484, %50 : vector<4x4xf32>
    %486 = vector.shape_cast %485 : vector<4x4xf32> to vector<1x4x4xf32>
    %cst_79 = arith.constant dense<0.000000e+00> : vector<1xf32>
    %487 = vector.multi_reduction <add>, %486, %cst_79 [1, 2] : vector<1x4x4xf32> to vector<1xf32>
    %488 = vector.shape_cast %487 : vector<1xf32> to vector<1x1x1xf32>
    %489 = vector.extract %488[0, 0, 0] : f32 from vector<1x1x1xf32>
    %490 = vector.broadcast %481 : f32 to vector<4x4xf32>
    %491 = arith.subf %49, %490 : vector<4x4xf32>
    %492 = math.absf %491 : vector<4x4xf32>
    %493 = arith.mulf %492, %50 : vector<4x4xf32>
    %494 = vector.shape_cast %493 : vector<4x4xf32> to vector<1x4x4xf32>
    %cst_80 = arith.constant dense<0.000000e+00> : vector<1xf32>
    %495 = vector.multi_reduction <add>, %494, %cst_80 [1, 2] : vector<1x4x4xf32> to vector<1xf32>
    %496 = vector.shape_cast %495 : vector<1xf32> to vector<1x1x1xf32>
    %497 = vector.extract %496[0, 0, 0] : f32 from vector<1x1x1xf32>
    %498 = arith.index_cast %arg0 : i32 to index
    %c22 = arith.constant 22 : index
    %499 = memref.load %arg1[%498, %c22] : memref<2x48xf32, #tpu.memory_space<smem>>
    %500 = arith.index_cast %arg0 : i32 to index
    %c22_81 = arith.constant 22 : index
    %501 = memref.load %arg2[%500, %c22_81] : memref<2x48xf32, #tpu.memory_space<smem>>
    %502 = vector.broadcast %499 : f32 to vector<4x4xf32>
    %503 = arith.subf %48, %502 : vector<4x4xf32>
    %504 = math.absf %503 : vector<4x4xf32>
    %505 = arith.mulf %504, %50 : vector<4x4xf32>
    %506 = vector.shape_cast %505 : vector<4x4xf32> to vector<1x4x4xf32>
    %cst_82 = arith.constant dense<0.000000e+00> : vector<1xf32>
    %507 = vector.multi_reduction <add>, %506, %cst_82 [1, 2] : vector<1x4x4xf32> to vector<1xf32>
    %508 = vector.shape_cast %507 : vector<1xf32> to vector<1x1x1xf32>
    %509 = vector.extract %508[0, 0, 0] : f32 from vector<1x1x1xf32>
    %510 = vector.broadcast %501 : f32 to vector<4x4xf32>
    %511 = arith.subf %49, %510 : vector<4x4xf32>
    %512 = math.absf %511 : vector<4x4xf32>
    %513 = arith.mulf %512, %50 : vector<4x4xf32>
    %514 = vector.shape_cast %513 : vector<4x4xf32> to vector<1x4x4xf32>
    %cst_83 = arith.constant dense<0.000000e+00> : vector<1xf32>
    %515 = vector.multi_reduction <add>, %514, %cst_83 [1, 2] : vector<1x4x4xf32> to vector<1xf32>
    %516 = vector.shape_cast %515 : vector<1xf32> to vector<1x1x1xf32>
    %517 = vector.extract %516[0, 0, 0] : f32 from vector<1x1x1xf32>
    %518 = arith.index_cast %arg0 : i32 to index
    %c38 = arith.constant 38 : index
    %519 = memref.load %arg1[%518, %c38] : memref<2x48xf32, #tpu.memory_space<smem>>
    %520 = arith.index_cast %arg0 : i32 to index
    %c38_84 = arith.constant 38 : index
    %521 = memref.load %arg2[%520, %c38_84] : memref<2x48xf32, #tpu.memory_space<smem>>
    %522 = vector.broadcast %519 : f32 to vector<4x4xf32>
    %523 = arith.subf %48, %522 : vector<4x4xf32>
    %524 = math.absf %523 : vector<4x4xf32>
    %525 = arith.mulf %524, %50 : vector<4x4xf32>
    %526 = vector.shape_cast %525 : vector<4x4xf32> to vector<1x4x4xf32>
    %cst_85 = arith.constant dense<0.000000e+00> : vector<1xf32>
    %527 = vector.multi_reduction <add>, %526, %cst_85 [1, 2] : vector<1x4x4xf32> to vector<1xf32>
    %528 = vector.shape_cast %527 : vector<1xf32> to vector<1x1x1xf32>
    %529 = vector.extract %528[0, 0, 0] : f32 from vector<1x1x1xf32>
    %530 = vector.broadcast %521 : f32 to vector<4x4xf32>
    %531 = arith.subf %49, %530 : vector<4x4xf32>
    %532 = math.absf %531 : vector<4x4xf32>
    %533 = arith.mulf %532, %50 : vector<4x4xf32>
    %534 = vector.shape_cast %533 : vector<4x4xf32> to vector<1x4x4xf32>
    %cst_86 = arith.constant dense<0.000000e+00> : vector<1xf32>
    %535 = vector.multi_reduction <add>, %534, %cst_86 [1, 2] : vector<1x4x4xf32> to vector<1xf32>
    %536 = vector.shape_cast %535 : vector<1xf32> to vector<1x1x1xf32>
    %537 = vector.extract %536[0, 0, 0] : f32 from vector<1x1x1xf32>
    %538 = arith.index_cast %arg0 : i32 to index
    %c7 = arith.constant 7 : index
    %539 = memref.load %arg1[%538, %c7] : memref<2x48xf32, #tpu.memory_space<smem>>
    %540 = arith.index_cast %arg0 : i32 to index
    %c7_87 = arith.constant 7 : index
    %541 = memref.load %arg2[%540, %c7_87] : memref<2x48xf32, #tpu.memory_space<smem>>
    %542 = vector.broadcast %539 : f32 to vector<4x4xf32>
    %543 = arith.subf %55, %542 : vector<4x4xf32>
    %544 = math.absf %543 : vector<4x4xf32>
    %545 = arith.mulf %544, %57 : vector<4x4xf32>
    %546 = vector.shape_cast %545 : vector<4x4xf32> to vector<1x4x4xf32>
    %cst_88 = arith.constant dense<0.000000e+00> : vector<1xf32>
    %547 = vector.multi_reduction <add>, %546, %cst_88 [1, 2] : vector<1x4x4xf32> to vector<1xf32>
    %548 = vector.shape_cast %547 : vector<1xf32> to vector<1x1x1xf32>
    %549 = vector.extract %548[0, 0, 0] : f32 from vector<1x1x1xf32>
    %550 = vector.broadcast %541 : f32 to vector<4x4xf32>
    %551 = arith.subf %56, %550 : vector<4x4xf32>
    %552 = math.absf %551 : vector<4x4xf32>
    %553 = arith.mulf %552, %57 : vector<4x4xf32>
    %554 = vector.shape_cast %553 : vector<4x4xf32> to vector<1x4x4xf32>
    %cst_89 = arith.constant dense<0.000000e+00> : vector<1xf32>
    %555 = vector.multi_reduction <add>, %554, %cst_89 [1, 2] : vector<1x4x4xf32> to vector<1xf32>
    %556 = vector.shape_cast %555 : vector<1xf32> to vector<1x1x1xf32>
    %557 = vector.extract %556[0, 0, 0] : f32 from vector<1x1x1xf32>
    %558 = arith.index_cast %arg0 : i32 to index
    %c23 = arith.constant 23 : index
    %559 = memref.load %arg1[%558, %c23] : memref<2x48xf32, #tpu.memory_space<smem>>
    %560 = arith.index_cast %arg0 : i32 to index
    %c23_90 = arith.constant 23 : index
    %561 = memref.load %arg2[%560, %c23_90] : memref<2x48xf32, #tpu.memory_space<smem>>
    %562 = vector.broadcast %559 : f32 to vector<4x4xf32>
    %563 = arith.subf %55, %562 : vector<4x4xf32>
    %564 = math.absf %563 : vector<4x4xf32>
    %565 = arith.mulf %564, %57 : vector<4x4xf32>
    %566 = vector.shape_cast %565 : vector<4x4xf32> to vector<1x4x4xf32>
    %cst_91 = arith.constant dense<0.000000e+00> : vector<1xf32>
    %567 = vector.multi_reduction <add>, %566, %cst_91 [1, 2] : vector<1x4x4xf32> to vector<1xf32>
    %568 = vector.shape_cast %567 : vector<1xf32> to vector<1x1x1xf32>
    %569 = vector.extract %568[0, 0, 0] : f32 from vector<1x1x1xf32>
    %570 = vector.broadcast %561 : f32 to vector<4x4xf32>
    %571 = arith.subf %56, %570 : vector<4x4xf32>
    %572 = math.absf %571 : vector<4x4xf32>
    %573 = arith.mulf %572, %57 : vector<4x4xf32>
    %574 = vector.shape_cast %573 : vector<4x4xf32> to vector<1x4x4xf32>
    %cst_92 = arith.constant dense<0.000000e+00> : vector<1xf32>
    %575 = vector.multi_reduction <add>, %574, %cst_92 [1, 2] : vector<1x4x4xf32> to vector<1xf32>
    %576 = vector.shape_cast %575 : vector<1xf32> to vector<1x1x1xf32>
    %577 = vector.extract %576[0, 0, 0] : f32 from vector<1x1x1xf32>
    %578 = arith.index_cast %arg0 : i32 to index
    %c39 = arith.constant 39 : index
    %579 = memref.load %arg1[%578, %c39] : memref<2x48xf32, #tpu.memory_space<smem>>
    %580 = arith.index_cast %arg0 : i32 to index
    %c39_93 = arith.constant 39 : index
    %581 = memref.load %arg2[%580, %c39_93] : memref<2x48xf32, #tpu.memory_space<smem>>
    %582 = vector.broadcast %579 : f32 to vector<4x4xf32>
    %583 = arith.subf %55, %582 : vector<4x4xf32>
    %584 = math.absf %583 : vector<4x4xf32>
    %585 = arith.mulf %584, %57 : vector<4x4xf32>
    %586 = vector.shape_cast %585 : vector<4x4xf32> to vector<1x4x4xf32>
    %cst_94 = arith.constant dense<0.000000e+00> : vector<1xf32>
    %587 = vector.multi_reduction <add>, %586, %cst_94 [1, 2] : vector<1x4x4xf32> to vector<1xf32>
    %588 = vector.shape_cast %587 : vector<1xf32> to vector<1x1x1xf32>
    %589 = vector.extract %588[0, 0, 0] : f32 from vector<1x1x1xf32>
    %590 = vector.broadcast %581 : f32 to vector<4x4xf32>
    %591 = arith.subf %56, %590 : vector<4x4xf32>
    %592 = math.absf %591 : vector<4x4xf32>
    %593 = arith.mulf %592, %57 : vector<4x4xf32>
    %594 = vector.shape_cast %593 : vector<4x4xf32> to vector<1x4x4xf32>
    %cst_95 = arith.constant dense<0.000000e+00> : vector<1xf32>
    %595 = vector.multi_reduction <add>, %594, %cst_95 [1, 2] : vector<1x4x4xf32> to vector<1xf32>
    %596 = vector.shape_cast %595 : vector<1xf32> to vector<1x1x1xf32>
    %597 = vector.extract %596[0, 0, 0] : f32 from vector<1x1x1xf32>
    %598 = arith.index_cast %arg0 : i32 to index
    %c8 = arith.constant 8 : index
    %599 = memref.load %arg1[%598, %c8] : memref<2x48xf32, #tpu.memory_space<smem>>
    %600 = arith.index_cast %arg0 : i32 to index
    %c8_96 = arith.constant 8 : index
    %601 = memref.load %arg2[%600, %c8_96] : memref<2x48xf32, #tpu.memory_space<smem>>
    %602 = vector.broadcast %599 : f32 to vector<4x4xf32>
    %603 = arith.subf %62, %602 : vector<4x4xf32>
    %604 = math.absf %603 : vector<4x4xf32>
    %605 = arith.mulf %604, %64 : vector<4x4xf32>
    %606 = vector.shape_cast %605 : vector<4x4xf32> to vector<1x4x4xf32>
    %cst_97 = arith.constant dense<0.000000e+00> : vector<1xf32>
    %607 = vector.multi_reduction <add>, %606, %cst_97 [1, 2] : vector<1x4x4xf32> to vector<1xf32>
    %608 = vector.shape_cast %607 : vector<1xf32> to vector<1x1x1xf32>
    %609 = vector.extract %608[0, 0, 0] : f32 from vector<1x1x1xf32>
    %610 = vector.broadcast %601 : f32 to vector<4x4xf32>
    %611 = arith.subf %63, %610 : vector<4x4xf32>
    %612 = math.absf %611 : vector<4x4xf32>
    %613 = arith.mulf %612, %64 : vector<4x4xf32>
    %614 = vector.shape_cast %613 : vector<4x4xf32> to vector<1x4x4xf32>
    %cst_98 = arith.constant dense<0.000000e+00> : vector<1xf32>
    %615 = vector.multi_reduction <add>, %614, %cst_98 [1, 2] : vector<1x4x4xf32> to vector<1xf32>
    %616 = vector.shape_cast %615 : vector<1xf32> to vector<1x1x1xf32>
    %617 = vector.extract %616[0, 0, 0] : f32 from vector<1x1x1xf32>
    %618 = arith.index_cast %arg0 : i32 to index
    %c24 = arith.constant 24 : index
    %619 = memref.load %arg1[%618, %c24] : memref<2x48xf32, #tpu.memory_space<smem>>
    %620 = arith.index_cast %arg0 : i32 to index
    %c24_99 = arith.constant 24 : index
    %621 = memref.load %arg2[%620, %c24_99] : memref<2x48xf32, #tpu.memory_space<smem>>
    %622 = vector.broadcast %619 : f32 to vector<4x4xf32>
    %623 = arith.subf %62, %622 : vector<4x4xf32>
    %624 = math.absf %623 : vector<4x4xf32>
    %625 = arith.mulf %624, %64 : vector<4x4xf32>
    %626 = vector.shape_cast %625 : vector<4x4xf32> to vector<1x4x4xf32>
    %cst_100 = arith.constant dense<0.000000e+00> : vector<1xf32>
    %627 = vector.multi_reduction <add>, %626, %cst_100 [1, 2] : vector<1x4x4xf32> to vector<1xf32>
    %628 = vector.shape_cast %627 : vector<1xf32> to vector<1x1x1xf32>
    %629 = vector.extract %628[0, 0, 0] : f32 from vector<1x1x1xf32>
    %630 = vector.broadcast %621 : f32 to vector<4x4xf32>
    %631 = arith.subf %63, %630 : vector<4x4xf32>
    %632 = math.absf %631 : vector<4x4xf32>
    %633 = arith.mulf %632, %64 : vector<4x4xf32>
    %634 = vector.shape_cast %633 : vector<4x4xf32> to vector<1x4x4xf32>
    %cst_101 = arith.constant dense<0.000000e+00> : vector<1xf32>
    %635 = vector.multi_reduction <add>, %634, %cst_101 [1, 2] : vector<1x4x4xf32> to vector<1xf32>
    %636 = vector.shape_cast %635 : vector<1xf32> to vector<1x1x1xf32>
    %637 = vector.extract %636[0, 0, 0] : f32 from vector<1x1x1xf32>
    %638 = arith.index_cast %arg0 : i32 to index
    %c40 = arith.constant 40 : index
    %639 = memref.load %arg1[%638, %c40] : memref<2x48xf32, #tpu.memory_space<smem>>
    %640 = arith.index_cast %arg0 : i32 to index
    %c40_102 = arith.constant 40 : index
    %641 = memref.load %arg2[%640, %c40_102] : memref<2x48xf32, #tpu.memory_space<smem>>
    %642 = vector.broadcast %639 : f32 to vector<4x4xf32>
    %643 = arith.subf %62, %642 : vector<4x4xf32>
    %644 = math.absf %643 : vector<4x4xf32>
    %645 = arith.mulf %644, %64 : vector<4x4xf32>
    %646 = vector.shape_cast %645 : vector<4x4xf32> to vector<1x4x4xf32>
    %cst_103 = arith.constant dense<0.000000e+00> : vector<1xf32>
    %647 = vector.multi_reduction <add>, %646, %cst_103 [1, 2] : vector<1x4x4xf32> to vector<1xf32>
    %648 = vector.shape_cast %647 : vector<1xf32> to vector<1x1x1xf32>
    %649 = vector.extract %648[0, 0, 0] : f32 from vector<1x1x1xf32>
    %650 = vector.broadcast %641 : f32 to vector<4x4xf32>
    %651 = arith.subf %63, %650 : vector<4x4xf32>
    %652 = math.absf %651 : vector<4x4xf32>
    %653 = arith.mulf %652, %64 : vector<4x4xf32>
    %654 = vector.shape_cast %653 : vector<4x4xf32> to vector<1x4x4xf32>
    %cst_104 = arith.constant dense<0.000000e+00> : vector<1xf32>
    %655 = vector.multi_reduction <add>, %654, %cst_104 [1, 2] : vector<1x4x4xf32> to vector<1xf32>
    %656 = vector.shape_cast %655 : vector<1xf32> to vector<1x1x1xf32>
    %657 = vector.extract %656[0, 0, 0] : f32 from vector<1x1x1xf32>
    %658 = arith.index_cast %arg0 : i32 to index
    %c9 = arith.constant 9 : index
    %659 = memref.load %arg1[%658, %c9] : memref<2x48xf32, #tpu.memory_space<smem>>
    %660 = arith.index_cast %arg0 : i32 to index
    %c9_105 = arith.constant 9 : index
    %661 = memref.load %arg2[%660, %c9_105] : memref<2x48xf32, #tpu.memory_space<smem>>
    %662 = vector.broadcast %659 : f32 to vector<4x4xf32>
    %663 = arith.subf %69, %662 : vector<4x4xf32>
    %664 = math.absf %663 : vector<4x4xf32>
    %665 = arith.mulf %664, %71 : vector<4x4xf32>
    %666 = vector.shape_cast %665 : vector<4x4xf32> to vector<1x4x4xf32>
    %cst_106 = arith.constant dense<0.000000e+00> : vector<1xf32>
    %667 = vector.multi_reduction <add>, %666, %cst_106 [1, 2] : vector<1x4x4xf32> to vector<1xf32>
    %668 = vector.shape_cast %667 : vector<1xf32> to vector<1x1x1xf32>
    %669 = vector.extract %668[0, 0, 0] : f32 from vector<1x1x1xf32>
    %670 = vector.broadcast %661 : f32 to vector<4x4xf32>
    %671 = arith.subf %70, %670 : vector<4x4xf32>
    %672 = math.absf %671 : vector<4x4xf32>
    %673 = arith.mulf %672, %71 : vector<4x4xf32>
    %674 = vector.shape_cast %673 : vector<4x4xf32> to vector<1x4x4xf32>
    %cst_107 = arith.constant dense<0.000000e+00> : vector<1xf32>
    %675 = vector.multi_reduction <add>, %674, %cst_107 [1, 2] : vector<1x4x4xf32> to vector<1xf32>
    %676 = vector.shape_cast %675 : vector<1xf32> to vector<1x1x1xf32>
    %677 = vector.extract %676[0, 0, 0] : f32 from vector<1x1x1xf32>
    %678 = arith.index_cast %arg0 : i32 to index
    %c25 = arith.constant 25 : index
    %679 = memref.load %arg1[%678, %c25] : memref<2x48xf32, #tpu.memory_space<smem>>
    %680 = arith.index_cast %arg0 : i32 to index
    %c25_108 = arith.constant 25 : index
    %681 = memref.load %arg2[%680, %c25_108] : memref<2x48xf32, #tpu.memory_space<smem>>
    %682 = vector.broadcast %679 : f32 to vector<4x4xf32>
    %683 = arith.subf %69, %682 : vector<4x4xf32>
    %684 = math.absf %683 : vector<4x4xf32>
    %685 = arith.mulf %684, %71 : vector<4x4xf32>
    %686 = vector.shape_cast %685 : vector<4x4xf32> to vector<1x4x4xf32>
    %cst_109 = arith.constant dense<0.000000e+00> : vector<1xf32>
    %687 = vector.multi_reduction <add>, %686, %cst_109 [1, 2] : vector<1x4x4xf32> to vector<1xf32>
    %688 = vector.shape_cast %687 : vector<1xf32> to vector<1x1x1xf32>
    %689 = vector.extract %688[0, 0, 0] : f32 from vector<1x1x1xf32>
    %690 = vector.broadcast %681 : f32 to vector<4x4xf32>
    %691 = arith.subf %70, %690 : vector<4x4xf32>
    %692 = math.absf %691 : vector<4x4xf32>
    %693 = arith.mulf %692, %71 : vector<4x4xf32>
    %694 = vector.shape_cast %693 : vector<4x4xf32> to vector<1x4x4xf32>
    %cst_110 = arith.constant dense<0.000000e+00> : vector<1xf32>
    %695 = vector.multi_reduction <add>, %694, %cst_110 [1, 2] : vector<1x4x4xf32> to vector<1xf32>
    %696 = vector.shape_cast %695 : vector<1xf32> to vector<1x1x1xf32>
    %697 = vector.extract %696[0, 0, 0] : f32 from vector<1x1x1xf32>
    %698 = arith.index_cast %arg0 : i32 to index
    %c41 = arith.constant 41 : index
    %699 = memref.load %arg1[%698, %c41] : memref<2x48xf32, #tpu.memory_space<smem>>
    %700 = arith.index_cast %arg0 : i32 to index
    %c41_111 = arith.constant 41 : index
    %701 = memref.load %arg2[%700, %c41_111] : memref<2x48xf32, #tpu.memory_space<smem>>
    %702 = vector.broadcast %699 : f32 to vector<4x4xf32>
    %703 = arith.subf %69, %702 : vector<4x4xf32>
    %704 = math.absf %703 : vector<4x4xf32>
    %705 = arith.mulf %704, %71 : vector<4x4xf32>
    %706 = vector.shape_cast %705 : vector<4x4xf32> to vector<1x4x4xf32>
    %cst_112 = arith.constant dense<0.000000e+00> : vector<1xf32>
    %707 = vector.multi_reduction <add>, %706, %cst_112 [1, 2] : vector<1x4x4xf32> to vector<1xf32>
    %708 = vector.shape_cast %707 : vector<1xf32> to vector<1x1x1xf32>
    %709 = vector.extract %708[0, 0, 0] : f32 from vector<1x1x1xf32>
    %710 = vector.broadcast %701 : f32 to vector<4x4xf32>
    %711 = arith.subf %70, %710 : vector<4x4xf32>
    %712 = math.absf %711 : vector<4x4xf32>
    %713 = arith.mulf %712, %71 : vector<4x4xf32>
    %714 = vector.shape_cast %713 : vector<4x4xf32> to vector<1x4x4xf32>
    %cst_113 = arith.constant dense<0.000000e+00> : vector<1xf32>
    %715 = vector.multi_reduction <add>, %714, %cst_113 [1, 2] : vector<1x4x4xf32> to vector<1xf32>
    %716 = vector.shape_cast %715 : vector<1xf32> to vector<1x1x1xf32>
    %717 = vector.extract %716[0, 0, 0] : f32 from vector<1x1x1xf32>
    %718 = arith.index_cast %arg0 : i32 to index
    %c10 = arith.constant 10 : index
    %719 = memref.load %arg1[%718, %c10] : memref<2x48xf32, #tpu.memory_space<smem>>
    %720 = arith.index_cast %arg0 : i32 to index
    %c10_114 = arith.constant 10 : index
    %721 = memref.load %arg2[%720, %c10_114] : memref<2x48xf32, #tpu.memory_space<smem>>
    %722 = vector.broadcast %719 : f32 to vector<4x4xf32>
    %723 = arith.subf %76, %722 : vector<4x4xf32>
    %724 = math.absf %723 : vector<4x4xf32>
    %725 = arith.mulf %724, %78 : vector<4x4xf32>
    %726 = vector.shape_cast %725 : vector<4x4xf32> to vector<1x4x4xf32>
    %cst_115 = arith.constant dense<0.000000e+00> : vector<1xf32>
    %727 = vector.multi_reduction <add>, %726, %cst_115 [1, 2] : vector<1x4x4xf32> to vector<1xf32>
    %728 = vector.shape_cast %727 : vector<1xf32> to vector<1x1x1xf32>
    %729 = vector.extract %728[0, 0, 0] : f32 from vector<1x1x1xf32>
    %730 = vector.broadcast %721 : f32 to vector<4x4xf32>
    %731 = arith.subf %77, %730 : vector<4x4xf32>
    %732 = math.absf %731 : vector<4x4xf32>
    %733 = arith.mulf %732, %78 : vector<4x4xf32>
    %734 = vector.shape_cast %733 : vector<4x4xf32> to vector<1x4x4xf32>
    %cst_116 = arith.constant dense<0.000000e+00> : vector<1xf32>
    %735 = vector.multi_reduction <add>, %734, %cst_116 [1, 2] : vector<1x4x4xf32> to vector<1xf32>
    %736 = vector.shape_cast %735 : vector<1xf32> to vector<1x1x1xf32>
    %737 = vector.extract %736[0, 0, 0] : f32 from vector<1x1x1xf32>
    %738 = arith.index_cast %arg0 : i32 to index
    %c26 = arith.constant 26 : index
    %739 = memref.load %arg1[%738, %c26] : memref<2x48xf32, #tpu.memory_space<smem>>
    %740 = arith.index_cast %arg0 : i32 to index
    %c26_117 = arith.constant 26 : index
    %741 = memref.load %arg2[%740, %c26_117] : memref<2x48xf32, #tpu.memory_space<smem>>
    %742 = vector.broadcast %739 : f32 to vector<4x4xf32>
    %743 = arith.subf %76, %742 : vector<4x4xf32>
    %744 = math.absf %743 : vector<4x4xf32>
    %745 = arith.mulf %744, %78 : vector<4x4xf32>
    %746 = vector.shape_cast %745 : vector<4x4xf32> to vector<1x4x4xf32>
    %cst_118 = arith.constant dense<0.000000e+00> : vector<1xf32>
    %747 = vector.multi_reduction <add>, %746, %cst_118 [1, 2] : vector<1x4x4xf32> to vector<1xf32>
    %748 = vector.shape_cast %747 : vector<1xf32> to vector<1x1x1xf32>
    %749 = vector.extract %748[0, 0, 0] : f32 from vector<1x1x1xf32>
    %750 = vector.broadcast %741 : f32 to vector<4x4xf32>
    %751 = arith.subf %77, %750 : vector<4x4xf32>
    %752 = math.absf %751 : vector<4x4xf32>
    %753 = arith.mulf %752, %78 : vector<4x4xf32>
    %754 = vector.shape_cast %753 : vector<4x4xf32> to vector<1x4x4xf32>
    %cst_119 = arith.constant dense<0.000000e+00> : vector<1xf32>
    %755 = vector.multi_reduction <add>, %754, %cst_119 [1, 2] : vector<1x4x4xf32> to vector<1xf32>
    %756 = vector.shape_cast %755 : vector<1xf32> to vector<1x1x1xf32>
    %757 = vector.extract %756[0, 0, 0] : f32 from vector<1x1x1xf32>
    %758 = arith.index_cast %arg0 : i32 to index
    %c42 = arith.constant 42 : index
    %759 = memref.load %arg1[%758, %c42] : memref<2x48xf32, #tpu.memory_space<smem>>
    %760 = arith.index_cast %arg0 : i32 to index
    %c42_120 = arith.constant 42 : index
    %761 = memref.load %arg2[%760, %c42_120] : memref<2x48xf32, #tpu.memory_space<smem>>
    %762 = vector.broadcast %759 : f32 to vector<4x4xf32>
    %763 = arith.subf %76, %762 : vector<4x4xf32>
    %764 = math.absf %763 : vector<4x4xf32>
    %765 = arith.mulf %764, %78 : vector<4x4xf32>
    %766 = vector.shape_cast %765 : vector<4x4xf32> to vector<1x4x4xf32>
    %cst_121 = arith.constant dense<0.000000e+00> : vector<1xf32>
    %767 = vector.multi_reduction <add>, %766, %cst_121 [1, 2] : vector<1x4x4xf32> to vector<1xf32>
    %768 = vector.shape_cast %767 : vector<1xf32> to vector<1x1x1xf32>
    %769 = vector.extract %768[0, 0, 0] : f32 from vector<1x1x1xf32>
    %770 = vector.broadcast %761 : f32 to vector<4x4xf32>
    %771 = arith.subf %77, %770 : vector<4x4xf32>
    %772 = math.absf %771 : vector<4x4xf32>
    %773 = arith.mulf %772, %78 : vector<4x4xf32>
    %774 = vector.shape_cast %773 : vector<4x4xf32> to vector<1x4x4xf32>
    %cst_122 = arith.constant dense<0.000000e+00> : vector<1xf32>
    %775 = vector.multi_reduction <add>, %774, %cst_122 [1, 2] : vector<1x4x4xf32> to vector<1xf32>
    %776 = vector.shape_cast %775 : vector<1xf32> to vector<1x1x1xf32>
    %777 = vector.extract %776[0, 0, 0] : f32 from vector<1x1x1xf32>
    %778 = arith.index_cast %arg0 : i32 to index
    %c11 = arith.constant 11 : index
    %779 = memref.load %arg1[%778, %c11] : memref<2x48xf32, #tpu.memory_space<smem>>
    %780 = arith.index_cast %arg0 : i32 to index
    %c11_123 = arith.constant 11 : index
    %781 = memref.load %arg2[%780, %c11_123] : memref<2x48xf32, #tpu.memory_space<smem>>
    %782 = vector.broadcast %779 : f32 to vector<4x4xf32>
    %783 = arith.subf %83, %782 : vector<4x4xf32>
    %784 = math.absf %783 : vector<4x4xf32>
    %785 = arith.mulf %784, %85 : vector<4x4xf32>
    %786 = vector.shape_cast %785 : vector<4x4xf32> to vector<1x4x4xf32>
    %cst_124 = arith.constant dense<0.000000e+00> : vector<1xf32>
    %787 = vector.multi_reduction <add>, %786, %cst_124 [1, 2] : vector<1x4x4xf32> to vector<1xf32>
    %788 = vector.shape_cast %787 : vector<1xf32> to vector<1x1x1xf32>
    %789 = vector.extract %788[0, 0, 0] : f32 from vector<1x1x1xf32>
    %790 = vector.broadcast %781 : f32 to vector<4x4xf32>
    %791 = arith.subf %84, %790 : vector<4x4xf32>
    %792 = math.absf %791 : vector<4x4xf32>
    %793 = arith.mulf %792, %85 : vector<4x4xf32>
    %794 = vector.shape_cast %793 : vector<4x4xf32> to vector<1x4x4xf32>
    %cst_125 = arith.constant dense<0.000000e+00> : vector<1xf32>
    %795 = vector.multi_reduction <add>, %794, %cst_125 [1, 2] : vector<1x4x4xf32> to vector<1xf32>
    %796 = vector.shape_cast %795 : vector<1xf32> to vector<1x1x1xf32>
    %797 = vector.extract %796[0, 0, 0] : f32 from vector<1x1x1xf32>
    %798 = arith.index_cast %arg0 : i32 to index
    %c27 = arith.constant 27 : index
    %799 = memref.load %arg1[%798, %c27] : memref<2x48xf32, #tpu.memory_space<smem>>
    %800 = arith.index_cast %arg0 : i32 to index
    %c27_126 = arith.constant 27 : index
    %801 = memref.load %arg2[%800, %c27_126] : memref<2x48xf32, #tpu.memory_space<smem>>
    %802 = vector.broadcast %799 : f32 to vector<4x4xf32>
    %803 = arith.subf %83, %802 : vector<4x4xf32>
    %804 = math.absf %803 : vector<4x4xf32>
    %805 = arith.mulf %804, %85 : vector<4x4xf32>
    %806 = vector.shape_cast %805 : vector<4x4xf32> to vector<1x4x4xf32>
    %cst_127 = arith.constant dense<0.000000e+00> : vector<1xf32>
    %807 = vector.multi_reduction <add>, %806, %cst_127 [1, 2] : vector<1x4x4xf32> to vector<1xf32>
    %808 = vector.shape_cast %807 : vector<1xf32> to vector<1x1x1xf32>
    %809 = vector.extract %808[0, 0, 0] : f32 from vector<1x1x1xf32>
    %810 = vector.broadcast %801 : f32 to vector<4x4xf32>
    %811 = arith.subf %84, %810 : vector<4x4xf32>
    %812 = math.absf %811 : vector<4x4xf32>
    %813 = arith.mulf %812, %85 : vector<4x4xf32>
    %814 = vector.shape_cast %813 : vector<4x4xf32> to vector<1x4x4xf32>
    %cst_128 = arith.constant dense<0.000000e+00> : vector<1xf32>
    %815 = vector.multi_reduction <add>, %814, %cst_128 [1, 2] : vector<1x4x4xf32> to vector<1xf32>
    %816 = vector.shape_cast %815 : vector<1xf32> to vector<1x1x1xf32>
    %817 = vector.extract %816[0, 0, 0] : f32 from vector<1x1x1xf32>
    %818 = arith.index_cast %arg0 : i32 to index
    %c43 = arith.constant 43 : index
    %819 = memref.load %arg1[%818, %c43] : memref<2x48xf32, #tpu.memory_space<smem>>
    %820 = arith.index_cast %arg0 : i32 to index
    %c43_129 = arith.constant 43 : index
    %821 = memref.load %arg2[%820, %c43_129] : memref<2x48xf32, #tpu.memory_space<smem>>
    %822 = vector.broadcast %819 : f32 to vector<4x4xf32>
    %823 = arith.subf %83, %822 : vector<4x4xf32>
    %824 = math.absf %823 : vector<4x4xf32>
    %825 = arith.mulf %824, %85 : vector<4x4xf32>
    %826 = vector.shape_cast %825 : vector<4x4xf32> to vector<1x4x4xf32>
    %cst_130 = arith.constant dense<0.000000e+00> : vector<1xf32>
    %827 = vector.multi_reduction <add>, %826, %cst_130 [1, 2] : vector<1x4x4xf32> to vector<1xf32>
    %828 = vector.shape_cast %827 : vector<1xf32> to vector<1x1x1xf32>
    %829 = vector.extract %828[0, 0, 0] : f32 from vector<1x1x1xf32>
    %830 = vector.broadcast %821 : f32 to vector<4x4xf32>
    %831 = arith.subf %84, %830 : vector<4x4xf32>
    %832 = math.absf %831 : vector<4x4xf32>
    %833 = arith.mulf %832, %85 : vector<4x4xf32>
    %834 = vector.shape_cast %833 : vector<4x4xf32> to vector<1x4x4xf32>
    %cst_131 = arith.constant dense<0.000000e+00> : vector<1xf32>
    %835 = vector.multi_reduction <add>, %834, %cst_131 [1, 2] : vector<1x4x4xf32> to vector<1xf32>
    %836 = vector.shape_cast %835 : vector<1xf32> to vector<1x1x1xf32>
    %837 = vector.extract %836[0, 0, 0] : f32 from vector<1x1x1xf32>
    %838 = arith.index_cast %arg0 : i32 to index
    %c12 = arith.constant 12 : index
    %839 = memref.load %arg1[%838, %c12] : memref<2x48xf32, #tpu.memory_space<smem>>
    %840 = arith.index_cast %arg0 : i32 to index
    %c12_132 = arith.constant 12 : index
    %841 = memref.load %arg2[%840, %c12_132] : memref<2x48xf32, #tpu.memory_space<smem>>
    %842 = vector.broadcast %839 : f32 to vector<4x4xf32>
    %843 = arith.subf %90, %842 : vector<4x4xf32>
    %844 = math.absf %843 : vector<4x4xf32>
    %845 = arith.mulf %844, %92 : vector<4x4xf32>
    %846 = vector.shape_cast %845 : vector<4x4xf32> to vector<1x4x4xf32>
    %cst_133 = arith.constant dense<0.000000e+00> : vector<1xf32>
    %847 = vector.multi_reduction <add>, %846, %cst_133 [1, 2] : vector<1x4x4xf32> to vector<1xf32>
    %848 = vector.shape_cast %847 : vector<1xf32> to vector<1x1x1xf32>
    %849 = vector.extract %848[0, 0, 0] : f32 from vector<1x1x1xf32>
    %850 = vector.broadcast %841 : f32 to vector<4x4xf32>
    %851 = arith.subf %91, %850 : vector<4x4xf32>
    %852 = math.absf %851 : vector<4x4xf32>
    %853 = arith.mulf %852, %92 : vector<4x4xf32>
    %854 = vector.shape_cast %853 : vector<4x4xf32> to vector<1x4x4xf32>
    %cst_134 = arith.constant dense<0.000000e+00> : vector<1xf32>
    %855 = vector.multi_reduction <add>, %854, %cst_134 [1, 2] : vector<1x4x4xf32> to vector<1xf32>
    %856 = vector.shape_cast %855 : vector<1xf32> to vector<1x1x1xf32>
    %857 = vector.extract %856[0, 0, 0] : f32 from vector<1x1x1xf32>
    %858 = arith.index_cast %arg0 : i32 to index
    %c28 = arith.constant 28 : index
    %859 = memref.load %arg1[%858, %c28] : memref<2x48xf32, #tpu.memory_space<smem>>
    %860 = arith.index_cast %arg0 : i32 to index
    %c28_135 = arith.constant 28 : index
    %861 = memref.load %arg2[%860, %c28_135] : memref<2x48xf32, #tpu.memory_space<smem>>
    %862 = vector.broadcast %859 : f32 to vector<4x4xf32>
    %863 = arith.subf %90, %862 : vector<4x4xf32>
    %864 = math.absf %863 : vector<4x4xf32>
    %865 = arith.mulf %864, %92 : vector<4x4xf32>
    %866 = vector.shape_cast %865 : vector<4x4xf32> to vector<1x4x4xf32>
    %cst_136 = arith.constant dense<0.000000e+00> : vector<1xf32>
    %867 = vector.multi_reduction <add>, %866, %cst_136 [1, 2] : vector<1x4x4xf32> to vector<1xf32>
    %868 = vector.shape_cast %867 : vector<1xf32> to vector<1x1x1xf32>
    %869 = vector.extract %868[0, 0, 0] : f32 from vector<1x1x1xf32>
    %870 = vector.broadcast %861 : f32 to vector<4x4xf32>
    %871 = arith.subf %91, %870 : vector<4x4xf32>
    %872 = math.absf %871 : vector<4x4xf32>
    %873 = arith.mulf %872, %92 : vector<4x4xf32>
    %874 = vector.shape_cast %873 : vector<4x4xf32> to vector<1x4x4xf32>
    %cst_137 = arith.constant dense<0.000000e+00> : vector<1xf32>
    %875 = vector.multi_reduction <add>, %874, %cst_137 [1, 2] : vector<1x4x4xf32> to vector<1xf32>
    %876 = vector.shape_cast %875 : vector<1xf32> to vector<1x1x1xf32>
    %877 = vector.extract %876[0, 0, 0] : f32 from vector<1x1x1xf32>
    %878 = arith.index_cast %arg0 : i32 to index
    %c44 = arith.constant 44 : index
    %879 = memref.load %arg1[%878, %c44] : memref<2x48xf32, #tpu.memory_space<smem>>
    %880 = arith.index_cast %arg0 : i32 to index
    %c44_138 = arith.constant 44 : index
    %881 = memref.load %arg2[%880, %c44_138] : memref<2x48xf32, #tpu.memory_space<smem>>
    %882 = vector.broadcast %879 : f32 to vector<4x4xf32>
    %883 = arith.subf %90, %882 : vector<4x4xf32>
    %884 = math.absf %883 : vector<4x4xf32>
    %885 = arith.mulf %884, %92 : vector<4x4xf32>
    %886 = vector.shape_cast %885 : vector<4x4xf32> to vector<1x4x4xf32>
    %cst_139 = arith.constant dense<0.000000e+00> : vector<1xf32>
    %887 = vector.multi_reduction <add>, %886, %cst_139 [1, 2] : vector<1x4x4xf32> to vector<1xf32>
    %888 = vector.shape_cast %887 : vector<1xf32> to vector<1x1x1xf32>
    %889 = vector.extract %888[0, 0, 0] : f32 from vector<1x1x1xf32>
    %890 = vector.broadcast %881 : f32 to vector<4x4xf32>
    %891 = arith.subf %91, %890 : vector<4x4xf32>
    %892 = math.absf %891 : vector<4x4xf32>
    %893 = arith.mulf %892, %92 : vector<4x4xf32>
    %894 = vector.shape_cast %893 : vector<4x4xf32> to vector<1x4x4xf32>
    %cst_140 = arith.constant dense<0.000000e+00> : vector<1xf32>
    %895 = vector.multi_reduction <add>, %894, %cst_140 [1, 2] : vector<1x4x4xf32> to vector<1xf32>
    %896 = vector.shape_cast %895 : vector<1xf32> to vector<1x1x1xf32>
    %897 = vector.extract %896[0, 0, 0] : f32 from vector<1x1x1xf32>
    %898 = arith.index_cast %arg0 : i32 to index
    %c13 = arith.constant 13 : index
    %899 = memref.load %arg1[%898, %c13] : memref<2x48xf32, #tpu.memory_space<smem>>
    %900 = arith.index_cast %arg0 : i32 to index
    %c13_141 = arith.constant 13 : index
    %901 = memref.load %arg2[%900, %c13_141] : memref<2x48xf32, #tpu.memory_space<smem>>
    %902 = vector.broadcast %899 : f32 to vector<4x4xf32>
    %903 = arith.subf %97, %902 : vector<4x4xf32>
    %904 = math.absf %903 : vector<4x4xf32>
    %905 = arith.mulf %904, %99 : vector<4x4xf32>
    %906 = vector.shape_cast %905 : vector<4x4xf32> to vector<1x4x4xf32>
    %cst_142 = arith.constant dense<0.000000e+00> : vector<1xf32>
    %907 = vector.multi_reduction <add>, %906, %cst_142 [1, 2] : vector<1x4x4xf32> to vector<1xf32>
    %908 = vector.shape_cast %907 : vector<1xf32> to vector<1x1x1xf32>
    %909 = vector.extract %908[0, 0, 0] : f32 from vector<1x1x1xf32>
    %910 = vector.broadcast %901 : f32 to vector<4x4xf32>
    %911 = arith.subf %98, %910 : vector<4x4xf32>
    %912 = math.absf %911 : vector<4x4xf32>
    %913 = arith.mulf %912, %99 : vector<4x4xf32>
    %914 = vector.shape_cast %913 : vector<4x4xf32> to vector<1x4x4xf32>
    %cst_143 = arith.constant dense<0.000000e+00> : vector<1xf32>
    %915 = vector.multi_reduction <add>, %914, %cst_143 [1, 2] : vector<1x4x4xf32> to vector<1xf32>
    %916 = vector.shape_cast %915 : vector<1xf32> to vector<1x1x1xf32>
    %917 = vector.extract %916[0, 0, 0] : f32 from vector<1x1x1xf32>
    %918 = arith.index_cast %arg0 : i32 to index
    %c29 = arith.constant 29 : index
    %919 = memref.load %arg1[%918, %c29] : memref<2x48xf32, #tpu.memory_space<smem>>
    %920 = arith.index_cast %arg0 : i32 to index
    %c29_144 = arith.constant 29 : index
    %921 = memref.load %arg2[%920, %c29_144] : memref<2x48xf32, #tpu.memory_space<smem>>
    %922 = vector.broadcast %919 : f32 to vector<4x4xf32>
    %923 = arith.subf %97, %922 : vector<4x4xf32>
    %924 = math.absf %923 : vector<4x4xf32>
    %925 = arith.mulf %924, %99 : vector<4x4xf32>
    %926 = vector.shape_cast %925 : vector<4x4xf32> to vector<1x4x4xf32>
    %cst_145 = arith.constant dense<0.000000e+00> : vector<1xf32>
    %927 = vector.multi_reduction <add>, %926, %cst_145 [1, 2] : vector<1x4x4xf32> to vector<1xf32>
    %928 = vector.shape_cast %927 : vector<1xf32> to vector<1x1x1xf32>
    %929 = vector.extract %928[0, 0, 0] : f32 from vector<1x1x1xf32>
    %930 = vector.broadcast %921 : f32 to vector<4x4xf32>
    %931 = arith.subf %98, %930 : vector<4x4xf32>
    %932 = math.absf %931 : vector<4x4xf32>
    %933 = arith.mulf %932, %99 : vector<4x4xf32>
    %934 = vector.shape_cast %933 : vector<4x4xf32> to vector<1x4x4xf32>
    %cst_146 = arith.constant dense<0.000000e+00> : vector<1xf32>
    %935 = vector.multi_reduction <add>, %934, %cst_146 [1, 2] : vector<1x4x4xf32> to vector<1xf32>
    %936 = vector.shape_cast %935 : vector<1xf32> to vector<1x1x1xf32>
    %937 = vector.extract %936[0, 0, 0] : f32 from vector<1x1x1xf32>
    %938 = arith.index_cast %arg0 : i32 to index
    %c45 = arith.constant 45 : index
    %939 = memref.load %arg1[%938, %c45] : memref<2x48xf32, #tpu.memory_space<smem>>
    %940 = arith.index_cast %arg0 : i32 to index
    %c45_147 = arith.constant 45 : index
    %941 = memref.load %arg2[%940, %c45_147] : memref<2x48xf32, #tpu.memory_space<smem>>
    %942 = vector.broadcast %939 : f32 to vector<4x4xf32>
    %943 = arith.subf %97, %942 : vector<4x4xf32>
    %944 = math.absf %943 : vector<4x4xf32>
    %945 = arith.mulf %944, %99 : vector<4x4xf32>
    %946 = vector.shape_cast %945 : vector<4x4xf32> to vector<1x4x4xf32>
    %cst_148 = arith.constant dense<0.000000e+00> : vector<1xf32>
    %947 = vector.multi_reduction <add>, %946, %cst_148 [1, 2] : vector<1x4x4xf32> to vector<1xf32>
    %948 = vector.shape_cast %947 : vector<1xf32> to vector<1x1x1xf32>
    %949 = vector.extract %948[0, 0, 0] : f32 from vector<1x1x1xf32>
    %950 = vector.broadcast %941 : f32 to vector<4x4xf32>
    %951 = arith.subf %98, %950 : vector<4x4xf32>
    %952 = math.absf %951 : vector<4x4xf32>
    %953 = arith.mulf %952, %99 : vector<4x4xf32>
    %954 = vector.shape_cast %953 : vector<4x4xf32> to vector<1x4x4xf32>
    %cst_149 = arith.constant dense<0.000000e+00> : vector<1xf32>
    %955 = vector.multi_reduction <add>, %954, %cst_149 [1, 2] : vector<1x4x4xf32> to vector<1xf32>
    %956 = vector.shape_cast %955 : vector<1xf32> to vector<1x1x1xf32>
    %957 = vector.extract %956[0, 0, 0] : f32 from vector<1x1x1xf32>
    %958 = arith.index_cast %arg0 : i32 to index
    %c14 = arith.constant 14 : index
    %959 = memref.load %arg1[%958, %c14] : memref<2x48xf32, #tpu.memory_space<smem>>
    %960 = arith.index_cast %arg0 : i32 to index
    %c14_150 = arith.constant 14 : index
    %961 = memref.load %arg2[%960, %c14_150] : memref<2x48xf32, #tpu.memory_space<smem>>
    %962 = vector.broadcast %959 : f32 to vector<4x4xf32>
    %963 = arith.subf %104, %962 : vector<4x4xf32>
    %964 = math.absf %963 : vector<4x4xf32>
    %965 = arith.mulf %964, %106 : vector<4x4xf32>
    %966 = vector.shape_cast %965 : vector<4x4xf32> to vector<1x4x4xf32>
    %cst_151 = arith.constant dense<0.000000e+00> : vector<1xf32>
    %967 = vector.multi_reduction <add>, %966, %cst_151 [1, 2] : vector<1x4x4xf32> to vector<1xf32>
    %968 = vector.shape_cast %967 : vector<1xf32> to vector<1x1x1xf32>
    %969 = vector.extract %968[0, 0, 0] : f32 from vector<1x1x1xf32>
    %970 = vector.broadcast %961 : f32 to vector<4x4xf32>
    %971 = arith.subf %105, %970 : vector<4x4xf32>
    %972 = math.absf %971 : vector<4x4xf32>
    %973 = arith.mulf %972, %106 : vector<4x4xf32>
    %974 = vector.shape_cast %973 : vector<4x4xf32> to vector<1x4x4xf32>
    %cst_152 = arith.constant dense<0.000000e+00> : vector<1xf32>
    %975 = vector.multi_reduction <add>, %974, %cst_152 [1, 2] : vector<1x4x4xf32> to vector<1xf32>
    %976 = vector.shape_cast %975 : vector<1xf32> to vector<1x1x1xf32>
    %977 = vector.extract %976[0, 0, 0] : f32 from vector<1x1x1xf32>
    %978 = arith.index_cast %arg0 : i32 to index
    %c30 = arith.constant 30 : index
    %979 = memref.load %arg1[%978, %c30] : memref<2x48xf32, #tpu.memory_space<smem>>
    %980 = arith.index_cast %arg0 : i32 to index
    %c30_153 = arith.constant 30 : index
    %981 = memref.load %arg2[%980, %c30_153] : memref<2x48xf32, #tpu.memory_space<smem>>
    %982 = vector.broadcast %979 : f32 to vector<4x4xf32>
    %983 = arith.subf %104, %982 : vector<4x4xf32>
    %984 = math.absf %983 : vector<4x4xf32>
    %985 = arith.mulf %984, %106 : vector<4x4xf32>
    %986 = vector.shape_cast %985 : vector<4x4xf32> to vector<1x4x4xf32>
    %cst_154 = arith.constant dense<0.000000e+00> : vector<1xf32>
    %987 = vector.multi_reduction <add>, %986, %cst_154 [1, 2] : vector<1x4x4xf32> to vector<1xf32>
    %988 = vector.shape_cast %987 : vector<1xf32> to vector<1x1x1xf32>
    %989 = vector.extract %988[0, 0, 0] : f32 from vector<1x1x1xf32>
    %990 = vector.broadcast %981 : f32 to vector<4x4xf32>
    %991 = arith.subf %105, %990 : vector<4x4xf32>
    %992 = math.absf %991 : vector<4x4xf32>
    %993 = arith.mulf %992, %106 : vector<4x4xf32>
    %994 = vector.shape_cast %993 : vector<4x4xf32> to vector<1x4x4xf32>
    %cst_155 = arith.constant dense<0.000000e+00> : vector<1xf32>
    %995 = vector.multi_reduction <add>, %994, %cst_155 [1, 2] : vector<1x4x4xf32> to vector<1xf32>
    %996 = vector.shape_cast %995 : vector<1xf32> to vector<1x1x1xf32>
    %997 = vector.extract %996[0, 0, 0] : f32 from vector<1x1x1xf32>
    %998 = arith.index_cast %arg0 : i32 to index
    %c46 = arith.constant 46 : index
    %999 = memref.load %arg1[%998, %c46] : memref<2x48xf32, #tpu.memory_space<smem>>
    %1000 = arith.index_cast %arg0 : i32 to index
    %c46_156 = arith.constant 46 : index
    %1001 = memref.load %arg2[%1000, %c46_156] : memref<2x48xf32, #tpu.memory_space<smem>>
    %1002 = vector.broadcast %999 : f32 to vector<4x4xf32>
    %1003 = arith.subf %104, %1002 : vector<4x4xf32>
    %1004 = math.absf %1003 : vector<4x4xf32>
    %1005 = arith.mulf %1004, %106 : vector<4x4xf32>
    %1006 = vector.shape_cast %1005 : vector<4x4xf32> to vector<1x4x4xf32>
    %cst_157 = arith.constant dense<0.000000e+00> : vector<1xf32>
    %1007 = vector.multi_reduction <add>, %1006, %cst_157 [1, 2] : vector<1x4x4xf32> to vector<1xf32>
    %1008 = vector.shape_cast %1007 : vector<1xf32> to vector<1x1x1xf32>
    %1009 = vector.extract %1008[0, 0, 0] : f32 from vector<1x1x1xf32>
    %1010 = vector.broadcast %1001 : f32 to vector<4x4xf32>
    %1011 = arith.subf %105, %1010 : vector<4x4xf32>
    %1012 = math.absf %1011 : vector<4x4xf32>
    %1013 = arith.mulf %1012, %106 : vector<4x4xf32>
    %1014 = vector.shape_cast %1013 : vector<4x4xf32> to vector<1x4x4xf32>
    %cst_158 = arith.constant dense<0.000000e+00> : vector<1xf32>
    %1015 = vector.multi_reduction <add>, %1014, %cst_158 [1, 2] : vector<1x4x4xf32> to vector<1xf32>
    %1016 = vector.shape_cast %1015 : vector<1xf32> to vector<1x1x1xf32>
    %1017 = vector.extract %1016[0, 0, 0] : f32 from vector<1x1x1xf32>
    %1018 = arith.index_cast %arg0 : i32 to index
    %c15 = arith.constant 15 : index
    %1019 = memref.load %arg1[%1018, %c15] : memref<2x48xf32, #tpu.memory_space<smem>>
    %1020 = arith.index_cast %arg0 : i32 to index
    %c15_159 = arith.constant 15 : index
    %1021 = memref.load %arg2[%1020, %c15_159] : memref<2x48xf32, #tpu.memory_space<smem>>
    %1022 = vector.broadcast %1019 : f32 to vector<4x4xf32>
    %1023 = arith.subf %111, %1022 : vector<4x4xf32>
    %1024 = math.absf %1023 : vector<4x4xf32>
    %1025 = arith.mulf %1024, %113 : vector<4x4xf32>
    %1026 = vector.shape_cast %1025 : vector<4x4xf32> to vector<1x4x4xf32>
    %cst_160 = arith.constant dense<0.000000e+00> : vector<1xf32>
    %1027 = vector.multi_reduction <add>, %1026, %cst_160 [1, 2] : vector<1x4x4xf32> to vector<1xf32>
    %1028 = vector.shape_cast %1027 : vector<1xf32> to vector<1x1x1xf32>
    %1029 = vector.extract %1028[0, 0, 0] : f32 from vector<1x1x1xf32>
    %1030 = vector.broadcast %1021 : f32 to vector<4x4xf32>
    %1031 = arith.subf %112, %1030 : vector<4x4xf32>
    %1032 = math.absf %1031 : vector<4x4xf32>
    %1033 = arith.mulf %1032, %113 : vector<4x4xf32>
    %1034 = vector.shape_cast %1033 : vector<4x4xf32> to vector<1x4x4xf32>
    %cst_161 = arith.constant dense<0.000000e+00> : vector<1xf32>
    %1035 = vector.multi_reduction <add>, %1034, %cst_161 [1, 2] : vector<1x4x4xf32> to vector<1xf32>
    %1036 = vector.shape_cast %1035 : vector<1xf32> to vector<1x1x1xf32>
    %1037 = vector.extract %1036[0, 0, 0] : f32 from vector<1x1x1xf32>
    %1038 = arith.index_cast %arg0 : i32 to index
    %c31 = arith.constant 31 : index
    %1039 = memref.load %arg1[%1038, %c31] : memref<2x48xf32, #tpu.memory_space<smem>>
    %1040 = arith.index_cast %arg0 : i32 to index
    %c31_162 = arith.constant 31 : index
    %1041 = memref.load %arg2[%1040, %c31_162] : memref<2x48xf32, #tpu.memory_space<smem>>
    %1042 = vector.broadcast %1039 : f32 to vector<4x4xf32>
    %1043 = arith.subf %111, %1042 : vector<4x4xf32>
    %1044 = math.absf %1043 : vector<4x4xf32>
    %1045 = arith.mulf %1044, %113 : vector<4x4xf32>
    %1046 = vector.shape_cast %1045 : vector<4x4xf32> to vector<1x4x4xf32>
    %cst_163 = arith.constant dense<0.000000e+00> : vector<1xf32>
    %1047 = vector.multi_reduction <add>, %1046, %cst_163 [1, 2] : vector<1x4x4xf32> to vector<1xf32>
    %1048 = vector.shape_cast %1047 : vector<1xf32> to vector<1x1x1xf32>
    %1049 = vector.extract %1048[0, 0, 0] : f32 from vector<1x1x1xf32>
    %1050 = vector.broadcast %1041 : f32 to vector<4x4xf32>
    %1051 = arith.subf %112, %1050 : vector<4x4xf32>
    %1052 = math.absf %1051 : vector<4x4xf32>
    %1053 = arith.mulf %1052, %113 : vector<4x4xf32>
    %1054 = vector.shape_cast %1053 : vector<4x4xf32> to vector<1x4x4xf32>
    %cst_164 = arith.constant dense<0.000000e+00> : vector<1xf32>
    %1055 = vector.multi_reduction <add>, %1054, %cst_164 [1, 2] : vector<1x4x4xf32> to vector<1xf32>
    %1056 = vector.shape_cast %1055 : vector<1xf32> to vector<1x1x1xf32>
    %1057 = vector.extract %1056[0, 0, 0] : f32 from vector<1x1x1xf32>
    %1058 = arith.index_cast %arg0 : i32 to index
    %c47 = arith.constant 47 : index
    %1059 = memref.load %arg1[%1058, %c47] : memref<2x48xf32, #tpu.memory_space<smem>>
    %1060 = arith.index_cast %arg0 : i32 to index
    %c47_165 = arith.constant 47 : index
    %1061 = memref.load %arg2[%1060, %c47_165] : memref<2x48xf32, #tpu.memory_space<smem>>
    %1062 = vector.broadcast %1059 : f32 to vector<4x4xf32>
    %1063 = arith.subf %111, %1062 : vector<4x4xf32>
    %1064 = math.absf %1063 : vector<4x4xf32>
    %1065 = arith.mulf %1064, %113 : vector<4x4xf32>
    %1066 = vector.shape_cast %1065 : vector<4x4xf32> to vector<1x4x4xf32>
    %cst_166 = arith.constant dense<0.000000e+00> : vector<1xf32>
    %1067 = vector.multi_reduction <add>, %1066, %cst_166 [1, 2] : vector<1x4x4xf32> to vector<1xf32>
    %1068 = vector.shape_cast %1067 : vector<1xf32> to vector<1x1x1xf32>
    %1069 = vector.extract %1068[0, 0, 0] : f32 from vector<1x1x1xf32>
    %1070 = vector.broadcast %1061 : f32 to vector<4x4xf32>
    %1071 = arith.subf %112, %1070 : vector<4x4xf32>
    %1072 = math.absf %1071 : vector<4x4xf32>
    %1073 = arith.mulf %1072, %113 : vector<4x4xf32>
    %1074 = vector.shape_cast %1073 : vector<4x4xf32> to vector<1x4x4xf32>
    %cst_167 = arith.constant dense<0.000000e+00> : vector<1xf32>
    %1075 = vector.multi_reduction <add>, %1074, %cst_167 [1, 2] : vector<1x4x4xf32> to vector<1xf32>
    %1076 = vector.shape_cast %1075 : vector<1xf32> to vector<1x1x1xf32>
    %1077 = vector.extract %1076[0, 0, 0] : f32 from vector<1x1x1xf32>
    %cst_168 = arith.constant 0.000000e+00 : f32
    %1078 = arith.addf %cst_168, %12 : f32
    %cst_169 = arith.constant 0.000000e+00 : f32
    %1079 = arith.addf %cst_169, %129 : f32
    %cst_170 = arith.constant 0.000000e+00 : f32
    %1080 = arith.addf %cst_170, %137 : f32
    %cst_171 = arith.constant 1.000000e-10 : f32
    %1081 = arith.addf %1078, %cst_171 : f32
    %1082 = arith.divf %1079, %1081 : f32
    %cst_172 = arith.constant 9.99999993E-9 : f32
    %1083 = arith.addf %1082, %cst_172 : f32
    %cst_173 = arith.constant 1.000000e+00 : f32
    %1084 = arith.divf %cst_173, %1083 : f32
    %1085 = arith.divf %1080, %1081 : f32
    %cst_174 = arith.constant 9.99999993E-9 : f32
    %1086 = arith.addf %1085, %cst_174 : f32
    %cst_175 = arith.constant 1.000000e+00 : f32
    %1087 = arith.divf %cst_175, %1086 : f32
    %cst_176 = arith.constant 0.000000e+00 : f32
    %1088 = arith.addf %cst_176, %19 : f32
    %cst_177 = arith.constant 0.000000e+00 : f32
    %1089 = arith.addf %cst_177, %189 : f32
    %cst_178 = arith.constant 0.000000e+00 : f32
    %1090 = arith.addf %cst_178, %197 : f32
    %cst_179 = arith.constant 1.000000e-10 : f32
    %1091 = arith.addf %1088, %cst_179 : f32
    %1092 = arith.divf %1089, %1091 : f32
    %cst_180 = arith.constant 9.99999993E-9 : f32
    %1093 = arith.addf %1092, %cst_180 : f32
    %cst_181 = arith.constant 1.000000e+00 : f32
    %1094 = arith.divf %cst_181, %1093 : f32
    %1095 = arith.divf %1090, %1091 : f32
    %cst_182 = arith.constant 9.99999993E-9 : f32
    %1096 = arith.addf %1095, %cst_182 : f32
    %cst_183 = arith.constant 1.000000e+00 : f32
    %1097 = arith.divf %cst_183, %1096 : f32
    %cst_184 = arith.constant 0.000000e+00 : f32
    %1098 = arith.addf %cst_184, %26 : f32
    %cst_185 = arith.constant 0.000000e+00 : f32
    %1099 = arith.addf %cst_185, %249 : f32
    %cst_186 = arith.constant 0.000000e+00 : f32
    %1100 = arith.addf %cst_186, %257 : f32
    %cst_187 = arith.constant 1.000000e-10 : f32
    %1101 = arith.addf %1098, %cst_187 : f32
    %1102 = arith.divf %1099, %1101 : f32
    %cst_188 = arith.constant 9.99999993E-9 : f32
    %1103 = arith.addf %1102, %cst_188 : f32
    %cst_189 = arith.constant 1.000000e+00 : f32
    %1104 = arith.divf %cst_189, %1103 : f32
    %1105 = arith.divf %1100, %1101 : f32
    %cst_190 = arith.constant 9.99999993E-9 : f32
    %1106 = arith.addf %1105, %cst_190 : f32
    %cst_191 = arith.constant 1.000000e+00 : f32
    %1107 = arith.divf %cst_191, %1106 : f32
    %cst_192 = arith.constant 0.000000e+00 : f32
    %1108 = arith.addf %cst_192, %33 : f32
    %cst_193 = arith.constant 0.000000e+00 : f32
    %1109 = arith.addf %cst_193, %309 : f32
    %cst_194 = arith.constant 0.000000e+00 : f32
    %1110 = arith.addf %cst_194, %317 : f32
    %cst_195 = arith.constant 1.000000e-10 : f32
    %1111 = arith.addf %1108, %cst_195 : f32
    %1112 = arith.divf %1109, %1111 : f32
    %cst_196 = arith.constant 9.99999993E-9 : f32
    %1113 = arith.addf %1112, %cst_196 : f32
    %cst_197 = arith.constant 1.000000e+00 : f32
    %1114 = arith.divf %cst_197, %1113 : f32
    %1115 = arith.divf %1110, %1111 : f32
    %cst_198 = arith.constant 9.99999993E-9 : f32
    %1116 = arith.addf %1115, %cst_198 : f32
    %cst_199 = arith.constant 1.000000e+00 : f32
    %1117 = arith.divf %cst_199, %1116 : f32
    %cst_200 = arith.constant 0.000000e+00 : f32
    %1118 = arith.addf %cst_200, %40 : f32
    %cst_201 = arith.constant 0.000000e+00 : f32
    %1119 = arith.addf %cst_201, %369 : f32
    %cst_202 = arith.constant 0.000000e+00 : f32
    %1120 = arith.addf %cst_202, %377 : f32
    %cst_203 = arith.constant 1.000000e-10 : f32
    %1121 = arith.addf %1118, %cst_203 : f32
    %1122 = arith.divf %1119, %1121 : f32
    %cst_204 = arith.constant 9.99999993E-9 : f32
    %1123 = arith.addf %1122, %cst_204 : f32
    %cst_205 = arith.constant 1.000000e+00 : f32
    %1124 = arith.divf %cst_205, %1123 : f32
    %1125 = arith.divf %1120, %1121 : f32
    %cst_206 = arith.constant 9.99999993E-9 : f32
    %1126 = arith.addf %1125, %cst_206 : f32
    %cst_207 = arith.constant 1.000000e+00 : f32
    %1127 = arith.divf %cst_207, %1126 : f32
    %cst_208 = arith.constant 0.000000e+00 : f32
    %1128 = arith.addf %cst_208, %47 : f32
    %cst_209 = arith.constant 0.000000e+00 : f32
    %1129 = arith.addf %cst_209, %429 : f32
    %cst_210 = arith.constant 0.000000e+00 : f32
    %1130 = arith.addf %cst_210, %437 : f32
    %cst_211 = arith.constant 1.000000e-10 : f32
    %1131 = arith.addf %1128, %cst_211 : f32
    %1132 = arith.divf %1129, %1131 : f32
    %cst_212 = arith.constant 9.99999993E-9 : f32
    %1133 = arith.addf %1132, %cst_212 : f32
    %cst_213 = arith.constant 1.000000e+00 : f32
    %1134 = arith.divf %cst_213, %1133 : f32
    %1135 = arith.divf %1130, %1131 : f32
    %cst_214 = arith.constant 9.99999993E-9 : f32
    %1136 = arith.addf %1135, %cst_214 : f32
    %cst_215 = arith.constant 1.000000e+00 : f32
    %1137 = arith.divf %cst_215, %1136 : f32
    %cst_216 = arith.constant 0.000000e+00 : f32
    %1138 = arith.addf %cst_216, %54 : f32
    %cst_217 = arith.constant 0.000000e+00 : f32
    %1139 = arith.addf %cst_217, %489 : f32
    %cst_218 = arith.constant 0.000000e+00 : f32
    %1140 = arith.addf %cst_218, %497 : f32
    %cst_219 = arith.constant 1.000000e-10 : f32
    %1141 = arith.addf %1138, %cst_219 : f32
    %1142 = arith.divf %1139, %1141 : f32
    %cst_220 = arith.constant 9.99999993E-9 : f32
    %1143 = arith.addf %1142, %cst_220 : f32
    %cst_221 = arith.constant 1.000000e+00 : f32
    %1144 = arith.divf %cst_221, %1143 : f32
    %1145 = arith.divf %1140, %1141 : f32
    %cst_222 = arith.constant 9.99999993E-9 : f32
    %1146 = arith.addf %1145, %cst_222 : f32
    %cst_223 = arith.constant 1.000000e+00 : f32
    %1147 = arith.divf %cst_223, %1146 : f32
    %cst_224 = arith.constant 0.000000e+00 : f32
    %1148 = arith.addf %cst_224, %61 : f32
    %cst_225 = arith.constant 0.000000e+00 : f32
    %1149 = arith.addf %cst_225, %549 : f32
    %cst_226 = arith.constant 0.000000e+00 : f32
    %1150 = arith.addf %cst_226, %557 : f32
    %cst_227 = arith.constant 1.000000e-10 : f32
    %1151 = arith.addf %1148, %cst_227 : f32
    %1152 = arith.divf %1149, %1151 : f32
    %cst_228 = arith.constant 9.99999993E-9 : f32
    %1153 = arith.addf %1152, %cst_228 : f32
    %cst_229 = arith.constant 1.000000e+00 : f32
    %1154 = arith.divf %cst_229, %1153 : f32
    %1155 = arith.divf %1150, %1151 : f32
    %cst_230 = arith.constant 9.99999993E-9 : f32
    %1156 = arith.addf %1155, %cst_230 : f32
    %cst_231 = arith.constant 1.000000e+00 : f32
    %1157 = arith.divf %cst_231, %1156 : f32
    %cst_232 = arith.constant 0.000000e+00 : f32
    %1158 = arith.addf %cst_232, %68 : f32
    %cst_233 = arith.constant 0.000000e+00 : f32
    %1159 = arith.addf %cst_233, %609 : f32
    %cst_234 = arith.constant 0.000000e+00 : f32
    %1160 = arith.addf %cst_234, %617 : f32
    %cst_235 = arith.constant 1.000000e-10 : f32
    %1161 = arith.addf %1158, %cst_235 : f32
    %1162 = arith.divf %1159, %1161 : f32
    %cst_236 = arith.constant 9.99999993E-9 : f32
    %1163 = arith.addf %1162, %cst_236 : f32
    %cst_237 = arith.constant 1.000000e+00 : f32
    %1164 = arith.divf %cst_237, %1163 : f32
    %1165 = arith.divf %1160, %1161 : f32
    %cst_238 = arith.constant 9.99999993E-9 : f32
    %1166 = arith.addf %1165, %cst_238 : f32
    %cst_239 = arith.constant 1.000000e+00 : f32
    %1167 = arith.divf %cst_239, %1166 : f32
    %cst_240 = arith.constant 0.000000e+00 : f32
    %1168 = arith.addf %cst_240, %75 : f32
    %cst_241 = arith.constant 0.000000e+00 : f32
    %1169 = arith.addf %cst_241, %669 : f32
    %cst_242 = arith.constant 0.000000e+00 : f32
    %1170 = arith.addf %cst_242, %677 : f32
    %cst_243 = arith.constant 1.000000e-10 : f32
    %1171 = arith.addf %1168, %cst_243 : f32
    %1172 = arith.divf %1169, %1171 : f32
    %cst_244 = arith.constant 9.99999993E-9 : f32
    %1173 = arith.addf %1172, %cst_244 : f32
    %cst_245 = arith.constant 1.000000e+00 : f32
    %1174 = arith.divf %cst_245, %1173 : f32
    %1175 = arith.divf %1170, %1171 : f32
    %cst_246 = arith.constant 9.99999993E-9 : f32
    %1176 = arith.addf %1175, %cst_246 : f32
    %cst_247 = arith.constant 1.000000e+00 : f32
    %1177 = arith.divf %cst_247, %1176 : f32
    %cst_248 = arith.constant 0.000000e+00 : f32
    %1178 = arith.addf %cst_248, %82 : f32
    %cst_249 = arith.constant 0.000000e+00 : f32
    %1179 = arith.addf %cst_249, %729 : f32
    %cst_250 = arith.constant 0.000000e+00 : f32
    %1180 = arith.addf %cst_250, %737 : f32
    %cst_251 = arith.constant 1.000000e-10 : f32
    %1181 = arith.addf %1178, %cst_251 : f32
    %1182 = arith.divf %1179, %1181 : f32
    %cst_252 = arith.constant 9.99999993E-9 : f32
    %1183 = arith.addf %1182, %cst_252 : f32
    %cst_253 = arith.constant 1.000000e+00 : f32
    %1184 = arith.divf %cst_253, %1183 : f32
    %1185 = arith.divf %1180, %1181 : f32
    %cst_254 = arith.constant 9.99999993E-9 : f32
    %1186 = arith.addf %1185, %cst_254 : f32
    %cst_255 = arith.constant 1.000000e+00 : f32
    %1187 = arith.divf %cst_255, %1186 : f32
    %cst_256 = arith.constant 0.000000e+00 : f32
    %1188 = arith.addf %cst_256, %89 : f32
    %cst_257 = arith.constant 0.000000e+00 : f32
    %1189 = arith.addf %cst_257, %789 : f32
    %cst_258 = arith.constant 0.000000e+00 : f32
    %1190 = arith.addf %cst_258, %797 : f32
    %cst_259 = arith.constant 1.000000e-10 : f32
    %1191 = arith.addf %1188, %cst_259 : f32
    %1192 = arith.divf %1189, %1191 : f32
    %cst_260 = arith.constant 9.99999993E-9 : f32
    %1193 = arith.addf %1192, %cst_260 : f32
    %cst_261 = arith.constant 1.000000e+00 : f32
    %1194 = arith.divf %cst_261, %1193 : f32
    %1195 = arith.divf %1190, %1191 : f32
    %cst_262 = arith.constant 9.99999993E-9 : f32
    %1196 = arith.addf %1195, %cst_262 : f32
    %cst_263 = arith.constant 1.000000e+00 : f32
    %1197 = arith.divf %cst_263, %1196 : f32
    %cst_264 = arith.constant 0.000000e+00 : f32
    %1198 = arith.addf %cst_264, %96 : f32
    %cst_265 = arith.constant 0.000000e+00 : f32
    %1199 = arith.addf %cst_265, %849 : f32
    %cst_266 = arith.constant 0.000000e+00 : f32
    %1200 = arith.addf %cst_266, %857 : f32
    %cst_267 = arith.constant 1.000000e-10 : f32
    %1201 = arith.addf %1198, %cst_267 : f32
    %1202 = arith.divf %1199, %1201 : f32
    %cst_268 = arith.constant 9.99999993E-9 : f32
    %1203 = arith.addf %1202, %cst_268 : f32
    %cst_269 = arith.constant 1.000000e+00 : f32
    %1204 = arith.divf %cst_269, %1203 : f32
    %1205 = arith.divf %1200, %1201 : f32
    %cst_270 = arith.constant 9.99999993E-9 : f32
    %1206 = arith.addf %1205, %cst_270 : f32
    %cst_271 = arith.constant 1.000000e+00 : f32
    %1207 = arith.divf %cst_271, %1206 : f32
    %cst_272 = arith.constant 0.000000e+00 : f32
    %1208 = arith.addf %cst_272, %103 : f32
    %cst_273 = arith.constant 0.000000e+00 : f32
    %1209 = arith.addf %cst_273, %909 : f32
    %cst_274 = arith.constant 0.000000e+00 : f32
    %1210 = arith.addf %cst_274, %917 : f32
    %cst_275 = arith.constant 1.000000e-10 : f32
    %1211 = arith.addf %1208, %cst_275 : f32
    %1212 = arith.divf %1209, %1211 : f32
    %cst_276 = arith.constant 9.99999993E-9 : f32
    %1213 = arith.addf %1212, %cst_276 : f32
    %cst_277 = arith.constant 1.000000e+00 : f32
    %1214 = arith.divf %cst_277, %1213 : f32
    %1215 = arith.divf %1210, %1211 : f32
    %cst_278 = arith.constant 9.99999993E-9 : f32
    %1216 = arith.addf %1215, %cst_278 : f32
    %cst_279 = arith.constant 1.000000e+00 : f32
    %1217 = arith.divf %cst_279, %1216 : f32
    %cst_280 = arith.constant 0.000000e+00 : f32
    %1218 = arith.addf %cst_280, %110 : f32
    %cst_281 = arith.constant 0.000000e+00 : f32
    %1219 = arith.addf %cst_281, %969 : f32
    %cst_282 = arith.constant 0.000000e+00 : f32
    %1220 = arith.addf %cst_282, %977 : f32
    %cst_283 = arith.constant 1.000000e-10 : f32
    %1221 = arith.addf %1218, %cst_283 : f32
    %1222 = arith.divf %1219, %1221 : f32
    %cst_284 = arith.constant 9.99999993E-9 : f32
    %1223 = arith.addf %1222, %cst_284 : f32
    %cst_285 = arith.constant 1.000000e+00 : f32
    %1224 = arith.divf %cst_285, %1223 : f32
    %1225 = arith.divf %1220, %1221 : f32
    %cst_286 = arith.constant 9.99999993E-9 : f32
    %1226 = arith.addf %1225, %cst_286 : f32
    %cst_287 = arith.constant 1.000000e+00 : f32
    %1227 = arith.divf %cst_287, %1226 : f32
    %cst_288 = arith.constant 0.000000e+00 : f32
    %1228 = arith.addf %cst_288, %117 : f32
    %cst_289 = arith.constant 0.000000e+00 : f32
    %1229 = arith.addf %cst_289, %1029 : f32
    %cst_290 = arith.constant 0.000000e+00 : f32
    %1230 = arith.addf %cst_290, %1037 : f32
    %cst_291 = arith.constant 1.000000e-10 : f32
    %1231 = arith.addf %1228, %cst_291 : f32
    %1232 = arith.divf %1229, %1231 : f32
    %cst_292 = arith.constant 9.99999993E-9 : f32
    %1233 = arith.addf %1232, %cst_292 : f32
    %cst_293 = arith.constant 1.000000e+00 : f32
    %1234 = arith.divf %cst_293, %1233 : f32
    %1235 = arith.divf %1230, %1231 : f32
    %cst_294 = arith.constant 9.99999993E-9 : f32
    %1236 = arith.addf %1235, %cst_294 : f32
    %cst_295 = arith.constant 1.000000e+00 : f32
    %1237 = arith.divf %cst_295, %1236 : f32
    %cst_296 = arith.constant 0.000000e+00 : f32
    %1238 = arith.addf %cst_296, %12 : f32
    %1239 = arith.addf %1238, %19 : f32
    %1240 = arith.addf %1239, %40 : f32
    %1241 = arith.addf %1240, %47 : f32
    %cst_297 = arith.constant 0.000000e+00 : f32
    %1242 = arith.addf %cst_297, %149 : f32
    %1243 = arith.addf %1242, %209 : f32
    %1244 = arith.addf %1243, %389 : f32
    %1245 = arith.addf %1244, %449 : f32
    %cst_298 = arith.constant 0.000000e+00 : f32
    %1246 = arith.addf %cst_298, %157 : f32
    %1247 = arith.addf %1246, %217 : f32
    %1248 = arith.addf %1247, %397 : f32
    %1249 = arith.addf %1248, %457 : f32
    %cst_299 = arith.constant 1.000000e-10 : f32
    %1250 = arith.addf %1241, %cst_299 : f32
    %1251 = arith.divf %1245, %1250 : f32
    %cst_300 = arith.constant 9.99999993E-9 : f32
    %1252 = arith.addf %1251, %cst_300 : f32
    %cst_301 = arith.constant 1.000000e+00 : f32
    %1253 = arith.divf %cst_301, %1252 : f32
    %1254 = arith.divf %1249, %1250 : f32
    %cst_302 = arith.constant 9.99999993E-9 : f32
    %1255 = arith.addf %1254, %cst_302 : f32
    %cst_303 = arith.constant 1.000000e+00 : f32
    %1256 = arith.divf %cst_303, %1255 : f32
    %cst_304 = arith.constant 0.000000e+00 : f32
    %1257 = arith.addf %cst_304, %26 : f32
    %1258 = arith.addf %1257, %33 : f32
    %1259 = arith.addf %1258, %54 : f32
    %1260 = arith.addf %1259, %61 : f32
    %cst_305 = arith.constant 0.000000e+00 : f32
    %1261 = arith.addf %cst_305, %269 : f32
    %1262 = arith.addf %1261, %329 : f32
    %1263 = arith.addf %1262, %509 : f32
    %1264 = arith.addf %1263, %569 : f32
    %cst_306 = arith.constant 0.000000e+00 : f32
    %1265 = arith.addf %cst_306, %277 : f32
    %1266 = arith.addf %1265, %337 : f32
    %1267 = arith.addf %1266, %517 : f32
    %1268 = arith.addf %1267, %577 : f32
    %cst_307 = arith.constant 1.000000e-10 : f32
    %1269 = arith.addf %1260, %cst_307 : f32
    %1270 = arith.divf %1264, %1269 : f32
    %cst_308 = arith.constant 9.99999993E-9 : f32
    %1271 = arith.addf %1270, %cst_308 : f32
    %cst_309 = arith.constant 1.000000e+00 : f32
    %1272 = arith.divf %cst_309, %1271 : f32
    %1273 = arith.divf %1268, %1269 : f32
    %cst_310 = arith.constant 9.99999993E-9 : f32
    %1274 = arith.addf %1273, %cst_310 : f32
    %cst_311 = arith.constant 1.000000e+00 : f32
    %1275 = arith.divf %cst_311, %1274 : f32
    %cst_312 = arith.constant 0.000000e+00 : f32
    %1276 = arith.addf %cst_312, %68 : f32
    %1277 = arith.addf %1276, %75 : f32
    %1278 = arith.addf %1277, %96 : f32
    %1279 = arith.addf %1278, %103 : f32
    %cst_313 = arith.constant 0.000000e+00 : f32
    %1280 = arith.addf %cst_313, %629 : f32
    %1281 = arith.addf %1280, %689 : f32
    %1282 = arith.addf %1281, %869 : f32
    %1283 = arith.addf %1282, %929 : f32
    %cst_314 = arith.constant 0.000000e+00 : f32
    %1284 = arith.addf %cst_314, %637 : f32
    %1285 = arith.addf %1284, %697 : f32
    %1286 = arith.addf %1285, %877 : f32
    %1287 = arith.addf %1286, %937 : f32
    %cst_315 = arith.constant 1.000000e-10 : f32
    %1288 = arith.addf %1279, %cst_315 : f32
    %1289 = arith.divf %1283, %1288 : f32
    %cst_316 = arith.constant 9.99999993E-9 : f32
    %1290 = arith.addf %1289, %cst_316 : f32
    %cst_317 = arith.constant 1.000000e+00 : f32
    %1291 = arith.divf %cst_317, %1290 : f32
    %1292 = arith.divf %1287, %1288 : f32
    %cst_318 = arith.constant 9.99999993E-9 : f32
    %1293 = arith.addf %1292, %cst_318 : f32
    %cst_319 = arith.constant 1.000000e+00 : f32
    %1294 = arith.divf %cst_319, %1293 : f32
    %cst_320 = arith.constant 0.000000e+00 : f32
    %1295 = arith.addf %cst_320, %82 : f32
    %1296 = arith.addf %1295, %89 : f32
    %1297 = arith.addf %1296, %110 : f32
    %1298 = arith.addf %1297, %117 : f32
    %cst_321 = arith.constant 0.000000e+00 : f32
    %1299 = arith.addf %cst_321, %749 : f32
    %1300 = arith.addf %1299, %809 : f32
    %1301 = arith.addf %1300, %989 : f32
    %1302 = arith.addf %1301, %1049 : f32
    %cst_322 = arith.constant 0.000000e+00 : f32
    %1303 = arith.addf %cst_322, %757 : f32
    %1304 = arith.addf %1303, %817 : f32
    %1305 = arith.addf %1304, %997 : f32
    %1306 = arith.addf %1305, %1057 : f32
    %cst_323 = arith.constant 1.000000e-10 : f32
    %1307 = arith.addf %1298, %cst_323 : f32
    %1308 = arith.divf %1302, %1307 : f32
    %cst_324 = arith.constant 9.99999993E-9 : f32
    %1309 = arith.addf %1308, %cst_324 : f32
    %cst_325 = arith.constant 1.000000e+00 : f32
    %1310 = arith.divf %cst_325, %1309 : f32
    %1311 = arith.divf %1306, %1307 : f32
    %cst_326 = arith.constant 9.99999993E-9 : f32
    %1312 = arith.addf %1311, %cst_326 : f32
    %cst_327 = arith.constant 1.000000e+00 : f32
    %1313 = arith.divf %cst_327, %1312 : f32
    %cst_328 = arith.constant 0.000000e+00 : f32
    %1314 = arith.addf %cst_328, %12 : f32
    %1315 = arith.addf %1314, %19 : f32
    %1316 = arith.addf %1315, %26 : f32
    %1317 = arith.addf %1316, %33 : f32
    %1318 = arith.addf %1317, %40 : f32
    %1319 = arith.addf %1318, %47 : f32
    %1320 = arith.addf %1319, %54 : f32
    %1321 = arith.addf %1320, %61 : f32
    %1322 = arith.addf %1321, %68 : f32
    %1323 = arith.addf %1322, %75 : f32
    %1324 = arith.addf %1323, %82 : f32
    %1325 = arith.addf %1324, %89 : f32
    %1326 = arith.addf %1325, %96 : f32
    %1327 = arith.addf %1326, %103 : f32
    %1328 = arith.addf %1327, %110 : f32
    %1329 = arith.addf %1328, %117 : f32
    %cst_329 = arith.constant 0.000000e+00 : f32
    %1330 = arith.addf %cst_329, %169 : f32
    %1331 = arith.addf %1330, %229 : f32
    %1332 = arith.addf %1331, %289 : f32
    %1333 = arith.addf %1332, %349 : f32
    %1334 = arith.addf %1333, %409 : f32
    %1335 = arith.addf %1334, %469 : f32
    %1336 = arith.addf %1335, %529 : f32
    %1337 = arith.addf %1336, %589 : f32
    %1338 = arith.addf %1337, %649 : f32
    %1339 = arith.addf %1338, %709 : f32
    %1340 = arith.addf %1339, %769 : f32
    %1341 = arith.addf %1340, %829 : f32
    %1342 = arith.addf %1341, %889 : f32
    %1343 = arith.addf %1342, %949 : f32
    %1344 = arith.addf %1343, %1009 : f32
    %1345 = arith.addf %1344, %1069 : f32
    %cst_330 = arith.constant 0.000000e+00 : f32
    %1346 = arith.addf %cst_330, %177 : f32
    %1347 = arith.addf %1346, %237 : f32
    %1348 = arith.addf %1347, %297 : f32
    %1349 = arith.addf %1348, %357 : f32
    %1350 = arith.addf %1349, %417 : f32
    %1351 = arith.addf %1350, %477 : f32
    %1352 = arith.addf %1351, %537 : f32
    %1353 = arith.addf %1352, %597 : f32
    %1354 = arith.addf %1353, %657 : f32
    %1355 = arith.addf %1354, %717 : f32
    %1356 = arith.addf %1355, %777 : f32
    %1357 = arith.addf %1356, %837 : f32
    %1358 = arith.addf %1357, %897 : f32
    %1359 = arith.addf %1358, %957 : f32
    %1360 = arith.addf %1359, %1017 : f32
    %1361 = arith.addf %1360, %1077 : f32
    %cst_331 = arith.constant 1.000000e-10 : f32
    %1362 = arith.addf %1329, %cst_331 : f32
    %1363 = arith.divf %1345, %1362 : f32
    %cst_332 = arith.constant 9.99999993E-9 : f32
    %1364 = arith.addf %1363, %cst_332 : f32
    %cst_333 = arith.constant 1.000000e+00 : f32
    %1365 = arith.divf %cst_333, %1364 : f32
    %1366 = arith.divf %1361, %1362 : f32
    %cst_334 = arith.constant 9.99999993E-9 : f32
    %1367 = arith.addf %1366, %cst_334 : f32
    %cst_335 = arith.constant 1.000000e+00 : f32
    %1368 = arith.divf %cst_335, %1367 : f32
    %cst_336 = arith.constant 0.000000e+00 : f32
    %1369 = vector.broadcast %cst_336 : f32 to vector<4x4xf32>
    %1370 = arith.index_cast %arg0 : i32 to index
    %c0_337 = arith.constant 0 : index
    %1371 = memref.load %arg1[%1370, %c0_337] : memref<2x48xf32, #tpu.memory_space<smem>>
    %1372 = arith.index_cast %arg0 : i32 to index
    %c0_338 = arith.constant 0 : index
    %1373 = memref.load %arg2[%1372, %c0_338] : memref<2x48xf32, #tpu.memory_space<smem>>
    %1374 = vector.broadcast %1371 : f32 to vector<4x4xf32>
    %1375 = arith.subf %6, %1374 : vector<4x4xf32>
    %1376 = vector.broadcast %1084 : f32 to vector<4x4xf32>
    %1377 = arith.mulf %1375, %1376 : vector<4x4xf32>
    %1378 = vector.broadcast %1373 : f32 to vector<4x4xf32>
    %1379 = arith.subf %7, %1378 : vector<4x4xf32>
    %1380 = vector.broadcast %1087 : f32 to vector<4x4xf32>
    %1381 = arith.mulf %1379, %1380 : vector<4x4xf32>
    %1382 = arith.subf %1377, %1381 : vector<4x4xf32>
    %1383 = math.absf %1382 : vector<4x4xf32>
    %1384 = arith.addf %1369, %1383 : vector<4x4xf32>
    %1385 = arith.index_cast %arg0 : i32 to index
    %c16_339 = arith.constant 16 : index
    %1386 = memref.load %arg1[%1385, %c16_339] : memref<2x48xf32, #tpu.memory_space<smem>>
    %1387 = arith.index_cast %arg0 : i32 to index
    %c16_340 = arith.constant 16 : index
    %1388 = memref.load %arg2[%1387, %c16_340] : memref<2x48xf32, #tpu.memory_space<smem>>
    %1389 = vector.broadcast %1386 : f32 to vector<4x4xf32>
    %1390 = arith.subf %6, %1389 : vector<4x4xf32>
    %1391 = vector.broadcast %1253 : f32 to vector<4x4xf32>
    %1392 = arith.mulf %1390, %1391 : vector<4x4xf32>
    %1393 = vector.broadcast %1388 : f32 to vector<4x4xf32>
    %1394 = arith.subf %7, %1393 : vector<4x4xf32>
    %1395 = vector.broadcast %1256 : f32 to vector<4x4xf32>
    %1396 = arith.mulf %1394, %1395 : vector<4x4xf32>
    %1397 = arith.subf %1392, %1396 : vector<4x4xf32>
    %1398 = math.absf %1397 : vector<4x4xf32>
    %1399 = arith.addf %1384, %1398 : vector<4x4xf32>
    %1400 = arith.index_cast %arg0 : i32 to index
    %c32_341 = arith.constant 32 : index
    %1401 = memref.load %arg1[%1400, %c32_341] : memref<2x48xf32, #tpu.memory_space<smem>>
    %1402 = arith.index_cast %arg0 : i32 to index
    %c32_342 = arith.constant 32 : index
    %1403 = memref.load %arg2[%1402, %c32_342] : memref<2x48xf32, #tpu.memory_space<smem>>
    %1404 = vector.broadcast %1401 : f32 to vector<4x4xf32>
    %1405 = arith.subf %6, %1404 : vector<4x4xf32>
    %1406 = vector.broadcast %1365 : f32 to vector<4x4xf32>
    %1407 = arith.mulf %1405, %1406 : vector<4x4xf32>
    %1408 = vector.broadcast %1403 : f32 to vector<4x4xf32>
    %1409 = arith.subf %7, %1408 : vector<4x4xf32>
    %1410 = vector.broadcast %1368 : f32 to vector<4x4xf32>
    %1411 = arith.mulf %1409, %1410 : vector<4x4xf32>
    %1412 = arith.subf %1407, %1411 : vector<4x4xf32>
    %1413 = math.absf %1412 : vector<4x4xf32>
    %1414 = arith.addf %1399, %1413 : vector<4x4xf32>
    %1415 = arith.mulf %1414, %8 : vector<4x4xf32>
    %1416 = vector.shape_cast %1415 : vector<4x4xf32> to vector<1x4x4xf32>
    %cst_343 = arith.constant dense<0.000000e+00> : vector<1xf32>
    %1417 = vector.multi_reduction <add>, %1416, %cst_343 [1, 2] : vector<1x4x4xf32> to vector<1xf32>
    %1418 = vector.shape_cast %1417 : vector<1xf32> to vector<1x1x1xf32>
    %1419 = vector.extract %1418[0, 0, 0] : f32 from vector<1x1x1xf32>
    %cst_344 = arith.constant 0.000000e+00 : f32
    %1420 = arith.addf %cst_344, %1419 : f32
    %cst_345 = arith.constant 0.000000e+00 : f32
    %1421 = arith.addf %cst_345, %12 : f32
    %cst_346 = arith.constant 0.000000e+00 : f32
    %1422 = vector.broadcast %cst_346 : f32 to vector<4x4xf32>
    %1423 = arith.index_cast %arg0 : i32 to index
    %c1_347 = arith.constant 1 : index
    %1424 = memref.load %arg1[%1423, %c1_347] : memref<2x48xf32, #tpu.memory_space<smem>>
    %1425 = arith.index_cast %arg0 : i32 to index
    %c1_348 = arith.constant 1 : index
    %1426 = memref.load %arg2[%1425, %c1_348] : memref<2x48xf32, #tpu.memory_space<smem>>
    %1427 = vector.broadcast %1424 : f32 to vector<4x4xf32>
    %1428 = arith.subf %13, %1427 : vector<4x4xf32>
    %1429 = vector.broadcast %1094 : f32 to vector<4x4xf32>
    %1430 = arith.mulf %1428, %1429 : vector<4x4xf32>
    %1431 = vector.broadcast %1426 : f32 to vector<4x4xf32>
    %1432 = arith.subf %14, %1431 : vector<4x4xf32>
    %1433 = vector.broadcast %1097 : f32 to vector<4x4xf32>
    %1434 = arith.mulf %1432, %1433 : vector<4x4xf32>
    %1435 = arith.subf %1430, %1434 : vector<4x4xf32>
    %1436 = math.absf %1435 : vector<4x4xf32>
    %1437 = arith.addf %1422, %1436 : vector<4x4xf32>
    %1438 = arith.index_cast %arg0 : i32 to index
    %c17_349 = arith.constant 17 : index
    %1439 = memref.load %arg1[%1438, %c17_349] : memref<2x48xf32, #tpu.memory_space<smem>>
    %1440 = arith.index_cast %arg0 : i32 to index
    %c17_350 = arith.constant 17 : index
    %1441 = memref.load %arg2[%1440, %c17_350] : memref<2x48xf32, #tpu.memory_space<smem>>
    %1442 = vector.broadcast %1439 : f32 to vector<4x4xf32>
    %1443 = arith.subf %13, %1442 : vector<4x4xf32>
    %1444 = vector.broadcast %1253 : f32 to vector<4x4xf32>
    %1445 = arith.mulf %1443, %1444 : vector<4x4xf32>
    %1446 = vector.broadcast %1441 : f32 to vector<4x4xf32>
    %1447 = arith.subf %14, %1446 : vector<4x4xf32>
    %1448 = vector.broadcast %1256 : f32 to vector<4x4xf32>
    %1449 = arith.mulf %1447, %1448 : vector<4x4xf32>
    %1450 = arith.subf %1445, %1449 : vector<4x4xf32>
    %1451 = math.absf %1450 : vector<4x4xf32>
    %1452 = arith.addf %1437, %1451 : vector<4x4xf32>
    %1453 = arith.index_cast %arg0 : i32 to index
    %c33_351 = arith.constant 33 : index
    %1454 = memref.load %arg1[%1453, %c33_351] : memref<2x48xf32, #tpu.memory_space<smem>>
    %1455 = arith.index_cast %arg0 : i32 to index
    %c33_352 = arith.constant 33 : index
    %1456 = memref.load %arg2[%1455, %c33_352] : memref<2x48xf32, #tpu.memory_space<smem>>
    %1457 = vector.broadcast %1454 : f32 to vector<4x4xf32>
    %1458 = arith.subf %13, %1457 : vector<4x4xf32>
    %1459 = vector.broadcast %1365 : f32 to vector<4x4xf32>
    %1460 = arith.mulf %1458, %1459 : vector<4x4xf32>
    %1461 = vector.broadcast %1456 : f32 to vector<4x4xf32>
    %1462 = arith.subf %14, %1461 : vector<4x4xf32>
    %1463 = vector.broadcast %1368 : f32 to vector<4x4xf32>
    %1464 = arith.mulf %1462, %1463 : vector<4x4xf32>
    %1465 = arith.subf %1460, %1464 : vector<4x4xf32>
    %1466 = math.absf %1465 : vector<4x4xf32>
    %1467 = arith.addf %1452, %1466 : vector<4x4xf32>
    %1468 = arith.mulf %1467, %15 : vector<4x4xf32>
    %1469 = vector.shape_cast %1468 : vector<4x4xf32> to vector<1x4x4xf32>
    %cst_353 = arith.constant dense<0.000000e+00> : vector<1xf32>
    %1470 = vector.multi_reduction <add>, %1469, %cst_353 [1, 2] : vector<1x4x4xf32> to vector<1xf32>
    %1471 = vector.shape_cast %1470 : vector<1xf32> to vector<1x1x1xf32>
    %1472 = vector.extract %1471[0, 0, 0] : f32 from vector<1x1x1xf32>
    %1473 = arith.addf %1420, %1472 : f32
    %1474 = arith.addf %1421, %19 : f32
    %cst_354 = arith.constant 0.000000e+00 : f32
    %1475 = vector.broadcast %cst_354 : f32 to vector<4x4xf32>
    %1476 = arith.index_cast %arg0 : i32 to index
    %c2_355 = arith.constant 2 : index
    %1477 = memref.load %arg1[%1476, %c2_355] : memref<2x48xf32, #tpu.memory_space<smem>>
    %1478 = arith.index_cast %arg0 : i32 to index
    %c2_356 = arith.constant 2 : index
    %1479 = memref.load %arg2[%1478, %c2_356] : memref<2x48xf32, #tpu.memory_space<smem>>
    %1480 = vector.broadcast %1477 : f32 to vector<4x4xf32>
    %1481 = arith.subf %20, %1480 : vector<4x4xf32>
    %1482 = vector.broadcast %1104 : f32 to vector<4x4xf32>
    %1483 = arith.mulf %1481, %1482 : vector<4x4xf32>
    %1484 = vector.broadcast %1479 : f32 to vector<4x4xf32>
    %1485 = arith.subf %21, %1484 : vector<4x4xf32>
    %1486 = vector.broadcast %1107 : f32 to vector<4x4xf32>
    %1487 = arith.mulf %1485, %1486 : vector<4x4xf32>
    %1488 = arith.subf %1483, %1487 : vector<4x4xf32>
    %1489 = math.absf %1488 : vector<4x4xf32>
    %1490 = arith.addf %1475, %1489 : vector<4x4xf32>
    %1491 = arith.index_cast %arg0 : i32 to index
    %c18_357 = arith.constant 18 : index
    %1492 = memref.load %arg1[%1491, %c18_357] : memref<2x48xf32, #tpu.memory_space<smem>>
    %1493 = arith.index_cast %arg0 : i32 to index
    %c18_358 = arith.constant 18 : index
    %1494 = memref.load %arg2[%1493, %c18_358] : memref<2x48xf32, #tpu.memory_space<smem>>
    %1495 = vector.broadcast %1492 : f32 to vector<4x4xf32>
    %1496 = arith.subf %20, %1495 : vector<4x4xf32>
    %1497 = vector.broadcast %1272 : f32 to vector<4x4xf32>
    %1498 = arith.mulf %1496, %1497 : vector<4x4xf32>
    %1499 = vector.broadcast %1494 : f32 to vector<4x4xf32>
    %1500 = arith.subf %21, %1499 : vector<4x4xf32>
    %1501 = vector.broadcast %1275 : f32 to vector<4x4xf32>
    %1502 = arith.mulf %1500, %1501 : vector<4x4xf32>
    %1503 = arith.subf %1498, %1502 : vector<4x4xf32>
    %1504 = math.absf %1503 : vector<4x4xf32>
    %1505 = arith.addf %1490, %1504 : vector<4x4xf32>
    %1506 = arith.index_cast %arg0 : i32 to index
    %c34_359 = arith.constant 34 : index
    %1507 = memref.load %arg1[%1506, %c34_359] : memref<2x48xf32, #tpu.memory_space<smem>>
    %1508 = arith.index_cast %arg0 : i32 to index
    %c34_360 = arith.constant 34 : index
    %1509 = memref.load %arg2[%1508, %c34_360] : memref<2x48xf32, #tpu.memory_space<smem>>
    %1510 = vector.broadcast %1507 : f32 to vector<4x4xf32>
    %1511 = arith.subf %20, %1510 : vector<4x4xf32>
    %1512 = vector.broadcast %1365 : f32 to vector<4x4xf32>
    %1513 = arith.mulf %1511, %1512 : vector<4x4xf32>
    %1514 = vector.broadcast %1509 : f32 to vector<4x4xf32>
    %1515 = arith.subf %21, %1514 : vector<4x4xf32>
    %1516 = vector.broadcast %1368 : f32 to vector<4x4xf32>
    %1517 = arith.mulf %1515, %1516 : vector<4x4xf32>
    %1518 = arith.subf %1513, %1517 : vector<4x4xf32>
    %1519 = math.absf %1518 : vector<4x4xf32>
    %1520 = arith.addf %1505, %1519 : vector<4x4xf32>
    %1521 = arith.mulf %1520, %22 : vector<4x4xf32>
    %1522 = vector.shape_cast %1521 : vector<4x4xf32> to vector<1x4x4xf32>
    %cst_361 = arith.constant dense<0.000000e+00> : vector<1xf32>
    %1523 = vector.multi_reduction <add>, %1522, %cst_361 [1, 2] : vector<1x4x4xf32> to vector<1xf32>
    %1524 = vector.shape_cast %1523 : vector<1xf32> to vector<1x1x1xf32>
    %1525 = vector.extract %1524[0, 0, 0] : f32 from vector<1x1x1xf32>
    %1526 = arith.addf %1473, %1525 : f32
    %1527 = arith.addf %1474, %26 : f32
    %cst_362 = arith.constant 0.000000e+00 : f32
    %1528 = vector.broadcast %cst_362 : f32 to vector<4x4xf32>
    %1529 = arith.index_cast %arg0 : i32 to index
    %c3_363 = arith.constant 3 : index
    %1530 = memref.load %arg1[%1529, %c3_363] : memref<2x48xf32, #tpu.memory_space<smem>>
    %1531 = arith.index_cast %arg0 : i32 to index
    %c3_364 = arith.constant 3 : index
    %1532 = memref.load %arg2[%1531, %c3_364] : memref<2x48xf32, #tpu.memory_space<smem>>
    %1533 = vector.broadcast %1530 : f32 to vector<4x4xf32>
    %1534 = arith.subf %27, %1533 : vector<4x4xf32>
    %1535 = vector.broadcast %1114 : f32 to vector<4x4xf32>
    %1536 = arith.mulf %1534, %1535 : vector<4x4xf32>
    %1537 = vector.broadcast %1532 : f32 to vector<4x4xf32>
    %1538 = arith.subf %28, %1537 : vector<4x4xf32>
    %1539 = vector.broadcast %1117 : f32 to vector<4x4xf32>
    %1540 = arith.mulf %1538, %1539 : vector<4x4xf32>
    %1541 = arith.subf %1536, %1540 : vector<4x4xf32>
    %1542 = math.absf %1541 : vector<4x4xf32>
    %1543 = arith.addf %1528, %1542 : vector<4x4xf32>
    %1544 = arith.index_cast %arg0 : i32 to index
    %c19_365 = arith.constant 19 : index
    %1545 = memref.load %arg1[%1544, %c19_365] : memref<2x48xf32, #tpu.memory_space<smem>>
    %1546 = arith.index_cast %arg0 : i32 to index
    %c19_366 = arith.constant 19 : index
    %1547 = memref.load %arg2[%1546, %c19_366] : memref<2x48xf32, #tpu.memory_space<smem>>
    %1548 = vector.broadcast %1545 : f32 to vector<4x4xf32>
    %1549 = arith.subf %27, %1548 : vector<4x4xf32>
    %1550 = vector.broadcast %1272 : f32 to vector<4x4xf32>
    %1551 = arith.mulf %1549, %1550 : vector<4x4xf32>
    %1552 = vector.broadcast %1547 : f32 to vector<4x4xf32>
    %1553 = arith.subf %28, %1552 : vector<4x4xf32>
    %1554 = vector.broadcast %1275 : f32 to vector<4x4xf32>
    %1555 = arith.mulf %1553, %1554 : vector<4x4xf32>
    %1556 = arith.subf %1551, %1555 : vector<4x4xf32>
    %1557 = math.absf %1556 : vector<4x4xf32>
    %1558 = arith.addf %1543, %1557 : vector<4x4xf32>
    %1559 = arith.index_cast %arg0 : i32 to index
    %c35_367 = arith.constant 35 : index
    %1560 = memref.load %arg1[%1559, %c35_367] : memref<2x48xf32, #tpu.memory_space<smem>>
    %1561 = arith.index_cast %arg0 : i32 to index
    %c35_368 = arith.constant 35 : index
    %1562 = memref.load %arg2[%1561, %c35_368] : memref<2x48xf32, #tpu.memory_space<smem>>
    %1563 = vector.broadcast %1560 : f32 to vector<4x4xf32>
    %1564 = arith.subf %27, %1563 : vector<4x4xf32>
    %1565 = vector.broadcast %1365 : f32 to vector<4x4xf32>
    %1566 = arith.mulf %1564, %1565 : vector<4x4xf32>
    %1567 = vector.broadcast %1562 : f32 to vector<4x4xf32>
    %1568 = arith.subf %28, %1567 : vector<4x4xf32>
    %1569 = vector.broadcast %1368 : f32 to vector<4x4xf32>
    %1570 = arith.mulf %1568, %1569 : vector<4x4xf32>
    %1571 = arith.subf %1566, %1570 : vector<4x4xf32>
    %1572 = math.absf %1571 : vector<4x4xf32>
    %1573 = arith.addf %1558, %1572 : vector<4x4xf32>
    %1574 = arith.mulf %1573, %29 : vector<4x4xf32>
    %1575 = vector.shape_cast %1574 : vector<4x4xf32> to vector<1x4x4xf32>
    %cst_369 = arith.constant dense<0.000000e+00> : vector<1xf32>
    %1576 = vector.multi_reduction <add>, %1575, %cst_369 [1, 2] : vector<1x4x4xf32> to vector<1xf32>
    %1577 = vector.shape_cast %1576 : vector<1xf32> to vector<1x1x1xf32>
    %1578 = vector.extract %1577[0, 0, 0] : f32 from vector<1x1x1xf32>
    %1579 = arith.addf %1526, %1578 : f32
    %1580 = arith.addf %1527, %33 : f32
    %cst_370 = arith.constant 0.000000e+00 : f32
    %1581 = vector.broadcast %cst_370 : f32 to vector<4x4xf32>
    %1582 = arith.index_cast %arg0 : i32 to index
    %c4_371 = arith.constant 4 : index
    %1583 = memref.load %arg1[%1582, %c4_371] : memref<2x48xf32, #tpu.memory_space<smem>>
    %1584 = arith.index_cast %arg0 : i32 to index
    %c4_372 = arith.constant 4 : index
    %1585 = memref.load %arg2[%1584, %c4_372] : memref<2x48xf32, #tpu.memory_space<smem>>
    %1586 = vector.broadcast %1583 : f32 to vector<4x4xf32>
    %1587 = arith.subf %34, %1586 : vector<4x4xf32>
    %1588 = vector.broadcast %1124 : f32 to vector<4x4xf32>
    %1589 = arith.mulf %1587, %1588 : vector<4x4xf32>
    %1590 = vector.broadcast %1585 : f32 to vector<4x4xf32>
    %1591 = arith.subf %35, %1590 : vector<4x4xf32>
    %1592 = vector.broadcast %1127 : f32 to vector<4x4xf32>
    %1593 = arith.mulf %1591, %1592 : vector<4x4xf32>
    %1594 = arith.subf %1589, %1593 : vector<4x4xf32>
    %1595 = math.absf %1594 : vector<4x4xf32>
    %1596 = arith.addf %1581, %1595 : vector<4x4xf32>
    %1597 = arith.index_cast %arg0 : i32 to index
    %c20_373 = arith.constant 20 : index
    %1598 = memref.load %arg1[%1597, %c20_373] : memref<2x48xf32, #tpu.memory_space<smem>>
    %1599 = arith.index_cast %arg0 : i32 to index
    %c20_374 = arith.constant 20 : index
    %1600 = memref.load %arg2[%1599, %c20_374] : memref<2x48xf32, #tpu.memory_space<smem>>
    %1601 = vector.broadcast %1598 : f32 to vector<4x4xf32>
    %1602 = arith.subf %34, %1601 : vector<4x4xf32>
    %1603 = vector.broadcast %1253 : f32 to vector<4x4xf32>
    %1604 = arith.mulf %1602, %1603 : vector<4x4xf32>
    %1605 = vector.broadcast %1600 : f32 to vector<4x4xf32>
    %1606 = arith.subf %35, %1605 : vector<4x4xf32>
    %1607 = vector.broadcast %1256 : f32 to vector<4x4xf32>
    %1608 = arith.mulf %1606, %1607 : vector<4x4xf32>
    %1609 = arith.subf %1604, %1608 : vector<4x4xf32>
    %1610 = math.absf %1609 : vector<4x4xf32>
    %1611 = arith.addf %1596, %1610 : vector<4x4xf32>
    %1612 = arith.index_cast %arg0 : i32 to index
    %c36_375 = arith.constant 36 : index
    %1613 = memref.load %arg1[%1612, %c36_375] : memref<2x48xf32, #tpu.memory_space<smem>>
    %1614 = arith.index_cast %arg0 : i32 to index
    %c36_376 = arith.constant 36 : index
    %1615 = memref.load %arg2[%1614, %c36_376] : memref<2x48xf32, #tpu.memory_space<smem>>
    %1616 = vector.broadcast %1613 : f32 to vector<4x4xf32>
    %1617 = arith.subf %34, %1616 : vector<4x4xf32>
    %1618 = vector.broadcast %1365 : f32 to vector<4x4xf32>
    %1619 = arith.mulf %1617, %1618 : vector<4x4xf32>
    %1620 = vector.broadcast %1615 : f32 to vector<4x4xf32>
    %1621 = arith.subf %35, %1620 : vector<4x4xf32>
    %1622 = vector.broadcast %1368 : f32 to vector<4x4xf32>
    %1623 = arith.mulf %1621, %1622 : vector<4x4xf32>
    %1624 = arith.subf %1619, %1623 : vector<4x4xf32>
    %1625 = math.absf %1624 : vector<4x4xf32>
    %1626 = arith.addf %1611, %1625 : vector<4x4xf32>
    %1627 = arith.mulf %1626, %36 : vector<4x4xf32>
    %1628 = vector.shape_cast %1627 : vector<4x4xf32> to vector<1x4x4xf32>
    %cst_377 = arith.constant dense<0.000000e+00> : vector<1xf32>
    %1629 = vector.multi_reduction <add>, %1628, %cst_377 [1, 2] : vector<1x4x4xf32> to vector<1xf32>
    %1630 = vector.shape_cast %1629 : vector<1xf32> to vector<1x1x1xf32>
    %1631 = vector.extract %1630[0, 0, 0] : f32 from vector<1x1x1xf32>
    %1632 = arith.addf %1579, %1631 : f32
    %1633 = arith.addf %1580, %40 : f32
    %cst_378 = arith.constant 0.000000e+00 : f32
    %1634 = vector.broadcast %cst_378 : f32 to vector<4x4xf32>
    %1635 = arith.index_cast %arg0 : i32 to index
    %c5_379 = arith.constant 5 : index
    %1636 = memref.load %arg1[%1635, %c5_379] : memref<2x48xf32, #tpu.memory_space<smem>>
    %1637 = arith.index_cast %arg0 : i32 to index
    %c5_380 = arith.constant 5 : index
    %1638 = memref.load %arg2[%1637, %c5_380] : memref<2x48xf32, #tpu.memory_space<smem>>
    %1639 = vector.broadcast %1636 : f32 to vector<4x4xf32>
    %1640 = arith.subf %41, %1639 : vector<4x4xf32>
    %1641 = vector.broadcast %1134 : f32 to vector<4x4xf32>
    %1642 = arith.mulf %1640, %1641 : vector<4x4xf32>
    %1643 = vector.broadcast %1638 : f32 to vector<4x4xf32>
    %1644 = arith.subf %42, %1643 : vector<4x4xf32>
    %1645 = vector.broadcast %1137 : f32 to vector<4x4xf32>
    %1646 = arith.mulf %1644, %1645 : vector<4x4xf32>
    %1647 = arith.subf %1642, %1646 : vector<4x4xf32>
    %1648 = math.absf %1647 : vector<4x4xf32>
    %1649 = arith.addf %1634, %1648 : vector<4x4xf32>
    %1650 = arith.index_cast %arg0 : i32 to index
    %c21_381 = arith.constant 21 : index
    %1651 = memref.load %arg1[%1650, %c21_381] : memref<2x48xf32, #tpu.memory_space<smem>>
    %1652 = arith.index_cast %arg0 : i32 to index
    %c21_382 = arith.constant 21 : index
    %1653 = memref.load %arg2[%1652, %c21_382] : memref<2x48xf32, #tpu.memory_space<smem>>
    %1654 = vector.broadcast %1651 : f32 to vector<4x4xf32>
    %1655 = arith.subf %41, %1654 : vector<4x4xf32>
    %1656 = vector.broadcast %1253 : f32 to vector<4x4xf32>
    %1657 = arith.mulf %1655, %1656 : vector<4x4xf32>
    %1658 = vector.broadcast %1653 : f32 to vector<4x4xf32>
    %1659 = arith.subf %42, %1658 : vector<4x4xf32>
    %1660 = vector.broadcast %1256 : f32 to vector<4x4xf32>
    %1661 = arith.mulf %1659, %1660 : vector<4x4xf32>
    %1662 = arith.subf %1657, %1661 : vector<4x4xf32>
    %1663 = math.absf %1662 : vector<4x4xf32>
    %1664 = arith.addf %1649, %1663 : vector<4x4xf32>
    %1665 = arith.index_cast %arg0 : i32 to index
    %c37_383 = arith.constant 37 : index
    %1666 = memref.load %arg1[%1665, %c37_383] : memref<2x48xf32, #tpu.memory_space<smem>>
    %1667 = arith.index_cast %arg0 : i32 to index
    %c37_384 = arith.constant 37 : index
    %1668 = memref.load %arg2[%1667, %c37_384] : memref<2x48xf32, #tpu.memory_space<smem>>
    %1669 = vector.broadcast %1666 : f32 to vector<4x4xf32>
    %1670 = arith.subf %41, %1669 : vector<4x4xf32>
    %1671 = vector.broadcast %1365 : f32 to vector<4x4xf32>
    %1672 = arith.mulf %1670, %1671 : vector<4x4xf32>
    %1673 = vector.broadcast %1668 : f32 to vector<4x4xf32>
    %1674 = arith.subf %42, %1673 : vector<4x4xf32>
    %1675 = vector.broadcast %1368 : f32 to vector<4x4xf32>
    %1676 = arith.mulf %1674, %1675 : vector<4x4xf32>
    %1677 = arith.subf %1672, %1676 : vector<4x4xf32>
    %1678 = math.absf %1677 : vector<4x4xf32>
    %1679 = arith.addf %1664, %1678 : vector<4x4xf32>
    %1680 = arith.mulf %1679, %43 : vector<4x4xf32>
    %1681 = vector.shape_cast %1680 : vector<4x4xf32> to vector<1x4x4xf32>
    %cst_385 = arith.constant dense<0.000000e+00> : vector<1xf32>
    %1682 = vector.multi_reduction <add>, %1681, %cst_385 [1, 2] : vector<1x4x4xf32> to vector<1xf32>
    %1683 = vector.shape_cast %1682 : vector<1xf32> to vector<1x1x1xf32>
    %1684 = vector.extract %1683[0, 0, 0] : f32 from vector<1x1x1xf32>
    %1685 = arith.addf %1632, %1684 : f32
    %1686 = arith.addf %1633, %47 : f32
    %cst_386 = arith.constant 0.000000e+00 : f32
    %1687 = vector.broadcast %cst_386 : f32 to vector<4x4xf32>
    %1688 = arith.index_cast %arg0 : i32 to index
    %c6_387 = arith.constant 6 : index
    %1689 = memref.load %arg1[%1688, %c6_387] : memref<2x48xf32, #tpu.memory_space<smem>>
    %1690 = arith.index_cast %arg0 : i32 to index
    %c6_388 = arith.constant 6 : index
    %1691 = memref.load %arg2[%1690, %c6_388] : memref<2x48xf32, #tpu.memory_space<smem>>
    %1692 = vector.broadcast %1689 : f32 to vector<4x4xf32>
    %1693 = arith.subf %48, %1692 : vector<4x4xf32>
    %1694 = vector.broadcast %1144 : f32 to vector<4x4xf32>
    %1695 = arith.mulf %1693, %1694 : vector<4x4xf32>
    %1696 = vector.broadcast %1691 : f32 to vector<4x4xf32>
    %1697 = arith.subf %49, %1696 : vector<4x4xf32>
    %1698 = vector.broadcast %1147 : f32 to vector<4x4xf32>
    %1699 = arith.mulf %1697, %1698 : vector<4x4xf32>
    %1700 = arith.subf %1695, %1699 : vector<4x4xf32>
    %1701 = math.absf %1700 : vector<4x4xf32>
    %1702 = arith.addf %1687, %1701 : vector<4x4xf32>
    %1703 = arith.index_cast %arg0 : i32 to index
    %c22_389 = arith.constant 22 : index
    %1704 = memref.load %arg1[%1703, %c22_389] : memref<2x48xf32, #tpu.memory_space<smem>>
    %1705 = arith.index_cast %arg0 : i32 to index
    %c22_390 = arith.constant 22 : index
    %1706 = memref.load %arg2[%1705, %c22_390] : memref<2x48xf32, #tpu.memory_space<smem>>
    %1707 = vector.broadcast %1704 : f32 to vector<4x4xf32>
    %1708 = arith.subf %48, %1707 : vector<4x4xf32>
    %1709 = vector.broadcast %1272 : f32 to vector<4x4xf32>
    %1710 = arith.mulf %1708, %1709 : vector<4x4xf32>
    %1711 = vector.broadcast %1706 : f32 to vector<4x4xf32>
    %1712 = arith.subf %49, %1711 : vector<4x4xf32>
    %1713 = vector.broadcast %1275 : f32 to vector<4x4xf32>
    %1714 = arith.mulf %1712, %1713 : vector<4x4xf32>
    %1715 = arith.subf %1710, %1714 : vector<4x4xf32>
    %1716 = math.absf %1715 : vector<4x4xf32>
    %1717 = arith.addf %1702, %1716 : vector<4x4xf32>
    %1718 = arith.index_cast %arg0 : i32 to index
    %c38_391 = arith.constant 38 : index
    %1719 = memref.load %arg1[%1718, %c38_391] : memref<2x48xf32, #tpu.memory_space<smem>>
    %1720 = arith.index_cast %arg0 : i32 to index
    %c38_392 = arith.constant 38 : index
    %1721 = memref.load %arg2[%1720, %c38_392] : memref<2x48xf32, #tpu.memory_space<smem>>
    %1722 = vector.broadcast %1719 : f32 to vector<4x4xf32>
    %1723 = arith.subf %48, %1722 : vector<4x4xf32>
    %1724 = vector.broadcast %1365 : f32 to vector<4x4xf32>
    %1725 = arith.mulf %1723, %1724 : vector<4x4xf32>
    %1726 = vector.broadcast %1721 : f32 to vector<4x4xf32>
    %1727 = arith.subf %49, %1726 : vector<4x4xf32>
    %1728 = vector.broadcast %1368 : f32 to vector<4x4xf32>
    %1729 = arith.mulf %1727, %1728 : vector<4x4xf32>
    %1730 = arith.subf %1725, %1729 : vector<4x4xf32>
    %1731 = math.absf %1730 : vector<4x4xf32>
    %1732 = arith.addf %1717, %1731 : vector<4x4xf32>
    %1733 = arith.mulf %1732, %50 : vector<4x4xf32>
    %1734 = vector.shape_cast %1733 : vector<4x4xf32> to vector<1x4x4xf32>
    %cst_393 = arith.constant dense<0.000000e+00> : vector<1xf32>
    %1735 = vector.multi_reduction <add>, %1734, %cst_393 [1, 2] : vector<1x4x4xf32> to vector<1xf32>
    %1736 = vector.shape_cast %1735 : vector<1xf32> to vector<1x1x1xf32>
    %1737 = vector.extract %1736[0, 0, 0] : f32 from vector<1x1x1xf32>
    %1738 = arith.addf %1685, %1737 : f32
    %1739 = arith.addf %1686, %54 : f32
    %cst_394 = arith.constant 0.000000e+00 : f32
    %1740 = vector.broadcast %cst_394 : f32 to vector<4x4xf32>
    %1741 = arith.index_cast %arg0 : i32 to index
    %c7_395 = arith.constant 7 : index
    %1742 = memref.load %arg1[%1741, %c7_395] : memref<2x48xf32, #tpu.memory_space<smem>>
    %1743 = arith.index_cast %arg0 : i32 to index
    %c7_396 = arith.constant 7 : index
    %1744 = memref.load %arg2[%1743, %c7_396] : memref<2x48xf32, #tpu.memory_space<smem>>
    %1745 = vector.broadcast %1742 : f32 to vector<4x4xf32>
    %1746 = arith.subf %55, %1745 : vector<4x4xf32>
    %1747 = vector.broadcast %1154 : f32 to vector<4x4xf32>
    %1748 = arith.mulf %1746, %1747 : vector<4x4xf32>
    %1749 = vector.broadcast %1744 : f32 to vector<4x4xf32>
    %1750 = arith.subf %56, %1749 : vector<4x4xf32>
    %1751 = vector.broadcast %1157 : f32 to vector<4x4xf32>
    %1752 = arith.mulf %1750, %1751 : vector<4x4xf32>
    %1753 = arith.subf %1748, %1752 : vector<4x4xf32>
    %1754 = math.absf %1753 : vector<4x4xf32>
    %1755 = arith.addf %1740, %1754 : vector<4x4xf32>
    %1756 = arith.index_cast %arg0 : i32 to index
    %c23_397 = arith.constant 23 : index
    %1757 = memref.load %arg1[%1756, %c23_397] : memref<2x48xf32, #tpu.memory_space<smem>>
    %1758 = arith.index_cast %arg0 : i32 to index
    %c23_398 = arith.constant 23 : index
    %1759 = memref.load %arg2[%1758, %c23_398] : memref<2x48xf32, #tpu.memory_space<smem>>
    %1760 = vector.broadcast %1757 : f32 to vector<4x4xf32>
    %1761 = arith.subf %55, %1760 : vector<4x4xf32>
    %1762 = vector.broadcast %1272 : f32 to vector<4x4xf32>
    %1763 = arith.mulf %1761, %1762 : vector<4x4xf32>
    %1764 = vector.broadcast %1759 : f32 to vector<4x4xf32>
    %1765 = arith.subf %56, %1764 : vector<4x4xf32>
    %1766 = vector.broadcast %1275 : f32 to vector<4x4xf32>
    %1767 = arith.mulf %1765, %1766 : vector<4x4xf32>
    %1768 = arith.subf %1763, %1767 : vector<4x4xf32>
    %1769 = math.absf %1768 : vector<4x4xf32>
    %1770 = arith.addf %1755, %1769 : vector<4x4xf32>
    %1771 = arith.index_cast %arg0 : i32 to index
    %c39_399 = arith.constant 39 : index
    %1772 = memref.load %arg1[%1771, %c39_399] : memref<2x48xf32, #tpu.memory_space<smem>>
    %1773 = arith.index_cast %arg0 : i32 to index
    %c39_400 = arith.constant 39 : index
    %1774 = memref.load %arg2[%1773, %c39_400] : memref<2x48xf32, #tpu.memory_space<smem>>
    %1775 = vector.broadcast %1772 : f32 to vector<4x4xf32>
    %1776 = arith.subf %55, %1775 : vector<4x4xf32>
    %1777 = vector.broadcast %1365 : f32 to vector<4x4xf32>
    %1778 = arith.mulf %1776, %1777 : vector<4x4xf32>
    %1779 = vector.broadcast %1774 : f32 to vector<4x4xf32>
    %1780 = arith.subf %56, %1779 : vector<4x4xf32>
    %1781 = vector.broadcast %1368 : f32 to vector<4x4xf32>
    %1782 = arith.mulf %1780, %1781 : vector<4x4xf32>
    %1783 = arith.subf %1778, %1782 : vector<4x4xf32>
    %1784 = math.absf %1783 : vector<4x4xf32>
    %1785 = arith.addf %1770, %1784 : vector<4x4xf32>
    %1786 = arith.mulf %1785, %57 : vector<4x4xf32>
    %1787 = vector.shape_cast %1786 : vector<4x4xf32> to vector<1x4x4xf32>
    %cst_401 = arith.constant dense<0.000000e+00> : vector<1xf32>
    %1788 = vector.multi_reduction <add>, %1787, %cst_401 [1, 2] : vector<1x4x4xf32> to vector<1xf32>
    %1789 = vector.shape_cast %1788 : vector<1xf32> to vector<1x1x1xf32>
    %1790 = vector.extract %1789[0, 0, 0] : f32 from vector<1x1x1xf32>
    %1791 = arith.addf %1738, %1790 : f32
    %1792 = arith.addf %1739, %61 : f32
    %cst_402 = arith.constant 0.000000e+00 : f32
    %1793 = vector.broadcast %cst_402 : f32 to vector<4x4xf32>
    %1794 = arith.index_cast %arg0 : i32 to index
    %c8_403 = arith.constant 8 : index
    %1795 = memref.load %arg1[%1794, %c8_403] : memref<2x48xf32, #tpu.memory_space<smem>>
    %1796 = arith.index_cast %arg0 : i32 to index
    %c8_404 = arith.constant 8 : index
    %1797 = memref.load %arg2[%1796, %c8_404] : memref<2x48xf32, #tpu.memory_space<smem>>
    %1798 = vector.broadcast %1795 : f32 to vector<4x4xf32>
    %1799 = arith.subf %62, %1798 : vector<4x4xf32>
    %1800 = vector.broadcast %1164 : f32 to vector<4x4xf32>
    %1801 = arith.mulf %1799, %1800 : vector<4x4xf32>
    %1802 = vector.broadcast %1797 : f32 to vector<4x4xf32>
    %1803 = arith.subf %63, %1802 : vector<4x4xf32>
    %1804 = vector.broadcast %1167 : f32 to vector<4x4xf32>
    %1805 = arith.mulf %1803, %1804 : vector<4x4xf32>
    %1806 = arith.subf %1801, %1805 : vector<4x4xf32>
    %1807 = math.absf %1806 : vector<4x4xf32>
    %1808 = arith.addf %1793, %1807 : vector<4x4xf32>
    %1809 = arith.index_cast %arg0 : i32 to index
    %c24_405 = arith.constant 24 : index
    %1810 = memref.load %arg1[%1809, %c24_405] : memref<2x48xf32, #tpu.memory_space<smem>>
    %1811 = arith.index_cast %arg0 : i32 to index
    %c24_406 = arith.constant 24 : index
    %1812 = memref.load %arg2[%1811, %c24_406] : memref<2x48xf32, #tpu.memory_space<smem>>
    %1813 = vector.broadcast %1810 : f32 to vector<4x4xf32>
    %1814 = arith.subf %62, %1813 : vector<4x4xf32>
    %1815 = vector.broadcast %1291 : f32 to vector<4x4xf32>
    %1816 = arith.mulf %1814, %1815 : vector<4x4xf32>
    %1817 = vector.broadcast %1812 : f32 to vector<4x4xf32>
    %1818 = arith.subf %63, %1817 : vector<4x4xf32>
    %1819 = vector.broadcast %1294 : f32 to vector<4x4xf32>
    %1820 = arith.mulf %1818, %1819 : vector<4x4xf32>
    %1821 = arith.subf %1816, %1820 : vector<4x4xf32>
    %1822 = math.absf %1821 : vector<4x4xf32>
    %1823 = arith.addf %1808, %1822 : vector<4x4xf32>
    %1824 = arith.index_cast %arg0 : i32 to index
    %c40_407 = arith.constant 40 : index
    %1825 = memref.load %arg1[%1824, %c40_407] : memref<2x48xf32, #tpu.memory_space<smem>>
    %1826 = arith.index_cast %arg0 : i32 to index
    %c40_408 = arith.constant 40 : index
    %1827 = memref.load %arg2[%1826, %c40_408] : memref<2x48xf32, #tpu.memory_space<smem>>
    %1828 = vector.broadcast %1825 : f32 to vector<4x4xf32>
    %1829 = arith.subf %62, %1828 : vector<4x4xf32>
    %1830 = vector.broadcast %1365 : f32 to vector<4x4xf32>
    %1831 = arith.mulf %1829, %1830 : vector<4x4xf32>
    %1832 = vector.broadcast %1827 : f32 to vector<4x4xf32>
    %1833 = arith.subf %63, %1832 : vector<4x4xf32>
    %1834 = vector.broadcast %1368 : f32 to vector<4x4xf32>
    %1835 = arith.mulf %1833, %1834 : vector<4x4xf32>
    %1836 = arith.subf %1831, %1835 : vector<4x4xf32>
    %1837 = math.absf %1836 : vector<4x4xf32>
    %1838 = arith.addf %1823, %1837 : vector<4x4xf32>
    %1839 = arith.mulf %1838, %64 : vector<4x4xf32>
    %1840 = vector.shape_cast %1839 : vector<4x4xf32> to vector<1x4x4xf32>
    %cst_409 = arith.constant dense<0.000000e+00> : vector<1xf32>
    %1841 = vector.multi_reduction <add>, %1840, %cst_409 [1, 2] : vector<1x4x4xf32> to vector<1xf32>
    %1842 = vector.shape_cast %1841 : vector<1xf32> to vector<1x1x1xf32>
    %1843 = vector.extract %1842[0, 0, 0] : f32 from vector<1x1x1xf32>
    %1844 = arith.addf %1791, %1843 : f32
    %1845 = arith.addf %1792, %68 : f32
    %cst_410 = arith.constant 0.000000e+00 : f32
    %1846 = vector.broadcast %cst_410 : f32 to vector<4x4xf32>
    %1847 = arith.index_cast %arg0 : i32 to index
    %c9_411 = arith.constant 9 : index
    %1848 = memref.load %arg1[%1847, %c9_411] : memref<2x48xf32, #tpu.memory_space<smem>>
    %1849 = arith.index_cast %arg0 : i32 to index
    %c9_412 = arith.constant 9 : index
    %1850 = memref.load %arg2[%1849, %c9_412] : memref<2x48xf32, #tpu.memory_space<smem>>
    %1851 = vector.broadcast %1848 : f32 to vector<4x4xf32>
    %1852 = arith.subf %69, %1851 : vector<4x4xf32>
    %1853 = vector.broadcast %1174 : f32 to vector<4x4xf32>
    %1854 = arith.mulf %1852, %1853 : vector<4x4xf32>
    %1855 = vector.broadcast %1850 : f32 to vector<4x4xf32>
    %1856 = arith.subf %70, %1855 : vector<4x4xf32>
    %1857 = vector.broadcast %1177 : f32 to vector<4x4xf32>
    %1858 = arith.mulf %1856, %1857 : vector<4x4xf32>
    %1859 = arith.subf %1854, %1858 : vector<4x4xf32>
    %1860 = math.absf %1859 : vector<4x4xf32>
    %1861 = arith.addf %1846, %1860 : vector<4x4xf32>
    %1862 = arith.index_cast %arg0 : i32 to index
    %c25_413 = arith.constant 25 : index
    %1863 = memref.load %arg1[%1862, %c25_413] : memref<2x48xf32, #tpu.memory_space<smem>>
    %1864 = arith.index_cast %arg0 : i32 to index
    %c25_414 = arith.constant 25 : index
    %1865 = memref.load %arg2[%1864, %c25_414] : memref<2x48xf32, #tpu.memory_space<smem>>
    %1866 = vector.broadcast %1863 : f32 to vector<4x4xf32>
    %1867 = arith.subf %69, %1866 : vector<4x4xf32>
    %1868 = vector.broadcast %1291 : f32 to vector<4x4xf32>
    %1869 = arith.mulf %1867, %1868 : vector<4x4xf32>
    %1870 = vector.broadcast %1865 : f32 to vector<4x4xf32>
    %1871 = arith.subf %70, %1870 : vector<4x4xf32>
    %1872 = vector.broadcast %1294 : f32 to vector<4x4xf32>
    %1873 = arith.mulf %1871, %1872 : vector<4x4xf32>
    %1874 = arith.subf %1869, %1873 : vector<4x4xf32>
    %1875 = math.absf %1874 : vector<4x4xf32>
    %1876 = arith.addf %1861, %1875 : vector<4x4xf32>
    %1877 = arith.index_cast %arg0 : i32 to index
    %c41_415 = arith.constant 41 : index
    %1878 = memref.load %arg1[%1877, %c41_415] : memref<2x48xf32, #tpu.memory_space<smem>>
    %1879 = arith.index_cast %arg0 : i32 to index
    %c41_416 = arith.constant 41 : index
    %1880 = memref.load %arg2[%1879, %c41_416] : memref<2x48xf32, #tpu.memory_space<smem>>
    %1881 = vector.broadcast %1878 : f32 to vector<4x4xf32>
    %1882 = arith.subf %69, %1881 : vector<4x4xf32>
    %1883 = vector.broadcast %1365 : f32 to vector<4x4xf32>
    %1884 = arith.mulf %1882, %1883 : vector<4x4xf32>
    %1885 = vector.broadcast %1880 : f32 to vector<4x4xf32>
    %1886 = arith.subf %70, %1885 : vector<4x4xf32>
    %1887 = vector.broadcast %1368 : f32 to vector<4x4xf32>
    %1888 = arith.mulf %1886, %1887 : vector<4x4xf32>
    %1889 = arith.subf %1884, %1888 : vector<4x4xf32>
    %1890 = math.absf %1889 : vector<4x4xf32>
    %1891 = arith.addf %1876, %1890 : vector<4x4xf32>
    %1892 = arith.mulf %1891, %71 : vector<4x4xf32>
    %1893 = vector.shape_cast %1892 : vector<4x4xf32> to vector<1x4x4xf32>
    %cst_417 = arith.constant dense<0.000000e+00> : vector<1xf32>
    %1894 = vector.multi_reduction <add>, %1893, %cst_417 [1, 2] : vector<1x4x4xf32> to vector<1xf32>
    %1895 = vector.shape_cast %1894 : vector<1xf32> to vector<1x1x1xf32>
    %1896 = vector.extract %1895[0, 0, 0] : f32 from vector<1x1x1xf32>
    %1897 = arith.addf %1844, %1896 : f32
    %1898 = arith.addf %1845, %75 : f32
    %cst_418 = arith.constant 0.000000e+00 : f32
    %1899 = vector.broadcast %cst_418 : f32 to vector<4x4xf32>
    %1900 = arith.index_cast %arg0 : i32 to index
    %c10_419 = arith.constant 10 : index
    %1901 = memref.load %arg1[%1900, %c10_419] : memref<2x48xf32, #tpu.memory_space<smem>>
    %1902 = arith.index_cast %arg0 : i32 to index
    %c10_420 = arith.constant 10 : index
    %1903 = memref.load %arg2[%1902, %c10_420] : memref<2x48xf32, #tpu.memory_space<smem>>
    %1904 = vector.broadcast %1901 : f32 to vector<4x4xf32>
    %1905 = arith.subf %76, %1904 : vector<4x4xf32>
    %1906 = vector.broadcast %1184 : f32 to vector<4x4xf32>
    %1907 = arith.mulf %1905, %1906 : vector<4x4xf32>
    %1908 = vector.broadcast %1903 : f32 to vector<4x4xf32>
    %1909 = arith.subf %77, %1908 : vector<4x4xf32>
    %1910 = vector.broadcast %1187 : f32 to vector<4x4xf32>
    %1911 = arith.mulf %1909, %1910 : vector<4x4xf32>
    %1912 = arith.subf %1907, %1911 : vector<4x4xf32>
    %1913 = math.absf %1912 : vector<4x4xf32>
    %1914 = arith.addf %1899, %1913 : vector<4x4xf32>
    %1915 = arith.index_cast %arg0 : i32 to index
    %c26_421 = arith.constant 26 : index
    %1916 = memref.load %arg1[%1915, %c26_421] : memref<2x48xf32, #tpu.memory_space<smem>>
    %1917 = arith.index_cast %arg0 : i32 to index
    %c26_422 = arith.constant 26 : index
    %1918 = memref.load %arg2[%1917, %c26_422] : memref<2x48xf32, #tpu.memory_space<smem>>
    %1919 = vector.broadcast %1916 : f32 to vector<4x4xf32>
    %1920 = arith.subf %76, %1919 : vector<4x4xf32>
    %1921 = vector.broadcast %1310 : f32 to vector<4x4xf32>
    %1922 = arith.mulf %1920, %1921 : vector<4x4xf32>
    %1923 = vector.broadcast %1918 : f32 to vector<4x4xf32>
    %1924 = arith.subf %77, %1923 : vector<4x4xf32>
    %1925 = vector.broadcast %1313 : f32 to vector<4x4xf32>
    %1926 = arith.mulf %1924, %1925 : vector<4x4xf32>
    %1927 = arith.subf %1922, %1926 : vector<4x4xf32>
    %1928 = math.absf %1927 : vector<4x4xf32>
    %1929 = arith.addf %1914, %1928 : vector<4x4xf32>
    %1930 = arith.index_cast %arg0 : i32 to index
    %c42_423 = arith.constant 42 : index
    %1931 = memref.load %arg1[%1930, %c42_423] : memref<2x48xf32, #tpu.memory_space<smem>>
    %1932 = arith.index_cast %arg0 : i32 to index
    %c42_424 = arith.constant 42 : index
    %1933 = memref.load %arg2[%1932, %c42_424] : memref<2x48xf32, #tpu.memory_space<smem>>
    %1934 = vector.broadcast %1931 : f32 to vector<4x4xf32>
    %1935 = arith.subf %76, %1934 : vector<4x4xf32>
    %1936 = vector.broadcast %1365 : f32 to vector<4x4xf32>
    %1937 = arith.mulf %1935, %1936 : vector<4x4xf32>
    %1938 = vector.broadcast %1933 : f32 to vector<4x4xf32>
    %1939 = arith.subf %77, %1938 : vector<4x4xf32>
    %1940 = vector.broadcast %1368 : f32 to vector<4x4xf32>
    %1941 = arith.mulf %1939, %1940 : vector<4x4xf32>
    %1942 = arith.subf %1937, %1941 : vector<4x4xf32>
    %1943 = math.absf %1942 : vector<4x4xf32>
    %1944 = arith.addf %1929, %1943 : vector<4x4xf32>
    %1945 = arith.mulf %1944, %78 : vector<4x4xf32>
    %1946 = vector.shape_cast %1945 : vector<4x4xf32> to vector<1x4x4xf32>
    %cst_425 = arith.constant dense<0.000000e+00> : vector<1xf32>
    %1947 = vector.multi_reduction <add>, %1946, %cst_425 [1, 2] : vector<1x4x4xf32> to vector<1xf32>
    %1948 = vector.shape_cast %1947 : vector<1xf32> to vector<1x1x1xf32>
    %1949 = vector.extract %1948[0, 0, 0] : f32 from vector<1x1x1xf32>
    %1950 = arith.addf %1897, %1949 : f32
    %1951 = arith.addf %1898, %82 : f32
    %cst_426 = arith.constant 0.000000e+00 : f32
    %1952 = vector.broadcast %cst_426 : f32 to vector<4x4xf32>
    %1953 = arith.index_cast %arg0 : i32 to index
    %c11_427 = arith.constant 11 : index
    %1954 = memref.load %arg1[%1953, %c11_427] : memref<2x48xf32, #tpu.memory_space<smem>>
    %1955 = arith.index_cast %arg0 : i32 to index
    %c11_428 = arith.constant 11 : index
    %1956 = memref.load %arg2[%1955, %c11_428] : memref<2x48xf32, #tpu.memory_space<smem>>
    %1957 = vector.broadcast %1954 : f32 to vector<4x4xf32>
    %1958 = arith.subf %83, %1957 : vector<4x4xf32>
    %1959 = vector.broadcast %1194 : f32 to vector<4x4xf32>
    %1960 = arith.mulf %1958, %1959 : vector<4x4xf32>
    %1961 = vector.broadcast %1956 : f32 to vector<4x4xf32>
    %1962 = arith.subf %84, %1961 : vector<4x4xf32>
    %1963 = vector.broadcast %1197 : f32 to vector<4x4xf32>
    %1964 = arith.mulf %1962, %1963 : vector<4x4xf32>
    %1965 = arith.subf %1960, %1964 : vector<4x4xf32>
    %1966 = math.absf %1965 : vector<4x4xf32>
    %1967 = arith.addf %1952, %1966 : vector<4x4xf32>
    %1968 = arith.index_cast %arg0 : i32 to index
    %c27_429 = arith.constant 27 : index
    %1969 = memref.load %arg1[%1968, %c27_429] : memref<2x48xf32, #tpu.memory_space<smem>>
    %1970 = arith.index_cast %arg0 : i32 to index
    %c27_430 = arith.constant 27 : index
    %1971 = memref.load %arg2[%1970, %c27_430] : memref<2x48xf32, #tpu.memory_space<smem>>
    %1972 = vector.broadcast %1969 : f32 to vector<4x4xf32>
    %1973 = arith.subf %83, %1972 : vector<4x4xf32>
    %1974 = vector.broadcast %1310 : f32 to vector<4x4xf32>
    %1975 = arith.mulf %1973, %1974 : vector<4x4xf32>
    %1976 = vector.broadcast %1971 : f32 to vector<4x4xf32>
    %1977 = arith.subf %84, %1976 : vector<4x4xf32>
    %1978 = vector.broadcast %1313 : f32 to vector<4x4xf32>
    %1979 = arith.mulf %1977, %1978 : vector<4x4xf32>
    %1980 = arith.subf %1975, %1979 : vector<4x4xf32>
    %1981 = math.absf %1980 : vector<4x4xf32>
    %1982 = arith.addf %1967, %1981 : vector<4x4xf32>
    %1983 = arith.index_cast %arg0 : i32 to index
    %c43_431 = arith.constant 43 : index
    %1984 = memref.load %arg1[%1983, %c43_431] : memref<2x48xf32, #tpu.memory_space<smem>>
    %1985 = arith.index_cast %arg0 : i32 to index
    %c43_432 = arith.constant 43 : index
    %1986 = memref.load %arg2[%1985, %c43_432] : memref<2x48xf32, #tpu.memory_space<smem>>
    %1987 = vector.broadcast %1984 : f32 to vector<4x4xf32>
    %1988 = arith.subf %83, %1987 : vector<4x4xf32>
    %1989 = vector.broadcast %1365 : f32 to vector<4x4xf32>
    %1990 = arith.mulf %1988, %1989 : vector<4x4xf32>
    %1991 = vector.broadcast %1986 : f32 to vector<4x4xf32>
    %1992 = arith.subf %84, %1991 : vector<4x4xf32>
    %1993 = vector.broadcast %1368 : f32 to vector<4x4xf32>
    %1994 = arith.mulf %1992, %1993 : vector<4x4xf32>
    %1995 = arith.subf %1990, %1994 : vector<4x4xf32>
    %1996 = math.absf %1995 : vector<4x4xf32>
    %1997 = arith.addf %1982, %1996 : vector<4x4xf32>
    %1998 = arith.mulf %1997, %85 : vector<4x4xf32>
    %1999 = vector.shape_cast %1998 : vector<4x4xf32> to vector<1x4x4xf32>
    %cst_433 = arith.constant dense<0.000000e+00> : vector<1xf32>
    %2000 = vector.multi_reduction <add>, %1999, %cst_433 [1, 2] : vector<1x4x4xf32> to vector<1xf32>
    %2001 = vector.shape_cast %2000 : vector<1xf32> to vector<1x1x1xf32>
    %2002 = vector.extract %2001[0, 0, 0] : f32 from vector<1x1x1xf32>
    %2003 = arith.addf %1950, %2002 : f32
    %2004 = arith.addf %1951, %89 : f32
    %cst_434 = arith.constant 0.000000e+00 : f32
    %2005 = vector.broadcast %cst_434 : f32 to vector<4x4xf32>
    %2006 = arith.index_cast %arg0 : i32 to index
    %c12_435 = arith.constant 12 : index
    %2007 = memref.load %arg1[%2006, %c12_435] : memref<2x48xf32, #tpu.memory_space<smem>>
    %2008 = arith.index_cast %arg0 : i32 to index
    %c12_436 = arith.constant 12 : index
    %2009 = memref.load %arg2[%2008, %c12_436] : memref<2x48xf32, #tpu.memory_space<smem>>
    %2010 = vector.broadcast %2007 : f32 to vector<4x4xf32>
    %2011 = arith.subf %90, %2010 : vector<4x4xf32>
    %2012 = vector.broadcast %1204 : f32 to vector<4x4xf32>
    %2013 = arith.mulf %2011, %2012 : vector<4x4xf32>
    %2014 = vector.broadcast %2009 : f32 to vector<4x4xf32>
    %2015 = arith.subf %91, %2014 : vector<4x4xf32>
    %2016 = vector.broadcast %1207 : f32 to vector<4x4xf32>
    %2017 = arith.mulf %2015, %2016 : vector<4x4xf32>
    %2018 = arith.subf %2013, %2017 : vector<4x4xf32>
    %2019 = math.absf %2018 : vector<4x4xf32>
    %2020 = arith.addf %2005, %2019 : vector<4x4xf32>
    %2021 = arith.index_cast %arg0 : i32 to index
    %c28_437 = arith.constant 28 : index
    %2022 = memref.load %arg1[%2021, %c28_437] : memref<2x48xf32, #tpu.memory_space<smem>>
    %2023 = arith.index_cast %arg0 : i32 to index
    %c28_438 = arith.constant 28 : index
    %2024 = memref.load %arg2[%2023, %c28_438] : memref<2x48xf32, #tpu.memory_space<smem>>
    %2025 = vector.broadcast %2022 : f32 to vector<4x4xf32>
    %2026 = arith.subf %90, %2025 : vector<4x4xf32>
    %2027 = vector.broadcast %1291 : f32 to vector<4x4xf32>
    %2028 = arith.mulf %2026, %2027 : vector<4x4xf32>
    %2029 = vector.broadcast %2024 : f32 to vector<4x4xf32>
    %2030 = arith.subf %91, %2029 : vector<4x4xf32>
    %2031 = vector.broadcast %1294 : f32 to vector<4x4xf32>
    %2032 = arith.mulf %2030, %2031 : vector<4x4xf32>
    %2033 = arith.subf %2028, %2032 : vector<4x4xf32>
    %2034 = math.absf %2033 : vector<4x4xf32>
    %2035 = arith.addf %2020, %2034 : vector<4x4xf32>
    %2036 = arith.index_cast %arg0 : i32 to index
    %c44_439 = arith.constant 44 : index
    %2037 = memref.load %arg1[%2036, %c44_439] : memref<2x48xf32, #tpu.memory_space<smem>>
    %2038 = arith.index_cast %arg0 : i32 to index
    %c44_440 = arith.constant 44 : index
    %2039 = memref.load %arg2[%2038, %c44_440] : memref<2x48xf32, #tpu.memory_space<smem>>
    %2040 = vector.broadcast %2037 : f32 to vector<4x4xf32>
    %2041 = arith.subf %90, %2040 : vector<4x4xf32>
    %2042 = vector.broadcast %1365 : f32 to vector<4x4xf32>
    %2043 = arith.mulf %2041, %2042 : vector<4x4xf32>
    %2044 = vector.broadcast %2039 : f32 to vector<4x4xf32>
    %2045 = arith.subf %91, %2044 : vector<4x4xf32>
    %2046 = vector.broadcast %1368 : f32 to vector<4x4xf32>
    %2047 = arith.mulf %2045, %2046 : vector<4x4xf32>
    %2048 = arith.subf %2043, %2047 : vector<4x4xf32>
    %2049 = math.absf %2048 : vector<4x4xf32>
    %2050 = arith.addf %2035, %2049 : vector<4x4xf32>
    %2051 = arith.mulf %2050, %92 : vector<4x4xf32>
    %2052 = vector.shape_cast %2051 : vector<4x4xf32> to vector<1x4x4xf32>
    %cst_441 = arith.constant dense<0.000000e+00> : vector<1xf32>
    %2053 = vector.multi_reduction <add>, %2052, %cst_441 [1, 2] : vector<1x4x4xf32> to vector<1xf32>
    %2054 = vector.shape_cast %2053 : vector<1xf32> to vector<1x1x1xf32>
    %2055 = vector.extract %2054[0, 0, 0] : f32 from vector<1x1x1xf32>
    %2056 = arith.addf %2003, %2055 : f32
    %2057 = arith.addf %2004, %96 : f32
    %cst_442 = arith.constant 0.000000e+00 : f32
    %2058 = vector.broadcast %cst_442 : f32 to vector<4x4xf32>
    %2059 = arith.index_cast %arg0 : i32 to index
    %c13_443 = arith.constant 13 : index
    %2060 = memref.load %arg1[%2059, %c13_443] : memref<2x48xf32, #tpu.memory_space<smem>>
    %2061 = arith.index_cast %arg0 : i32 to index
    %c13_444 = arith.constant 13 : index
    %2062 = memref.load %arg2[%2061, %c13_444] : memref<2x48xf32, #tpu.memory_space<smem>>
    %2063 = vector.broadcast %2060 : f32 to vector<4x4xf32>
    %2064 = arith.subf %97, %2063 : vector<4x4xf32>
    %2065 = vector.broadcast %1214 : f32 to vector<4x4xf32>
    %2066 = arith.mulf %2064, %2065 : vector<4x4xf32>
    %2067 = vector.broadcast %2062 : f32 to vector<4x4xf32>
    %2068 = arith.subf %98, %2067 : vector<4x4xf32>
    %2069 = vector.broadcast %1217 : f32 to vector<4x4xf32>
    %2070 = arith.mulf %2068, %2069 : vector<4x4xf32>
    %2071 = arith.subf %2066, %2070 : vector<4x4xf32>
    %2072 = math.absf %2071 : vector<4x4xf32>
    %2073 = arith.addf %2058, %2072 : vector<4x4xf32>
    %2074 = arith.index_cast %arg0 : i32 to index
    %c29_445 = arith.constant 29 : index
    %2075 = memref.load %arg1[%2074, %c29_445] : memref<2x48xf32, #tpu.memory_space<smem>>
    %2076 = arith.index_cast %arg0 : i32 to index
    %c29_446 = arith.constant 29 : index
    %2077 = memref.load %arg2[%2076, %c29_446] : memref<2x48xf32, #tpu.memory_space<smem>>
    %2078 = vector.broadcast %2075 : f32 to vector<4x4xf32>
    %2079 = arith.subf %97, %2078 : vector<4x4xf32>
    %2080 = vector.broadcast %1291 : f32 to vector<4x4xf32>
    %2081 = arith.mulf %2079, %2080 : vector<4x4xf32>
    %2082 = vector.broadcast %2077 : f32 to vector<4x4xf32>
    %2083 = arith.subf %98, %2082 : vector<4x4xf32>
    %2084 = vector.broadcast %1294 : f32 to vector<4x4xf32>
    %2085 = arith.mulf %2083, %2084 : vector<4x4xf32>
    %2086 = arith.subf %2081, %2085 : vector<4x4xf32>
    %2087 = math.absf %2086 : vector<4x4xf32>
    %2088 = arith.addf %2073, %2087 : vector<4x4xf32>
    %2089 = arith.index_cast %arg0 : i32 to index
    %c45_447 = arith.constant 45 : index
    %2090 = memref.load %arg1[%2089, %c45_447] : memref<2x48xf32, #tpu.memory_space<smem>>
    %2091 = arith.index_cast %arg0 : i32 to index
    %c45_448 = arith.constant 45 : index
    %2092 = memref.load %arg2[%2091, %c45_448] : memref<2x48xf32, #tpu.memory_space<smem>>
    %2093 = vector.broadcast %2090 : f32 to vector<4x4xf32>
    %2094 = arith.subf %97, %2093 : vector<4x4xf32>
    %2095 = vector.broadcast %1365 : f32 to vector<4x4xf32>
    %2096 = arith.mulf %2094, %2095 : vector<4x4xf32>
    %2097 = vector.broadcast %2092 : f32 to vector<4x4xf32>
    %2098 = arith.subf %98, %2097 : vector<4x4xf32>
    %2099 = vector.broadcast %1368 : f32 to vector<4x4xf32>
    %2100 = arith.mulf %2098, %2099 : vector<4x4xf32>
    %2101 = arith.subf %2096, %2100 : vector<4x4xf32>
    %2102 = math.absf %2101 : vector<4x4xf32>
    %2103 = arith.addf %2088, %2102 : vector<4x4xf32>
    %2104 = arith.mulf %2103, %99 : vector<4x4xf32>
    %2105 = vector.shape_cast %2104 : vector<4x4xf32> to vector<1x4x4xf32>
    %cst_449 = arith.constant dense<0.000000e+00> : vector<1xf32>
    %2106 = vector.multi_reduction <add>, %2105, %cst_449 [1, 2] : vector<1x4x4xf32> to vector<1xf32>
    %2107 = vector.shape_cast %2106 : vector<1xf32> to vector<1x1x1xf32>
    %2108 = vector.extract %2107[0, 0, 0] : f32 from vector<1x1x1xf32>
    %2109 = arith.addf %2056, %2108 : f32
    %2110 = arith.addf %2057, %103 : f32
    %cst_450 = arith.constant 0.000000e+00 : f32
    %2111 = vector.broadcast %cst_450 : f32 to vector<4x4xf32>
    %2112 = arith.index_cast %arg0 : i32 to index
    %c14_451 = arith.constant 14 : index
    %2113 = memref.load %arg1[%2112, %c14_451] : memref<2x48xf32, #tpu.memory_space<smem>>
    %2114 = arith.index_cast %arg0 : i32 to index
    %c14_452 = arith.constant 14 : index
    %2115 = memref.load %arg2[%2114, %c14_452] : memref<2x48xf32, #tpu.memory_space<smem>>
    %2116 = vector.broadcast %2113 : f32 to vector<4x4xf32>
    %2117 = arith.subf %104, %2116 : vector<4x4xf32>
    %2118 = vector.broadcast %1224 : f32 to vector<4x4xf32>
    %2119 = arith.mulf %2117, %2118 : vector<4x4xf32>
    %2120 = vector.broadcast %2115 : f32 to vector<4x4xf32>
    %2121 = arith.subf %105, %2120 : vector<4x4xf32>
    %2122 = vector.broadcast %1227 : f32 to vector<4x4xf32>
    %2123 = arith.mulf %2121, %2122 : vector<4x4xf32>
    %2124 = arith.subf %2119, %2123 : vector<4x4xf32>
    %2125 = math.absf %2124 : vector<4x4xf32>
    %2126 = arith.addf %2111, %2125 : vector<4x4xf32>
    %2127 = arith.index_cast %arg0 : i32 to index
    %c30_453 = arith.constant 30 : index
    %2128 = memref.load %arg1[%2127, %c30_453] : memref<2x48xf32, #tpu.memory_space<smem>>
    %2129 = arith.index_cast %arg0 : i32 to index
    %c30_454 = arith.constant 30 : index
    %2130 = memref.load %arg2[%2129, %c30_454] : memref<2x48xf32, #tpu.memory_space<smem>>
    %2131 = vector.broadcast %2128 : f32 to vector<4x4xf32>
    %2132 = arith.subf %104, %2131 : vector<4x4xf32>
    %2133 = vector.broadcast %1310 : f32 to vector<4x4xf32>
    %2134 = arith.mulf %2132, %2133 : vector<4x4xf32>
    %2135 = vector.broadcast %2130 : f32 to vector<4x4xf32>
    %2136 = arith.subf %105, %2135 : vector<4x4xf32>
    %2137 = vector.broadcast %1313 : f32 to vector<4x4xf32>
    %2138 = arith.mulf %2136, %2137 : vector<4x4xf32>
    %2139 = arith.subf %2134, %2138 : vector<4x4xf32>
    %2140 = math.absf %2139 : vector<4x4xf32>
    %2141 = arith.addf %2126, %2140 : vector<4x4xf32>
    %2142 = arith.index_cast %arg0 : i32 to index
    %c46_455 = arith.constant 46 : index
    %2143 = memref.load %arg1[%2142, %c46_455] : memref<2x48xf32, #tpu.memory_space<smem>>
    %2144 = arith.index_cast %arg0 : i32 to index
    %c46_456 = arith.constant 46 : index
    %2145 = memref.load %arg2[%2144, %c46_456] : memref<2x48xf32, #tpu.memory_space<smem>>
    %2146 = vector.broadcast %2143 : f32 to vector<4x4xf32>
    %2147 = arith.subf %104, %2146 : vector<4x4xf32>
    %2148 = vector.broadcast %1365 : f32 to vector<4x4xf32>
    %2149 = arith.mulf %2147, %2148 : vector<4x4xf32>
    %2150 = vector.broadcast %2145 : f32 to vector<4x4xf32>
    %2151 = arith.subf %105, %2150 : vector<4x4xf32>
    %2152 = vector.broadcast %1368 : f32 to vector<4x4xf32>
    %2153 = arith.mulf %2151, %2152 : vector<4x4xf32>
    %2154 = arith.subf %2149, %2153 : vector<4x4xf32>
    %2155 = math.absf %2154 : vector<4x4xf32>
    %2156 = arith.addf %2141, %2155 : vector<4x4xf32>
    %2157 = arith.mulf %2156, %106 : vector<4x4xf32>
    %2158 = vector.shape_cast %2157 : vector<4x4xf32> to vector<1x4x4xf32>
    %cst_457 = arith.constant dense<0.000000e+00> : vector<1xf32>
    %2159 = vector.multi_reduction <add>, %2158, %cst_457 [1, 2] : vector<1x4x4xf32> to vector<1xf32>
    %2160 = vector.shape_cast %2159 : vector<1xf32> to vector<1x1x1xf32>
    %2161 = vector.extract %2160[0, 0, 0] : f32 from vector<1x1x1xf32>
    %2162 = arith.addf %2109, %2161 : f32
    %2163 = arith.addf %2110, %110 : f32
    %cst_458 = arith.constant 0.000000e+00 : f32
    %2164 = vector.broadcast %cst_458 : f32 to vector<4x4xf32>
    %2165 = arith.index_cast %arg0 : i32 to index
    %c15_459 = arith.constant 15 : index
    %2166 = memref.load %arg1[%2165, %c15_459] : memref<2x48xf32, #tpu.memory_space<smem>>
    %2167 = arith.index_cast %arg0 : i32 to index
    %c15_460 = arith.constant 15 : index
    %2168 = memref.load %arg2[%2167, %c15_460] : memref<2x48xf32, #tpu.memory_space<smem>>
    %2169 = vector.broadcast %2166 : f32 to vector<4x4xf32>
    %2170 = arith.subf %111, %2169 : vector<4x4xf32>
    %2171 = vector.broadcast %1234 : f32 to vector<4x4xf32>
    %2172 = arith.mulf %2170, %2171 : vector<4x4xf32>
    %2173 = vector.broadcast %2168 : f32 to vector<4x4xf32>
    %2174 = arith.subf %112, %2173 : vector<4x4xf32>
    %2175 = vector.broadcast %1237 : f32 to vector<4x4xf32>
    %2176 = arith.mulf %2174, %2175 : vector<4x4xf32>
    %2177 = arith.subf %2172, %2176 : vector<4x4xf32>
    %2178 = math.absf %2177 : vector<4x4xf32>
    %2179 = arith.addf %2164, %2178 : vector<4x4xf32>
    %2180 = arith.index_cast %arg0 : i32 to index
    %c31_461 = arith.constant 31 : index
    %2181 = memref.load %arg1[%2180, %c31_461] : memref<2x48xf32, #tpu.memory_space<smem>>
    %2182 = arith.index_cast %arg0 : i32 to index
    %c31_462 = arith.constant 31 : index
    %2183 = memref.load %arg2[%2182, %c31_462] : memref<2x48xf32, #tpu.memory_space<smem>>
    %2184 = vector.broadcast %2181 : f32 to vector<4x4xf32>
    %2185 = arith.subf %111, %2184 : vector<4x4xf32>
    %2186 = vector.broadcast %1310 : f32 to vector<4x4xf32>
    %2187 = arith.mulf %2185, %2186 : vector<4x4xf32>
    %2188 = vector.broadcast %2183 : f32 to vector<4x4xf32>
    %2189 = arith.subf %112, %2188 : vector<4x4xf32>
    %2190 = vector.broadcast %1313 : f32 to vector<4x4xf32>
    %2191 = arith.mulf %2189, %2190 : vector<4x4xf32>
    %2192 = arith.subf %2187, %2191 : vector<4x4xf32>
    %2193 = math.absf %2192 : vector<4x4xf32>
    %2194 = arith.addf %2179, %2193 : vector<4x4xf32>
    %2195 = arith.index_cast %arg0 : i32 to index
    %c47_463 = arith.constant 47 : index
    %2196 = memref.load %arg1[%2195, %c47_463] : memref<2x48xf32, #tpu.memory_space<smem>>
    %2197 = arith.index_cast %arg0 : i32 to index
    %c47_464 = arith.constant 47 : index
    %2198 = memref.load %arg2[%2197, %c47_464] : memref<2x48xf32, #tpu.memory_space<smem>>
    %2199 = vector.broadcast %2196 : f32 to vector<4x4xf32>
    %2200 = arith.subf %111, %2199 : vector<4x4xf32>
    %2201 = vector.broadcast %1365 : f32 to vector<4x4xf32>
    %2202 = arith.mulf %2200, %2201 : vector<4x4xf32>
    %2203 = vector.broadcast %2198 : f32 to vector<4x4xf32>
    %2204 = arith.subf %112, %2203 : vector<4x4xf32>
    %2205 = vector.broadcast %1368 : f32 to vector<4x4xf32>
    %2206 = arith.mulf %2204, %2205 : vector<4x4xf32>
    %2207 = arith.subf %2202, %2206 : vector<4x4xf32>
    %2208 = math.absf %2207 : vector<4x4xf32>
    %2209 = arith.addf %2194, %2208 : vector<4x4xf32>
    %2210 = arith.mulf %2209, %113 : vector<4x4xf32>
    %2211 = vector.shape_cast %2210 : vector<4x4xf32> to vector<1x4x4xf32>
    %cst_465 = arith.constant dense<0.000000e+00> : vector<1xf32>
    %2212 = vector.multi_reduction <add>, %2211, %cst_465 [1, 2] : vector<1x4x4xf32> to vector<1xf32>
    %2213 = vector.shape_cast %2212 : vector<1xf32> to vector<1x1x1xf32>
    %2214 = vector.extract %2213[0, 0, 0] : f32 from vector<1x1x1xf32>
    %2215 = arith.addf %2162, %2214 : f32
    %2216 = arith.addf %2163, %117 : f32
    %2217 = vector.broadcast %2215 : f32 to vector<1x1x1xf32>
    %c0_466 = arith.constant 0 : index
    %c0_467 = arith.constant 0 : index
    %c0_468 = arith.constant 0 : index
    %2218 = vector.load %arg6[%c0_466, %c0_467, %c0_468] : memref<1x1x1xf32, #tpu.memory_space<vmem>>, vector<1x1x1xf32>
    tpu.vector_store %arg6[%c0_466, %c0_467, %c0_468], %2217 {strides = array<i32>} : memref<1x1x1xf32, #tpu.memory_space<vmem>>, vector<1x1x1xf32>,
    %2219 = vector.broadcast %2216 : f32 to vector<1x1x1xf32>
    %c0_469 = arith.constant 0 : index
    %c0_470 = arith.constant 0 : index
    %c0_471 = arith.constant 0 : index
    %2220 = vector.load %arg7[%c0_469, %c0_470, %c0_471] : memref<1x1x1xf32, #tpu.memory_space<vmem>>, vector<1x1x1xf32>
    tpu.vector_store %arg7[%c0_469, %c0_470, %c0_471], %2219 {strides = array<i32>} : memref<1x1x1xf32, #tpu.memory_space<vmem>>, vector<1x1x1xf32>,
    return
  }
  func.func @transform_0(%arg0: i32) -> (i32, i32) {
    %c0_i32 = arith.constant 0 : i32
    %c0_i32_0 = arith.constant 0 : i32
    %c0_i32_1 = arith.constant 0 : i32
    return %c0_i32, %c0_i32_0 : i32, i32
  }
  func.func @transform_1(%arg0: i32) -> (i32, i32) {
    %c0_i32 = arith.constant 0 : i32
    %c0_i32_0 = arith.constant 0 : i32
    %c0_i32_1 = arith.constant 0 : i32
    return %c0_i32, %c0_i32_0 : i32, i32
  }
  func.func @transform_2(%arg0: i32) -> (i32, i32, i32) {
    %c0_i32 = arith.constant 0 : i32
    %c0_i32_0 = arith.constant 0 : i32
    %c0_i32_1 = arith.constant 0 : i32
    return %arg0, %c0_i32, %c0_i32_0 : i32, i32, i32
  }
  func.func @transform_3(%arg0: i32) -> (i32, i32, i32) {
    %c0_i32 = arith.constant 0 : i32
    %c0_i32_0 = arith.constant 0 : i32
    %c0_i32_1 = arith.constant 0 : i32
    return %arg0, %c0_i32, %c0_i32_0 : i32, i32, i32
  }
  func.func @transform_4(%arg0: i32) -> (i32, i32, i32) {
    %c0_i32 = arith.constant 0 : i32
    %c0_i32_0 = arith.constant 0 : i32
    %c0_i32_1 = arith.constant 0 : i32
    return %arg0, %c0_i32, %c0_i32_0 : i32, i32, i32
  }
  func.func @transform_5(%arg0: i32) -> (i32, i32, i32) {
    %c0_i32 = arith.constant 0 : i32
    %c0_i32_0 = arith.constant 0 : i32
    %c0_i32_1 = arith.constant 0 : i32
    return %arg0, %c0_i32, %c0_i32_0 : i32, i32, i32
  }
  func.func @transform_6(%arg0: i32) -> (i32, i32, i32) {
    %c0_i32 = arith.constant 0 : i32
    %c0_i32_0 = arith.constant 0 : i32
    %c0_i32_1 = arith.constant 0 : i32
    return %arg0, %c0_i32, %c0_i32_0 : i32, i32, i32
  }
}

</mosaic_0001>

<bundles_post_ra>
// kernel: hdsn_loss.1
= control target key start
LH: loop header
LB: loop body
LE: loop exit
PB: predicated region body
PF: predicated region fallthrough
CT: control target
= control target key end

     0   :  { %s7643_s0 = inlined_call_operand.vmem [shape: f32[2,48], index: 0, kind: input, shape index: {}]   ;;  %s7644_s1 = inlined_call_operand.vmem [shape: f32[2,48], index: 1, kind: input, shape index: {}]   ;;  %s7645_s2 = inlined_call_operand.vmem [shape: f32[2,16,16], index: 2, kind: input, shape index: {}]   ;;  %s7646_s3 = inlined_call_operand.vmem [shape: f32[2,16,16], index: 3, kind: input, shape index: {}]   ;;  %s7647_s4 = inlined_call_operand.vmem [shape: f32[2,16,16], index: 4, kind: input, shape index: {}]   ;;  %s7648_s5 = inlined_call_operand.vmem [shape: f32[2,1,1], index: 5, kind: output, shape index: {0}]   ;;  %s7649_s6 = inlined_call_operand.vmem [shape: f32[2,1,1], index: 6, kind: output, shape index: {1}]  }
   0x1   :  { %7811 = sst [smem:[#allocation162_spill]] %s7643_s0 }
   0x2   :  { %7812 = sst [smem:[#allocation163_spill]] %s7644_s1 }
   0x3   :  { %7813 = sst [smem:[#allocation164_spill]] %s7645_s2 }
   0x4   :  { %7814 = sst [smem:[#allocation165_spill]] %s7646_s3 }
   0x5   :  { %7815 = sst [smem:[#allocation166_spill]] %s7647_s4 }
   0x6   :  { %7816 = sst [smem:[#allocation167_spill]] %s7648_s5 }
   0x7   :  { %7817 = sst [smem:[#allocation168_spill]] %s7649_s6 }
   0x8   :  { %12 = vsyncpa [#allocation3], 0 }
   0x9   :  { %13 = vsyncpa [#allocation5], 0  ;;  %s5283_s21 = smov 0  }
   0xa LB: > { %7818 = sst [smem:[#allocation8_spill]] %s5241_s21  ;;  %s5289_s22 = sadd.s32 4294967295, %s5241_s21   ;;  %s5241_s21 = sphi %s5283_s21, %s19_s21  }
   0xb   : > { %p4627_p0 = scmp.ge.s32.totalorder %s5241_s21, 1  ;;  %p196_p1 = scmp.lt.s32.totalorder %s5241_s21, 3 }
   0xc   : > { %s7819_s0 = sld [smem:[#allocation162_spill]]  ;;  %p5043_p3 = scmp.eq.s32.totalorder %s5289_s22, 0 }
   0xd   : > { %p197_p2 = pnand %p4627_p0, %p196_p1  ;;  %s7820_s1 = sld [smem:[#allocation163_spill]] }
   0xe   : > { %s5243_s29 = smov [#allocation2]   ;;  %s5244_s30 = smov [#allocation4]  }
   0xf   : > { %p5036_p4 = pneg %p197_p2 }
  0x11   : > { %p5037_p5 = pnand %p5043_p3, %p5036_p4  ;;  %255 = sbr.rel (%p197_p2) target bundleno = 3554 (0xde2), region = 40 }
  0x12   : > { %s208_s25 = sshll.u32 %s7819_s0, 4  ;;  %s209_s25 = int_to_ptr.vmem [resolvable:$true] %s208_s25 }
  0x13   : > { %s218_s28 = sshll.u32 %s7820_s1, 4  ;;  %s219_s28 = int_to_ptr.vmem [resolvable:$true] %s218_s28 }
  0x14   : > { %5039 = dma.vmem_to_smem (!%p5037_p5), %s209_s25, 32, %s5243_s29, [#allocation3]  }
  0x15   : > { %5042 = dma.vmem_to_smem (!%p5037_p5), %s219_s28, 32, %s5244_s30, [#allocation5]  }
  0x16   : > { %5232 = dma.done.wait (%p5043_p3), [#allocation3], 32  }
  0x17   : > { %5234 = vsyncadd (%p5043_p3), [#allocation3], 4294967264 }
  0x18   : > { %5236 = dma.done.wait (%p5043_p3), [#allocation5], 32  }
  0x19   : > { %5238 = vsyncadd (%p5043_p3), [#allocation5], 4294967264 }
  0x1a   : > { %267 = sfence }
  0x1b   : > { %p303_p6 = scmp.lt.s32.totalorder %s5289_s22, 1  ;;  %vm330_vm0 = vcmask 27648   ;;  %s7822_s4 = sld [smem:[#allocation166_spill]]  ;;  %vm4503_vm1 = vcmask 0  }
  0x1c   : > { %s7706_s12 = smov 120   ;;  %s7710_s13 = smov 116  }
  0x1d   : > { %s5312_s7 = scalar_select %p303_p6, %s5289_s22, 1 }
  0x1e   : > { %s7712_s14 = smov 124   ;;  %s5369_s15 = sshll.u32 %s5289_s22, 7 }
  0x1f   : > { %7821 = sst [smem:[#allocation9_spill]] %s5312_s7  ;;  %s5315_s8 = sshll.u32 %s5312_s7, 4 }
  0x20   : > { %s534_s16 = sld [smem:[#allocation2 + %s5369_s15]]  ;;  %s665_s20 = sadd.s32 17, %s5369_s15 }
  0x21   : > { %s5321_s11 = scalar_lea.vmem %s7822_s4, %s5315_s8  ;;  %s7824_s3 = sld [smem:[#allocation165_spill]] }
  0x22   : > { %7823 = sst [smem:[#allocation10_spill]] %s5321_s11  ;;  %v5324_v0 = vld [vmem:[%s5321_s11] sm:$0xff]  ;;  %v5341_v6 = vld [vmem:[%s5321_s11 + $0x8] sm:$0xff]  ;;  %s743_s23 = sadd.s32 2, %s5369_s15 }
  0x23   : > { %v331_v1 = vsel %vm330_vm0, %v5324_v0, 0.0  ;;  %355 = vrot.lane.b32.xlu1 %v5324_v0, %s7706_s12  ;;  %368 = vrot.lane.b32.xlu2 %v5324_v0, %s7710_s13  ;;  %v381_v2 = vrot.slane %v5324_v0, 4  ;;  %v432_v7 = vsel %vm330_vm0, %v5341_v6, 0.0  ;;  %v5359_v58 = vrot.slane %v5341_v6, 4  ;;  %s666_s22 = sld [smem:[#allocation2 + %s665_s20]]  ;;  %s821_s28 = sadd.s32 34, %s5369_s15 }
  0x24   : > { %332 = vadd.xlane.f32.xlu0 %v331_v1  ;;  %s745_s24 = sld [smem:[#allocation4 + %s743_s23]]  ;;  %s7654_s30 = sadd.s32 3, %s5369_s15 }
  0x25   : > { %v383_v3 = vsel %vm330_vm0, %v381_v2, 0.0  ;;  %v484_v59 = vsel %vm330_vm0, %v5359_v58, 0.0  ;;  %s7826_s2 = sld [smem:[#allocation164_spill]]  ;;  %s938_s9 = sadd.s32 35, %s5369_s15 }
  0x26   : > { %s822_s29 = sld [smem:[#allocation2 + %s821_s28]]  ;;  %s1170_s17 = sadd.s32 37, %s5369_s15 }
  0x27   : > { %s5376_s19 = scalar_lea.vmem %s7824_s3, %s5315_s8  ;;  %s939_s10 = sld [smem:[#allocation2 + %s938_s9]] }
  0x28   : > { %s1293_s26 = sadd.s32 38, %s5369_s15  ;;  %s7916_s1 = smov 124  }
  0x29   : > { %s7926_s21 = sadd.s32 31, %s5369_s15  ;;  %s7933_s6 = sld [smem:[#allocation168_spill]] }
  0x2a   : > { %s2301_s5 = sld [smem:[#allocation4 + %s7926_s21]] }
  0x2b   : > { %393 = vrot.lane.b32.xlu1 %v381_v2, %s7712_s14  ;;  %s5404_s27 = scalar_lea.vmem %s7826_s2, %s5315_s8  ;;  %s862_s8 = sld [smem:[#allocation4 + %s7654_s30]] }
  0x38   : > { %342 = vrot.lane.b32.xlu0 %v5324_v0, %s7712_s14 }
  0x40   : > { %406 = vrot.lane.b32.xlu0 %v381_v2, %s7706_s12 }
  0x4c   : > { %384 = vadd.xlane.f32.xlu2 %v383_v3 }
  0x64   : > { %419 = vrot.lane.b32.xlu2 %v381_v2, %s7710_s13 }
  0x7d   : > { %v369_v4 = vpop.permute.xlu2 %368 }
  0x7e   : > { %v371_v5 = vsel %vm330_vm0, %v369_v4, 0.0 }
  0x7f   : > { %372 = vadd.xlane.f32.xlu0 %v371_v5 }
  0x87   : > { %433 = vadd.xlane.f32.xlu0 %v432_v7 }
  0x95   : > { %v356_v8 = vpop.permute.xlu1 %355 }
  0x96   : > { %v358_v9 = vsel %vm330_vm0, %v356_v8, 0.0 }
  0x97   : > { %v333_v10 = vpop.xlane.xlu0 %332  ;;  %359 = vadd.xlane.f32.xlu2 %v358_v9 }
  0x98   : > { %v334_v11 = vrot.slane %v333_v10, 4 }
  0x9a   : > { %v335_v12 = vadd.f32 %v334_v11, %v333_v10 }
  0x9b   : > { %469 = vrot.lane.b32.xlu0 %v5341_v6, %s7710_s13 }
  0x9c   : > { %v336_v13 = vrot.slane %v335_v12, 2 }
  0x9d   : > { %v394_v21 = vpop.permute.xlu1 %393 }
  0x9e   : > { %v337_v14 = vadd.f32 %v336_v13, %v335_v12  ;;  %v396_v22 = vsel %vm330_vm0, %v394_v21, 0.0 }
  0xa0   : > { %v338_v15 = vrot.slane %v337_v14, 1 }
  0xa2   : > { %v339_v16 = vadd.f32 %v338_v15, %v337_v14  ;;  %v5379_v15 = vld [vmem:[%s5376_s19] sm:$0xff] }
  0xa4   : > { %4646 = vpush %v339_v16  ;;  %v536_v16 = vstv %s534_s16  ;;  %s7653_s16 = sadd.s32 5, %s5369_s15 }
  0xa5   : > { %s1090_s18 = sld [smem:[#allocation4 + %s7653_s16]]  ;;  %s782_s16 = sadd.s32 18, %s5369_s15 }
  0xa6   : > { %s783_s30 = sld [smem:[#allocation2 + %s782_s16]] }
  0xaa   : > { %v343_v17 = vpop.permute.xlu0 %342 }
  0xab   : > { %v345_v18 = vsel %vm330_vm0, %v343_v17, 0.0  ;;  %v5382_v17 = vsub.f32 %v5379_v15, %v536_v16 }
  0xac   : > { %346 = vadd.xlane.f32.xlu1 %v345_v18 }
  0xb2   : > { %v407_v19 = vpop.permute.xlu0 %406 }
  0xb3   : > { %v409_v20 = vsel %vm330_vm0, %v407_v19, 0.0  ;;  %v538_v19 = vand.u32 2147483647, %v5382_v17 }
  0xb4   : > { %410 = vadd.xlane.f32.xlu2 %v409_v20 }
  0xb5   : > { %v539_v20 = vmul.f32 %v538_v19, %v5324_v0 }
  0xbf   : > { %v385_v23 = vpop.xlane.xlu2 %384 }
  0xc0   : > { %v386_v29 = vrot.slane %v385_v23, 4 }
  0xc2   : > { %v387_v32 = vadd.f32 %v386_v29, %v385_v23  ;;  %v540_v23 = vsel %vm330_vm0, %v539_v20, 0.0 }
  0xc4   : > { %v388_v36 = vrot.slane %v387_v32, 2 }
  0xc5   : > { %443 = vrot.lane.b32.xlu1 %v5341_v6, %s7712_s14  ;;  %485 = vadd.xlane.f32.xlu0 %v484_v59 }
  0xc6   : > { %v389_v41 = vadd.f32 %v388_v36, %v387_v32 }
  0xc7   : > { %v420_v24 = vpop.permute.xlu2 %419 }
  0xc8   : > { %v390_v46 = vrot.slane %v389_v41, 1  ;;  %v422_v52 = vsel %vm330_vm0, %v420_v24, 0.0 }
  0xca   : > { %v391_v51 = vadd.f32 %v390_v46, %v389_v41  ;;  %v668_v41 = vstv %s666_s22  ;;  %s1171_s22 = sld [smem:[#allocation2 + %s1170_s17]] }
  0xd9   : > { %520 = vrot.lane.b32.xlu0 %v5359_v58, %s7710_s13 }
  0xef   : > { %397 = vadd.xlane.f32.xlu1 %v396_v22 }
  0xf2   : > { %v373_v26 = vpop.xlane.xlu0 %372 }
  0xf3   : > { %v374_v28 = vrot.slane %v373_v26, 4 }
  0xf5   : > { %v375_v31 = vadd.f32 %v374_v28, %v373_v26 }
  0xf7   : > { %v376_v34 = vrot.slane %v375_v31, 2 }
  0xf9   : > { %v377_v40 = vadd.f32 %v376_v34, %v375_v31 }
  0xfa   : > { %v434_v53 = vpop.xlane.xlu0 %433 }
  0xfb   : > { %v378_v45 = vrot.slane %v377_v40, 1  ;;  %v435_v14 = vrot.slane %v434_v53, 4 }
  0xfd   : > { %v379_v50 = vadd.f32 %v378_v45, %v377_v40  ;;  %v436_v18 = vadd.f32 %v435_v14, %v434_v53 }
  0xff   : > { %v437_v22 = vrot.slane %v436_v18, 2 }
 0x101   : > { %v438_v26 = vadd.f32 %v437_v22, %v436_v18 }
 0x103   : > { %541 = vadd.xlane.f32.xlu0 %v540_v23  ;;  %v439_v31 = vrot.slane %v438_v26, 1 }
 0x108   : > { %456 = vrot.lane.b32.xlu1 %v5341_v6, %s7706_s12 }
 0x10a   : > { %v360_v25 = vpop.xlane.xlu2 %359 }
 0x10b   : > { %v361_v27 = vrot.slane %v360_v25, 4 }
 0x10d   : > { %v362_v30 = vadd.f32 %v361_v27, %v360_v25  ;;  %v470_v56 = vpop.permute.xlu0 %469 }
 0x10e   : > { %v472_v57 = vsel %vm330_vm0, %v470_v56, 0.0  ;;  %v881_v56 = vstv %s862_s8  ;;  %s7650_s8 = sadd.s32 7, %s5369_s15 }
 0x10f   : > { %v363_v33 = vrot.slane %v362_v30, 2 }
 0x111   : > { %v364_v38 = vadd.f32 %v363_v33, %v362_v30 }
 0x113   : > { %v365_v43 = vrot.slane %v364_v38, 1 }
 0x115   : > { %v366_v48 = vadd.f32 %v365_v43, %v364_v38 }
 0x11f   : > { %v347_v35 = vpop.xlane.xlu1 %346 }
 0x120   : > { %v348_v37 = vrot.slane %v347_v35, 4 }
 0x122   : > { %v349_v39 = vadd.f32 %v348_v37, %v347_v35  ;;  %v440_v35 = vadd.f32 %v439_v31, %v438_v26 }
 0x124   : > { %v350_v42 = vrot.slane %v349_v39, 2 }
 0x126   : > { %v351_v44 = vadd.f32 %v350_v42, %v349_v39  ;;  %v5391_v42 = vsub.f32 %v5379_v15, %v668_v41 }
 0x127   : > { %v411_v60 = vpop.xlane.xlu2 %410 }
 0x128   : > { %v352_v47 = vrot.slane %v351_v44, 1  ;;  %v412_v61 = vrot.slane %v411_v60, 4  ;;  %7825 = vst [vmem:[#allocation11_spill] sm:$0xff] %v5391_v42  ;;  %v670_v43 = vand.u32 2147483647, %v5391_v42 }
 0x12a   : > { %v353_v49 = vadd.f32 %v352_v47, %v351_v44  ;;  %v413_v62 = vadd.f32 %v412_v61, %v411_v60  ;;  %v671_v45 = vmul.f32 %v670_v43, %v5324_v0  ;;  %v5408_v47 = vld [vmem:[%s5404_s27] sm:$0xff]  ;;  %v941_v61 = vstv %s939_s10  ;;  %s1336_s10 = sld [smem:[#allocation4 + %s7650_s8]]  ;;  %s7652_s8 = sadd.s32 9, %s5369_s15 }
 0x12c   : > { %4648 = vpush %v353_v49  ;;  %v414_v63 = vrot.slane %v413_v62, 2  ;;  %673 = vrot.lane.b32.xlu0 %v671_v45, %s7712_s14 }
 0x12d   : > { %4650 = vpush %v366_v48  ;;  %v764_v48 = vstv %s745_s24  ;;  %s7651_s24 = sadd.s32 6, %s5369_s15 }
 0x12e   : > { %4652 = vpush %v379_v50  ;;  %v415_v3 = vadd.f32 %v414_v63, %v413_v62  ;;  %v5413_v49 = vsub.f32 %v5408_v47, %v764_v48  ;;  %v5445_v62 = vsub.f32 %v5379_v15, %v941_v61  ;;  %s1213_s25 = sld [smem:[#allocation4 + %s7651_s24]] }
 0x12f   : > { %4654 = vpush %v391_v51  ;;  %s1552_s24 = sld [smem:[#allocation4 + %s7652_s8]] }
 0x130   : > { %v416_v7 = vrot.slane %v415_v3, 1  ;;  %v766_v50 = vand.u32 2147483647, %v5413_v49  ;;  %7829 = vst [vmem:[#allocation14_spill] sm:$0xff] %v5445_v62  ;;  %v943_v63 = vand.u32 2147483647, %v5445_v62  ;;  %v1356_v48 = vstv %s1336_s10 }
 0x131   : > { %s667_s10 = sld [smem:[#allocation4 + %s665_s20]]  ;;  %s1628_s20 = sadd.s32 41, %s5369_s15 }
 0x132   : > { %423 = vadd.xlane.f32.xlu1 %v422_v52  ;;  %v417_v10 = vadd.f32 %v416_v7, %v415_v3  ;;  %v767_v51 = vmul.f32 %v766_v50, %v5324_v0  ;;  %v824_v52 = vstv %s822_s29  ;;  %s1294_s29 = sld [smem:[#allocation2 + %s1293_s26]]  ;;  %v5488_v50 = vsub.f32 %v5408_v47, %v1356_v48 }
 0x133   : > { %v5422_v53 = vsub.f32 %v5379_v15, %v824_v52  ;;  %s1629_s8 = sld [smem:[#allocation2 + %s1628_s20]] }
 0x134   : > { %769 = vrot.lane.b32.xlu0 %v767_v51, %s7706_s12  ;;  %7834 = vst [vmem:[#allocation19_spill] sm:$0xff] %v5488_v50  ;;  %v1358_v51 = vand.u32 2147483647, %v5488_v50 }
 0x135   : > { %7827 = vst [vmem:[#allocation12_spill] sm:$0xff] %v5422_v53 }
 0x136   : > { %v1359_v52 = vmul.f32 %v1358_v51, %v5324_v0 }
 0x137   : > { %v444_v54 = vpop.permute.xlu1 %443 }
 0x138   : > { %v446_v55 = vsel %vm330_vm0, %v444_v54, 0.0  ;;  %v826_v54 = vand.u32 2147483647, %v5422_v53 }
 0x139   : > { %447 = vadd.xlane.f32.xlu2 %v446_v55 }
 0x13a   : > { %v827_v55 = vmul.f32 %v826_v54, %v5324_v0  ;;  %v1361_v54 = vrot.slane %v1359_v52, 4 }
 0x13c   : > { %829 = vrot.lane.b32.xlu0 %v827_v55, %s7706_s12 }
 0x141   : > { %473 = vadd.xlane.f32.xlu2 %v472_v57  ;;  %v5432_v57 = vsub.f32 %v5408_v47, %v881_v56 }
 0x143   : > { %7828 = vst [vmem:[#allocation13_spill] sm:$0xff] %v5432_v57  ;;  %v883_v59 = vand.u32 2147483647, %v5432_v57 }
 0x145   : > { %v884_v60 = vmul.f32 %v883_v59, %v5324_v0 }
 0x147   : > { %886 = vrot.lane.b32.xlu0 %v884_v60, %s7710_s13 }
 0x159   : > { %494 = vrot.lane.b32.xlu2 %v5359_v58, %s7712_s14 }
 0x162   : > { %v398_v1 = vpop.xlane.xlu1 %397 }
 0x163   : > { %v399_v2 = vrot.slane %v398_v1, 4 }
 0x165   : > { %v400_v4 = vadd.f32 %v399_v2, %v398_v1  ;;  %v1110_v1 = vstv %s1090_s18  ;;  %v1173_v2 = vstv %s1171_s22  ;;  %s626_s18 = sadd.s32 1, %s5369_s15  ;;  %s1416_s22 = sadd.s32 39, %s5369_s15 }
 0x166   : > { %v5453_v3 = vsub.f32 %v5408_v47, %v1110_v1  ;;  %v5458_v7 = vsub.f32 %v5379_v15, %v1173_v2 }
 0x167   : > { %v401_v5 = vrot.slane %v400_v4, 2 }
 0x168   : > { %7830 = vst [vmem:[#allocation15_spill] sm:$0xff] %v5453_v3 }
 0x169   : > { %v402_v8 = vadd.f32 %v401_v5, %v400_v4  ;;  %v486_v4 = vpop.xlane.xlu0 %485  ;;  %v1112_v5 = vand.u32 2147483647, %v5453_v3  ;;  %7831 = vst [vmem:[#allocation16_spill] sm:$0xff] %v5458_v7 }
 0x16b   : > { %v403_v9 = vrot.slane %v402_v8, 1 }
 0x16d   : > { %v404_v11 = vadd.f32 %v403_v9, %v402_v8  ;;  %v487_v8 = vrot.slane %v486_v4, 4  ;;  %v1113_v9 = vmul.f32 %v1112_v5, %v5324_v0  ;;  %v1571_v5 = vstv %s1552_s24 }
 0x16f   : > { %4656 = vpush %v404_v11  ;;  %v1115_v11 = vrot.slane %v1113_v9, 4  ;;  %v488_v14 = vadd.f32 %v487_v8, %v486_v4  ;;  %v5516_v4 = vld [vmem:[%s5404_s27 + $0x8] sm:$0xff] }
 0x170   : > { %4658 = vpush %v417_v10 }
 0x171   : > { %v489_v20 = vrot.slane %v488_v14, 2 }
 0x17a   : > { %v457_v12 = vpop.permute.xlu1 %456 }
 0x17b   : > { %v459_v13 = vsel %vm330_vm0, %v457_v12, 0.0  ;;  %v1175_v12 = vand.u32 2147483647, %v5458_v7 }
 0x17c   : > { %460 = vadd.xlane.f32.xlu1 %v459_v13  ;;  %v1233_v13 = vstv %s1213_s25  ;;  %s627_s25 = sld [smem:[#allocation2 + %s626_s18]] }
 0x17d   : > { %v1176_v18 = vmul.f32 %v1175_v12, %v5324_v0  ;;  %v5465_v19 = vsub.f32 %v5408_v47, %v1233_v13 }
 0x17f   : > { %7832 = vst [vmem:[#allocation17_spill] sm:$0xff] %v5465_v19 }
 0x182   : > { %v629_v55 = vstv %s627_s25  ;;  %s704_s25 = sadd.s32 33, %s5369_s15 }
 0x183   : > { %v5505_v60 = vsub.f32 %v5379_v15, %v629_v55 }
 0x185   : > { %v631_v1 = vand.u32 2147483647, %v5505_v60 }
 0x187   : > { %v632_v8 = vmul.f32 %v631_v1, %v5324_v0 }
 0x1a5   : > { %v424_v21 = vpop.xlane.xlu1 %423 }
 0x1a6   : > { %v425_v24 = vrot.slane %v424_v21, 4 }
 0x1a8   : > { %v426_v25 = vadd.f32 %v425_v24, %v424_v21  ;;  %v1178_v24 = vrot.slane %v1176_v18, 4  ;;  %v1631_v18 = vstv %s1629_s8  ;;  %s823_s8 = sld [smem:[#allocation4 + %s821_s28]]  ;;  %s7658_s28 = sadd.s32 19, %s5369_s15 }
 0x1aa   : > { %v427_v27 = vrot.slane %v426_v25, 2 }
 0x1ac   : > { %v448_v28 = vpop.xlane.xlu2 %447  ;;  %v428_v29 = vadd.f32 %v427_v27, %v426_v25  ;;  %v1235_v25 = vand.u32 2147483647, %v5465_v19  ;;  %v490_v27 = vadd.f32 %v489_v20, %v488_v14 }
 0x1ad   : > { %v449_v30 = vrot.slane %v448_v28, 4 }
 0x1ae   : > { %v429_v32 = vrot.slane %v428_v29, 1 }
 0x1af   : > { %v450_v33 = vadd.f32 %v449_v30, %v448_v28  ;;  %v1236_v30 = vmul.f32 %v1235_v25, %v5324_v0 }
 0x1b0   : > { %v430_v34 = vadd.f32 %v429_v32, %v428_v29  ;;  %v491_v32 = vrot.slane %v490_v27, 1 }
 0x1b1   : > { %v451_v36 = vrot.slane %v450_v33, 2 }
 0x1b2   : > { %4660 = vpush %v430_v34 }
 0x1b3   : > { %4662 = vpush %v440_v35  ;;  %v452_v37 = vadd.f32 %v451_v36, %v450_v33  ;;  %v1238_v35 = vrot.slane %v1236_v30, 4 }
 0x1b4   : > { %v474_v38 = vpop.xlane.xlu2 %473 }
 0x1b5   : > { %v453_v39 = vrot.slane %v452_v37, 1  ;;  %v475_v10 = vrot.slane %v474_v38, 4 }
 0x1b7   : > { %v454_v40 = vadd.f32 %v453_v39, %v452_v37  ;;  %v476_v16 = vadd.f32 %v475_v10, %v474_v38  ;;  %v492_v37 = vadd.f32 %v491_v32, %v490_v27  ;;  %v1296_v38 = vstv %s1294_s29  ;;  %s1417_s29 = sld [smem:[#allocation2 + %s1416_s22]] }
 0x1b8   : > { %v5477_v41 = vsub.f32 %v5379_v15, %v1296_v38  ;;  %v5525_v10 = vsub.f32 %v5516_v4, %v1571_v5  ;;  %v785_v27 = vstv %s783_s30  ;;  %s900_s30 = sld [smem:[#allocation2 + %s7658_s28]] }
 0x1b9   : > { %4664 = vpush %v454_v40  ;;  %v477_v22 = vrot.slane %v476_v16, 2  ;;  %v521_v40 = vpop.permute.xlu0 %520 }
 0x1ba   : > { %7833 = vst [vmem:[#allocation18_spill] sm:$0xff] %v5477_v41  ;;  %v1298_v43 = vand.u32 2147483647, %v5477_v41 }
 0x1bb   : > { %v478_v28 = vadd.f32 %v477_v22, %v476_v16  ;;  %7837 = vst [vmem:[#allocation22_spill] sm:$0xff] %v5525_v10  ;;  %v5539_v16 = vld [vmem:[%s5376_s19 + $0x8] sm:$0xff] }
 0x1bc   : > { %v495_v44 = vpop.permute.xlu2 %494  ;;  %v1299_v45 = vmul.f32 %v1298_v43, %v5324_v0  ;;  %v5546_v22 = vsub.f32 %v5539_v16, %v1631_v18 }
 0x1bd   : > { %v497_v46 = vsel %vm330_vm0, %v495_v44, 0.0  ;;  %v479_v33 = vrot.slane %v478_v28, 1  ;;  %v523_v44 = vsel %vm330_vm0, %v521_v40, 0.0  ;;  %v1419_v56 = vstv %s1417_s29  ;;  %s706_s29 = sld [smem:[#allocation4 + %s704_s25]] }
 0x1be   : > { %498 = vadd.xlane.f32.xlu1 %v497_v46  ;;  %v1301_v46 = vrot.slane %v1299_v45, 4  ;;  %v5500_v59 = vsub.f32 %v5379_v15, %v1419_v56  ;;  %7839 = vst [vmem:[#allocation24_spill] sm:$0xff] %v5546_v22 }
 0x1bf   : > { %v480_v39 = vadd.f32 %v479_v33, %v478_v28 }
 0x1c0   : > { %7835 = vst [vmem:[#allocation20_spill] sm:$0xff] %v5500_v59  ;;  %v1421_v61 = vand.u32 2147483647, %v5500_v59 }
 0x1c3   : > { %v725_v14 = vstv %s706_s29  ;;  %s7656_s29 = sadd.s32 42, %s5369_s15 }
 0x1d7   : > { %507 = vrot.lane.b32.xlu1 %v5359_v58, %s7706_s12  ;;  %v944_v58 = vmul.f32 %v943_v63, %v5324_v0  ;;  %v1422_v63 = vmul.f32 %v1421_v61, %v5324_v0 }
 0x1d9   : > { %946 = vrot.lane.b32.xlu0 %v944_v58, %s7710_s13  ;;  %v1424_v2 = vrot.slane %v1422_v63, 4  ;;  %v686_v58 = vstv %s667_s10  ;;  %s7655_s10 = sadd.s32 10, %s5369_s15 }
 0x1da   : > { %v5522_v9 = vsub.f32 %v5408_v47, %v686_v58  ;;  %s1669_s24 = sld [smem:[#allocation4 + %s7655_s10]] }
 0x1db   : > { %s1746_s10 = sld [smem:[#allocation2 + %s7656_s29]] }
 0x1dc   : > { %7836 = vst [vmem:[#allocation21_spill] sm:$0xff] %v5522_v9  ;;  %v688_v12 = vand.u32 2147483647, %v5522_v9 }
 0x1de   : > { %v689_v20 = vmul.f32 %v688_v12, %v5324_v0 }
 0x1e1   : > { %1116 = vrot.lane.b32.xlu0 %v1115_v11, %s7712_s14  ;;  %v1573_v11 = vand.u32 2147483647, %v5525_v10 }
 0x1e3   : > { %v1574_v13 = vmul.f32 %v1573_v11, %v5341_v6 }
 0x1e9   : > { %1179 = vrot.lane.b32.xlu0 %v1178_v24, %s7712_s14 }
 0x1ef   : > { %v461_v21 = vpop.xlane.xlu1 %460 }
 0x1f0   : > { %v462_v23 = vrot.slane %v461_v21, 4 }
 0x1f1   : > { %1239 = vrot.lane.b32.xlu0 %v1238_v35, %s7706_s12  ;;  %v1748_v35 = vstv %s1746_s10  ;;  %s940_s10 = sld [smem:[#allocation4 + %s938_s9]] }
 0x1f2   : > { %v463_v26 = vadd.f32 %v462_v23, %v461_v21  ;;  %v5543_v21 = vsub.f32 %v5408_v47, %v725_v14  ;;  %v1633_v23 = vand.u32 2147483647, %v5546_v22 }
 0x1f4   : > { %v464_v29 = vrot.slane %v463_v26, 2  ;;  %7838 = vst [vmem:[#allocation23_spill] sm:$0xff] %v5543_v21  ;;  %v727_v24 = vand.u32 2147483647, %v5543_v21  ;;  %v1634_v25 = vmul.f32 %v1633_v23, %v5341_v6 }
 0x1f6   : > { %v465_v31 = vadd.f32 %v464_v29, %v463_v26  ;;  %v1688_v26 = vstv %s1669_s24  ;;  %v728_v30 = vmul.f32 %v727_v24, %v5324_v0  ;;  %s7657_s24 = sadd.s32 11, %s5369_s15 }
 0x1f7   : > { %v5556_v28 = vsub.f32 %v5516_v4, %v1688_v26  ;;  %s1786_s29 = sld [smem:[#allocation4 + %s7657_s24]]  ;;  %s7660_s24 = sadd.s32 21, %s5369_s15  ;;  %v959_v5 = vstv %s940_s10 }
 0x1f8   : > { %v466_v34 = vrot.slane %v465_v31, 1  ;;  %s1130_s9 = sld [smem:[#allocation2 + %s7660_s24]]  ;;  %v5617_v14 = vsub.f32 %v5408_v47, %v959_v5  ;;  %s564_s24 = sadd.s32 16, %s5369_s15 }
 0x1f9   : > { %1302 = vrot.lane.b32.xlu0 %v1301_v46, %s7706_s12  ;;  %7840 = vst [vmem:[#allocation25_spill] sm:$0xff] %v5556_v28  ;;  %v1690_v29 = vand.u32 2147483647, %v5556_v28  ;;  %v902_v46 = vstv %s900_s30  ;;  %s535_s30 = sld [smem:[#allocation4 + %s5369_s15]]  ;;  %s7662_s10 = sadd.s32 45, %s5369_s15 }
 0x1fa   : > { %v467_v36 = vadd.f32 %v466_v34, %v465_v31  ;;  %v5564_v31 = vsub.f32 %v5379_v15, %v785_v27  ;;  %v842_v34 = vstv %s823_s8  ;;  %s7659_s8 = sadd.s32 43, %s5369_s15  ;;  %v5599_v56 = vsub.f32 %v5379_v15, %v902_v46  ;;  %7847 = vst [vmem:[#allocation32_spill] sm:$0xff] %v5617_v14 }
 0x1fb   : > { %v1691_v32 = vmul.f32 %v1690_v29, %v5341_v6  ;;  %v5581_v38 = vsub.f32 %v5408_v47, %v842_v34  ;;  %s1863_s28 = sld [smem:[#allocation2 + %s7659_s8]]  ;;  %v961_v26 = vand.u32 2147483647, %v5617_v14 }
 0x1fc   : > { %4666 = vpush %v467_v36  ;;  %v787_v33 = vand.u32 2147483647, %v5564_v31  ;;  %v5577_v36 = vsub.f32 %v5539_v16, %v1748_v35  ;;  %v904_v58 = vand.u32 2147483647, %v5599_v56 }
 0x1fd   : > { %4668 = vpush %v480_v39  ;;  %v844_v45 = vand.u32 2147483647, %v5581_v38  ;;  %v1805_v48 = vstv %s1786_s29  ;;  %s7661_s29 = sadd.s32 13, %s5369_s15 }
 0x1fe   : > { %4670 = vpush %v492_v37  ;;  %v788_v37 = vmul.f32 %v787_v33, %v5324_v0  ;;  %v1750_v39 = vand.u32 2147483647, %v5577_v36  ;;  %v5595_v52 = vsub.f32 %v5516_v4, %v1805_v48  ;;  %s2014_s8 = sld [smem:[#allocation4 + %s7661_s29]]  ;;  %v1132_v18 = vstv %s1130_s9 }
 0x1ff   : > { %7841 = vst [vmem:[#allocation26_spill] sm:$0xff] %v5564_v31  ;;  %v5626_v24 = vsub.f32 %v5379_v15, %v1132_v18  ;;  %s565_s29 = sld [smem:[#allocation2 + %s564_s24]]  ;;  %v962_v33 = vmul.f32 %v961_v26, %v5324_v0 }
 0x200   : > { %7842 = vst [vmem:[#allocation27_spill] sm:$0xff] %v5577_v36  ;;  %v1751_v40 = vmul.f32 %v1750_v39, %v5341_v6  ;;  %v1807_v61 = vand.u32 2147483647, %v5595_v52  ;;  %s2095_s9 = sld [smem:[#allocation2 + %s7662_s10]] }
 0x201   : > { %524 = vadd.xlane.f32.xlu1 %v523_v44  ;;  %1362 = vrot.lane.b32.xlu0 %v1361_v54, %s7710_s13  ;;  %7843 = vst [vmem:[#allocation28_spill] sm:$0xff] %v5581_v38  ;;  %v845_v54 = vmul.f32 %v844_v45, %v5324_v0  ;;  %s566_s10 = sld [smem:[#allocation4 + %s564_s24]] }
 0x202   : > { %7844 = vst [vmem:[#allocation29_spill] sm:$0xff] %v5595_v52  ;;  %v1808_v1 = vmul.f32 %v1807_v61, %v5341_v6  ;;  %s1295_s24 = sld [smem:[#allocation4 + %s1293_s26]] }
 0x203   : > { %7845 = vst [vmem:[#allocation30_spill] sm:$0xff] %v5599_v56 }
 0x204   : > { %7848 = vst [vmem:[#allocation33_spill] sm:$0xff] %v5626_v24  ;;  %v2034_v27 = vstv %s2014_s8  ;;  %s7665_s8 = sadd.s32 14, %s5369_s15 }
 0x209   : > { %1425 = vrot.lane.b32.xlu0 %v1424_v2, %s7710_s13 }
 0x211   : > { %1576 = vrot.lane.b32.xlu0 %v1574_v13, %s7712_s14  ;;  %v905_v13 = vmul.f32 %v904_v58, %v5324_v0 }
 0x219   : > { %1636 = vrot.lane.b32.xlu0 %v1634_v25, %s7712_s14  ;;  %v550_v25 = vstv %s535_s30 }
 0x21a   : > { %634 = vrot.lane.b32.xlu1 %v632_v8, %s7712_s14  ;;  %v1865_v8 = vstv %s1863_s28  ;;  %s1172_s28 = sld [smem:[#allocation4 + %s1170_s17]]  ;;  %v5633_v29 = vsub.f32 %v5408_v47, %v550_v25  ;;  %s1252_s17 = sadd.s32 22, %s5369_s15 }
 0x21b   : > { %v5613_v12 = vsub.f32 %v5539_v16, %v1865_v8  ;;  %s5645_s30 = sld [smem:[#allocation2 + %s1252_s17]] }
 0x21d   : > { %7846 = vst [vmem:[#allocation31_spill] sm:$0xff] %v5613_v12 }
 0x220   : > { %v1192_v35 = vstv %s1172_s28  ;;  %s2137_s28 = sld [smem:[#allocation4 + %s7665_s8]]  ;;  %s2053_s8 = sadd.s32 29, %s5369_s15 }
 0x221   : > { %1693 = vrot.lane.b32.xlu0 %v1691_v32, %s7706_s12  ;;  %v1134_v32 = vand.u32 2147483647, %v5626_v24  ;;  %v5654_v46 = vsub.f32 %v5408_v47, %v1192_v35  ;;  %v1255_v58 = vstv %s5645_s30  ;;  %s7663_s30 = sadd.s32 15, %s5369_s15  ;;  %v2321_v24 = vstv %s2301_s5  ;;  %s1938_s5 = sadd.s32 28, %s5369_s15 }
 0x222   : > { %691 = vrot.lane.b32.xlu1 %v689_v20, %s7712_s14  ;;  %v1867_v20 = vand.u32 2147483647, %v5613_v12 }
 0x223   : > { %7850 = vst [vmem:[#allocation35_spill] sm:$0xff] %v5654_v46 }
 0x224   : > { %v1868_v23 = vmul.f32 %v1867_v20, %v5341_v6 }
 0x226   : > { %v2157_v25 = vstv %s2137_s28  ;;  %s2260_s28 = sld [smem:[#allocation4 + %s7663_s30]]  ;;  %s1589_s30 = sadd.s32 25, %s5369_s15 }
 0x229   : > { %1753 = vrot.lane.b32.xlu0 %v1751_v40, %s7706_s12 }
 0x22a   : > { %730 = vrot.lane.b32.xlu1 %v728_v30, %s7712_s14  ;;  %v5638_v30 = vsub.f32 %v5516_v4, %v2034_v27 }
 0x22c   : > { %7849 = vst [vmem:[#allocation34_spill] sm:$0xff] %v5638_v30  ;;  %v2036_v34 = vand.u32 2147483647, %v5638_v30 }
 0x22e   : > { %v2037_v39 = vmul.f32 %v2036_v34, %v5341_v6 }
 0x230   : > { %v2039_v48 = vrot.slane %v2037_v39, 4 }
 0x231   : > { %v499_v43 = vpop.xlane.xlu1 %498  ;;  %1810 = vrot.lane.b32.xlu0 %v1808_v1, %s7710_s13 }
 0x232   : > { %v500_v44 = vrot.slane %v499_v43, 4  ;;  %790 = vrot.lane.b32.xlu1 %v788_v37, %s7706_s12  ;;  %v552_v37 = vand.u32 2147483647, %v5633_v29 }
 0x234   : > { %v501_v51 = vadd.f32 %v500_v44, %v499_v43  ;;  %v1135_v43 = vmul.f32 %v1134_v32, %v5324_v0  ;;  %v567_v44 = vstv %s565_s29  ;;  %s2217_s29 = sadd.s32 46, %s5369_s15  ;;  %v5689_v32 = vsub.f32 %v5516_v4, %v2157_v25 }
 0x235   : > { %v5663_v61 = vsub.f32 %v5379_v15, %v567_v44  ;;  %s2218_s26 = sld [smem:[#allocation2 + %s2217_s29]]  ;;  %v2280_v25 = vstv %s2260_s28 }
 0x236   : > { %v502_v55 = vrot.slane %v501_v51, 2  ;;  %v1137_v1 = vrot.slane %v1135_v43, 4  ;;  %7855 = vst [vmem:[#allocation40_spill] sm:$0xff] %v5689_v32  ;;  %v2159_v35 = vand.u32 2147483647, %v5689_v32  ;;  %s705_s28 = sld [smem:[#allocation2 + %s704_s25]] }
 0x237   : > { %7852 = vst [vmem:[#allocation37_spill] sm:$0xff] %v5663_v61  ;;  %s1630_s25 = sld [smem:[#allocation4 + %s1628_s20]] }
 0x238   : > { %v503_v63 = vadd.f32 %v502_v55, %v501_v51  ;;  %v2097_v51 = vstv %s2095_s9  ;;  %v553_v55 = vmul.f32 %v552_v37, %v5324_v0  ;;  %v1315_v37 = vstv %s1295_s24  ;;  %s1418_s24 = sld [smem:[#allocation4 + %s1416_s22]] }
 0x239   : > { %1870 = vrot.lane.b32.xlu0 %v1868_v23, %s7710_s13  ;;  %v5678_v23 = vsub.f32 %v5379_v15, %v1255_v58  ;;  %v2160_v43 = vmul.f32 %v2159_v35, %v5341_v6  ;;  %s628_s22 = sld [smem:[#allocation4 + %s626_s18]] }
 0x23a   : > { %847 = vrot.lane.b32.xlu1 %v845_v54, %s7706_s12  ;;  %v504_v2 = vrot.slane %v503_v63, 1  ;;  %v5657_v54 = vsub.f32 %v5539_v16, %v2097_v51  ;;  %v554_v8 = vsel %vm330_vm0, %v553_v55, 0.0  ;;  %s1590_s18 = sld [smem:[#allocation2 + %s1589_s30]] }
 0x23b   : > { %7853 = vst [vmem:[#allocation38_spill] sm:$0xff] %v5678_v23  ;;  %v1257_v34 = vand.u32 2147483647, %v5678_v23  ;;  %v2220_v51 = vstv %s2218_s26  ;;  %s2340_s26 = sadd.s32 47, %s5369_s15  ;;  %s784_s20 = sld [smem:[#allocation4 + %s782_s16]] }
 0x23c   : > { %v505_v11 = vadd.f32 %v504_v2, %v503_v63  ;;  %7851 = vst [vmem:[#allocation36_spill] sm:$0xff] %v5657_v54  ;;  %v2099_v63 = vand.u32 2147483647, %v5657_v54  ;;  %v1194_v2 = vand.u32 2147483647, %v5654_v46  ;;  %s7865_s16 = sadd.s32 42, %s5369_s15 }
 0x23d   : > { %v1258_v44 = vmul.f32 %v1257_v34, %v5324_v0 }
 0x23e   : > { %4672 = vpush %v505_v11  ;;  %v2100_v5 = vmul.f32 %v2099_v63, %v5341_v6  ;;  %v569_v11 = vand.u32 2147483647, %v5663_v61  ;;  %v1195_v20 = vmul.f32 %v1194_v2, %v5324_v0  ;;  %v5709_v63 = vsub.f32 %v5539_v16, %v2220_v51 }
 0x23f   : > { %v647_v51 = vstv %s628_s22  ;;  %s1747_s22 = sld [smem:[#allocation4 + %s7865_s16]]  ;;  %s7869_s16 = sadd.s32 19, %s5369_s15 }
 0x240   : > { %v2102_v18 = vrot.slane %v2100_v5, 4  ;;  %v570_v26 = vmul.f32 %v569_v11, %v5324_v0  ;;  %7857 = vst [vmem:[#allocation42_spill] sm:$0xff] %v5709_v63  ;;  %v2222_v58 = vand.u32 2147483647, %v5709_v63 }
 0x241   : > { %2040 = vrot.lane.b32.xlu0 %v2039_v48, %s7712_s14  ;;  %v2162_v48 = vrot.slane %v2160_v43, 4 }
 0x242   : > { %907 = vrot.lane.b32.xlu1 %v905_v13, %s7710_s13  ;;  %v581_v13 = vstv %s566_s10  ;;  %s1375_s10 = sadd.s32 23, %s5369_s15  ;;  %v571_v39 = vsel %vm330_vm0, %v570_v26, 0.0  ;;  %v2223_v11 = vmul.f32 %v2222_v58, %v5341_v6  ;;  %v5729_v26 = vsub.f32 %v5516_v4, %v2280_v25 }
 0x243   : > { %v5684_v27 = vsub.f32 %v5408_v47, %v581_v13  ;;  %s1376_s9 = sld [smem:[#allocation2 + %s1375_s10]]  ;;  %v1592_v25 = vstv %s1590_s18  ;;  %s7866_s18 = sadd.s32 3, %s5369_s15 }
 0x244   : > { %7859 = vst [vmem:[#allocation44_spill] sm:$0xff] %v5729_v26  ;;  %v2282_v35 = vand.u32 2147483647, %v5729_v26 }
 0x245   : > { %7854 = vst [vmem:[#allocation39_spill] sm:$0xff] %v5684_v27 }
 0x249   : > { %v508_v40 = vpop.permute.xlu1 %507  ;;  %2103 = vrot.lane.b32.xlu0 %v2102_v18, %s7712_s14  ;;  %v1378_v5 = vstv %s1376_s9  ;;  %s2341_s9 = sld [smem:[#allocation2 + %s2340_s26]] }
 0x24a   : > { %964 = vrot.lane.b32.xlu1 %v962_v33, %s7710_s13  ;;  %v510_v45 = vsel %vm330_vm0, %v508_v40, 0.0  ;;  %v1197_v33 = vrot.slane %v1195_v20, 4  ;;  %v583_v40 = vand.u32 2147483647, %v5684_v27  ;;  %v5721_v18 = vsub.f32 %v5379_v15, %v1378_v5 }
 0x24b   : > { %511 = vadd.xlane.f32.xlu2 %v510_v45  ;;  %v5702_v45 = vsub.f32 %v5408_v47, %v1315_v37  ;;  %v2225_v20 = vrot.slane %v2223_v11, 4  ;;  %v1438_v37 = vstv %s1418_s24  ;;  %v5751_v5 = vsub.f32 %v5408_v47, %v647_v51  ;;  %s744_s24 = sld [smem:[#allocation2 + %s743_s23]] }
 0x24c   : > { %v584_v55 = vmul.f32 %v583_v40, %v5324_v0  ;;  %7858 = vst [vmem:[#allocation43_spill] sm:$0xff] %v5721_v18  ;;  %v1380_v34 = vand.u32 2147483647, %v5721_v18  ;;  %v5738_v43 = vsub.f32 %v5408_v47, %v1438_v37 }
 0x24d   : > { %7856 = vst [vmem:[#allocation41_spill] sm:$0xff] %v5702_v45  ;;  %v1317_v2 = vand.u32 2147483647, %v5702_v45 }
 0x24e   : > { %v1381_v40 = vmul.f32 %v1380_v34, %v5324_v0  ;;  %7860 = vst [vmem:[#allocation45_spill] sm:$0xff] %v5738_v43 }
 0x24f   : > { %v1318_v13 = vmul.f32 %v1317_v2, %v5324_v0  ;;  %v1440_v2 = vand.u32 2147483647, %v5738_v43  ;;  %v5855_v43 = vpop.xlane.xlu0 %541 }
 0x251   : > { %2163 = vrot.lane.b32.xlu0 %v2162_v48, %s7706_s12  ;;  %v2343_v48 = vstv %s2341_s9  ;;  %v1441_v11 = vmul.f32 %v1440_v2, %v5324_v0  ;;  %s1706_s9 = sadd.s32 26, %s5369_s15  ;;  %v746_v51 = vstv %s744_s24  ;;  %s7664_s24 = sadd.s32 32, %s5369_s15 }
 0x252   : > { %1138 = vrot.lane.b32.xlu1 %v1137_v1, %s7712_s14  ;;  %v1260_v1 = vrot.slane %v1258_v44, 4  ;;  %s1707_s23 = sld [smem:[#allocation2 + %s1706_s9]] }
 0x253   : > { %555 = vadd.xlane.f32.xlu2 %v554_v8  ;;  %v585_v8 = vsel %vm330_vm0, %v584_v55, 0.0  ;;  %v5746_v55 = vsub.f32 %v5539_v16, %v2343_v48  ;;  %v1443_v34 = vrot.slane %v1441_v11, 4  ;;  %v1649_v48 = vstv %s1630_s25  ;;  %s1823_s25 = sadd.s32 27, %s5369_s15 }
 0x254   : > { %v5780_v2 = vsub.f32 %v5516_v4, %v1649_v48 }
 0x255   : > { %7861 = vst [vmem:[#allocation46_spill] sm:$0xff] %v5746_v55  ;;  %v2345_v58 = vand.u32 2147483647, %v5746_v55  ;;  %v5842_v55 = vld [vmem:[%s5321_s11 + $0x8] sm:$0xff] }
 0x256   : > { %7864 = vst [vmem:[#allocation49_spill] sm:$0xff] %v5780_v2  ;;  %v1651_v11 = vand.u32 2147483647, %v5780_v2 }
 0x259   : > { %2226 = vrot.lane.b32.xlu0 %v2225_v20, %s7706_s12  ;;  %v649_v20 = vand.u32 2147483647, %v5751_v5 }
 0x25a   : > { %1198 = vrot.lane.b32.xlu1 %v1197_v33, %s7712_s14  ;;  %v1320_v33 = vrot.slane %v1318_v13, 4 }
 0x25b   : > { %572 = vadd.xlane.f32.xlu2 %v571_v39  ;;  %v2283_v39 = vmul.f32 %v2282_v35, %v5341_v6  ;;  %v5763_v35 = vsub.f32 %v5539_v16, %v1592_v25  ;;  %v650_v37 = vmul.f32 %v649_v20, %v5324_v0  ;;  %v1709_v20 = vstv %s1707_s23  ;;  %s1824_s23 = sld [smem:[#allocation2 + %s1823_s25]] }
 0x25c   : > { %v803_v25 = vstv %s784_s20  ;;  %s597_s20 = sld [smem:[#allocation4 + %s7664_s24]] }
 0x25d   : > { %v2285_v44 = vrot.slane %v2283_v39, 4  ;;  %7862 = vst [vmem:[#allocation47_spill] sm:$0xff] %v5763_v35 }
 0x261   : > { %2286 = vrot.lane.b32.xlu0 %v2285_v44, %s7710_s13 }
 0x262   : > { %1261 = vrot.lane.b32.xlu1 %v1260_v1, %s7706_s12  ;;  %v1383_v1 = vrot.slane %v1381_v40, 4  ;;  %v1594_v40 = vand.u32 2147483647, %v5763_v35 }
 0x263   : > { %586 = vadd.xlane.f32.xlu2 %v585_v8  ;;  %v2346_v8 = vmul.f32 %v2345_v58, %v5341_v6 }
 0x265   : > { %v2348_v13 = vrot.slane %v2346_v8, 4  ;;  %v5784_v8 = vsub.f32 %v5379_v15, %v746_v51 }
 0x269   : > { %2349 = vrot.lane.b32.xlu0 %v2348_v13, %s7710_s13  ;;  %v748_v13 = vand.u32 2147483647, %v5784_v8 }
 0x26a   : > { %1321 = vrot.lane.b32.xlu1 %v1320_v33, %s7706_s12  ;;  %v707_v33 = vstv %s705_s28  ;;  %s861_s28 = sld [smem:[#allocation2 + %s7866_s18]] }
 0x26b   : > { %v5767_v39 = vsub.f32 %v5379_v15, %v707_v33  ;;  %s901_s18 = sld [smem:[#allocation4 + %s7869_s16]]  ;;  %s7872_s16 = sadd.s32 43, %s5369_s15 }
 0x26c   : > { %s1864_s24 = sld [smem:[#allocation4 + %s7872_s16]] }
 0x26d   : > { %7863 = vst [vmem:[#allocation48_spill] sm:$0xff] %v5767_v39  ;;  %v709_v44 = vand.u32 2147483647, %v5767_v39 }
 0x26f   : > { %v710_v58 = vmul.f32 %v709_v44, %v5324_v0  ;;  %v5802_v44 = vsub.f32 %v5408_v47, %v803_v25 }
 0x271   : > { %7868 = vst [vmem:[#allocation51_spill] sm:$0xff] %v5802_v44  ;;  %v805_v51 = vand.u32 2147483647, %v5802_v44 }
 0x272   : > { %1384 = vrot.lane.b32.xlu1 %v1383_v1, %s7710_s13  ;;  %v1595_v1 = vmul.f32 %v1594_v40, %v5341_v6  ;;  %v749_v40 = vmul.f32 %v748_v13, %v5324_v0  ;;  %v863_v0 = vstv %s861_s28 }
 0x274   : > { %v5794_v33 = vpop.xlane.xlu1 %524 }
 0x27a   : > { %1444 = vrot.lane.b32.xlu1 %v1443_v34, %s7710_s13  ;;  %v1652_v34 = vmul.f32 %v1651_v11, %v5341_v6 }
 0x27b   : > { %652 = vrot.lane.b32.xlu2 %v650_v37, %s7712_s14  ;;  %v5798_v37 = vsub.f32 %v5539_v16, %v1709_v20  ;;  %v5823_v20 = vld [vmem:[%s5321_s11] sm:$0xff] }
 0x27c   : > { %v806_v25 = vmul.f32 %v5823_v20, %v805_v51  ;;  %v920_v51 = vstv %s901_s18 }
 0x27d   : > { %7867 = vst [vmem:[#allocation50_spill] sm:$0xff] %v5798_v37  ;;  %v1711_v48 = vand.u32 2147483647, %v5798_v37  ;;  %v5851_v12 = vsub.f32 %v5408_v47, %v920_v51  ;;  %v1883_v51 = vstv %s1864_s24  ;;  %s7880_s24 = sadd.s32 6, %s5369_s15 }
 0x27e   : > { %v5872_v46 = vsub.f32 %v5516_v4, %v1883_v51  ;;  %s1212_s16 = sld [smem:[#allocation2 + %s7880_s24]] }
 0x27f   : > { %7875 = vst [vmem:[#allocation55_spill] sm:$0xff] %v5851_v12 }
 0x280   : > { %7878 = vst [vmem:[#allocation57_spill] sm:$0xff] %v5872_v46 }
 0x282   : > { %1597 = vrot.lane.b32.xlu1 %v1595_v1, %s7712_s14  ;;  %v1766_v1 = vstv %s1747_s22  ;;  %s7871_s22 = sadd.s32 5, %s5369_s15 }
 0x283   : > { %712 = vrot.lane.b32.xlu2 %v710_v58, %s7712_s14  ;;  %v1712_v58 = vmul.f32 %v1711_v48, %v5341_v6  ;;  %v5818_v11 = vsub.f32 %v5516_v4, %v1766_v1  ;;  %s1089_s28 = sld [smem:[#allocation2 + %s7871_s22]]  ;;  %v1826_v48 = vstv %s1824_s23  ;;  %v612_v1 = vstv %s597_s20  ;;  %s7876_s20 = sadd.s32 21, %s5369_s15 }
 0x284   : > { %v5846_v54 = vsub.f32 %v5539_v16, %v1826_v48  ;;  %s2054_s23 = sld [smem:[#allocation2 + %s2053_s8]]  ;;  %v922_v48 = vand.u32 2147483647, %v5851_v12  ;;  %s7879_s22 = sadd.s32 45, %s5369_s15 }
 0x285   : > { %7870 = vst [vmem:[#allocation52_spill] sm:$0xff] %v5818_v11  ;;  %v1768_v6 = vand.u32 2147483647, %v5818_v11  ;;  %s1131_s18 = sld [smem:[#allocation4 + %s7876_s20]] }
 0x286   : > { %7874 = vst [vmem:[#allocation54_spill] sm:$0xff] %v5846_v54 }
 0x28a   : > { %1654 = vrot.lane.b32.xlu1 %v1652_v34, %s7712_s14  ;;  %v5827_v34 = vsub.f32 %v5379_v15, %v863_v0  ;;  %v5839_v0 = vsub.f32 %v5408_v47, %v612_v1  ;;  %v1091_v1 = vstv %s1089_s28  ;;  %s2096_s28 = sld [smem:[#allocation4 + %s7879_s22]]  ;;  %s7885_s22 = sadd.s32 7, %s5369_s15 }
 0x28b   : > { %751 = vrot.lane.b32.xlu2 %v749_v40, %s7706_s12  ;;  %v1151_v7 = vstv %s1131_s18  ;;  %s1254_s18 = sld [smem:[#allocation4 + %s1252_s17]] }
 0x28c   : > { %v5820_v13 = vpop.permute.xlu1 %634  ;;  %v865_v40 = vand.u32 2147483647, %v5827_v34  ;;  %7873 = vst [vmem:[#allocation53_spill] sm:$0xff] %v5839_v0  ;;  %v5888_v51 = vsub.f32 %v5408_v47, %v1151_v7  ;;  %s5915_s17 = sld [smem:[#allocation4 + %s2217_s29]]  ;;  %s7708_s29 = sadd.s32 31, %s5369_s15 }
 0x28d   : > { %s5941_s24 = sld [smem:[#allocation2 + %s7708_s29]] }
 0x28e   : > { %v866_v63 = vmul.f32 %v5823_v20, %v865_v40  ;;  %v1828_v40 = vand.u32 2147483647, %v5846_v54  ;;  %7882 = vst [vmem:[#allocation59_spill] sm:$0xff] %v5888_v51 }
 0x290   : > { %v1829_v41 = vmul.f32 %v5842_v55, %v1828_v40  ;;  %v2116_v2 = vstv %s2096_s28  ;;  %s1335_s28 = sld [smem:[#allocation2 + %s7885_s22]]  ;;  %s7701_s22 = sadd.s32 36, %s5369_s15 }
 0x292   : > { %1714 = vrot.lane.b32.xlu1 %v1712_v58, %s7706_s12  ;;  %v1769_v58 = vmul.f32 %v5842_v55, %v1768_v6  ;;  %v2239_v38 = vstv %s5915_s17 }
 0x293   : > { %808 = vrot.lane.b32.xlu2 %v806_v25, %s7706_s12  ;;  %v614_v25 = vand.u32 2147483647, %v5839_v0  ;;  %v5867_v0 = vsub.f32 %v5379_v15, %v1091_v1  ;;  %v674_v1 = vpop.permute.xlu0 %673  ;;  %v2302_v54 = vstv %s5941_s24  ;;  %s6015_s24 = sld [smem:[#allocation4 + %s7701_s22]] }
 0x294   : > { %v5859_v59 = vpop.permute.xlu1 %691  ;;  %v676_v11 = vsel %vm330_vm0, %v674_v1, 0.0 }
 0x295   : > { %v615_v6 = vmul.f32 %v5823_v20, %v614_v25  ;;  %7877 = vst [vmem:[#allocation56_spill] sm:$0xff] %v5867_v0  ;;  %v1093_v25 = vand.u32 2147483647, %v5867_v0 }
 0x296   : > { %v1337_v14 = vstv %s1335_s28  ;;  %s6009_s28 = sld [smem:[#allocation4 + %s1589_s30]]  ;;  %s7896_s30 = sadd.s32 10, %s5369_s15 }
 0x297   : > { %v616_v45 = vsel %vm330_vm0, %v615_v6, 0.0  ;;  %v1885_v6 = vand.u32 2147483647, %v5872_v46 }
 0x298   : > { %617 = vadd.xlane.f32.xlu0 %v616_v45 }
 0x299   : > { %v1886_v36 = vmul.f32 %v5842_v55, %v1885_v6 }
 0x29a   : > { %1771 = vrot.lane.b32.xlu1 %v1769_v58, %s7706_s12  ;;  %v923_v58 = vmul.f32 %v5823_v20, %v922_v48  ;;  %v1094_v48 = vmul.f32 %v5823_v20, %v1093_v25  ;;  %v5902_v25 = vsub.f32 %v5516_v4, %v2116_v2 }
 0x29b   : > { %868 = vrot.lane.b32.xlu2 %v866_v63, %s7710_s13  ;;  %v2056_v63 = vstv %s2054_s23  ;;  %s2176_s23 = sadd.s32 30, %s5369_s15 }
 0x29c   : > { %v5883_v45 = vsub.f32 %v5539_v16, %v2056_v63  ;;  %v731_v40 = vpop.permute.xlu1 %730  ;;  %v1096_v46 = vrot.slane %v1094_v48, 4  ;;  %v1153_v63 = vand.u32 2147483647, %v5888_v51  ;;  %s2177_s20 = sld [smem:[#allocation2 + %s2176_s23]]  ;;  %7883 = vst [vmem:[#allocation60_spill] sm:$0xff] %v5902_v25  ;;  %v5910_v48 = vpop.permute.xlu0 %769 }
 0x29d   : > { %v733_v6 = vsel %vm330_vm0, %v731_v40, 0.0 }
 0x29e   : > { %7881 = vst [vmem:[#allocation58_spill] sm:$0xff] %v5883_v45 }
 0x2a0   : > { %677 = vadd.xlane.f32.xlu0 %v676_v11  ;;  %v1154_v11 = vmul.f32 %v5823_v20, %v1153_v63 }
 0x2a2   : > { %1831 = vrot.lane.b32.xlu1 %v1829_v41, %s7710_s13  ;;  %v2058_v41 = vand.u32 2147483647, %v5883_v45  ;;  %v1156_v2 = vrot.slane %v1154_v11, 4 }
 0x2a3   : > { %925 = vrot.lane.b32.xlu2 %v923_v58, %s7710_s13  ;;  %v1214_v58 = vstv %s1212_s16  ;;  %s5946_s16 = sld [smem:[#allocation4 + %s1375_s10]] }
 0x2a4   : > { %v2059_v7 = vmul.f32 %v5842_v55, %v2058_v41  ;;  %v5907_v1 = vsub.f32 %v5379_v15, %v1214_v58  ;;  %v791_v22 = vpop.permute.xlu1 %790  ;;  %v2179_v41 = vstv %s2177_s20  ;;  %v1274_v15 = vstv %s1254_s18  ;;  %s5968_s10 = sld [smem:[#allocation4 + %s2340_s26]]  ;;  %s7705_s20 = sadd.s32 20, %s5369_s15 }
 0x2a5   : > { %v5923_v63 = vsub.f32 %v5539_v16, %v2179_v41  ;;  %v793_v11 = vsel %vm330_vm0, %v791_v22, 0.0  ;;  %s7892_s26 = sadd.s32 9, %s5369_s15  ;;  %s5991_s17 = sld [smem:[#allocation2 + %s7705_s20]] }
 0x2a6   : > { %7884 = vst [vmem:[#allocation61_spill] sm:$0xff] %v5907_v1  ;;  %v2061_v21 = vrot.slane %v2059_v7, 4  ;;  %v5928_v7 = vsub.f32 %v5408_v47, %v1274_v15  ;;  %s5986_s18 = sld [smem:[#allocation2 + %s7892_s26]] }
 0x2a7   : > { %7886 = vst [vmem:[#allocation62_spill] sm:$0xff] %v5923_v63 }
 0x2a8   : > { %734 = vadd.xlane.f32.xlu0 %v733_v6  ;;  %7887 = vst [vmem:[#allocation63_spill] sm:$0xff] %v5928_v7  ;;  %v526_v6 = vrot.slane %v5794_v33, 4  ;;  %v1276_v15 = vand.u32 2147483647, %v5928_v7 }
 0x2aa   : > { %1888 = vrot.lane.b32.xlu1 %v1886_v36, %s7710_s13  ;;  %v2118_v36 = vand.u32 2147483647, %v5902_v25  ;;  %v527_v22 = vadd.f32 %v526_v6, %v5794_v33  ;;  %v1277_v33 = vmul.f32 %v5823_v20, %v1276_v15  ;;  %v1397_v15 = vstv %s5946_s16  ;;  %s6035_s16 = sld [smem:[#allocation2 + %s7896_s30]] }
 0x2ab   : > { %1097 = vrot.lane.b32.xlu2 %v1096_v46, %s7712_s14  ;;  %v1216_v46 = vand.u32 2147483647, %v5907_v1 }
 0x2ac   : > { %v2119_v40 = vmul.f32 %v5842_v55, %v2118_v36  ;;  %v5934_v36 = vpop.permute.xlu0 %829  ;;  %v848_v25 = vpop.permute.xlu1 %847  ;;  %v528_v6 = vrot.slane %v527_v22, 2 }
 0x2ad   : > { %v1217_v58 = vmul.f32 %v5823_v20, %v1216_v46 }
 0x2ae   : > { %v2121_v41 = vrot.slane %v2119_v40, 4 }
 0x2af   : > { %v1219_v46 = vrot.slane %v1217_v58, 4  ;;  %v5952_v58 = vsub.f32 %v5516_v4, %v2239_v38 }
 0x2b0   : > { %794 = vadd.xlane.f32.xlu0 %v793_v11  ;;  %v5955_v11 = vld [vmem:[%s5376_s19] sm:$0xff] }
 0x2b1   : > { %7888 = vst [vmem:[#allocation64_spill] sm:$0xff] %v5952_v58  ;;  %v5958_v53 = vsub.f32 %v5955_v11, %v1337_v14  ;;  %v2241_v38 = vand.u32 2147483647, %v5952_v58  ;;  %v1279_v14 = vrot.slane %v1277_v33, 4  ;;  %v5978_v58 = vsub.f32 %v5539_v16, %v2302_v54 }
 0x2b2   : > { %2062 = vrot.lane.b32.xlu1 %v2061_v21, %s7712_s14  ;;  %v543_v21 = vrot.slane %v5855_v43, 4 }
 0x2b3   : > { %1157 = vrot.lane.b32.xlu2 %v1156_v2, %s7712_s14  ;;  %v2181_v2 = vand.u32 2147483647, %v5923_v63  ;;  %7889 = vst [vmem:[#allocation65_spill] sm:$0xff] %v5958_v53  ;;  %v1339_v62 = vand.u32 2147483647, %v5958_v53 }
 0x2b4   : > { %v544_v39 = vadd.f32 %v543_v21, %v5855_v43  ;;  %v850_v43 = vsel %vm330_vm0, %v848_v25, 0.0  ;;  %v529_v25 = vadd.f32 %v528_v6, %v527_v22  ;;  %v908_v37 = vpop.permute.xlu1 %907  ;;  %7890 = vst [vmem:[#allocation66_spill] sm:$0xff] %v5978_v58  ;;  %v5982_v22 = vsub.f32 %v5408_v47, %v1397_v15 }
 0x2b5   : > { %v2182_v40 = vmul.f32 %v5842_v55, %v2181_v2  ;;  %v1340_v33 = vmul.f32 %v5823_v20, %v1339_v62  ;;  %v2362_v15 = vstv %s5968_s10  ;;  %s1708_s10 = sld [smem:[#allocation4 + %s1706_s9]]  ;;  %s7900_s9 = sadd.s32 11, %s5369_s15 }
 0x2b6   : > { %v545_v21 = vrot.slane %v544_v39, 2  ;;  %7891 = vst [vmem:[#allocation67_spill] sm:$0xff] %v5982_v22  ;;  %s1785_s26 = sld [smem:[#allocation2 + %s7900_s9]] }
 0x2b7   : > { %v2184_v2 = vrot.slane %v2182_v40, 4 }
 0x2b8   : > { %851 = vadd.xlane.f32.xlu0 %v850_v43  ;;  %v546_v40 = vadd.f32 %v545_v21, %v544_v39  ;;  %v2242_v43 = vmul.f32 %v5842_v55, %v2241_v38  ;;  %v910_v39 = vsel %vm330_vm0, %v908_v37, 0.0 }
 0x2ba   : > { %2122 = vrot.lane.b32.xlu1 %v2121_v41, %s7712_s14  ;;  %v547_v54 = vrot.slane %v546_v40, 1  ;;  %v2244_v21 = vrot.slane %v2242_v43, 4  ;;  %v6002_v43 = vsub.f32 %v5516_v4, %v2362_v15 }
 0x2bb   : > { %1220 = vrot.lane.b32.xlu2 %v1219_v46, %s7706_s12  ;;  %v5970_v46 = vpop.permute.xlu0 %886 }
 0x2bc   : > { %v548_v44 = vadd.f32 %v547_v54, %v546_v40  ;;  %7893 = vst [vmem:[#allocation68_spill] sm:$0xff] %v6002_v43 }
 0x2be   : > { %v512_v41 = vpop.xlane.xlu2 %511 }
 0x2bf   : > { %v513_v63 = vrot.slane %v512_v41, 4 }
 0x2c0   : > { %911 = vadd.xlane.f32.xlu0 %v910_v39 }
 0x2c1   : > { %v514_v45 = vadd.f32 %v513_v63, %v512_v41  ;;  %v530_v63 = vrot.slane %v529_v25, 1  ;;  %v1342_v41 = vrot.slane %v1340_v33, 4  ;;  %v965_v33 = vpop.permute.xlu1 %964 }
 0x2c2   : > { %2185 = vrot.lane.b32.xlu1 %v2184_v2, %s7706_s12  ;;  %v2304_v2 = vand.u32 2147483647, %v5978_v58  ;;  %v967_v40 = vsel %vm330_vm0, %v965_v33, 0.0  ;;  %v1670_v58 = vstv %s6035_s16 }
 0x2c3   : > { %1280 = vrot.lane.b32.xlu2 %v1279_v14, %s7706_s12  ;;  %v515_v35 = vrot.slane %v514_v45, 2  ;;  %v1399_v14 = vand.u32 2147483647, %v5982_v22  ;;  %v531_v37 = vadd.f32 %v530_v63, %v529_v25  ;;  %v1553_v63 = vstv %s5986_s18  ;;  %s1825_s18 = sld [smem:[#allocation4 + %s1823_s25]] }
 0x2c5   : > { %v516_v62 = vadd.f32 %v515_v35, %v514_v45  ;;  %v5997_v35 = vpop.permute.xlu0 %946  ;;  %v2305_v45 = vmul.f32 %v5842_v55, %v2304_v2  ;;  %v1400_v25 = vmul.f32 %v5823_v20, %v1399_v14  ;;  %v6022_v2 = vsub.f32 %v5539_v16, %v1553_v63 }
 0x2c6   : > { %v556_v6 = vpop.xlane.xlu2 %555 }
 0x2c7   : > { %v557_v47 = vrot.slane %v556_v6, 4  ;;  %v517_v38 = vrot.slane %v516_v62, 1  ;;  %7895 = vst [vmem:[#allocation70_spill] sm:$0xff] %v6022_v2  ;;  %v1555_v33 = vand.u32 2147483647, %v6022_v2 }
 0x2c8   : > { %968 = vadd.xlane.f32.xlu0 %v967_v40  ;;  %v1610_v40 = vstv %s6009_s28 }
 0x2c9   : > { %v558_v7 = vadd.f32 %v557_v47, %v556_v6  ;;  %v518_v12 = vadd.f32 %v517_v38, %v516_v62  ;;  %v1017_v62 = vstv %s5991_s17  ;;  %v1402_v38 = vrot.slane %v1400_v25, 4  ;;  %s6084_s17 = spop %4646 }
 0x2ca   : > { %2245 = vrot.lane.b32.xlu1 %v2244_v21, %s7706_s12  ;;  %v2307_v21 = vrot.slane %v2305_v45, 4  ;;  %s6086_s28 = spop %4648 }
 0x2cb   : > { %4674 = vpush %v518_v12  ;;  %1343 = vrot.lane.b32.xlu2 %v1342_v41, %s7710_s13  ;;  %v559_v39 = vrot.slane %v558_v7, 2  ;;  %v6018_v12 = vsub.f32 %v5955_v11, %v1017_v62  ;;  %v2364_v41 = vand.u32 2147483647, %v6002_v43  ;;  %v1071_v62 = vstv %s6015_s24  ;;  %s7903_s24 = sadd.s32 13, %s5369_s15  ;;  %s6096_s16 = sadd.f32 %s6086_s28, %s6084_s17 }
 0x2cc   : > { %4676 = vpush %v531_v37  ;;  %s2013_s30 = sld [smem:[#allocation2 + %s7903_s24]]  ;;  %s6103_s25 = spop %4650 }
 0x2cd   : > { %4678 = vpush %v548_v44  ;;  %v560_v54 = vadd.f32 %v559_v39, %v558_v7  ;;  %v1019_v44 = vand.u32 2147483647, %v6018_v12  ;;  %v2365_v45 = vmul.f32 %v5842_v55, %v2364_v41  ;;  %v6030_v63 = vpop.permute.xlu0 %1116  ;;  %7904 = sst [smem:[#allocation76_spill]] %s6096_s16  ;;  %s6116_s9 = spop %4652 }
 0x2ce   : > { %7894 = vst [vmem:[#allocation69_spill] sm:$0xff] %v6018_v12  ;;  %v573_v6 = vpop.xlane.xlu2 %572 }
 0x2cf   : > { %v574_v47 = vrot.slane %v573_v6, 4  ;;  %v561_v14 = vrot.slane %v560_v54, 1  ;;  %v1020_v37 = vmul.f32 %v5823_v20, %v1019_v44 }
 0x2d1   : > { %v575_v7 = vadd.f32 %v574_v47, %v573_v6  ;;  %v562_v15 = vadd.f32 %v561_v14, %v560_v54  ;;  %v1022_v25 = vrot.slane %v1020_v37, 4  ;;  %v1556_v14 = vmul.f32 %v5842_v55, %v1555_v33 }
 0x2d2   : > { %2308 = vrot.lane.b32.xlu1 %v2307_v21, %s7710_s13  ;;  %v6040_v21 = vld [vmem:[%s5404_s27] sm:$0xff]  ;;  %v6047_v37 = vsub.f32 %v5516_v4, %v1610_v40 }
 0x2d3   : > { %1403 = vrot.lane.b32.xlu2 %v1402_v38, %s7710_s13  ;;  %4680 = vpush %v562_v15  ;;  %v576_v39 = vrot.slane %v575_v7, 2  ;;  %v1024_v6 = vsel %vm330_vm0, %v1022_v25, 0.0  ;;  %v6043_v41 = vsub.f32 %v6040_v21, %v1071_v62  ;;  %v2367_v38 = vrot.slane %v2365_v45, 4 }
 0x2d4   : > { %1025 = vadd.xlane.f32.xlu0 %v1024_v6  ;;  %7898 = vst [vmem:[#allocation72_spill] sm:$0xff] %v6047_v37  ;;  %v1612_v45 = vand.u32 2147483647, %v6047_v37 }
 0x2d5   : > { %v577_v54 = vadd.f32 %v576_v39, %v575_v7  ;;  %7897 = vst [vmem:[#allocation71_spill] sm:$0xff] %v6043_v41  ;;  %v1139_v7 = vpop.permute.xlu1 %1138  ;;  %v1073_v39 = vand.u32 2147483647, %v6043_v41 }
 0x2d6   : > { %v587_v47 = vpop.xlane.xlu2 %586 }
 0x2d7   : > { %v588_v44 = vrot.slane %v587_v47, 4  ;;  %v578_v15 = vrot.slane %v577_v54, 1  ;;  %v1074_v62 = vmul.f32 %v5823_v20, %v1073_v39 }
 0x2d9   : > { %v589_v25 = vadd.f32 %v588_v44, %v587_v47  ;;  %v579_v43 = vadd.f32 %v578_v15, %v577_v54  ;;  %v1076_v6 = vrot.slane %v1074_v62, 4  ;;  %v6058_v47 = vpop.permute.xlu0 %1179  ;;  %v1613_v54 = vmul.f32 %v5842_v55, %v1612_v45 }
 0x2da   : > { %2368 = vrot.lane.b32.xlu1 %v2367_v38, %s7710_s13 }
 0x2db   : > { %1558 = vrot.lane.b32.xlu2 %v1556_v14, %s7712_s14  ;;  %4682 = vpush %v579_v43  ;;  %v590_v33 = vrot.slane %v589_v25, 2  ;;  %v1078_v41 = vsel %vm330_vm0, %v1076_v6, 0.0  ;;  %v6062_v14 = vsub.f32 %v5539_v16, %v1670_v58 }
 0x2dc   : > { %1079 = vadd.xlane.f32.xlu0 %v1078_v41  ;;  %v1141_v41 = vsel %vm330_vm0, %v1139_v7, 0.0 }
 0x2dd   : > { %v591_v40 = vadd.f32 %v590_v33, %v589_v25  ;;  %7899 = vst [vmem:[#allocation73_spill] sm:$0xff] %v6062_v14  ;;  %v1199_v15 = vpop.permute.xlu1 %1198  ;;  %v1672_v39 = vand.u32 2147483647, %v6062_v14  ;;  %v1727_v25 = vstv %s1708_s10  ;;  %s3853_s10 = sadd.f32 %s6103_s25, %s6096_s16 }
 0x2de   : > { %v6064_v43 = vpop.permute.xlu2 %652  ;;  %v6073_v62 = vsub.f32 %v5516_v4, %v1727_v25  ;;  %v1844_v25 = vstv %s1825_s18  ;;  %s6121_s18 = spop %4654 }
 0x2df   : > { %v592_v38 = vrot.slane %v591_v40, 1  ;;  %v1673_v58 = vmul.f32 %v5842_v55, %v1672_v39  ;;  %s3854_s24 = sadd.f32 %s6116_s9, %s3853_s10  ;;  %s6129_s22 = spop %4656 }
 0x2e0   : > { %7901 = vst [vmem:[#allocation74_spill] sm:$0xff] %v6073_v62  ;;  %v1729_v6 = vand.u32 2147483647, %v6073_v62  ;;  %7906 = sst [smem:[#allocation78_spill]] %s6121_s18  ;;  %s7909_s10 = sadd.s32 14, %s5369_s15 }
 0x2e1   : > { %v593_v44 = vadd.f32 %v592_v38, %v591_v40  ;;  %v6075_v45 = vpop.permute.xlu0 %1239  ;;  %v1787_v38 = vstv %s1785_s26  ;;  %s2055_s26 = sld [smem:[#allocation4 + %s2053_s8]] }
 0x2e2   : > { %v1730_v4 = vmul.f32 %v5842_v55, %v1729_v6  ;;  %v6090_v7 = vsub.f32 %v5539_v16, %v1787_v38  ;;  %7908 = sst [smem:[#allocation80_spill]] %s6129_s22 }
 0x2e3   : > { %1615 = vrot.lane.b32.xlu2 %v1613_v54, %s7712_s14  ;;  %4684 = vpush %v593_v44  ;;  %v1201_v54 = vsel %vm330_vm0, %v1199_v15, 0.0  ;;  %s3855_s8 = sadd.f32 %s6121_s18, %s3854_s24 }
 0x2e4   : > { %1142 = vadd.xlane.f32.xlu0 %v1141_v41  ;;  %7902 = vst [vmem:[#allocation75_spill] sm:$0xff] %v6090_v7  ;;  %v1789_v15 = vand.u32 2147483647, %v6090_v7  ;;  %s6141_s20 = sld [smem:[#allocation2 + %s7909_s10]] }
 0x2e5   : > { %v1262_v40 = vpop.permute.xlu1 %1261  ;;  %s6170_s14 = sld [smem:[#allocation4 + %s2176_s23]]  ;;  %s7721_s23 = sadd.s32 40, %s5369_s15 }
 0x2e6   : > { %v6077_v33 = vpop.permute.xlu2 %712  ;;  %v1264_v39 = vsel %vm330_vm0, %v1262_v40, 0.0  ;;  %v1790_v6 = vmul.f32 %v5842_v55, %v1789_v15  ;;  %v2015_v40 = vstv %s2013_s30  ;;  %s3856_s30 = sadd.f32 %s6129_s22, %s3855_s8 }
 0x2e7   : > { %v6126_v15 = vsub.f32 %v5539_v16, %v2015_v40  ;;  %v2075_v16 = vstv %s2055_s26  ;;  %s7714_s26 = sadd.s32 24, %s5369_s15 }
 0x2e9   : > { %v6098_v44 = vpop.permute.xlu0 %1302  ;;  %7907 = vst [vmem:[#allocation79_spill] sm:$0xff] %v6126_v15 }
 0x2eb   : > { %1675 = vrot.lane.b32.xlu2 %v1673_v58, %s7706_s12 }
 0x2ec   : > { %1202 = vadd.xlane.f32.xlu0 %v1201_v54  ;;  %v6111_v54 = vld [vmem:[%s5404_s27 + $0x8] sm:$0xff] }
 0x2ed   : > { %v1322_v58 = vpop.permute.xlu1 %1321  ;;  %v6114_v38 = vsub.f32 %v6111_v54, %v1844_v25 }
 0x2ee   : > { %v6107_v41 = vpop.permute.xlu2 %751 }
 0x2ef   : > { %7905 = vst [vmem:[#allocation77_spill] sm:$0xff] %v6114_v38 }
 0x2f1   : > { %v6131_v25 = vpop.permute.xlu0 %1362 }
 0x2f3   : > { %1732 = vrot.lane.b32.xlu2 %v1730_v4, %s7706_s12  ;;  %v1846_v4 = vand.u32 2147483647, %v6114_v38  ;;  %v2017_v38 = vand.u32 2147483647, %v6126_v15  ;;  %s6143_s12 = spop %4658 }
 0x2f4   : > { %1265 = vadd.xlane.f32.xlu0 %v1264_v39  ;;  %v1324_v39 = vsel %vm330_vm0, %v1322_v58, 0.0  ;;  %7910 = sst [smem:[#allocation81_spill]] %s6143_s12  ;;  %s6145_s29 = spop %4660  ;;  %v637_v58 = vsel %vm330_vm0, %v5820_v13, 0.0 }
 0x2f5   : > { %v1385_v37 = vpop.permute.xlu1 %1384  ;;  %7911 = sst [smem:[#allocation82_spill]] %s6145_s29  ;;  %v2018_v40 = vmul.f32 %v5842_v55, %v2017_v38  ;;  %s6162_s10 = spop %4662 }
 0x2f6   : > { %v6135_v62 = vpop.permute.xlu2 %808  ;;  %s3857_s24 = sadd.f32 %s6143_s12, %s3856_s30 }
 0x2f7   : > { %s1489_s30 = sld [smem:[#allocation2 + %s7714_s26]]  ;;  %v2020_v13 = vrot.slane %v2018_v40, 4 }
 0x2f8   : > { %s3858_s8 = sadd.f32 %s6145_s29, %s3857_s24 }
 0x2f9   : > { %v6158_v22 = vpop.permute.xlu0 %1425  ;;  %7913 = sst [smem:[#allocation84_spill]] %s6162_s10 }
 0x2fa   : > { %s3859_s24 = sadd.f32 %s6162_s10, %s3858_s8 }
 0x2fb   : > { %1792 = vrot.lane.b32.xlu2 %v1790_v6, %s7710_s13  ;;  %v1847_v6 = vmul.f32 %v5842_v55, %v1846_v4  ;;  %v6153_v4 = vsub.f32 %v6111_v54, %v2075_v16  ;;  %s1521_s8 = sld [smem:[#allocation4 + %s7721_s23]] }
 0x2fc   : > { %1325 = vadd.xlane.f32.xlu0 %v1324_v39  ;;  %v1387_v39 = vsel %vm330_vm0, %v1385_v37, 0.0  ;;  %v2138_v37 = vstv %s6141_s20 }
 0x2fd   : > { %7912 = vst [vmem:[#allocation83_spill] sm:$0xff] %v6153_v4  ;;  %v2077_v38 = vand.u32 2147483647, %v6153_v4  ;;  %v1445_v16 = vpop.permute.xlu1 %1444  ;;  %v1491_v23 = vstv %s1489_s30 }
 0x2fe   : > { %v1447_v18 = vsel %vm330_vm0, %v1445_v16, 0.0  ;;  %v2198_v16 = vstv %s6170_s14  ;;  %s7725_s14 = sadd.s32 4, %s5369_s15 }
 0x2ff   : > { %v2078_v40 = vmul.f32 %v5842_v55, %v2077_v38  ;;  %v6217_v31 = vsub.f32 %v6111_v54, %v2198_v16  ;;  %s978_s3 = sld [smem:[#allocation2 + %s7725_s14]]  ;;  %s7928_s14 = smov 120  }
 0x301   : > { %7922 = vst [vmem:[#allocation91_spill] sm:$0xff] %v6217_v31  ;;  %v2200_v16 = vand.u32 2147483647, %v6217_v31 }
 0x303   : > { %1849 = vrot.lane.b32.xlu2 %v1847_v6, %s7710_s13  ;;  %s6165_s13 = spop %4664  ;;  %v6173_v6 = vpop.permute.xlu2 %868 }
 0x304   : > { %638 = vadd.xlane.f32.xlu1 %v637_v58  ;;  %1388 = vadd.xlane.f32.xlu0 %v1387_v39  ;;  %7914 = sst [smem:[#allocation85_spill]] %s6165_s13  ;;  %s6175_s26 = spop %4666  ;;  %v694_v58 = vsel %vm330_vm0, %v5859_v59, 0.0  ;;  %v6183_v39 = vld [vmem:[%s5376_s19 + $0x8] sm:$0xff] }
 0x305   : > { %7915 = sst [smem:[#allocation86_spill]] %s6175_s26  ;;  %v6186_v4 = vsub.f32 %v6183_v39, %v2138_v37  ;;  %v6195_v38 = vsub.f32 %v6183_v39, %v1491_v23  ;;  %s6197_s19 = spop %4668  ;;  %v6199_v37 = vpop.permute.xlu0 %1576  ;;  %v754_v23 = vsel %vm330_vm0, %v6107_v41, 0.0  ;;  %v1536_v41 = vstv %s1521_s8 }
 0x306   : > { %s3860_s0 = sadd.f32 %s6165_s13, %s3859_s24  ;;  %s7920_s24 = sadd.s32 15, %s5369_s15 }
 0x307   : > { %7917 = vst [vmem:[#allocation87_spill] sm:$0xff] %v6186_v4  ;;  %v2140_v59 = vand.u32 2147483647, %v6186_v4  ;;  %7919 = sst [smem:[#allocation89_spill]] %s6197_s19  ;;  %s6208_s30 = spop %4670 }
 0x308   : > { %s3861_s20 = sadd.f32 %s6175_s26, %s3860_s0  ;;  %7918 = vst [vmem:[#allocation88_spill] sm:$0xff] %v6195_v38 }
 0x309   : > { %s6204_s2 = sld [smem:[#allocation2 + %s7920_s24]]  ;;  %v2141_v56 = vmul.f32 %v5842_v55, %v2140_v59 }
 0x30a   : > { %s3862_s0 = sadd.f32 %s6197_s19, %s3861_s20  ;;  %s6221_s20 = spop %4672 }
 0x30b   : > { %2021 = vrot.lane.b32.xlu2 %v2020_v13, %s7916_s1  ;;  %v2080_v13 = vrot.slane %v2078_v40, 4  ;;  %7921 = sst [smem:[#allocation90_spill]] %s6208_s30  ;;  %v1598_v40 = vpop.permute.xlu1 %1597  ;;  %s6225_s23 = spop %4674  ;;  %v2143_v59 = vrot.slane %v2141_v56, 4  ;;  %v811_v56 = vsel %vm330_vm0, %v6135_v62, 0.0 }
 0x30c   : > { %695 = vadd.xlane.f32.xlu1 %v694_v58  ;;  %1448 = vadd.xlane.f32.xlu0 %v1447_v18  ;;  %v1493_v18 = vand.u32 2147483647, %v6195_v38  ;;  %v6210_v58 = vpop.permute.xlu2 %925  ;;  %7923 = sst [smem:[#allocation92_spill]] %s6221_s20 }
 0x30d   : > { %s3863_s24 = sadd.f32 %s6208_s30, %s3862_s0 }
 0x30e   : > { %v1494_v38 = vmul.f32 %v5842_v55, %v1493_v18  ;;  %7924 = sst [smem:[#allocation93_spill]] %s6225_s23  ;;  %v6232_v18 = vsub.f32 %v6111_v54, %v1536_v41 }
 0x30f   : > { %s3864_s4 = sadd.f32 %s6221_s20, %s3863_s24  ;;  %v2261_v51 = vstv %s6204_s2  ;;  %s7745_s24 = sadd.s32 44, %s5369_s15 }
 0x310   : > { %7925 = vst [vmem:[#allocation94_spill] sm:$0xff] %v6232_v18  ;;  %v6248_v41 = vsub.f32 %v6183_v39, %v2261_v51  ;;  %s1939_s8 = sld [smem:[#allocation2 + %s1938_s5]] }
 0x311   : > { %s3865_s0 = sadd.f32 %s6225_s23, %s3864_s4  ;;  %s7931_s4 = sadd.s32 20, %s5369_s15 }
 0x312   : > { %7929 = vst [vmem:[#allocation96_spill] sm:$0xff] %v6248_v41  ;;  %s1016_s21 = sld [smem:[#allocation4 + %s7931_s4]]  ;;  %s7937_s4 = sadd.s32 32, %s5369_s15 }
 0x313   : > { %2081 = vrot.lane.b32.xlu2 %v2080_v13, %s7916_s1  ;;  %v1495_v13 = vsel %vm330_vm0, %v1494_v38, 0.0  ;;  %v1538_v38 = vand.u32 2147483647, %v6232_v18  ;;  %s6241_s1 = spop %4676  ;;  %v1655_v9 = vpop.permute.xlu1 %1654 }
 0x314   : > { %755 = vadd.xlane.f32.xlu1 %v754_v23  ;;  %1496 = vadd.xlane.f32.xlu0 %v1495_v13  ;;  %v6239_v23 = vpop.permute.xlu0 %1636  ;;  %7927 = sst [smem:[#allocation95_spill]] %s6241_s1  ;;  %v2201_v13 = vmul.f32 %v5842_v55, %v2200_v16  ;;  %v1098_v18 = vpop.permute.xlu2 %1097  ;;  %v2263_v16 = vand.u32 2147483647, %v6248_v41 }
 0x315   : > { %v1539_v31 = vmul.f32 %v5842_v55, %v1538_v38  ;;  %s6252_s2 = sadd.f32 %s6241_s1, %s3865_s0  ;;  %s323_s0 = scalar_lea.vmem %s7933_s6, %s5312_s7  ;;  %v871_v38 = vsel %vm330_vm0, %v6173_v6, 0.0 }
 0x316   : > { %v2203_v62 = vrot.slane %v2201_v13, 4 }
 0x317   : > { %7930 = sst [smem:[#allocation97_spill]] %s6252_s2  ;;  %v1540_v27 = vsel %vm330_vm0, %v1539_v31, 0.0  ;;  %v4505_v51 = vstv %s6252_s2  ;;  %v2264_v31 = vmul.f32 %v5842_v55, %v2263_v16 }
 0x318   : > { %4506 = vst.msk [vmem:[%s323_s0] sm:$0x1] %vm4503_vm1, %v4505_v51  ;;  %v1034_v42 = vstv %s1016_s21  ;;  %s596_s21 = sld [smem:[#allocation2 + %s7937_s4]]  ;;  %s1457_s4 = sadd.s32 8, %s5369_s15 }
 0x319   : > { %v6281_v26 = vsub.f32 %v6040_v21, %v1034_v42  ;;  %s1977_s0 = sld [smem:[#allocation4 + %s7745_s24]] }
 0x31b   : > { %2144 = vrot.lane.b32.xlu2 %v2143_v59, %s7928_s14  ;;  %v980_v59 = vstv %s978_s3  ;;  %v1715_v61 = vpop.permute.xlu1 %1714  ;;  %7935 = vst [vmem:[#allocation100_spill] sm:$0xff] %v6281_v26  ;;  %s7936_s3 = smov 116  }
 0x31c   : > { %812 = vadd.xlane.f32.xlu1 %v811_v56  ;;  %1541 = vadd.xlane.f32.xlu0 %v1540_v27  ;;  %v6260_v12 = vsub.f32 %v5955_v11, %v980_v59  ;;  %v6271_v27 = vsub.f32 %v6111_v54, %v2321_v24  ;;  %v1600_v56 = vsel %vm330_vm0, %v1598_v40, 0.0  ;;  %v6274_v13 = vpop.permute.xlu0 %1693  ;;  %v1158_v6 = vpop.permute.xlu2 %1157  ;;  %v928_v40 = vsel %vm330_vm0, %v6210_v58, 0.0 }
 0x31e   : > { %7932 = vst [vmem:[#allocation98_spill] sm:$0xff] %v6260_v12  ;;  %v982_v59 = vand.u32 2147483647, %v6260_v12  ;;  %v2323_v16 = vand.u32 2147483647, %v6271_v27 }
 0x31f   : > { %7934 = vst [vmem:[#allocation99_spill] sm:$0xff] %v6271_v27 }
 0x320   : > { %v983_v24 = vmul.f32 %v5823_v20, %v982_v59  ;;  %v2324_v51 = vmul.f32 %v5842_v55, %v2323_v16  ;;  %v1717_v16 = vsel %vm330_vm0, %v1715_v61, 0.0 }
 0x322   : > { %v2326_v59 = vrot.slane %v2324_v51, 4 }
 0x323   : > { %2204 = vrot.lane.b32.xlu2 %v2203_v62, %s7928_s14  ;;  %v2266_v62 = vrot.slane %v2264_v31, 4  ;;  %v1036_v31 = vand.u32 2147483647, %v6281_v26  ;;  %v1772_v42 = vpop.permute.xlu1 %1771 }
 0x324   : > { %872 = vadd.xlane.f32.xlu1 %v871_v38  ;;  %1601 = vadd.xlane.f32.xlu0 %v1600_v56  ;;  %v1657_v38 = vsel %vm330_vm0, %v1655_v9, 0.0  ;;  %v985_v56 = vrot.slane %v983_v24, 4  ;;  %v6289_v41 = vpop.permute.xlu0 %1753  ;;  %v1221_v27 = vpop.permute.xlu2 %1220 }
 0x325   : > { %v1037_v58 = vmul.f32 %v5823_v20, %v1036_v31 }
 0x327   : > { %v1039_v9 = vrot.slane %v1037_v58, 4 }
 0x32b   : > { %2267 = vrot.lane.b32.xlu2 %v2266_v62, %s7936_s3  ;;  %v987_v62 = vsel %vm330_vm0, %v985_v56, 0.0  ;;  %v1832_v56 = vpop.permute.xlu1 %1831 }
 0x32c   : > { %929 = vadd.xlane.f32.xlu1 %v928_v40  ;;  %1658 = vadd.xlane.f32.xlu0 %v1657_v38  ;;  %v6295_v24 = vpop.permute.xlu0 %1810  ;;  %v1041_v40 = vsel %vm330_vm0, %v1039_v9, 0.0  ;;  %v1281_v51 = vpop.permute.xlu2 %1280  ;;  %v1774_v38 = vsel %vm330_vm0, %v1772_v42, 0.0  ;;  %v1834_v61 = vsel %vm330_vm0, %v1832_v56, 0.0  ;;  %v598_v42 = vstv %s596_s21  ;;  %s1458_s21 = sld [smem:[#allocation2 + %s1457_s4]] }
 0x32d   : > { %v1160_v9 = vsel %vm330_vm0, %v1158_v6, 0.0 }
 0x333   : > { %2327 = vrot.lane.b32.xlu2 %v2326_v59, %s7936_s3  ;;  %v1100_v59 = vsel %vm330_vm0, %v1098_v18, 0.0  ;;  %v1889_v58 = vpop.permute.xlu1 %1888  ;;  %v6316_v18 = vsub.f32 %v5955_v11, %v598_v42  ;;  %v1995_v42 = vstv %s1977_s0 }
 0x334   : > { %988 = vadd.xlane.f32.xlu1 %v987_v62  ;;  %1718 = vadd.xlane.f32.xlu0 %v1717_v16  ;;  %v6300_v31 = vpop.permute.xlu0 %1870  ;;  %v1344_v62 = vpop.permute.xlu2 %1343  ;;  %v1891_v16 = vsel %vm330_vm0, %v1889_v58, 0.0 }
 0x335   : > { %7938 = vst [vmem:[#allocation101_spill] sm:$0xff] %v6316_v18  ;;  %v600_v6 = vand.u32 2147483647, %v6316_v18 }
 0x337   : > { %v601_v4 = vmul.f32 %v5823_v20, %v600_v6 }
 0x33c   : > { %1042 = vadd.xlane.f32.xlu1 %v1041_v40  ;;  %1775 = vadd.xlane.f32.xlu0 %v1774_v38  ;;  %v6311_v40 = vpop.permute.xlu0 %2040  ;;  %v1941_v38 = vstv %s1939_s8  ;;  %s7941_s8 = sadd.s32 24, %s5369_s15 }
 0x33d   : > { %v6319_v56 = vsub.f32 %v6183_v39, %v1941_v38  ;;  %s1490_s0 = sld [smem:[#allocation4 + %s7941_s8]] }
 0x33f   : > { %7939 = vst [vmem:[#allocation102_spill] sm:$0xff] %v6319_v56  ;;  %v1943_v58 = vand.u32 2147483647, %v6319_v56 }
 0x341   : > { %v1944_v26 = vmul.f32 %v5842_v55, %v1943_v58 }
 0x343   : > { %v1946_v32 = vrot.slane %v1944_v26, 4  ;;  %v602_v26 = vsel %vm330_vm0, %v601_v4, 0.0 }
 0x344   : > { %1101 = vadd.xlane.f32.xlu1 %v1100_v59  ;;  %1835 = vadd.xlane.f32.xlu0 %v1834_v61  ;;  %v1404_v61 = vpop.permute.xlu2 %1403  ;;  %v2063_v59 = vpop.permute.xlu1 %2062 }
 0x345   : > { %v1948_v38 = vsel %vm330_vm0, %v1946_v32, 0.0  ;;  %v6330_v30 = vpop.permute.xlu0 %2103  ;;  %v1283_v32 = vsel %vm330_vm0, %v1281_v51, 0.0  ;;  %v2065_v4 = vsel %vm330_vm0, %v2063_v59, 0.0  ;;  %v1346_v51 = vsel %vm330_vm0, %v1344_v62, 0.0 }
 0x346   : > { %v715_v59 = vsel %vm330_vm0, %v6077_v33, 0.0  ;;  %v772_v33 = vsel %vm330_vm0, %v5910_v48, 0.0 }
 0x34c   : > { %1161 = vadd.xlane.f32.xlu1 %v1160_v9  ;;  %1892 = vadd.xlane.f32.xlu0 %v1891_v16  ;;  %v1223_v9 = vsel %vm330_vm0, %v1221_v27, 0.0  ;;  %v6328_v16 = vsub.f32 %v6111_v54, %v1995_v42  ;;  %v1559_v18 = vpop.permute.xlu2 %1558  ;;  %v2123_v56 = vpop.permute.xlu1 %2122  ;;  %v1460_v42 = vstv %s1458_s21  ;;  %s7944_s21 = sadd.s32 4, %s5369_s15 }
 0x34d   : > { %s979_s8 = sld [smem:[#allocation4 + %s7944_s21]] }
 0x34e   : > { %7940 = vst [vmem:[#allocation103_spill] sm:$0xff] %v6328_v16  ;;  %v1997_v58 = vand.u32 2147483647, %v6328_v16 }
 0x350   : > { %v1998_v27 = vmul.f32 %v5842_v55, %v1997_v58  ;;  %v655_v58 = vsel %vm330_vm0, %v6064_v43, 0.0  ;;  %v1406_v43 = vsel %vm330_vm0, %v1404_v61, 0.0 }
 0x352   : > { %v2000_v20 = vrot.slane %v1998_v27, 4 }
 0x354   : > { %1224 = vadd.xlane.f32.xlu1 %v1223_v9  ;;  %1949 = vadd.xlane.f32.xlu0 %v1948_v38  ;;  %v2002_v6 = vsel %vm330_vm0, %v2000_v20, 0.0  ;;  %v6340_v9 = vpop.permute.xlu0 %2163  ;;  %v1616_v38 = vpop.permute.xlu2 %1615  ;;  %v1505_v20 = vstv %s1490_s0  ;;  %s7945_s0 = sadd.s32 36, %s5369_s15 }
 0x355   : > { %v2186_v16 = vpop.permute.xlu1 %2185  ;;  %s1052_s24 = sld [smem:[#allocation2 + %s7945_s0]]  ;;  %s7950_s0 = sadd.s32 40, %s5369_s15 }
 0x356   : > { %v2188_v15 = vsel %vm330_vm0, %v2186_v16, 0.0  ;;  %v832_v16 = vsel %vm330_vm0, %v5934_v36, 0.0  ;;  %v1561_v36 = vsel %vm330_vm0, %v1559_v18, 0.0 }
 0x35c   : > { %603 = vadd.xlane.f32.xlu2 %v602_v26  ;;  %1284 = vadd.xlane.f32.xlu1 %v1283_v32  ;;  %v6349_v26 = vsub.f32 %v6183_v39, %v1460_v42  ;;  %v6352_v32 = vpop.permute.xlu0 %2226  ;;  %v1676_v62 = vpop.permute.xlu2 %1675 }
 0x35d   : > { %2003 = vadd.xlane.f32.xlu0 %v2002_v6  ;;  %v2125_v6 = vsel %vm330_vm0, %v2123_v56, 0.0 }
 0x35e   : > { %7942 = vst [vmem:[#allocation104_spill] sm:$0xff] %v6349_v26  ;;  %v1462_v27 = vand.u32 2147483647, %v6349_v26 }
 0x360   : > { %v1463_v42 = vmul.f32 %v5842_v55, %v1462_v27 }
 0x364   : > { %656 = vadd.xlane.f32.xlu2 %v655_v58  ;;  %1347 = vadd.xlane.f32.xlu1 %v1346_v51  ;;  %v2246_v58 = vpop.permute.xlu1 %2245  ;;  %v1464_v51 = vsel %vm330_vm0, %v1463_v42, 0.0  ;;  %v6367_v61 = vpop.permute.xlu0 %2286  ;;  %v997_v42 = vstv %s979_s8  ;;  %s1940_s8 = sld [smem:[#allocation4 + %s1938_s5]] }
 0x365   : > { %2066 = vadd.xlane.f32.xlu0 %v2065_v4  ;;  %v6360_v4 = vsub.f32 %v6111_v54, %v1505_v20  ;;  %v1733_v20 = vpop.permute.xlu2 %1732  ;;  %s1459_s5 = sld [smem:[#allocation4 + %s1457_s4]] }
 0x367   : > { %7943 = vst [vmem:[#allocation105_spill] sm:$0xff] %v6360_v4  ;;  %v1507_v56 = vand.u32 2147483647, %v6360_v4 }
 0x369   : > { %v1508_v27 = vmul.f32 %v5842_v55, %v1507_v56 }
 0x36c   : > { %716 = vadd.xlane.f32.xlu2 %v715_v59  ;;  %1407 = vadd.xlane.f32.xlu1 %v1406_v43  ;;  %v1509_v59 = vsel %vm330_vm0, %v1508_v27, 0.0  ;;  %v2248_v43 = vsel %vm330_vm0, %v2246_v58, 0.0  ;;  %v6376_v48 = vpop.permute.xlu0 %2349  ;;  %v889_v58 = vsel %vm330_vm0, %v5970_v46, 0.0  ;;  %v1054_v27 = vstv %s1052_s24  ;;  %s1901_s24 = sadd.s32 12, %s5369_s15 }
 0x36d   : > { %2126 = vadd.xlane.f32.xlu0 %v2125_v6  ;;  %v2309_v6 = vpop.permute.xlu1 %2308  ;;  %v1793_v55 = vpop.permute.xlu2 %1792  ;;  %s1902_s21 = sld [smem:[#allocation2 + %s1901_s24]] }
 0x36e   : > { %v2311_v56 = vsel %vm330_vm0, %v2309_v6, 0.0  ;;  %v1618_v6 = vsel %vm330_vm0, %v1616_v38, 0.0  ;;  %s6545_s4 = sld [smem:[#allocation4 + %s1901_s24]]  ;;  %s7953_s24 = sadd.s32 44, %s5369_s15 }
 0x36f   : > { %s6637_s15 = spop %4678 }
 0x374   : > { %773 = vadd.xlane.f32.xlu2 %v772_v33  ;;  %1465 = vadd.xlane.f32.xlu1 %v1464_v51  ;;  %v6381_v51 = vsub.f32 %v6040_v21, %v997_v42  ;;  %v6392_v21 = vsub.f32 %v5955_v11, %v1054_v27 }
 0x375   : > { %2189 = vadd.xlane.f32.xlu0 %v2188_v15  ;;  %v2369_v15 = vpop.permute.xlu1 %2368  ;;  %v1850_v42 = vpop.permute.xlu2 %1849 }
 0x376   : > { %7946 = vst [vmem:[#allocation106_spill] sm:$0xff] %v6381_v51  ;;  %v999_v33 = vand.u32 2147483647, %v6381_v51  ;;  %v2371_v46 = vsel %vm330_vm0, %v2369_v15, 0.0  ;;  %v1678_v15 = vsel %vm330_vm0, %v1676_v62, 0.0 }
 0x377   : > { %7947 = vst [vmem:[#allocation107_spill] sm:$0xff] %v6392_v21 }
 0x37c   : > { %833 = vadd.xlane.f32.xlu2 %v832_v16  ;;  %1510 = vadd.xlane.f32.xlu1 %v1509_v59  ;;  %v6388_v59 = vpop.xlane.xlu0 %617 }
 0x37d   : > { %2249 = vadd.xlane.f32.xlu0 %v2248_v43  ;;  %v5192_v43 = vld [vmem:[%s5321_s11] sm:$0xff]  ;;  %v6396_v18 = vpop.xlane.xlu1 %638  ;;  %v2022_v27 = vpop.permute.xlu2 %2021 }
 0x37e   : > { %v1000_v16 = vmul.f32 %v5192_v43, %v999_v33 }
 0x384   : > { %890 = vadd.xlane.f32.xlu2 %v889_v58  ;;  %1562 = vadd.xlane.f32.xlu1 %v1561_v36  ;;  %v949_v58 = vsel %vm330_vm0, %v5997_v35, 0.0  ;;  %v1056_v36 = vand.u32 2147483647, %v6392_v21  ;;  %v6402_v38 = vpop.xlane.xlu0 %677  ;;  %v6430_v21 = vld [vmem:[%s5321_s11 + $0x8] sm:$0xff] }
 0x385   : > { %2312 = vadd.xlane.f32.xlu0 %v2311_v56  ;;  %v1002_v56 = vrot.slane %v1000_v16, 4  ;;  %v6406_v35 = vpop.xlane.xlu1 %695  ;;  %v2082_v62 = vpop.permute.xlu2 %2081 }
 0x386   : > { %v1057_v33 = vmul.f32 %v5192_v43, %v1056_v36  ;;  %v1904_v43 = vstv %s1902_s21  ;;  %s1520_s21 = sld [smem:[#allocation2 + %s7950_s0]]  ;;  %v2084_v14 = vsel %vm330_vm0, %v2082_v62, 0.0  ;;  %v697_v62 = vrot.slane %v6406_v35, 4 }
 0x387   : > { %v1004_v11 = vsel %vm330_vm0, %v1002_v56, 0.0  ;;  %v6419_v36 = vsub.f32 %v6183_v39, %v1904_v43 }
 0x388   : > { %v698_v53 = vadd.f32 %v697_v62, %v6406_v35 }
 0x389   : > { %7948 = vst [vmem:[#allocation108_spill] sm:$0xff] %v6419_v36 }
 0x38c   : > { %950 = vadd.xlane.f32.xlu2 %v949_v58  ;;  %1619 = vadd.xlane.f32.xlu1 %v1618_v6  ;;  %v1059_v58 = vrot.slane %v1057_v33, 4  ;;  %v1735_v6 = vsel %vm330_vm0, %v1733_v20, 0.0  ;;  %v1119_v33 = vsel %vm330_vm0, %v6030_v63, 0.0  ;;  %v1906_v20 = vand.u32 2147483647, %v6419_v36 }
 0x38d   : > { %2372 = vadd.xlane.f32.xlu0 %v2371_v46  ;;  %v6412_v46 = vpop.xlane.xlu0 %734  ;;  %v6416_v56 = vpop.xlane.xlu1 %755  ;;  %v1182_v63 = vsel %vm330_vm0, %v6058_v47, 0.0  ;;  %v1242_v47 = vsel %vm330_vm0, %v6075_v45, 0.0  ;;  %v1365_v45 = vsel %vm330_vm0, %v6131_v25, 0.0  ;;  %v1522_v28 = vstv %s1520_s21 }
 0x38e   : > { %v1061_v16 = vsel %vm330_vm0, %v1059_v58, 0.0  ;;  %v1958_v58 = vstv %s1940_s8  ;;  %v1907_v43 = vmul.f32 %v6430_v21, %v1906_v20  ;;  %v736_v3 = vrot.slane %v6412_v46, 4  ;;  %s6558_s8 = sld [smem:[#allocation2 + %s7953_s24]] }
 0x38f   : > { %v6434_v4 = vsub.f32 %v6111_v54, %v1958_v58 }
 0x391   : > { %7949 = vst [vmem:[#allocation109_spill] sm:$0xff] %v6434_v4 }
 0x394   : > { %1005 = vadd.xlane.f32.xlu2 %v1004_v11  ;;  %1679 = vadd.xlane.f32.xlu1 %v1678_v15  ;;  %v1795_v11 = vsel %vm330_vm0, %v1793_v55, 0.0  ;;  %v1852_v55 = vsel %vm330_vm0, %v1850_v42, 0.0 }
 0x395   : > { %v6425_v15 = vpop.xlane.xlu0 %794 }
 0x39c   : > { %1062 = vadd.xlane.f32.xlu2 %v1061_v16  ;;  %1736 = vadd.xlane.f32.xlu1 %v1735_v6  ;;  %v2145_v16 = vpop.permute.xlu2 %2144  ;;  %v6427_v6 = vpop.xlane.xlu1 %812 }
 0x39d   : > { %v6440_v36 = vpop.xlane.xlu0 %851 }
 0x3a4   : > { %1120 = vadd.xlane.f32.xlu2 %v1119_v33  ;;  %1796 = vadd.xlane.f32.xlu1 %v1795_v11  ;;  %v1909_v11 = vrot.slane %v1907_v43, 4  ;;  %v1960_v33 = vand.u32 2147483647, %v6434_v4  ;;  %v6444_v58 = vpop.permute.xlu2 %2204  ;;  %v6446_v7 = vpop.xlane.xlu1 %872  ;;  %v1474_v4 = vstv %s1459_s5 }
 0x3a6   : > { %v1911_v52 = vsel %vm330_vm0, %v1909_v11, 0.0  ;;  %v1961_v20 = vmul.f32 %v6430_v21, %v1960_v33 }
 0x3a8   : > { %v1963_v42 = vrot.slane %v1961_v20, 4 }
 0x3aa   : > { %v1965_v43 = vsel %vm330_vm0, %v1963_v42, 0.0  ;;  %v640_v42 = vrot.slane %v6396_v18, 4 }
 0x3ac   : > { %1183 = vadd.xlane.f32.xlu2 %v1182_v63  ;;  %1853 = vadd.xlane.f32.xlu1 %v1852_v55  ;;  %v6451_v55 = vpop.xlane.xlu0 %911  ;;  %v1305_v63 = vsel %vm330_vm0, %v6098_v44, 0.0  ;;  %v6457_v11 = vpop.permute.xlu2 %2267  ;;  %v6469_v44 = vsub.f32 %v6111_v54, %v1474_v4  ;;  %v1428_v54 = vsel %vm330_vm0, %v6158_v22, 0.0 }
 0x3ad   : > { %v6459_v33 = vpop.xlane.xlu1 %929 }
 0x3ae   : > { %7951 = vst [vmem:[#allocation110_spill] sm:$0xff] %v6469_v44 }
 0x3b4   : > { %1243 = vadd.xlane.f32.xlu2 %v1242_v47  ;;  %1912 = vadd.xlane.f32.xlu1 %v1911_v52  ;;  %v2024_v52 = vsel %vm330_vm0, %v2022_v27, 0.0  ;;  %v6466_v20 = vpop.xlane.xlu0 %968  ;;  %v619_v47 = vrot.slane %v6388_v59, 4  ;;  %v1476_v27 = vand.u32 2147483647, %v6469_v44  ;;  %v679_v44 = vrot.slane %v6402_v38, 4 }
 0x3b6   : > { %v620_v25 = vadd.f32 %v619_v47, %v6388_v59  ;;  %v1477_v4 = vmul.f32 %v6430_v21, %v1476_v27 }
 0x3b8   : > { %v621_v2 = vrot.slane %v620_v25, 2  ;;  %v1478_v22 = vsel %vm330_vm0, %v1477_v4, 0.0 }
 0x3ba   : > { %v622_v26 = vadd.f32 %v621_v2, %v620_v25  ;;  %v757_v2 = vrot.slane %v6416_v56, 4  ;;  %v737_v25 = vadd.f32 %v736_v3, %v6412_v46  ;;  %v796_v3 = vrot.slane %v6425_v15, 4 }
 0x3bc   : > { %1306 = vadd.xlane.f32.xlu2 %v1305_v63  ;;  %1966 = vadd.xlane.f32.xlu1 %v1965_v43  ;;  %v6473_v43 = vpop.permute.xlu2 %2327  ;;  %v6475_v63 = vpop.xlane.xlu1 %988 }
 0x3bd   : > { %v6487_v10 = vpop.xlane.xlu0 %1025 }
 0x3c4   : > { %1366 = vadd.xlane.f32.xlu2 %v1365_v45  ;;  %2025 = vadd.xlane.f32.xlu1 %v2024_v52  ;;  %v641_v52 = vadd.f32 %v640_v42, %v6396_v18  ;;  %v6485_v45 = vsub.f32 %v6183_v39, %v1522_v28  ;;  %v6491_v42 = vpop.xlane.xlu1 %1042  ;;  %v680_v28 = vadd.f32 %v679_v44, %v6402_v38  ;;  %v699_v38 = vrot.slane %v698_v53, 2 }
 0x3c6   : > { %7952 = vst [vmem:[#allocation111_spill] sm:$0xff] %v6485_v45  ;;  %v642_v59 = vrot.slane %v641_v52, 2  ;;  %v681_v4 = vrot.slane %v680_v28, 2  ;;  %v700_v57 = vadd.f32 %v699_v38, %v698_v53  ;;  %v1579_v53 = vsel %vm330_vm0, %v6199_v37, 0.0 }
 0x3c8   : > { %v643_v50 = vadd.f32 %v642_v59, %v641_v52 }
 0x3cc   : > { %1429 = vadd.xlane.f32.xlu2 %v1428_v54  ;;  %2085 = vadd.xlane.f32.xlu1 %v2084_v14  ;;  %v1524_v14 = vand.u32 2147483647, %v6485_v45  ;;  %v2147_v54 = vsel %vm330_vm0, %v2145_v16, 0.0  ;;  %v623_v45 = vrot.slane %v622_v26, 1  ;;  %v6507_v62 = vpop.xlane.xlu1 %1101 }
 0x3ce   : > { %v1525_v1 = vmul.f32 %v6430_v21, %v1524_v14 }
 0x3cf   : > { %v604_v47 = vpop.xlane.xlu2 %603 }
 0x3d0   : > { %v605_v18 = vrot.slane %v604_v47, 4  ;;  %v1526_v35 = vsel %vm330_vm0, %v1525_v1, 0.0  ;;  %v738_v1 = vrot.slane %v737_v25, 2 }
 0x3d2   : > { %v606_v27 = vadd.f32 %v605_v18, %v604_v47  ;;  %v644_v47 = vrot.slane %v643_v50, 1  ;;  %v6500_v18 = vpop.xlane.xlu0 %1079 }
 0x3d4   : > { %v607_v19 = vrot.slane %v606_v27, 2  ;;  %1479 = vadd.xlane.f32.xlu2 %v1478_v22  ;;  %2148 = vadd.xlane.f32.xlu1 %v2147_v54  ;;  %v624_v22 = vadd.f32 %v623_v45, %v622_v26  ;;  %v645_v14 = vadd.f32 %v644_v47, %v643_v50  ;;  %v758_v54 = vadd.f32 %v757_v2, %v6416_v56 }
 0x3d5   : > { %v797_v56 = vadd.f32 %v796_v3, %v6425_v15 }
 0x3d6   : > { %v608_v0 = vadd.f32 %v607_v19, %v606_v27  ;;  %v2207_v19 = vsel %vm330_vm0, %v6444_v58, 0.0  ;;  %v682_v27 = vadd.f32 %v681_v4, %v680_v28  ;;  %v759_v26 = vrot.slane %v758_v54, 2 }
 0x3d7   : > { %v657_v51 = vpop.xlane.xlu2 %656  ;;  %v701_v28 = vrot.slane %v700_v57, 1 }
 0x3d8   : > { %v658_v16 = vrot.slane %v657_v51, 4  ;;  %v609_v44 = vrot.slane %v608_v0, 1  ;;  %v683_v58 = vrot.slane %v682_v27, 1  ;;  %v760_v15 = vadd.f32 %v759_v26, %v758_v54 }
 0x3d9   : > { %v1639_v54 = vsel %vm330_vm0, %v6239_v23, 0.0 }
 0x3da   : > { %v659_v52 = vadd.f32 %v658_v16, %v657_v51  ;;  %v610_v59 = vadd.f32 %v609_v44, %v608_v0  ;;  %v814_v51 = vrot.slane %v6427_v6, 4  ;;  %v6513_v4 = vpop.xlane.xlu0 %1142  ;;  %v684_v16 = vadd.f32 %v683_v58, %v682_v27 }
 0x3db   : > { %v739_v44 = vadd.f32 %v738_v1, %v737_v25 }
 0x3dc   : > { %v660_v12 = vrot.slane %v659_v52, 2  ;;  %1527 = vadd.xlane.f32.xlu2 %v1526_v35  ;;  %2208 = vadd.xlane.f32.xlu1 %v2207_v19  ;;  %4686 = vpush %v610_v59  ;;  %v815_v2 = vadd.f32 %v814_v51, %v6427_v6  ;;  %v6520_v59 = vpop.xlane.xlu1 %1161  ;;  %v853_v19 = vrot.slane %v6440_v36, 4  ;;  %v874_v6 = vrot.slane %v6446_v7, 4 }
 0x3dd   : > { %4688 = vpush %v624_v22  ;;  %v798_v22 = vrot.slane %v797_v56, 2  ;;  %v740_v3 = vrot.slane %v739_v44, 1 }
 0x3de   : > { %4690 = vpush %v645_v14  ;;  %v661_v0 = vadd.f32 %v660_v12, %v659_v52  ;;  %v2270_v12 = vsel %vm330_vm0, %v6457_v11, 0.0  ;;  %v702_v52 = vadd.f32 %v701_v28, %v700_v57  ;;  %v816_v14 = vrot.slane %v815_v2, 2 }
 0x3df   : > { %v717_v46 = vpop.xlane.xlu2 %716  ;;  %v854_v1 = vadd.f32 %v853_v19, %v6440_v36  ;;  %v741_v58 = vadd.f32 %v740_v3, %v739_v44  ;;  %v799_v26 = vadd.f32 %v798_v22, %v797_v56  ;;  %v875_v28 = vadd.f32 %v874_v6, %v6446_v7 }
 0x3e0   : > { %v718_v50 = vrot.slane %v717_v46, 4  ;;  %v662_v45 = vrot.slane %v661_v0, 1  ;;  %v931_v44 = vrot.slane %v6459_v33, 4 }
 0x3e1   : > { %v855_v23 = vrot.slane %v854_v1, 2  ;;  %v800_v56 = vrot.slane %v799_v26, 1 }
 0x3e2   : > { %v719_v47 = vadd.f32 %v718_v50, %v717_v46  ;;  %v663_v38 = vadd.f32 %v662_v45, %v661_v0  ;;  %v761_v0 = vrot.slane %v760_v15, 1  ;;  %v2330_v46 = vsel %vm330_vm0, %v6473_v43, 0.0  ;;  %v6529_v45 = vpop.xlane.xlu0 %1202 }
 0x3e3   : > { %v817_v50 = vadd.f32 %v816_v14, %v815_v2  ;;  %v801_v22 = vadd.f32 %v800_v56, %v799_v26  ;;  %v856_v14 = vadd.f32 %v855_v23, %v854_v1 }
 0x3e4   : > { %v720_v35 = vrot.slane %v719_v47, 2  ;;  %1580 = vadd.xlane.f32.xlu2 %v1579_v53  ;;  %2271 = vadd.xlane.f32.xlu1 %v2270_v12  ;;  %4692 = vpush %v663_v38  ;;  %v762_v36 = vadd.f32 %v761_v0, %v760_v15  ;;  %v913_v38 = vrot.slane %v6451_v55, 4  ;;  %v6533_v12 = vpop.xlane.xlu1 %1224  ;;  %v990_v0 = vrot.slane %v6475_v63, 4 }
 0x3e5   : > { %4694 = vpush %v684_v16  ;;  %v818_v2 = vrot.slane %v817_v50, 1  ;;  %v876_v16 = vrot.slane %v875_v28, 2 }
 0x3e6   : > { %4696 = vpush %v702_v52  ;;  %v721_v37 = vadd.f32 %v720_v35, %v719_v47  ;;  %v914_v15 = vadd.f32 %v913_v38, %v6451_v55  ;;  %v970_v55 = vrot.slane %v6466_v20, 4 }
 0x3e7   : > { %v774_v11 = vpop.xlane.xlu2 %773  ;;  %v819_v6 = vadd.f32 %v818_v2, %v817_v50  ;;  %v991_v50 = vadd.f32 %v990_v0, %v6475_v63  ;;  %v1044_v63 = vrot.slane %v6491_v42, 4 }
 0x3e8   : > { %v775_v25 = vrot.slane %v774_v11, 4  ;;  %v722_v27 = vrot.slane %v721_v37, 1 }
 0x3ea   : > { %v776_v57 = vadd.f32 %v775_v25, %v774_v11  ;;  %v723_v51 = vadd.f32 %v722_v27, %v721_v37  ;;  %v1696_v37 = vsel %vm330_vm0, %v6274_v13, 0.0  ;;  %v932_v11 = vadd.f32 %v931_v44, %v6459_v33  ;;  %v6540_v27 = vpop.xlane.xlu0 %1265 }
 0x3eb   : > { %v877_v25 = vadd.f32 %v876_v16, %v875_v28  ;;  %v915_v13 = vrot.slane %v914_v15, 2  ;;  %v857_v33 = vrot.slane %v856_v14, 1  ;;  %v992_v16 = vrot.slane %v991_v50, 2 }
 0x3ec   : > { %v777_v47 = vrot.slane %v776_v57, 2  ;;  %1640 = vadd.xlane.f32.xlu2 %v1639_v54  ;;  %2331 = vadd.xlane.f32.xlu1 %v2330_v46  ;;  %4698 = vpush %v723_v51  ;;  %v933_v54 = vrot.slane %v932_v11, 2  ;;  %v6548_v26 = vpop.xlane.xlu1 %1284 }
 0x3ed   : > { %4700 = vpush %v741_v58  ;;  %v878_v58 = vrot.slane %v877_v25, 1  ;;  %v858_v23 = vadd.f32 %v857_v33, %v856_v14  ;;  %v916_v38 = vadd.f32 %v915_v13, %v914_v15  ;;  %v5194_v14 = vld [vmem:[%s5404_s27 + $0x8] sm:$0xff]  ;;  %v993_v0 = vadd.f32 %v992_v16, %v991_v50  ;;  %s6644_s27 = spop %4680 }
 0x3ee   : > { %4702 = vpush %v762_v36  ;;  %v778_v53 = vadd.f32 %v777_v47, %v776_v57  ;;  %v971_v36 = vadd.f32 %v970_v55, %v6466_v20  ;;  %v934_v2 = vadd.f32 %v933_v54, %v932_v11  ;;  %v1813_v55 = vsel %vm330_vm0, %v6295_v24, 0.0  ;;  %s6646_s5 = spop %4682 }
 0x3ef   : > { %v834_v43 = vpop.xlane.xlu2 %833  ;;  %v879_v56 = vadd.f32 %v878_v58, %v877_v25  ;;  %v994_v50 = vrot.slane %v993_v0, 1  ;;  %7954 = sst [smem:[#allocation112_spill]] %s6646_s5  ;;  %s6649_s0 = spop %4684 }
 0x3f0   : > { %v835_v7 = vrot.slane %v834_v43, 4  ;;  %v779_v35 = vrot.slane %v778_v53, 1  ;;  %v972_v20 = vrot.slane %v971_v36, 2  ;;  %7955 = sst [smem:[#allocation113_spill]] %s6649_s0 }
 0x3f2   : > { %v836_v52 = vadd.f32 %v835_v7, %v834_v43  ;;  %v780_v19 = vadd.f32 %v779_v35, %v778_v53  ;;  %v1756_v53 = vsel %vm330_vm0, %v6289_v41, 0.0  ;;  %v1921_v7 = vstv %s6545_s4 }
 0x3f3   : > { %v1027_v41 = vrot.slane %v6487_v10, 4  ;;  %v6564_v11 = vsub.f32 %v5194_v14, %v1921_v7  ;;  %v973_v33 = vadd.f32 %v972_v20, %v971_v36  ;;  %v995_v7 = vadd.f32 %v994_v50, %v993_v0 }
 0x3f4   : > { %v837_v3 = vrot.slane %v836_v52, 2  ;;  %1697 = vadd.xlane.f32.xlu2 %v1696_v37  ;;  %4704 = vpush %v780_v19  ;;  %v6561_v19 = vpop.xlane.xlu0 %1325  ;;  %v6568_v13 = vpop.xlane.xlu1 %1347 }
 0x3f5   : > { %4706 = vpush %v801_v22  ;;  %v935_v22 = vrot.slane %v934_v2, 1 }
 0x3f6   : > { %4708 = vpush %v819_v6  ;;  %v838_v57 = vadd.f32 %v837_v3, %v836_v52  ;;  %v917_v52 = vrot.slane %v916_v38, 1  ;;  %v1045_v3 = vadd.f32 %v1044_v63, %v6491_v42  ;;  %v1923_v42 = vand.u32 2147483647, %v6564_v11 }
 0x3f7   : > { %v891_v1 = vpop.xlane.xlu2 %890 }
 0x3f8   : > { %v892_v51 = vrot.slane %v891_v1, 4  ;;  %v839_v46 = vrot.slane %v838_v57, 1  ;;  %v1046_v58 = vrot.slane %v1045_v3, 2 }
 0x3fa   : > { %v893_v28 = vadd.f32 %v892_v51, %v891_v1  ;;  %v840_v47 = vadd.f32 %v839_v46, %v838_v57  ;;  %v1028_v57 = vadd.f32 %v1027_v41, %v6487_v10  ;;  %v918_v1 = vadd.f32 %v917_v52, %v916_v38 }
 0x3fb   : > { %v936_v51 = vadd.f32 %v935_v22, %v934_v2  ;;  %v1081_v46 = vrot.slane %v6500_v18, 4  ;;  %v1047_v20 = vadd.f32 %v1046_v58, %v1045_v3 }
 0x3fc   : > { %v894_v43 = vrot.slane %v893_v28, 2  ;;  %1757 = vadd.xlane.f32.xlu2 %v1756_v53  ;;  %4710 = vpush %v840_v47  ;;  %v1029_v47 = vrot.slane %v1028_v57, 2  ;;  %v1103_v53 = vrot.slane %v6507_v62, 4  ;;  %v6581_v16 = vpop.xlane.xlu0 %1388 }
 0x3fd   : > { %4712 = vpush %v858_v23  ;;  %v974_v23 = vrot.slane %v973_v33, 1 }
 0x3fe   : > { %4714 = vpush %v879_v56  ;;  %v895_v44 = vadd.f32 %v894_v43, %v893_v28  ;;  %v1978_v28 = vstv %s6558_s8  ;;  %v1082_v43 = vadd.f32 %v1081_v46, %v6500_v18  ;;  %v1924_v56 = vmul.f32 %v6430_v21, %v1923_v42  ;;  %v6586_v18 = vpop.xlane.xlu1 %1407 }
 0x3ff   : > { %v951_v35 = vpop.xlane.xlu2 %950  ;;  %v6579_v2 = vsub.f32 %v6183_v39, %v1978_v28  ;;  %v1104_v41 = vadd.f32 %v1103_v53, %v6507_v62  ;;  %v975_v52 = vadd.f32 %v974_v23, %v973_v33  ;;  %v1144_v62 = vrot.slane %v6513_v4, 4 }
 0x400   : > { %v952_v15 = vrot.slane %v951_v35, 4  ;;  %v896_v37 = vrot.slane %v895_v44, 1  ;;  %v1926_v39 = vrot.slane %v1924_v56, 4  ;;  %v1083_v3 = vrot.slane %v1082_v43, 2 }
 0x401   : > { %v1980_v22 = vand.u32 2147483647, %v6579_v2  ;;  %v1145_v58 = vadd.f32 %v1144_v62, %v6513_v4 }
 0x402   : > { %v953_v6 = vadd.f32 %v952_v15, %v951_v35  ;;  %v897_v25 = vadd.f32 %v896_v37, %v895_v44  ;;  %v1873_v35 = vsel %vm330_vm0, %v6300_v31, 0.0  ;;  %v1030_v15 = vadd.f32 %v1029_v47, %v1028_v57 }
 0x403   : > { %v1163_v57 = vrot.slane %v6520_v59, 4  ;;  %v1928_v33 = vsel %vm330_vm0, %v1926_v39, 0.0  ;;  %v1084_v50 = vadd.f32 %v1083_v3, %v1082_v43 }
 0x404   : > { %v954_v54 = vrot.slane %v953_v6, 2  ;;  %1814 = vadd.xlane.f32.xlu2 %v1813_v55  ;;  %4716 = vpush %v897_v25  ;;  %v1105_v25 = vrot.slane %v1104_v41, 2  ;;  %v1031_v31 = vrot.slane %v1030_v15, 1  ;;  %v6594_v47 = vpop.xlane.xlu0 %1448 }
 0x405   : > { %4718 = vpush %v918_v1  ;;  %v1164_v53 = vadd.f32 %v1163_v57, %v6520_v59  ;;  %v1286_v57 = vrot.slane %v6548_v26, 4 }
 0x406   : > { %4720 = vpush %v936_v51  ;;  %v955_v10 = vadd.f32 %v954_v54, %v953_v6  ;;  %v1048_v6 = vrot.slane %v1047_v20, 1  ;;  %v1981_v54 = vmul.f32 %v6430_v21, %v1980_v22  ;;  %v1106_v28 = vadd.f32 %v1105_v25, %v1104_v41  ;;  %v6598_v56 = vpop.xlane.xlu1 %1465 }
 0x407   : > { %v1006_v24 = vpop.xlane.xlu2 %1005  ;;  %v1146_v21 = vrot.slane %v1145_v58, 2 }
 0x408   : > { %v1007_v36 = vrot.slane %v1006_v24, 4  ;;  %v956_v38 = vrot.slane %v955_v10, 1  ;;  %v1049_v42 = vadd.f32 %v1048_v6, %v1047_v20  ;;  %v1983_v23 = vrot.slane %v1981_v54, 4 }
 0x409   : > { %v1107_v43 = vrot.slane %v1106_v28, 1  ;;  %v1147_v39 = vadd.f32 %v1146_v21, %v1145_v58 }
 0x40a   : > { %v1008_v63 = vadd.f32 %v1007_v36, %v1006_v24  ;;  %v957_v44 = vadd.f32 %v956_v38, %v955_v10  ;;  %v1032_v10 = vadd.f32 %v1031_v31, %v1030_v15  ;;  %v1204_v38 = vrot.slane %v6529_v45, 4 }
 0x40b   : > { %v1985_v41 = vsel %vm330_vm0, %v1983_v23, 0.0  ;;  %v1108_v6 = vadd.f32 %v1107_v43, %v1106_v28  ;;  %v1267_v31 = vrot.slane %v6540_v27, 4 }
 0x40c   : > { %v1009_v37 = vrot.slane %v1008_v63, 2  ;;  %1874 = vadd.xlane.f32.xlu2 %v1873_v35  ;;  %4722 = vpush %v957_v44  ;;  %v1165_v44 = vrot.slane %v1164_v53, 2  ;;  %v1205_v15 = vadd.f32 %v1204_v38, %v6529_v45  ;;  %v6604_v62 = vpop.xlane.xlu0 %1496 }
 0x40d   : > { %4724 = vpush %v975_v52  ;;  %s6654_s21 = spop %4686 }
 0x40e   : > { %4726 = vpush %v995_v7  ;;  %v1010_v14 = vadd.f32 %v1009_v37, %v1008_v63  ;;  %v1085_v63 = vrot.slane %v1084_v50, 1  ;;  %v1226_v7 = vrot.slane %v6533_v12, 4  ;;  %v1166_v3 = vadd.f32 %v1165_v44, %v1164_v53  ;;  %s6657_s4 = spop %4688 }
 0x40f   : > { %v1063_v0 = vpop.xlane.xlu2 %1062  ;;  %s6662_s24 = spop %4690 }
 0x410   : > { %v1064_v55 = vrot.slane %v1063_v0, 4  ;;  %v1011_v1 = vrot.slane %v1010_v14, 1  ;;  %v1086_v37 = vadd.f32 %v1085_v63, %v1084_v50  ;;  %v1227_v22 = vadd.f32 %v1226_v7, %v6533_v12 }
 0x411   : > { %v1167_v54 = vrot.slane %v1166_v3, 1  ;;  %v1287_v50 = vadd.f32 %v1286_v57, %v6548_v26 }
 0x412   : > { %v1065_v51 = vadd.f32 %v1064_v55, %v1063_v0  ;;  %v1012_v46 = vadd.f32 %v1011_v1, %v1010_v14  ;;  %v1206_v0 = vrot.slane %v1205_v15, 2  ;;  %v1148_v55 = vrot.slane %v1147_v39, 1 }
 0x413   : > { %v1228_v1 = vrot.slane %v1227_v22, 2  ;;  %v1168_v23 = vadd.f32 %v1167_v54, %v1166_v3 }
 0x414   : > { %v1066_v24 = vrot.slane %v1065_v51, 2  ;;  %1929 = vadd.xlane.f32.xlu2 %v1928_v33  ;;  %4728 = vpush %v1012_v46  ;;  %v2043_v46 = vsel %vm330_vm0, %v6311_v40, 0.0  ;;  %v1149_v28 = vadd.f32 %v1148_v55, %v1147_v39  ;;  %v1207_v53 = vadd.f32 %v1206_v0, %v1205_v15  ;;  %v6615_v44 = vpop.xlane.xlu0 %1541 }
 0x415   : > { %4730 = vpush %v1032_v10  ;;  %v1268_v10 = vadd.f32 %v1267_v31, %v6540_v27  ;;  %v1288_v40 = vrot.slane %v1287_v50, 2  ;;  %v1349_v27 = vrot.slane %v6568_v13, 4  ;;  %v1409_v55 = vrot.slane %v6586_v18, 4  ;;  %s6664_s8 = spop %4692 }
 0x416   : > { %4732 = vpush %v1049_v42  ;;  %v1067_v36 = vadd.f32 %v1066_v24, %v1065_v51  ;;  %v6608_v51 = vpop.xlane.xlu1 %1510  ;;  %v1208_v43 = vrot.slane %v1207_v53, 1  ;;  %s6670_s6 = spop %4694 }
 0x417   : > { %v1121_v4 = vpop.xlane.xlu2 %1120  ;;  %v1269_v38 = vrot.slane %v1268_v10, 2  ;;  %7956 = sst [smem:[#allocation114_spill]] %s6670_s6  ;;  %s6676_s7 = spop %4696 }
 0x418   : > { %v1122_v20 = vrot.slane %v1121_v4, 4  ;;  %v1068_v59 = vrot.slane %v1067_v36, 1  ;;  %7957 = sst [smem:[#allocation115_spill]] %s6676_s7 }
 0x419   : > { %v1270_v39 = vadd.f32 %v1269_v38, %v1268_v10 }
 0x41a   : > { %v1123_v35 = vadd.f32 %v1122_v20, %v1121_v4  ;;  %v1069_v52 = vadd.f32 %v1068_v59, %v1067_v36  ;;  %v1229_v36 = vadd.f32 %v1228_v1, %v1227_v22  ;;  %v1327_v4 = vrot.slane %v6561_v19, 4 }
 0x41b   : > { %v2106_v59 = vsel %vm330_vm0, %v6330_v30, 0.0  ;;  %v1289_v22 = vadd.f32 %v1288_v40, %v1287_v50  ;;  %v1390_v30 = vrot.slane %v6581_v16, 4  ;;  %v1271_v57 = vrot.slane %v1270_v39, 1 }
 0x41c   : > { %v1124_v14 = vrot.slane %v1123_v35, 2  ;;  %1986 = vadd.xlane.f32.xlu2 %v1985_v41  ;;  %4734 = vpush %v1069_v52  ;;  %v1230_v20 = vrot.slane %v1229_v36, 1  ;;  %v1328_v52 = vadd.f32 %v1327_v4, %v6561_v19  ;;  %v1410_v50 = vadd.f32 %v1409_v55, %v6586_v18 }
 0x41d   : > { %4736 = vpush %v1086_v37  ;;  %v1209_v37 = vadd.f32 %v1208_v43, %v1207_v53  ;;  %v1290_v19 = vrot.slane %v1289_v22, 1  ;;  %s6678_s14 = spop %4698 }
 0x41e   : > { %4738 = vpush %v1108_v6  ;;  %v1125_v25 = vadd.f32 %v1124_v14, %v1123_v35  ;;  %v6621_v15 = vpop.xlane.xlu1 %1562  ;;  %v1350_v14 = vadd.f32 %v1349_v27, %v6568_v13  ;;  %v1231_v3 = vadd.f32 %v1230_v20, %v1229_v36  ;;  %v1329_v0 = vrot.slane %v1328_v52, 2  ;;  %s6682_s3 = spop %4700 }
 0x41f   : > { %v1184_v45 = vpop.xlane.xlu2 %1183  ;;  %v1291_v53 = vadd.f32 %v1290_v19, %v1289_v22  ;;  %v1467_v36 = vrot.slane %v6598_v56, 4  ;;  %v1411_v40 = vrot.slane %v1410_v50, 2  ;;  %v2229_v20 = vsel %vm330_vm0, %v6352_v32, 0.0  ;;  %s6684_s11 = spop %4702 }
 0x420   : > { %v1185_v33 = vrot.slane %v1184_v45, 4  ;;  %v1126_v12 = vrot.slane %v1125_v25, 1  ;;  %v1330_v10 = vadd.f32 %v1329_v0, %v1328_v52 }
 0x421   : > { %v1468_v27 = vadd.f32 %v1467_v36, %v6598_v56  ;;  %v1412_v22 = vadd.f32 %v1411_v40, %v1410_v50 }
 0x422   : > { %v1186_v42 = vadd.f32 %v1185_v33, %v1184_v45  ;;  %v1127_v58 = vadd.f32 %v1126_v12, %v1125_v25  ;;  %v1351_v45 = vrot.slane %v1350_v14, 2  ;;  %v6626_v12 = vpop.xlane.xlu0 %1601  ;;  %v1331_v4 = vrot.slane %v1330_v10, 1 }
 0x423   : > { %v1469_v56 = vrot.slane %v1468_v27, 2 }
 0x424   : > { %v1187_v24 = vrot.slane %v1186_v42, 2  ;;  %2044 = vadd.xlane.f32.xlu2 %v2043_v46  ;;  %4740 = vpush %v1127_v58  ;;  %v2166_v46 = vsel %vm330_vm0, %v6340_v9, 0.0  ;;  %v1272_v58 = vadd.f32 %v1271_v57, %v1270_v39  ;;  %v1450_v9 = vrot.slane %v6594_v47, 4 }
 0x425   : > { %4742 = vpush %v1149_v28  ;;  %v1413_v57 = vrot.slane %v1412_v22, 1  ;;  %s6687_s2 = spop %4704 }
 0x426   : > { %4744 = vpush %v1168_v23  ;;  %v1188_v21 = vadd.f32 %v1187_v24, %v1186_v42  ;;  %v1391_v42 = vadd.f32 %v1390_v30, %v6581_v16  ;;  %v1352_v24 = vadd.f32 %v1351_v45, %v1350_v14  ;;  %v6632_v23 = vpop.xlane.xlu1 %1619  ;;  %v1512_v14 = vrot.slane %v6608_v51, 4  ;;  %s6692_s7 = spop %4706 }
 0x427   : > { %v1244_v63 = vpop.xlane.xlu2 %1243  ;;  %7958 = sst [smem:[#allocation116_spill]] %s6692_s7  ;;  %s6697_s0 = spop %4708 }
 0x428   : > { %v1245_v26 = vrot.slane %v1244_v63, 4  ;;  %v1189_v7 = vrot.slane %v1188_v21, 1  ;;  %v1392_v38 = vrot.slane %v1391_v42, 2  ;;  %v1353_v43 = vrot.slane %v1352_v24, 1  ;;  %7959 = sst [smem:[#allocation117_spill]] %s6697_s0 }
 0x429   : > { %v1513_v19 = vadd.f32 %v1512_v14, %v6608_v51 }
 0x42a   : > { %v1246_v41 = vadd.f32 %v1245_v26, %v1244_v63  ;;  %v1190_v35 = vadd.f32 %v1189_v7, %v1188_v21  ;;  %v6642_v52 = vpop.xlane.xlu0 %1658  ;;  %v1354_v39 = vadd.f32 %v1353_v43, %v1352_v24 }
 0x42c   : > { %v1247_v6 = vrot.slane %v1246_v41, 2  ;;  %2107 = vadd.xlane.f32.xlu2 %v2106_v59  ;;  %4746 = vpush %v1190_v35  ;;  %v1451_v59 = vadd.f32 %v1450_v9, %v6594_v47  ;;  %v1393_v35 = vadd.f32 %v1392_v38, %v1391_v42  ;;  %v2352_v9 = vsel %vm330_vm0, %v6376_v48, 0.0 }
 0x42d   : > { %4748 = vpush %v1209_v37  ;;  %s6700_s6 = spop %4710 }
 0x42e   : > { %4750 = vpush %v1231_v3  ;;  %v1248_v25 = vadd.f32 %v1247_v6, %v1246_v41  ;;  %v1332_v41 = vadd.f32 %v1331_v4, %v1330_v10  ;;  %v1452_v47 = vrot.slane %v1451_v59, 2  ;;  %v1498_v6 = vrot.slane %v6604_v62, 4  ;;  %v6652_v3 = vpop.xlane.xlu1 %1679  ;;  %s6702_s7 = spop %4712 }
 0x42f   : > { %v1307_v31 = vpop.xlane.xlu2 %1306  ;;  %v1394_v0 = vrot.slane %v1393_v35, 1  ;;  %v1514_v10 = vrot.slane %v1513_v19, 2  ;;  %s6706_s0 = spop %4714 }
 0x430   : > { %v1308_v1 = vrot.slane %v1307_v31, 4  ;;  %v1249_v33 = vrot.slane %v1248_v25, 1  ;;  %7960 = sst [smem:[#allocation118_spill]] %s6706_s0 }
 0x432   : > { %v1309_v13 = vadd.f32 %v1308_v1, %v1307_v31  ;;  %v1250_v54 = vadd.f32 %v1249_v33, %v1248_v25  ;;  %v1470_v1 = vadd.f32 %v1469_v56, %v1468_v27  ;;  %v2289_v33 = vsel %vm330_vm0, %v6367_v61, 0.0  ;;  %v6666_v51 = vpop.xlane.xlu0 %1718 }
 0x434   : > { %v1310_v28 = vrot.slane %v1309_v13, 2  ;;  %2167 = vadd.xlane.f32.xlu2 %v2166_v46  ;;  %4752 = vpush %v1250_v54  ;;  %v1395_v54 = vadd.f32 %v1394_v0, %v1393_v35  ;;  %v1453_v46 = vadd.f32 %v1452_v47, %v1451_v59  ;;  %v1603_v35 = vrot.slane %v6626_v12, 4 }
 0x435   : > { %4754 = vpush %v1272_v58  ;;  %v1414_v58 = vadd.f32 %v1413_v57, %v1412_v22  ;;  %v1621_v22 = vrot.slane %v6632_v23, 4  ;;  %s6708_s5 = spop %4716 }
 0x436   : > { %4756 = vpush %v1291_v53  ;;  %v1311_v21 = vadd.f32 %v1310_v28, %v1309_v13  ;;  %v1499_v13 = vadd.f32 %v1498_v6, %v6604_v62  ;;  %v1471_v28 = vrot.slane %v1470_v1, 1  ;;  %v1543_v62 = vrot.slane %v6615_v44, 4  ;;  %7961 = sst [smem:[#allocation119_spill]] %s6708_s5  ;;  %s6713_s16 = spop %4718 }
 0x437   : > { %v1367_v16 = vpop.xlane.xlu2 %1366  ;;  %v1564_v53 = vrot.slane %v6621_v15, 4  ;;  %v1454_v36 = vrot.slane %v1453_v46, 1  ;;  %7962 = sst [smem:[#allocation120_spill]] %s6713_s16  ;;  %s6718_s1 = spop %4720 }
 0x438   : > { %v1368_v63 = vrot.slane %v1367_v16, 4  ;;  %v1312_v18 = vrot.slane %v1311_v21, 1  ;;  %v1500_v61 = vrot.slane %v1499_v13, 2  ;;  %v1544_v43 = vadd.f32 %v1543_v62, %v6615_v44  ;;  %7963 = sst [smem:[#allocation121_spill]] %s6718_s1 }
 0x439   : > { %v1565_v27 = vadd.f32 %v1564_v53, %v6621_v15 }
 0x43a   : > { %v1369_v26 = vadd.f32 %v1368_v63, %v1367_v16  ;;  %v1313_v7 = vadd.f32 %v1312_v18, %v1311_v21  ;;  %v6674_v16 = vpop.xlane.xlu1 %1736  ;;  %v1472_v63 = vadd.f32 %v1471_v28, %v1470_v1  ;;  %v1515_v18 = vadd.f32 %v1514_v10, %v1513_v19 }
 0x43b   : > { %v1622_v19 = vadd.f32 %v1621_v22, %v6632_v23 }
 0x43c   : > { %v1370_v37 = vrot.slane %v1369_v26, 2  ;;  %2230 = vadd.xlane.f32.xlu2 %v2229_v20  ;;  %4758 = vpush %v1313_v7  ;;  %v1501_v7 = vadd.f32 %v1500_v61, %v1499_v13  ;;  %v1516_v59 = vrot.slane %v1515_v18, 1 }
 0x43d   : > { %4760 = vpush %v1332_v41  ;;  %v1545_v41 = vrot.slane %v1544_v43, 2  ;;  %s6720_s23 = spop %4722 }
 0x43e   : > { %4762 = vpush %v1354_v39  ;;  %v1371_v32 = vadd.f32 %v1370_v37, %v1369_v26  ;;  %v1455_v26 = vadd.f32 %v1454_v36, %v1453_v46  ;;  %v1566_v37 = vrot.slane %v1565_v27, 2  ;;  %v1502_v15 = vrot.slane %v1501_v7, 1  ;;  %v6689_v39 = vpop.xlane.xlu0 %1775  ;;  %s6724_s16 = spop %4724 }
 0x43f   : > { %v1430_v25 = vpop.xlane.xlu2 %1429  ;;  %v1517_v6 = vadd.f32 %v1516_v59, %v1515_v18  ;;  %v1623_v46 = vrot.slane %v1622_v19, 2  ;;  %s6726_s20 = spop %4726 }
 0x440   : > { %v1431_v30 = vrot.slane %v1430_v25, 4  ;;  %v1372_v31 = vrot.slane %v1371_v32, 1  ;;  %v1567_v57 = vadd.f32 %v1566_v37, %v1565_v27  ;;  %7964 = sst [smem:[#allocation122_spill]] %s6726_s20 }
 0x441   : > { %s3884_s20 = sadd.f32 %s6682_s3, %s6657_s4 }
 0x442   : > { %v1432_v45 = vadd.f32 %v1431_v30, %v1430_v25  ;;  %v1373_v55 = vadd.f32 %v1372_v31, %v1371_v32  ;;  %v1604_v25 = vadd.f32 %v1603_v35, %v6626_v12  ;;  %v6695_v0 = vpop.xlane.xlu1 %1796  ;;  %v1503_v30 = vadd.f32 %v1502_v15, %v1501_v7 }
 0x443   : > { %v1546_v31 = vadd.f32 %v1545_v41, %v1544_v43  ;;  %v1660_v12 = vrot.slane %v6642_v52, 4 }
 0x444   : > { %v1433_v42 = vrot.slane %v1432_v45, 2  ;;  %2290 = vadd.xlane.f32.xlu2 %v2289_v33  ;;  %4764 = vpush %v1373_v55  ;;  %v1605_v1 = vrot.slane %v1604_v25, 2 }
 0x445   : > { %4766 = vpush %v1395_v54  ;;  %v1547_v13 = vrot.slane %v1546_v31, 1  ;;  %v1568_v54 = vrot.slane %v1567_v57, 1  ;;  %v1661_v61 = vadd.f32 %v1660_v12, %v6642_v52  ;;  %s6728_s1 = spop %4728 }
 0x446   : > { %4768 = vpush %v1414_v58  ;;  %v1434_v50 = vadd.f32 %v1433_v42, %v1432_v45  ;;  %v1681_v42 = vrot.slane %v6652_v3, 4  ;;  %v6710_v10 = vpop.xlane.xlu0 %1835  ;;  %v1606_v53 = vadd.f32 %v1605_v1, %v1604_v25  ;;  %7965 = sst [smem:[#allocation123_spill]] %s6728_s1  ;;  %s6734_s30 = spop %4730 }
 0x447   : > { %v1480_v24 = vpop.xlane.xlu2 %1479  ;;  %v1548_v62 = vadd.f32 %v1547_v13, %v1546_v31  ;;  %v1662_v52 = vrot.slane %v1661_v61, 2  ;;  %7966 = sst [smem:[#allocation124_spill]] %s6734_s30  ;;  %s6736_s19 = spop %4732 }
 0x448   : > { %v1481_v21 = vrot.slane %v1480_v24, 4  ;;  %v1435_v38 = vrot.slane %v1434_v50, 1  ;;  %7967 = sst [smem:[#allocation125_spill]] %s6736_s19 }
 0x449   : > { %v1663_v37 = vadd.f32 %v1662_v52, %v1661_v61 }
 0x44a   : > { %v1482_v4 = vadd.f32 %v1481_v21, %v1480_v24  ;;  %v1436_v40 = vadd.f32 %v1435_v38, %v1434_v50  ;;  %v1682_v24 = vadd.f32 %v1681_v42, %v6652_v3  ;;  %v1569_v21 = vadd.f32 %v1568_v54, %v1567_v57 }
 0x44b   : > { %v1624_v38 = vadd.f32 %v1623_v46, %v1622_v19  ;;  %v1607_v3 = vrot.slane %v1606_v53, 1  ;;  %v1664_v25 = vrot.slane %v1663_v37, 1 }
 0x44c   : > { %v1483_v20 = vrot.slane %v1482_v4, 2  ;;  %2353 = vadd.xlane.f32.xlu2 %v2352_v9  ;;  %4770 = vpush %v1436_v40  ;;  %v6716_v9 = vpop.xlane.xlu1 %1853  ;;  %v1720_v40 = vrot.slane %v6666_v51, 4  ;;  %v1683_v43 = vrot.slane %v1682_v24, 2 }
 0x44d   : > { %4772 = vpush %v1455_v26  ;;  %v1625_v7 = vrot.slane %v1624_v38, 1  ;;  %v1608_v35 = vadd.f32 %v1607_v3, %v1606_v53  ;;  %s6741_s26 = spop %4734  ;;  %v1665_v12 = vadd.f32 %v1664_v25, %v1663_v37 }
 0x44e   : > { %4774 = vpush %v1472_v63  ;;  %v1484_v48 = vadd.f32 %v1483_v20, %v1482_v4  ;;  %v1738_v63 = vrot.slane %v6674_v16, 4  ;;  %v1721_v59 = vadd.f32 %v1720_v40, %v6666_v51  ;;  %v1777_v51 = vrot.slane %v6689_v39, 4  ;;  %s6744_s30 = spop %4736 }
 0x44f   : > { %v1528_v44 = vpop.xlane.xlu2 %1527  ;;  %v1626_v22 = vadd.f32 %v1625_v7, %v1624_v38  ;;  %s6747_s19 = spop %4738 }
 0x450   : > { %v1529_v56 = vrot.slane %v1528_v44, 4  ;;  %v1485_v14 = vrot.slane %v1484_v48, 1  ;;  %v1739_v41 = vadd.f32 %v1738_v63, %v6674_v16  ;;  %v1778_v1 = vadd.f32 %v1777_v51, %v6689_v39  ;;  %7968 = sst [smem:[#allocation126_spill]] %s6747_s19 }
 0x452   : > { %v1530_v32 = vadd.f32 %v1529_v56, %v1528_v44  ;;  %v1486_v47 = vadd.f32 %v1485_v14, %v1484_v48  ;;  %v6732_v44 = vpop.xlane.xlu0 %1892  ;;  %v1684_v56 = vadd.f32 %v1683_v43, %v1682_v24  ;;  %v1779_v39 = vrot.slane %v1778_v1, 2 }
 0x454   : > { %v1531_v45 = vrot.slane %v1530_v32, 2  ;;  %4776 = vpush %v1486_v47  ;;  %v1740_v47 = vrot.slane %v1739_v41, 2  ;;  %v6739_v16 = vpop.xlane.xlu1 %1912  ;;  %v1685_v19 = vrot.slane %v1684_v56, 1  ;;  %v1780_v63 = vadd.f32 %v1779_v39, %v1778_v1 }
 0x455   : > { %4778 = vpush %v1503_v30  ;;  %v1798_v30 = vrot.slane %v6695_v0, 4  ;;  %s6750_s13 = spop %4740 }
 0x456   : > { %4780 = vpush %v1517_v6  ;;  %v1532_v55 = vadd.f32 %v1531_v45, %v1530_v32  ;;  %v1722_v32 = vrot.slane %v1721_v59, 2  ;;  %v1741_v13 = vadd.f32 %v1740_v47, %v1739_v41  ;;  %7969 = sst [smem:[#allocation127_spill]] %s6750_s13  ;;  %v1686_v42 = vadd.f32 %v1685_v19, %v1684_v56  ;;  %s6754_s10 = spop %4742 }
 0x457   : > { %v1581_v33 = vpop.xlane.xlu2 %1580  ;;  %v1799_v54 = vadd.f32 %v1798_v30, %v6695_v0  ;;  %7970 = sst [smem:[#allocation128_spill]] %s6754_s10  ;;  %v1855_v0 = vrot.slane %v6716_v9, 4  ;;  %s6758_s29 = spop %4744 }
 0x458   : > { %v1582_v23 = vrot.slane %v1581_v33, 4  ;;  %v1533_v58 = vrot.slane %v1532_v55, 1  ;;  %7971 = sst [smem:[#allocation129_spill]] %s6758_s29 }
 0x459   : > { %v1800_v53 = vrot.slane %v1799_v54, 2 }
 0x45a   : > { %v1583_v50 = vadd.f32 %v1582_v23, %v1581_v33  ;;  %v1534_v28 = vadd.f32 %v1533_v58, %v1532_v55  ;;  %v1723_v33 = vadd.f32 %v1722_v32, %v1721_v59  ;;  %v6752_v23 = vpop.xlane.xlu0 %1949  ;;  %v1781_v59 = vrot.slane %v1780_v63, 1 }
 0x45c   : > { %v1584_v36 = vrot.slane %v1583_v50, 2  ;;  %4782 = vpush %v1534_v28  ;;  %v1724_v61 = vrot.slane %v1723_v33, 1  ;;  %v1782_v47 = vadd.f32 %v1781_v59, %v1780_v63 }
 0x45d   : > { %4784 = vpush %v1548_v62  ;;  %v1742_v62 = vrot.slane %v1741_v13, 1  ;;  %s6760_s13 = spop %4746 }
 0x45e   : > { %4786 = vpush %v1569_v21  ;;  %v1585_v4 = vadd.f32 %v1584_v36, %v1583_v50  ;;  %v1837_v50 = vrot.slane %v6710_v10, 4  ;;  %v1967_v21 = vpop.xlane.xlu1 %1966  ;;  %s6763_s10 = spop %4748  ;;  %v1725_v40 = vadd.f32 %v1724_v61, %v1723_v33 }
 0x45f   : > { %v1641_v18 = vpop.xlane.xlu2 %1640  ;;  %v1743_v43 = vadd.f32 %v1742_v62, %v1741_v13  ;;  %s6766_s29 = spop %4750 }
 0x460   : > { %v1642_v27 = vrot.slane %v1641_v18, 4  ;;  %v1586_v26 = vrot.slane %v1585_v4, 1  ;;  %v1838_v52 = vadd.f32 %v1837_v50, %v6710_v10  ;;  %7972 = sst [smem:[#allocation130_spill]] %s6766_s29 }
 0x462   : > { %v1643_v20 = vadd.f32 %v1642_v27, %v1641_v18  ;;  %v1587_v48 = vadd.f32 %v1586_v26, %v1585_v4  ;;  %v1856_v18 = vadd.f32 %v1855_v0, %v6716_v9  ;;  %v1801_v27 = vadd.f32 %v1800_v53, %v1799_v54  ;;  %v6772_v41 = vpop.xlane.xlu0 %2003 }
 0x463   : > { %v1914_v26 = vrot.slane %v6739_v16, 4  ;;  %v1839_v10 = vrot.slane %v1838_v52, 2 }
 0x464   : > { %v1644_v15 = vrot.slane %v1643_v20, 2  ;;  %4788 = vpush %v1587_v48  ;;  %v1857_v9 = vrot.slane %v1856_v18, 2 }
 0x465   : > { %4790 = vpush %v1608_v35  ;;  %s6769_s19 = spop %4752 }
 0x466   : > { %4792 = vpush %v1626_v22  ;;  %v1645_v14 = vadd.f32 %v1644_v15, %v1643_v20  ;;  %7973 = sst [smem:[#allocation131_spill]] %s6769_s19  ;;  %v1894_v20 = vrot.slane %v6732_v44, 4  ;;  %s6774_s12 = spop %4754  ;;  %v1802_v15 = vrot.slane %v1801_v27, 1  ;;  %v1915_v22 = vadd.f32 %v1914_v26, %v6739_v16  ;;  %v6780_v51 = vpop.xlane.xlu1 %2025 }
 0x467   : > { %v1698_v6 = vpop.xlane.xlu2 %1697  ;;  %7974 = sst [smem:[#allocation132_spill]] %s6774_s12  ;;  %s6777_s29 = spop %4756 }
 0x468   : > { %v1699_v31 = vrot.slane %v1698_v6, 4  ;;  %v1646_v57 = vrot.slane %v1645_v14, 1  ;;  %7975 = sst [smem:[#allocation133_spill]] %s6777_s29  ;;  %v1895_v32 = vadd.f32 %v1894_v20, %v6732_v44  ;;  %v1803_v30 = vadd.f32 %v1802_v15, %v1801_v27 }
 0x469   : > { %v1916_v16 = vrot.slane %v1915_v22, 2 }
 0x46a   : > { %v1700_v45 = vadd.f32 %v1699_v31, %v1698_v6  ;;  %v1647_v55 = vadd.f32 %v1646_v57, %v1645_v14  ;;  %v1840_v6 = vadd.f32 %v1839_v10, %v1838_v52  ;;  %v1858_v31 = vadd.f32 %v1857_v9, %v1856_v18  ;;  %v6793_v54 = vpop.xlane.xlu0 %2066 }
 0x46b   : > { %v1968_v57 = vrot.slane %v1967_v21, 4  ;;  %v1896_v44 = vrot.slane %v1895_v32, 2  ;;  %v1917_v39 = vadd.f32 %v1916_v16, %v1915_v22  ;;  %v2068_v15 = vrot.slane %v6793_v54, 4 }
 0x46c   : > { %v1701_v46 = vrot.slane %v1700_v45, 2  ;;  %4794 = vpush %v1647_v55  ;;  %v1841_v1 = vrot.slane %v1840_v6, 1  ;;  %v1859_v13 = vrot.slane %v1858_v31, 1 }
 0x46d   : > { %4796 = vpush %v1665_v12  ;;  %s6782_s19 = spop %4758  ;;  %v1897_v61 = vadd.f32 %v1896_v44, %v1895_v32  ;;  %v2069_v16 = vadd.f32 %v2068_v15, %v6793_v54 }
 0x46e   : > { %4798 = vpush %v1686_v42  ;;  %v1702_v58 = vadd.f32 %v1701_v46, %v1700_v45  ;;  %s6784_s12 = spop %4760  ;;  %v1951_v45 = vrot.slane %v6752_v23, 4  ;;  %v1969_v46 = vadd.f32 %v1968_v57, %v1967_v21  ;;  %v1860_v53 = vadd.f32 %v1859_v13, %v1858_v31  ;;  %v2086_v0 = vpop.xlane.xlu1 %2085 }
 0x46f   : > { %v1758_v28 = vpop.xlane.xlu2 %1757  ;;  %s6787_s29 = spop %4762  ;;  %v1918_v21 = vrot.slane %v1917_v39, 1 }
 0x470   : > { %v1759_v24 = vrot.slane %v1758_v28, 4  ;;  %v1703_v36 = vrot.slane %v1702_v58, 1  ;;  %7976 = sst [smem:[#allocation134_spill]] %s6787_s29  ;;  %v1952_v50 = vadd.f32 %v1951_v45, %v6752_v23 }
 0x471   : > { %s3885_s29 = sadd.f32 %s6702_s7, %s3884_s20  ;;  %v1919_v27 = vadd.f32 %v1918_v21, %v1917_v39 }
 0x472   : > { %v1760_v38 = vadd.f32 %v1759_v24, %v1758_v28  ;;  %v1704_v4 = vadd.f32 %v1703_v36, %v1702_v58  ;;  %v1842_v28 = vadd.f32 %v1841_v1, %v1840_v6  ;;  %v1970_v24 = vrot.slane %v1969_v46, 2  ;;  %v2127_v59 = vpop.xlane.xlu0 %2126 }
 0x473   : > { %s3886_s3 = sadd.f32 %s6724_s16, %s3885_s29  ;;  %v1953_v23 = vrot.slane %v1952_v50, 2  ;;  %v2128_v13 = vrot.slane %v2127_v59, 4 }
 0x474   : > { %v1761_v3 = vrot.slane %v1760_v38, 2  ;;  %4800 = vpush %v1704_v4  ;;  %v2027_v4 = vrot.slane %v6780_v51, 4  ;;  %v1971_v26 = vadd.f32 %v1970_v24, %v1969_v46 }
 0x475   : > { %4802 = vpush %v1725_v40  ;;  %s6789_s1 = spop %4764  ;;  %s3887_s7 = sadd.f32 %s6744_s30, %s3886_s3  ;;  %v1898_v40 = vrot.slane %v1897_v61, 1 }
 0x476   : > { %4804 = vpush %v1743_v43  ;;  %v1762_v7 = vadd.f32 %v1761_v3, %v1760_v38  ;;  %7977 = sst [smem:[#allocation135_spill]] %s6789_s1  ;;  %s6795_s22 = spop %4766  ;;  %v2005_v38 = vrot.slane %v6772_v41, 4  ;;  %v2028_v10 = vadd.f32 %v2027_v4, %v6780_v51  ;;  %v2087_v51 = vrot.slane %v2086_v0, 4 }
 0x477   : > { %v1815_v48 = vpop.xlane.xlu2 %1814  ;;  %7978 = sst [smem:[#allocation136_spill]] %s6795_s22  ;;  %s6799_s1 = spop %4768  ;;  %v1899_v20 = vadd.f32 %v1898_v40, %v1897_v61 }
 0x478   : > { %v1816_v35 = vrot.slane %v1815_v48, 4  ;;  %v1763_v37 = vrot.slane %v1762_v7, 1  ;;  %7979 = sst [smem:[#allocation137_spill]] %s6799_s1  ;;  %v2029_v22 = vrot.slane %v2028_v10, 2  ;;  %v2088_v45 = vadd.f32 %v2087_v51, %v2086_v0 }
 0x479   : > { %s3888_s16 = sadd.f32 %s6763_s10, %s3887_s7  ;;  %v2129_v0 = vadd.f32 %v2128_v13, %v2127_v59 }
 0x47a   : > { %v1817_v56 = vadd.f32 %v1816_v35, %v1815_v48  ;;  %v1764_v14 = vadd.f32 %v1763_v37, %v1762_v7  ;;  %v2006_v7 = vadd.f32 %v2005_v38, %v6772_v41  ;;  %v1954_v48 = vadd.f32 %v1953_v23, %v1952_v50  ;;  %s3868_s22 = sadd.f32 %s6678_s14, %s6654_s21  ;;  %v2190_v1 = vpop.xlane.xlu0 %2189 }
 0x47b   : > { %s3889_s30 = sadd.f32 %s6784_s12, %s3888_s16  ;;  %v1972_v35 = vrot.slane %v1971_v26, 1  ;;  %v2030_v44 = vadd.f32 %v2029_v22, %v2028_v10  ;;  %v2130_v40 = vrot.slane %v2129_v0, 2 }
 0x47c   : > { %v1818_v25 = vrot.slane %v1817_v56, 2  ;;  %4806 = vpush %v1764_v14  ;;  %v2007_v37 = vrot.slane %v2006_v7, 2  ;;  %v1955_v32 = vrot.slane %v1954_v48, 1 }
 0x47d   : > { %4808 = vpush %v1782_v47  ;;  %s6802_s4 = spop %4770  ;;  %v1973_v31 = vadd.f32 %v1972_v35, %v1971_v26  ;;  %v2131_v15 = vadd.f32 %v2130_v40, %v2129_v0 }
 0x47e   : > { %4810 = vpush %v1803_v30  ;;  %v1819_v19 = vadd.f32 %v1818_v25, %v1817_v56  ;;  %s6807_s20 = spop %4772  ;;  %v2149_v56 = vpop.xlane.xlu1 %2148  ;;  %v1956_v57 = vadd.f32 %v1955_v32, %v1954_v48 }
 0x47f   : > { %v1875_v55 = vpop.xlane.xlu2 %1874  ;;  %s6809_s29 = spop %4774  ;;  %s3890_s7 = sadd.f32 %s6807_s20, %s3889_s30  ;;  %v2150_v39 = vrot.slane %v2149_v56, 4 }
 0x480   : > { %v1876_v12 = vrot.slane %v1875_v55, 4  ;;  %v1820_v33 = vrot.slane %v1819_v19, 1  ;;  %7980 = sst [smem:[#allocation138_spill]] %s6809_s29 }
 0x481   : > { %s3869_s29 = sadd.f32 %s6700_s6, %s3868_s22  ;;  %v2151_v21 = vadd.f32 %v2150_v39, %v2149_v56 }
 0x482   : > { %v1877_v42 = vadd.f32 %v1876_v12, %v1875_v55  ;;  %v1821_v58 = vadd.f32 %v1820_v33, %v1819_v19  ;;  %v2008_v19 = vadd.f32 %v2007_v37, %v2006_v7  ;;  %v2070_v33 = vrot.slane %v2069_v16, 2 }
 0x483   : > { %s3870_s14 = sadd.f32 %s6720_s23, %s3869_s29  ;;  %v2152_v26 = vrot.slane %v2151_v21, 2 }
 0x484   : > { %v1878_v62 = vrot.slane %v1877_v42, 2  ;;  %4812 = vpush %v1821_v58  ;;  %v2009_v46 = vrot.slane %v2008_v19, 1  ;;  %v2089_v58 = vrot.slane %v2088_v45, 2 }
 0x485   : > { %4814 = vpush %v1842_v28  ;;  %s6812_s1 = spop %4776  ;;  %s3871_s6 = sadd.f32 %s6741_s26, %s3870_s14 }
 0x486   : > { %4816 = vpush %v1860_v53  ;;  %v1879_v36 = vadd.f32 %v1878_v62, %v1877_v42  ;;  %7981 = sst [smem:[#allocation139_spill]] %s6812_s1  ;;  %s6817_s3 = spop %4778  ;;  %v2031_v42 = vrot.slane %v2030_v44, 1  ;;  %v2209_v61 = vpop.xlane.xlu1 %2208  ;;  %v2010_v24 = vadd.f32 %v2009_v46, %v2008_v19  ;;  %v2090_v4 = vadd.f32 %v2089_v58, %v2088_v45 }
 0x487   : > { %v1930_v52 = vpop.xlane.xlu2 %1929  ;;  %s6821_s10 = spop %4780  ;;  %s3872_s22 = sadd.f32 %s6760_s13, %s3871_s6 }
 0x488   : > { %v1931_v63 = vrot.slane %v1930_v52, 4  ;;  %v1880_v18 = vrot.slane %v1879_v36, 1  ;;  %v2032_v38 = vadd.f32 %v2031_v42, %v2030_v44 }
 0x489   : > { %s3873_s26 = sadd.f32 %s6782_s19, %s3872_s22 }
 0x48a   : > { %v1932_v3 = vadd.f32 %v1931_v63, %v1930_v52  ;;  %v1881_v43 = vadd.f32 %v1880_v18, %v1879_v36  ;;  %v2071_v36 = vadd.f32 %v2070_v33, %v2069_v16  ;;  %v2191_v63 = vrot.slane %v2190_v1, 4  ;;  %s2384_s22 = sadd.f32 1e-10, %s6084_s17 }
 0x48b   : > { %s3874_s19 = sadd.f32 %s6802_s4, %s3873_s26  ;;  %v2210_v18 = vrot.slane %v2209_v61, 4 }
 0x48c   : > { %v1933_v9 = vrot.slane %v1932_v3, 2  ;;  %4818 = vpush %v1881_v43  ;;  %v2072_v43 = vrot.slane %v2071_v36, 1  ;;  %v6868_v39 = vstv %s2384_s22 }
 0x48d   : > { %4820 = vpush %v1899_v20  ;;  %s6824_s1 = spop %4782  ;;  %v2091_v20 = vrot.slane %v2090_v4, 1  ;;  %5060 = vrcp.f32 %v6868_v39  ;;  %vm2391_vm3 = vweird.f32 %v6868_v39 }
 0x48e   : > { %s4785_s5 = spop %4784  ;;  %4822 = vpush %v1919_v27  ;;  %v1934_v41 = vadd.f32 %v1933_v9, %v1932_v3  ;;  %s6849_s16 = sadd.f32 %s6824_s1, %s3874_s19  ;;  %v2250_v27 = vpop.xlane.xlu0 %2249  ;;  %v2192_v9 = vadd.f32 %v2191_v63, %v2190_v1  ;;  %v2272_v35 = vpop.xlane.xlu1 %2271  ;;  %v2073_v37 = vadd.f32 %v2072_v43, %v2071_v36 }
 0x48f   : > { %s6828_s12 = sadd.f32 %s4785_s5, %s3890_s7  ;;  %v1987_v14 = vpop.xlane.xlu2 %1986  ;;  %s6834_s5 = spop %4786  ;;  %v2092_v56 = vadd.f32 %v2091_v20, %v2090_v4 }
 0x490   : > { %v1988_v47 = vrot.slane %v1987_v14, 4  ;;  %v1935_v6 = vrot.slane %v1934_v41, 1  ;;  %7982 = sst [smem:[#allocation140_spill]] %s6834_s5  ;;  %v2193_v51 = vrot.slane %v2192_v9, 2 }
 0x492   : > { %v1989_v25 = vadd.f32 %v1988_v47, %v1987_v14  ;;  %v1936_v30 = vadd.f32 %v1935_v6, %v1934_v41  ;;  %v2211_v41 = vadd.f32 %v2210_v18, %v2209_v61  ;;  %v2153_v14 = vadd.f32 %v2152_v26, %v2151_v21 }
 0x493   : > { %v2251_v47 = vrot.slane %v2250_v27, 4  ;;  %v2194_v33 = vadd.f32 %v2193_v51, %v2192_v9 }
 0x494   : > { %v1990_v55 = vrot.slane %v1989_v25, 2  ;;  %4824 = vpush %v1936_v30  ;;  %v2212_v6 = vrot.slane %v2211_v41, 2  ;;  %v2132_v30 = vrot.slane %v2131_v15, 1  ;;  %v2154_v19 = vrot.slane %v2153_v14, 1 }
 0x495   : > { %4826 = vpush %v1956_v57  ;;  %s6836_s23 = spop %4788  ;;  %v2252_v1 = vadd.f32 %v2251_v47, %v2250_v27 }
 0x496   : > { %7983 = sst [smem:[#allocation141_spill]] %s6836_s23  ;;  %4828 = vpush %v1973_v31  ;;  %s6839_s21 = spop %4790  ;;  %v1991_v12 = vadd.f32 %v1990_v55, %v1989_v25  ;;  %v2273_v31 = vrot.slane %v2272_v35, 4  ;;  %v2313_v44 = vpop.xlane.xlu0 %2312  ;;  %v2213_v13 = vadd.f32 %v2212_v6, %v2211_v41  ;;  %v2155_v42 = vadd.f32 %v2154_v19, %v2153_v14  ;;  %v2332_v58 = vpop.xlane.xlu1 %2331 }
 0x497   : > { %s6843_s13 = spop %4792  ;;  %v2045_v54 = vpop.xlane.xlu2 %2044  ;;  %v2314_v61 = vrot.slane %v2313_v44, 4  ;;  %v2333_v36 = vrot.slane %v2332_v58, 4 }
 0x498   : > { %v2046_v50 = vrot.slane %v2045_v54, 4  ;;  %v1992_v28 = vrot.slane %v1991_v12, 1  ;;  %v2214_v0 = vrot.slane %v2213_v13, 1 }
 0x49a   : > { %v2047_v62 = vadd.f32 %v2046_v50, %v2045_v54  ;;  %v1993_v53 = vadd.f32 %v1992_v28, %v1991_v12  ;;  %v2133_v12 = vadd.f32 %v2132_v30, %v2131_v15  ;;  %v2274_v54 = vadd.f32 %v2273_v31, %v2272_v35 }
 0x49b   : > { %v2253_v28 = vrot.slane %v2252_v1, 2  ;;  %v2215_v27 = vadd.f32 %v2214_v0, %v2213_v13  ;;  %v2395_v0 = vand.u32 2147483647, %v6868_v39 }
 0x49c   : > { %v2048_v23 = vrot.slane %v2047_v62, 2  ;;  %4830 = vpush %v1993_v53  ;;  %v2195_v53 = vrot.slane %v2194_v33, 1 }
 0x49d   : > { %4832 = vpush %v2010_v24  ;;  %s6851_s30 = spop %4794  ;;  %v2275_v24 = vrot.slane %v2274_v54, 2  ;;  %v2254_v63 = vadd.f32 %v2253_v28, %v2252_v1  ;;  %vm2396_vm5 = vcmp.eq.f32.partialorder %v2395_v0, 8.507059e+37 }
 0x49e   : > { %4834 = vpush %v2032_v38  ;;  %s3876_s4 = sadd.f32 %s6851_s30, %s6849_s16  ;;  %s6855_s7 = spop %4796  ;;  %v2049_v52 = vadd.f32 %v2048_v23, %v2047_v62  ;;  %v2196_v40 = vadd.f32 %v2195_v53, %v2194_v33  ;;  %v2373_v18 = vpop.xlane.xlu0 %2372 }
 0x49f   : > { %s3892_s1 = sadd.f32 %s6855_s7, %s6828_s12  ;;  %v2108_v3 = vpop.xlane.xlu2 %2107  ;;  %s6859_s14 = spop %4798  ;;  %v2276_v26 = vadd.f32 %v2275_v24, %v2274_v54  ;;  %v2255_v9 = vrot.slane %v2254_v63, 1 }
 0x4a0   : > { %v2109_v7 = vrot.slane %v2108_v3, 4  ;;  %v2050_v10 = vrot.slane %v2049_v52, 1  ;;  %7984 = sst [smem:[#allocation142_spill]] %s6859_s14 }
 0x4a1   : > { %v2277_v15 = vrot.slane %v2276_v26, 1  ;;  %v2256_v51 = vadd.f32 %v2255_v9, %v2254_v63 }
 0x4a2   : > { %v2110_v48 = vadd.f32 %v2109_v7, %v2108_v3  ;;  %v2051_v59 = vadd.f32 %v2050_v10, %v2049_v52  ;;  %v2315_v52 = vadd.f32 %v2314_v61, %v2313_v44  ;;  %v2334_v3 = vadd.f32 %v2333_v36, %v2332_v58  ;;  %v6887_v10 = vpop.eup %5060 }
 0x4a3   : > { %vm2392_vm2 = vweird.f32 %v6887_v10 }
 0x4a4   : > { %v2111_v22 = vrot.slane %v2110_v48, 2  ;;  %4836 = vpush %v2051_v59  ;;  %v2316_v20 = vrot.slane %v2315_v52, 2  ;;  %v2335_v41 = vrot.slane %v2334_v3, 2  ;;  %vm2393_vm4 = vmor %vm2391_vm3, %vm2392_vm2 }
 0x4a5   : > { %4838 = vpush %v2073_v37  ;;  %s6861_s6 = spop %4800 }
 0x4a6   : > { %4840 = vpush %v2092_v56  ;;  %v2112_v32 = vadd.f32 %v2111_v22, %v2110_v48  ;;  %7985 = sst [smem:[#allocation143_spill]] %s6861_s6  ;;  %s6864_s26 = spop %4802  ;;  %v2374_v48 = vrot.slane %v2373_v18, 4  ;;  %v2387_v22 = vmul.f32 %v6887_v10, %v6868_v39  ;;  %v2317_v47 = vadd.f32 %v2316_v20, %v2315_v52 }
 0x4a7   : > { %v2168_v25 = vpop.xlane.xlu2 %2167  ;;  %s6866_s19 = spop %4804  ;;  %v2336_v30 = vadd.f32 %v2335_v41, %v2334_v3 }
 0x4a8   : > { %v2169_v16 = vrot.slane %v2168_v25, 4  ;;  %v2113_v57 = vrot.slane %v2112_v32, 1  ;;  %v2388_v31 = vsub.f32 1.0, %v2387_v22  ;;  %v2318_v44 = vrot.slane %v2317_v47, 1 }
 0x4a9   : > { %v2337_v1 = vrot.slane %v2336_v30, 1 }
 0x4aa   : > { %v2170_v45 = vadd.f32 %v2169_v16, %v2168_v25  ;;  %v2114_v55 = vadd.f32 %v2113_v57, %v2112_v32  ;;  %v2375_v32 = vadd.f32 %v2374_v48, %v2373_v18  ;;  %v2278_v25 = vadd.f32 %v2277_v15, %v2276_v26 }
 0x4ab   : > { %v2389_v13 = vmul.f32 %v6887_v10, %v2388_v31  ;;  %v2319_v54 = vadd.f32 %v2318_v44, %v2317_v47  ;;  %v2338_v58 = vadd.f32 %v2337_v1, %v2336_v30 }
 0x4ac   : > { %v2171_v46 = vrot.slane %v2170_v45, 2  ;;  %4842 = vpush %v2114_v55  ;;  %v2376_v57 = vrot.slane %v2375_v32, 2 }
 0x4ad   : > { %4844 = vpush %v2133_v12  ;;  %s4807_s17 = spop %4806  ;;  %v2390_v28 = vadd.f32 %v6887_v10, %v2389_v13 }
 0x4ae   : > { %4846 = vpush %v2155_v42  ;;  %s6873_s29 = sadd.f32 %s4807_s17, %s3876_s4  ;;  %s4809_s20 = spop %4808  ;;  %v2172_v50 = vadd.f32 %v2171_v46, %v2170_v45  ;;  %v2377_v46 = vadd.f32 %v2376_v57, %v2375_v32 }
 0x4af   : > { %s6878_s6 = sadd.f32 %s4809_s20, %s3892_s1  ;;  %v2231_v62 = vpop.xlane.xlu2 %2230  ;;  %s6881_s12 = spop %4810  ;;  %v2394_v36 = vsel %vm2393_vm4, %v6887_v10, %v2390_v28 }
 0x4b0   : > { %v2232_v21 = vrot.slane %v2231_v62, 4  ;;  %v2173_v23 = vrot.slane %v2172_v50, 1  ;;  %7986 = sst [smem:[#allocation144_spill]] %s6881_s12  ;;  %v2378_v61 = vrot.slane %v2377_v46, 1 }
 0x4b2   : > { %v2233_v38 = vadd.f32 %v2232_v21, %v2231_v62  ;;  %v2174_v4 = vadd.f32 %v2173_v23, %v2172_v50  ;;  %v2397_v62 = vand.u32 2147483648, %v6868_v39  ;;  %v2379_v21 = vadd.f32 %v2378_v61, %v2377_v46 }
 0x4b4   : > { %v2234_v43 = vrot.slane %v2233_v38, 2  ;;  %4848 = vpush %v2174_v4  ;;  %v2398_v23 = vor.u32 1.1754944e-38, %v2397_v62 }
 0x4b5   : > { %4850 = vpush %v2196_v40  ;;  %s6883_s20 = spop %4812 }
 0x4b6   : > { %7987 = sst [smem:[#allocation145_spill]] %s6883_s20  ;;  %4852 = vpush %v2215_v27  ;;  %s6885_s16 = spop %4814  ;;  %v2235_v7 = vadd.f32 %v2234_v43, %v2233_v38  ;;  %v2399_v38 = vsel %vm2396_vm5, %v2398_v23, %v2394_v36 }
 0x4b7   : > { %s6891_s4 = spop %4816  ;;  %v2291_v59 = vpop.xlane.xlu2 %2290  ;;  %s7990_s20 = sadd.f32 %s6839_s21, %s6817_s3 }
 0x4b8   : > { %v2292_v35 = vrot.slane %v2291_v59, 4  ;;  %v2236_v37 = vrot.slane %v2235_v7, 1  ;;  %s8002_s5 = sadd.f32 %s6891_s4, %s6866_s19 }
 0x4ba   : > { %v2293_v56 = vadd.f32 %v2292_v35, %v2291_v59  ;;  %v2237_v14 = vadd.f32 %v2236_v37, %v2235_v7 }
 0x4bc   : > { %v2294_v6 = vrot.slane %v2293_v56, 2  ;;  %4854 = vpush %v2237_v14 }
 0x4bd   : > { %4856 = vpush %v2256_v51  ;;  %s6897_s1 = spop %4818 }
 0x4be   : > { %4858 = vpush %v2278_v25  ;;  %s6901_s17 = spop %4820  ;;  %v2295_v16 = vadd.f32 %v2294_v6, %v2293_v56 }
 0x4bf   : > { %v2354_v19 = vpop.xlane.xlu2 %2353  ;;  %s6906_s30 = spop %4822 }
 0x4c0   : > { %v2355_v45 = vrot.slane %v2354_v19, 4  ;;  %v2296_v55 = vrot.slane %v2295_v16, 1  ;;  %7988 = sst [smem:[#allocation146_spill]] %s6906_s30 }
 0x4c1   : > { %s7992_s30 = sadd.f32 %s6843_s13, %s6821_s10 }
 0x4c2   : > { %v2356_v12 = vadd.f32 %v2355_v45, %v2354_v19  ;;  %v2297_v33 = vadd.f32 %v2296_v55, %v2295_v16  ;;  %s7994_s10 = sadd.f32 %s6897_s1, %s6873_s29 }
 0x4c4   : > { %v2357_v42 = vrot.slane %v2356_v12, 2  ;;  %4860 = vpush %v2297_v33 }
 0x4c5   : > { %4862 = vpush %v2319_v54  ;;  %s6908_s7 = spop %4824 }
 0x4c6   : > { %7989 = sst [smem:[#allocation147_spill]] %s6908_s7  ;;  %4864 = vpush %v2338_v58  ;;  %s4827_s22 = spop %4826  ;;  %v2358_v50 = vadd.f32 %v2357_v42, %v2356_v12 }
 0x4c7   : > { %s6915_s12 = sadd.f32 %s4827_s22, %s7990_s20  ;;  %s4829_s14 = spop %4828 }
 0x4c8   : > { %s6921_s23 = sadd.f32 %s4829_s14, %s7992_s30  ;;  %v2359_v53 = vrot.slane %v2358_v50, 1 }
 0x4c9   : > { %7991 = sst [smem:[#allocation148_spill]] %s6915_s12 }
 0x4ca   : > { %7993 = sst [smem:[#allocation149_spill]] %s6921_s23  ;;  %v2360_v24 = vadd.f32 %v2359_v53, %v2358_v50 }
 0x4cb   : > { %s7995_s14 = sadd.f32 %s6901_s17, %s6878_s6 }
 0x4cc   : > { %4866 = vpush %v2360_v24 }
 0x4cd   : > { %4868 = vpush %v2379_v21  ;;  %s4831_s3 = spop %4830 }
 0x4ce   : > { %4870 = vpush %v2399_v38  ;;  %s3879_s21 = sadd.f32 %s4831_s3, %s7994_s10  ;;  %s4833_s13 = spop %4832 }
 0x4cf   : > { %s3895_s20 = sadd.f32 %s4833_s13, %s7995_s14  ;;  %s6932_s30 = spop %4834 }
 0x4d0   : > { %7996 = sst [smem:[#allocation150_spill]] %s6932_s30 }
 0x4d1   : > { %s8000_s30 = sadd.f32 %s6885_s16, %s6864_s26 }
 0x4d5   : > { %s6934_s22 = spop %4836 }
 0x4d6   : > { %7997 = sst [smem:[#allocation151_spill]] %s6934_s22  ;;  %s6936_s7 = spop %4838 }
 0x4d7   : > { %7998 = sst [smem:[#allocation152_spill]] %s6936_s7  ;;  %s6940_s0 = spop %4840 }
 0x4d8   : > { %7999 = sst [smem:[#allocation153_spill]] %s6940_s0 }
 0x4dd   : > { %s4843_s1 = spop %4842 }
 0x4de   : > { %s3880_s3 = sadd.f32 %s4843_s1, %s3879_s21  ;;  %s4845_s10 = spop %4844 }
 0x4df   : > { %s3896_s6 = sadd.f32 %s4845_s10, %s3895_s20  ;;  %s6944_s17 = spop %4846 }
 0x4e0   : > { %s2456_s1 = sadd.f32 1e-10, %s6086_s28 }
 0x4e2   : > { %v2457_v39 = vstv %s2456_s1 }
 0x4e3   : > { %5062 = vrcp.f32 %v2457_v39  ;;  %vm2463_vm6 = vweird.f32 %v2457_v39  ;;  %v2469_v22 = vand.u32 2147483648, %v2457_v39  ;;  %v2467_v32 = vand.u32 2147483647, %v2457_v39 }
 0x4e5   : > { %s6946_s13 = spop %4848  ;;  %v2470_v57 = vor.u32 1.1754944e-38, %v2469_v22  ;;  %vm2468_vm3 = vcmp.eq.f32.partialorder %v2467_v32, 8.507059e+37 }
 0x4e6   : > { %s4851_s14 = spop %4850 }
 0x4e7   : > { %s6951_s22 = sadd.f32 %s4851_s14, %s8000_s30  ;;  %s4853_s18 = spop %4852 }
 0x4e8   : > { %s6956_s12 = sadd.f32 %s4853_s18, %s8002_s5 }
 0x4e9   : > { %8001 = sst [smem:[#allocation154_spill]] %s6951_s22  ;;  %v5063_v4 = vpop.eup %5062 }
 0x4ea   : > { %8003 = sst [smem:[#allocation155_spill]] %s6956_s12  ;;  %v2459_v52 = vmul.f32 %v5063_v4, %v2457_v39  ;;  %vm2464_vm7 = vweird.f32 %v5063_v4 }
 0x4eb   : > { %vm6986_vm11 = vmor %vm2463_vm6, %vm2464_vm7 }
 0x4ec   : > { %v2460_v18 = vsub.f32 1.0, %v2459_v52 }
 0x4ed   : > { %s4855_s7 = spop %4854 }
 0x4ee   : > { %s6958_s29 = sadd.f32 %s4855_s7, %s3880_s3  ;;  %s4857_s21 = spop %4856  ;;  %v2461_v43 = vmul.f32 %v5063_v4, %v2460_v18 }
 0x4ef   : > { %s6960_s20 = sadd.f32 %s4857_s21, %s3896_s6  ;;  %s6963_s26 = spop %4858 }
 0x4f0   : > { %8004 = sst [smem:[#allocation156_spill]] %s6958_s29  ;;  %v2462_v59 = vadd.f32 %v5063_v4, %v2461_v43 }
 0x4f1   : > { %8005 = sst [smem:[#allocation157_spill]] %s6960_s20 }
 0x4f2   : > { %v2466_v30 = vsel %vm6986_vm11, %v5063_v4, %v2462_v59 }
 0x4f3   : > { %v2471_v44 = vsel %vm2468_vm3, %v2470_v57, %v2466_v30 }
 0x4f5   : > { %s6965_s16 = spop %4860 }
 0x4f6   : > { %s6967_s30 = spop %4862 }
 0x4f7   : > { %8006 = sst [smem:[#allocation158_spill]] %s6967_s30  ;;  %s6971_s5 = spop %4864 }
 0x4f8   : > { %8007 = sst [smem:[#allocation159_spill]] %s6971_s5 }
 0x4fd   : > { %s6975_s4 = spop %4866 }
 0x4fe   : > { %8008 = sst [smem:[#allocation160_spill]] %s6975_s4  ;;  %s6979_s28 = spop %4868 }
 0x4ff   : > { %8009 = sst [smem:[#allocation161_spill]] %s6979_s28  ;;  %s4871_s10 = spop %4870 }
 0x500   : > { %s2401_s6 = smul.f32 %s4871_s10, %s6637_s15  ;;  %s2528_s15 = sadd.f32 1e-10, %s6103_s25 }
 0x501   : > { %s2435_s14 = smul.f32 %s4871_s10, %s6644_s27 }
 0x502   : > { %s2402_s21 = sadd.f32 1e-08, %s2401_s6  ;;  %v2529_v45 = vstv %s2528_s15 }
 0x503   : > { %s2436_s1 = sadd.f32 1e-08, %s2435_s14  ;;  %vm2535_vm4 = vweird.f32 %v2529_v45  ;;  %v2541_v0 = vand.u32 2147483648, %v2529_v45  ;;  %v2539_v23 = vand.u32 2147483647, %v2529_v45 }
 0x504   : > { %v2403_v40 = vstv %s2402_s21 }
 0x505   : > { %5064 = vrcp.f32 %v2403_v40  ;;  %v2437_v63 = vstv %s2436_s1  ;;  %v2415_v48 = vand.u32 2147483648, %v2403_v40  ;;  %v2413_v41 = vand.u32 2147483647, %v2403_v40 }
 0x506   : > { %5066 = vrcp.f32 %v2437_v63  ;;  %v2449_v35 = vand.u32 2147483648, %v2437_v63  ;;  %v2447_v15 = vand.u32 2147483647, %v2437_v63  ;;  %vm2409_vm10 = vweird.f32 %v2403_v40 }
 0x507   : > { %v2416_v51 = vor.u32 1.1754944e-38, %v2415_v48  ;;  %vm2443_vm13 = vweird.f32 %v2437_v63  ;;  %vm2414_vm14 = vcmp.eq.f32.partialorder %v2413_v41, 8.507059e+37  ;;  %5068 = vrcp.f32 %v2529_v45 }
 0x508   : > { %v2450_v25 = vor.u32 1.1754944e-38, %v2449_v35  ;;  %vm2448_vm2 = vcmp.eq.f32.partialorder %v2447_v15, 8.507059e+37 }
 0x50b   : > { %v5065_v3 = vpop.eup %5064 }
 0x50c   : > { %v5067_v27 = vpop.eup %5066  ;;  %v2405_v26 = vmul.f32 %v5065_v3, %v2403_v40  ;;  %vm2410_vm8 = vweird.f32 %v5065_v3 }
 0x50d   : > { %v2439_v7 = vmul.f32 %v5067_v27, %v2437_v63  ;;  %vm2444_vm9 = vweird.f32 %v5067_v27  ;;  %vm2411_vm12 = vmor %vm2409_vm10, %vm2410_vm8  ;;  %v5069_v33 = vpop.eup %5068 }
 0x50e   : > { %v2406_v10 = vsub.f32 1.0, %v2405_v26  ;;  %vm2445_vm15 = vmor %vm2443_vm13, %vm2444_vm9  ;;  %v2531_v46 = vmul.f32 %v5069_v33, %v2529_v45  ;;  %vm2536_vm5 = vweird.f32 %v5069_v33 }
 0x50f   : > { %v2440_v20 = vsub.f32 1.0, %v2439_v7  ;;  %vm7003_vm7 = vmor %vm2535_vm4, %vm2536_vm5 }
 0x510   : > { %v2407_v9 = vmul.f32 %v5065_v3, %v2406_v10 }
 0x511   : > { %v2441_v37 = vmul.f32 %v5067_v27, %v2440_v20 }
 0x512   : > { %v2408_v56 = vadd.f32 %v5065_v3, %v2407_v9 }
 0x513   : > { %v2442_v47 = vadd.f32 %v5067_v27, %v2441_v37 }
 0x514   : > { %v2412_v6 = vsel %vm2411_vm12, %v5065_v3, %v2408_v56  ;;  %v2542_v3 = vor.u32 1.1754944e-38, %v2541_v0 }
 0x515   : > { %v2417_v31 = vsel %vm2414_vm14, %v2416_v51, %v2412_v6  ;;  %v2446_v16 = vsel %vm2445_vm15, %v5067_v27, %v2442_v47  ;;  %vm2540_vm14 = vcmp.eq.f32.partialorder %v2539_v23, 8.507059e+37 }
 0x516   : > { %4872 = vpush %v2417_v31  ;;  %v2451_v19 = vsel %vm2448_vm2, %v2450_v25, %v2446_v16 }
 0x517   : > { %4874 = vpush %v2451_v19 }
 0x518   : > { %4876 = vpush %v2471_v44 }
 0x547   : > { %s4873_s27 = spop %4872 }
 0x548   : > { %v3968_v55 = vstv %s4873_s27  ;;  %s4875_s10 = spop %4874 }
 0x549   : > { %v6994_v1 = vmul.f32 %v3968_v55, %v5382_v17  ;;  %v3970_v12 = vstv %s4875_s10  ;;  %s4877_s6 = spop %4876  ;;  %v2532_v17 = vsub.f32 1.0, %v2531_v46 }
 0x54a   : > { %v6997_v13 = vmul.f32 %v3970_v12, %v5633_v29  ;;  %s2473_s14 = smul.f32 %s4877_s6, %s6662_s24  ;;  %s2600_s24 = sadd.f32 1e-10, %s6116_s9 }
 0x54b   : > { %s2507_s21 = smul.f32 %s4877_s6, %s6664_s8  ;;  %v2533_v28 = vmul.f32 %v5069_v33, %v2532_v17 }
 0x54c   : > { %v3972_v54 = vsub.f32 %v6994_v1, %v6997_v13  ;;  %s2474_s1 = sadd.f32 1e-08, %s2473_s14  ;;  %v2601_v41 = vstv %s2600_s24 }
 0x54d   : > { %s2508_s15 = sadd.f32 1e-08, %s2507_s21  ;;  %v2534_v21 = vadd.f32 %v5069_v33, %v2533_v28  ;;  %vm2607_vm2 = vweird.f32 %v2601_v41 }
 0x54e   : > { %v2475_v42 = vstv %s2474_s1 }
 0x54f   : > { %5070 = vrcp.f32 %v2475_v42  ;;  %v2509_v58 = vstv %s2508_s15  ;;  %v2487_v36 = vand.u32 2147483648, %v2475_v42  ;;  %v2485_v39 = vand.u32 2147483647, %v2475_v42  ;;  %s8018_s15 = sld [smem:[#allocation119_spill]] }
 0x550   : > { %5072 = vrcp.f32 %v2509_v58  ;;  %v2521_v4 = vand.u32 2147483648, %v2509_v58  ;;  %v2519_v63 = vand.u32 2147483647, %v2509_v58  ;;  %vm2481_vm9 = vweird.f32 %v2475_v42 }
 0x551   : > { %v2488_v43 = vor.u32 1.1754944e-38, %v2487_v36  ;;  %vm2515_vm11 = vweird.f32 %v2509_v58  ;;  %v2538_v26 = vsel %vm7003_vm7, %v5069_v33, %v2534_v21  ;;  %vm2486_vm12 = vcmp.eq.f32.partialorder %v2485_v39, 8.507059e+37 }
 0x552   : > { %v2522_v10 = vor.u32 1.1754944e-38, %v2521_v4  ;;  %vm2520_vm15 = vcmp.eq.f32.partialorder %v2519_v63, 8.507059e+37  ;;  %v2543_v9 = vsel %vm2540_vm14, %v2542_v3, %v2538_v26  ;;  %5074 = vrcp.f32 %v2601_v41 }
 0x555   : > { %v5071_v50 = vpop.eup %5070 }
 0x556   : > { %v5073_v61 = vpop.eup %5072  ;;  %v2477_v62 = vmul.f32 %v5071_v50, %v2475_v42  ;;  %vm2482_vm6 = vweird.f32 %v5071_v50  ;;  %v2613_v42 = vand.u32 2147483648, %v2601_v41 }
 0x557   : > { %v2511_v53 = vmul.f32 %v5073_v61, %v2509_v58  ;;  %vm2516_vm8 = vweird.f32 %v5073_v61  ;;  %vm2483_vm10 = vmor %vm2481_vm9, %vm2482_vm6 }
 0x558   : > { %v2478_v29 = vsub.f32 1.0, %v2477_v62  ;;  %vm2517_vm13 = vmor %vm2515_vm11, %vm2516_vm8  ;;  %v5075_v22 = vpop.eup %5074  ;;  %v2614_v36 = vor.u32 1.1754944e-38, %v2613_v42 }
 0x559   : > { %v2512_v24 = vsub.f32 1.0, %v2511_v53  ;;  %v2603_v32 = vmul.f32 %v5075_v22, %v2601_v41  ;;  %vm2608_vm3 = vweird.f32 %v5075_v22 }
 0x55a   : > { %v2479_v38 = vmul.f32 %v5071_v50, %v2478_v29  ;;  %vm7021_vm7 = vmor %vm2607_vm2, %vm2608_vm3 }
 0x55b   : > { %v2513_v40 = vmul.f32 %v5073_v61, %v2512_v24 }
 0x55c   : > { %v2480_v18 = vadd.f32 %v5071_v50, %v2479_v38 }
 0x55d   : > { %v2514_v27 = vadd.f32 %v5073_v61, %v2513_v40 }
 0x55e   : > { %v2484_v7 = vsel %vm2483_vm10, %v5071_v50, %v2480_v18  ;;  %v2611_v50 = vand.u32 2147483647, %v2601_v41 }
 0x55f   : > { %v2489_v20 = vsel %vm2486_vm12, %v2488_v43, %v2484_v7  ;;  %v2518_v48 = vsel %vm2517_vm13, %v5073_v61, %v2514_v27 }
 0x560   : > { %4878 = vpush %v2489_v20  ;;  %v2523_v59 = vsel %vm2520_vm15, %v2522_v10, %v2518_v48  ;;  %vm2612_vm13 = vcmp.eq.f32.partialorder %v2611_v50, 8.507059e+37  ;;  %v8024_v50 = vld [vmem:[#allocation13_spill] sm:$0xff] }
 0x561   : > { %4880 = vpush %v2523_v59 }
 0x562   : > { %4882 = vpush %v2543_v9 }
 0x591   : > { %s4879_s8 = spop %4878 }
 0x592   : > { %v4001_v35 = vstv %s4879_s8  ;;  %s4881_s27 = spop %4880 }
 0x593   : > { %v7011_v37 = vmul.f32 %v4001_v35, %v5505_v60  ;;  %v4003_v15 = vstv %s4881_s27  ;;  %s4883_s10 = spop %4882  ;;  %v2604_v60 = vsub.f32 1.0, %v2603_v32 }
 0x594   : > { %v7014_v56 = vmul.f32 %v4003_v15, %v5751_v5  ;;  %s2545_s6 = smul.f32 %s4883_s10, %s6684_s11  ;;  %s8016_s11 = sld [smem:[#allocation78_spill]] }
 0x595   : > { %s2579_s14 = smul.f32 %s4883_s10, %s6687_s2  ;;  %v2605_v25 = vmul.f32 %v5075_v22, %v2604_v60  ;;  %s8017_s2 = sld [smem:[#allocation118_spill]] }
 0x596   : > { %v4005_v14 = vsub.f32 %v7011_v37, %v7014_v56  ;;  %s2546_s21 = sadd.f32 1e-08, %s2545_s6 }
 0x597   : > { %s2580_s1 = sadd.f32 1e-08, %s2579_s14  ;;  %v2606_v44 = vadd.f32 %v5075_v22, %v2605_v25 }
 0x598   : > { %v2547_v51 = vstv %s2546_s21 }
 0x599   : > { %5076 = vrcp.f32 %v2547_v51  ;;  %v2581_v47 = vstv %s2580_s1  ;;  %v2559_v19 = vand.u32 2147483648, %v2547_v51  ;;  %v2557_v55 = vand.u32 2147483647, %v2547_v51 }
 0x59a   : > { %5078 = vrcp.f32 %v2581_v47  ;;  %v2593_v12 = vand.u32 2147483648, %v2581_v47  ;;  %v2591_v46 = vand.u32 2147483647, %v2581_v47  ;;  %vm2553_vm6 = vweird.f32 %v2547_v51  ;;  %s2672_s24 = sadd.f32 1e-10, %s8016_s11 }
 0x59b   : > { %v2560_v28 = vor.u32 1.1754944e-38, %v2559_v19  ;;  %vm2587_vm9 = vweird.f32 %v2581_v47  ;;  %vm2558_vm10 = vcmp.eq.f32.partialorder %v2557_v55, 8.507059e+37  ;;  %v2610_v29 = vsel %vm7021_vm7, %v5075_v22, %v2606_v44 }
 0x59c   : > { %v2594_v53 = vor.u32 1.1754944e-38, %v2593_v12  ;;  %vm2592_vm12 = vcmp.eq.f32.partialorder %v2591_v46, 8.507059e+37  ;;  %v2615_v23 = vsel %vm2612_vm13, %v2614_v36, %v2610_v29  ;;  %v2673_v38 = vstv %s2672_s24  ;;  %s8023_s24 = sld [smem:[#allocation123_spill]] }
 0x59d   : > { %5080 = vrcp.f32 %v2673_v38  ;;  %vm2679_vm14 = vweird.f32 %v2673_v38  ;;  %v2685_v59 = vand.u32 2147483648, %v2673_v38  ;;  %v2683_v15 = vand.u32 2147483647, %v2673_v38 }
 0x59f   : > { %v5077_v6 = vpop.eup %5076 }
 0x5a0   : > { %v5079_v30 = vpop.eup %5078  ;;  %v2549_v31 = vmul.f32 %v5077_v6, %v2547_v51  ;;  %vm2554_vm4 = vweird.f32 %v5077_v6 }
 0x5a1   : > { %v2583_v16 = vmul.f32 %v5079_v30, %v2581_v47  ;;  %vm2588_vm5 = vweird.f32 %v5079_v30  ;;  %vm2555_vm8 = vmor %vm2553_vm6, %vm2554_vm4 }
 0x5a2   : > { %v2550_v5 = vsub.f32 1.0, %v2549_v31  ;;  %vm2589_vm11 = vmor %vm2587_vm9, %vm2588_vm5 }
 0x5a3   : > { %v2584_v57 = vsub.f32 1.0, %v2583_v16  ;;  %v5081_v40 = vpop.eup %5080 }
 0x5a4   : > { %v2551_v45 = vmul.f32 %v5077_v6, %v2550_v5  ;;  %v2675_v3 = vmul.f32 %v5081_v40, %v2673_v38  ;;  %vm2680_vm15 = vweird.f32 %v5081_v40 }
 0x5a5   : > { %v2585_v33 = vmul.f32 %v5079_v30, %v2584_v57  ;;  %vm7038_vm3 = vmor %vm2679_vm14, %vm2680_vm15 }
 0x5a6   : > { %v2552_v58 = vadd.f32 %v5077_v6, %v2551_v45 }
 0x5a7   : > { %v2586_v61 = vadd.f32 %v5079_v30, %v2585_v33 }
 0x5a8   : > { %v2556_v62 = vsel %vm2555_vm8, %v5077_v6, %v2552_v58 }
 0x5a9   : > { %v2561_v0 = vsel %vm2558_vm10, %v2560_v28, %v2556_v62  ;;  %v2590_v24 = vsel %vm2589_vm11, %v5079_v30, %v2586_v61  ;;  %v2686_v30 = vor.u32 1.1754944e-38, %v2685_v59  ;;  %vm2684_vm10 = vcmp.eq.f32.partialorder %v2683_v15, 8.507059e+37 }
 0x5aa   : > { %4884 = vpush %v2561_v0  ;;  %v2595_v21 = vsel %vm2592_vm12, %v2594_v53, %v2590_v24 }
 0x5ab   : > { %4886 = vpush %v2595_v21 }
 0x5ac   : > { %4888 = vpush %v2615_v23 }
 0x5db   : > { %s4885_s8 = spop %4884 }
 0x5dc   : > { %v4034_v39 = vstv %s4885_s8  ;;  %s4887_s27 = spop %4886 }
 0x5dd   : > { %v7029_v4 = vmul.f32 %v4034_v39, %v5784_v8  ;;  %v4036_v52 = vstv %s4887_s27  ;;  %s4889_s10 = spop %4888  ;;  %v2676_v8 = vsub.f32 1.0, %v2675_v3 }
 0x5de   : > { %v7032_v63 = vmul.f32 %v4036_v52, %v5413_v49  ;;  %s2617_s6 = smul.f32 %s4889_s10, %s8017_s2  ;;  %s8021_s2 = sld [smem:[#allocation80_spill]] }
 0x5df   : > { %s2651_s14 = smul.f32 %s4889_s10, %s8018_s15  ;;  %v2677_v7 = vmul.f32 %v5081_v40, %v2676_v8  ;;  %s8022_s15 = sld [smem:[#allocation122_spill]] }
 0x5e0   : > { %v4038_v18 = vsub.f32 %v7029_v4, %v7032_v63  ;;  %s2618_s21 = sadd.f32 1e-08, %s2617_s6 }
 0x5e1   : > { %s2652_s1 = sadd.f32 1e-08, %s2651_s14  ;;  %v2678_v35 = vadd.f32 %v5081_v40, %v2677_v7 }
 0x5e2   : > { %v2619_v43 = vstv %s2618_s21 }
 0x5e3   : > { %5082 = vrcp.f32 %v2619_v43  ;;  %v2653_v27 = vstv %s2652_s1  ;;  %v2631_v41 = vand.u32 2147483648, %v2619_v43  ;;  %v2629_v32 = vand.u32 2147483647, %v2619_v43 }
 0x5e4   : > { %5084 = vrcp.f32 %v2653_v27  ;;  %v2665_v51 = vand.u32 2147483648, %v2653_v27  ;;  %v2663_v6 = vand.u32 2147483647, %v2653_v27  ;;  %vm2625_vm5 = vweird.f32 %v2619_v43  ;;  %s2744_s8 = sadd.f32 1e-10, %s8021_s2 }
 0x5e5   : > { %v2632_v31 = vor.u32 1.1754944e-38, %v2631_v41  ;;  %vm2659_vm7 = vweird.f32 %v2653_v27  ;;  %v2682_v5 = vsel %vm7038_vm3, %v5081_v40, %v2678_v35  ;;  %vm2630_vm8 = vcmp.eq.f32.partialorder %v2629_v32, 8.507059e+37 }
 0x5e6   : > { %v2666_v19 = vor.u32 1.1754944e-38, %v2665_v51  ;;  %vm2664_vm11 = vcmp.eq.f32.partialorder %v2663_v6, 8.507059e+37  ;;  %v2687_v12 = vsel %vm2684_vm10, %v2686_v30, %v2682_v5  ;;  %v2745_v33 = vstv %s2744_s8  ;;  %v8031_v5 = vld [vmem:[#allocation106_spill] sm:$0xff] }
 0x5e7   : > { %5086 = vrcp.f32 %v2745_v33  ;;  %vm2751_vm12 = vweird.f32 %v2745_v33  ;;  %v2757_v7 = vand.u32 2147483648, %v2745_v33 }
 0x5e9   : > { %v5083_v26 = vpop.eup %5082  ;;  %v2758_v32 = vor.u32 1.1754944e-38, %v2757_v7 }
 0x5ea   : > { %v5085_v10 = vpop.eup %5084  ;;  %v2621_v20 = vmul.f32 %v5083_v26, %v2619_v43  ;;  %vm2626_vm2 = vweird.f32 %v5083_v26 }
 0x5eb   : > { %v2655_v48 = vmul.f32 %v5085_v10, %v2653_v27  ;;  %vm2660_vm4 = vweird.f32 %v5085_v10  ;;  %vm2627_vm6 = vmor %vm2625_vm5, %vm2626_vm2 }
 0x5ec   : > { %v2622_v49 = vsub.f32 1.0, %v2621_v20  ;;  %vm2661_vm9 = vmor %vm2659_vm7, %vm2660_vm4 }
 0x5ed   : > { %v2656_v9 = vsub.f32 1.0, %v2655_v48  ;;  %v5087_v17 = vpop.eup %5086  ;;  %v2755_v48 = vand.u32 2147483647, %v2745_v33 }
 0x5ee   : > { %v2623_v22 = vmul.f32 %v5083_v26, %v2622_v49  ;;  %v2747_v62 = vmul.f32 %v5087_v17, %v2745_v33  ;;  %vm2752_vm13 = vweird.f32 %v5087_v17 }
 0x5ef   : > { %v2657_v60 = vmul.f32 %v5085_v10, %v2656_v9  ;;  %vm7056_vm3 = vmor %vm2751_vm12, %vm2752_vm13 }
 0x5f0   : > { %v2624_v25 = vadd.f32 %v5083_v26, %v2623_v22 }
 0x5f1   : > { %v2658_v16 = vadd.f32 %v5085_v10, %v2657_v60 }
 0x5f2   : > { %v2628_v57 = vsel %vm2627_vm6, %v5083_v26, %v2624_v25  ;;  %v8030_v25 = vld [vmem:[#allocation98_spill] sm:$0xff] }
 0x5f3   : > { %v2633_v44 = vsel %vm2630_vm8, %v2632_v31, %v2628_v57  ;;  %v2662_v45 = vsel %vm2661_vm9, %v5085_v10, %v2658_v16  ;;  %vm2756_vm9 = vcmp.eq.f32.partialorder %v2755_v48, 8.507059e+37 }
 0x5f4   : > { %4890 = vpush %v2633_v44  ;;  %v2667_v55 = vsel %vm2664_vm11, %v2666_v19, %v2662_v45 }
 0x5f5   : > { %4892 = vpush %v2667_v55 }
 0x5f6   : > { %4894 = vpush %v2687_v12 }
 0x625   : > { %s4891_s27 = spop %4890 }
 0x626   : > { %v4069_v46 = vstv %s4891_s27  ;;  %s4893_s10 = spop %4892  ;;  %s8029_s27 = sld [smem:[#allocation127_spill]] }
 0x627   : > { %v7046_v42 = vmul.f32 %v4069_v46, %v5827_v34  ;;  %v4071_v58 = vstv %s4893_s10  ;;  %s4895_s6 = spop %4894  ;;  %v2748_v34 = vsub.f32 1.0, %v2747_v62 }
 0x628   : > { %v7049_v28 = vmul.f32 %v4071_v58, %v8024_v50  ;;  %s2689_s14 = smul.f32 %s4895_s6, %s8022_s15  ;;  %s8027_s15 = sld [smem:[#allocation81_spill]] }
 0x629   : > { %s2723_s21 = smul.f32 %s4895_s6, %s8023_s24  ;;  %v2749_v24 = vmul.f32 %v5087_v17, %v2748_v34  ;;  %s8028_s24 = sld [smem:[#allocation126_spill]] }
 0x62a   : > { %v4073_v61 = vsub.f32 %v7046_v42, %v7049_v28  ;;  %s2690_s1 = sadd.f32 1e-08, %s2689_s14 }
 0x62b   : > { %s2724_s8 = sadd.f32 1e-08, %s2723_s21  ;;  %v2750_v40 = vadd.f32 %v5087_v17, %v2749_v24 }
 0x62c   : > { %v2691_v53 = vstv %s2690_s1 }
 0x62d   : > { %5088 = vrcp.f32 %v2691_v53  ;;  %v2725_v29 = vstv %s2724_s8  ;;  %v2703_v52 = vand.u32 2147483648, %v2691_v53  ;;  %v2701_v43 = vand.u32 2147483647, %v2691_v53 }
 0x62e   : > { %5090 = vrcp.f32 %v2725_v29  ;;  %v2737_v27 = vand.u32 2147483648, %v2725_v29  ;;  %v2735_v26 = vand.u32 2147483647, %v2725_v29  ;;  %vm2697_vm2 = vweird.f32 %v2691_v53  ;;  %s2816_s10 = sadd.f32 1e-10, %s8027_s15 }
 0x62f   : > { %v2704_v49 = vor.u32 1.1754944e-38, %v2703_v52  ;;  %vm2731_vm5 = vweird.f32 %v2725_v29  ;;  %vm2702_vm6 = vcmp.eq.f32.partialorder %v2701_v43, 8.507059e+37  ;;  %v2754_v35 = vsel %vm7056_vm3, %v5087_v17, %v2750_v40 }
 0x630   : > { %v2738_v41 = vor.u32 1.1754944e-38, %v2737_v27  ;;  %vm2736_vm8 = vcmp.eq.f32.partialorder %v2735_v26, 8.507059e+37  ;;  %v2759_v47 = vsel %vm2756_vm9, %v2758_v32, %v2754_v35  ;;  %v2817_v60 = vstv %s2816_s10  ;;  %v8038_v32 = vld [vmem:[#allocation15_spill] sm:$0xff] }
 0x631   : > { %5092 = vrcp.f32 %v2817_v60  ;;  %vm2823_vm10 = vweird.f32 %v2817_v60  ;;  %v2827_v40 = vand.u32 2147483647, %v2817_v60 }
 0x633   : > { %v5089_v0 = vpop.eup %5088 }
 0x634   : > { %v5091_v36 = vpop.eup %5090  ;;  %v2693_v21 = vmul.f32 %v5089_v0, %v2691_v53  ;;  %vm2698_vm14 = vweird.f32 %v5089_v0 }
 0x635   : > { %v2727_v23 = vmul.f32 %v5091_v36, %v2725_v29  ;;  %vm2732_vm15 = vweird.f32 %v5091_v36  ;;  %vm2699_vm4 = vmor %vm2697_vm2, %vm2698_vm14 }
 0x636   : > { %v2694_v38 = vsub.f32 1.0, %v2693_v21  ;;  %vm2733_vm7 = vmor %vm2731_vm5, %vm2732_vm15 }
 0x637   : > { %v2728_v39 = vsub.f32 1.0, %v2727_v23  ;;  %v5093_v16 = vpop.eup %5092 }
 0x638   : > { %v2695_v3 = vmul.f32 %v5089_v0, %v2694_v38  ;;  %v2819_v44 = vmul.f32 %v5093_v16, %v2817_v60  ;;  %vm2824_vm11 = vweird.f32 %v5093_v16  ;;  %v2829_v38 = vand.u32 2147483648, %v2817_v60 }
 0x639   : > { %v2729_v8 = vmul.f32 %v5091_v36, %v2728_v39  ;;  %vm7074_vm15 = vmor %vm2823_vm10, %vm2824_vm11 }
 0x63a   : > { %v2696_v10 = vadd.f32 %v5089_v0, %v2695_v3  ;;  %v2820_v12 = vsub.f32 1.0, %v2819_v44  ;;  %v2830_v20 = vor.u32 1.1754944e-38, %v2829_v38 }
 0x63b   : > { %v2730_v59 = vadd.f32 %v5091_v36, %v2729_v8 }
 0x63c   : > { %v2700_v9 = vsel %vm2699_vm4, %v5089_v0, %v2696_v10  ;;  %v2821_v46 = vmul.f32 %v5093_v16, %v2820_v12 }
 0x63d   : > { %v2705_v15 = vsel %vm2702_vm6, %v2704_v49, %v2700_v9  ;;  %v2734_v22 = vsel %vm2733_vm7, %v5091_v36, %v2730_v59  ;;  %vm2828_vm7 = vcmp.eq.f32.partialorder %v2827_v40, 8.507059e+37 }
 0x63e   : > { %4896 = vpush %v2705_v15  ;;  %v2739_v51 = vsel %vm2736_vm8, %v2738_v41, %v2734_v22  ;;  %v2822_v34 = vadd.f32 %v5093_v16, %v2821_v46  ;;  %v8037_v41 = vld [vmem:[#allocation56_spill] sm:$0xff] }
 0x63f   : > { %4898 = vpush %v2739_v51 }
 0x640   : > { %4900 = vpush %v2759_v47  ;;  %v2826_v26 = vsel %vm7074_vm15, %v5093_v16, %v2822_v34 }
 0x641   : > { %v2831_v49 = vsel %vm2828_vm7, %v2830_v20, %v2826_v26 }
 0x66f   : > { %s4897_s6 = spop %4896 }
 0x670   : > { %v4102_v6 = vstv %s4897_s6  ;;  %s4899_s14 = spop %4898 }
 0x671   : > { %v7064_v30 = vmul.f32 %v4102_v6, %v8030_v25  ;;  %v4104_v31 = vstv %s4899_s14  ;;  %s4901_s21 = spop %4900 }
 0x672   : > { %v7067_v57 = vmul.f32 %v4104_v31, %v8031_v5  ;;  %s2761_s1 = smul.f32 %s4901_s21, %s8028_s24  ;;  %s8035_s24 = sld [smem:[#allocation130_spill]] }
 0x673   : > { %s2795_s8 = smul.f32 %s4901_s21, %s8029_s27  ;;  %s8036_s27 = sld [smem:[#allocation131_spill]] }
 0x674   : > { %v4106_v19 = vsub.f32 %v7064_v30, %v7067_v57  ;;  %s2762_s3 = sadd.f32 1e-08, %s2761_s1 }
 0x675   : > { %s2796_s10 = sadd.f32 1e-08, %s2795_s8 }
 0x676   : > { %v2763_v45 = vstv %s2762_s3  ;;  %s8034_s3 = sld [smem:[#allocation82_spill]]  ;;  %v4107_v37 = vand.u32 2147483647, %v4106_v19 }
 0x677   : > { %5094 = vrcp.f32 %v2763_v45  ;;  %v2797_v55 = vstv %s2796_s10  ;;  %v2775_v29 = vand.u32 2147483648, %v2763_v45  ;;  %v2773_v24 = vand.u32 2147483647, %v2763_v45 }
 0x678   : > { %5096 = vrcp.f32 %v2797_v55  ;;  %v2809_v36 = vand.u32 2147483648, %v2797_v55  ;;  %v2807_v23 = vand.u32 2147483647, %v2797_v55  ;;  %vm2769_vm14 = vweird.f32 %v2763_v45 }
 0x679   : > { %v2776_v3 = vor.u32 1.1754944e-38, %v2775_v29  ;;  %vm2803_vm3 = vweird.f32 %v2797_v55  ;;  %vm2774_vm4 = vcmp.eq.f32.partialorder %v2773_v24, 8.507059e+37 }
 0x67a   : > { %v2810_v8 = vor.u32 1.1754944e-38, %v2809_v36  ;;  %vm2808_vm6 = vcmp.eq.f32.partialorder %v2807_v23, 8.507059e+37 }
 0x67c   : > { %s2888_s6 = sadd.f32 1e-10, %s8034_s3 }
 0x67d   : > { %v5095_v33 = vpop.eup %5094 }
 0x67e   : > { %v5097_v58 = vpop.eup %5096  ;;  %v2765_v17 = vmul.f32 %v5095_v33, %v2763_v45  ;;  %vm2770_vm12 = vweird.f32 %v5095_v33  ;;  %v2889_v59 = vstv %s2888_s6 }
 0x67f   : > { %v2799_v50 = vmul.f32 %v5097_v58, %v2797_v55  ;;  %vm2804_vm13 = vweird.f32 %v5097_v58  ;;  %vm2771_vm2 = vmor %vm2769_vm14, %vm2770_vm12  ;;  %5098 = vrcp.f32 %v2889_v59  ;;  %vm2895_vm8 = vweird.f32 %v2889_v59 }
 0x680   : > { %v2766_v62 = vsub.f32 1.0, %v2765_v17  ;;  %vm2805_vm5 = vmor %vm2803_vm3, %vm2804_vm13 }
 0x681   : > { %v2800_v53 = vsub.f32 1.0, %v2799_v50  ;;  %v2899_v50 = vand.u32 2147483647, %v2889_v59 }
 0x682   : > { %v2767_v0 = vmul.f32 %v5095_v33, %v2766_v62 }
 0x683   : > { %v2801_v21 = vmul.f32 %v5097_v58, %v2800_v53 }
 0x684   : > { %v2768_v39 = vadd.f32 %v5095_v33, %v2767_v0 }
 0x685   : > { %v2802_v43 = vadd.f32 %v5097_v58, %v2801_v21  ;;  %v5099_v22 = vpop.eup %5098 }
 0x686   : > { %v2772_v27 = vsel %vm2771_vm2, %v5095_v33, %v2768_v39  ;;  %v2891_v60 = vmul.f32 %v5099_v22, %v2889_v59  ;;  %vm2896_vm9 = vweird.f32 %v5099_v22  ;;  %v2901_v33 = vand.u32 2147483648, %v2889_v59  ;;  %v8045_v59 = vld [vmem:[#allocation17_spill] sm:$0xff] }
 0x687   : > { %v2777_v7 = vsel %vm2774_vm4, %v2776_v3, %v2772_v27  ;;  %v2806_v10 = vsel %vm2805_vm5, %v5097_v58, %v2802_v43  ;;  %vm7091_vm11 = vmor %vm2895_vm8, %vm2896_vm9  ;;  %vm2900_vm4 = vcmp.eq.f32.partialorder %v2899_v50, 8.507059e+37 }
 0x688   : > { %4902 = vpush %v2777_v7  ;;  %v2811_v48 = vsel %vm2808_vm6, %v2810_v8, %v2806_v10  ;;  %v2892_v31 = vsub.f32 1.0, %v2891_v60  ;;  %v2902_v21 = vor.u32 1.1754944e-38, %v2901_v33  ;;  %v8044_v10 = vld [vmem:[#allocation61_spill] sm:$0xff] }
 0x689   : > { %4904 = vpush %v2811_v48 }
 0x68a   : > { %4906 = vpush %v2831_v49  ;;  %v2893_v5 = vmul.f32 %v5099_v22, %v2892_v31 }
 0x68c   : > { %v2894_v17 = vadd.f32 %v5099_v22, %v2893_v5 }
 0x68e   : > { %v2898_v39 = vsel %vm7091_vm11, %v5099_v22, %v2894_v17 }
 0x68f   : > { %v2903_v8 = vsel %vm2900_vm4, %v2902_v21, %v2898_v39 }
 0x6b9   : > { %s4903_s14 = spop %4902 }
 0x6ba   : > { %v4134_v9 = vstv %s4903_s14  ;;  %s4905_s21 = spop %4904 }
 0x6bb   : > { %v7082_v35 = vmul.f32 %v4134_v9, %v8037_v41  ;;  %v4136_v15 = vstv %s4905_s21  ;;  %s4907_s1 = spop %4906 }
 0x6bc   : > { %v7085_v51 = vmul.f32 %v4136_v15, %v8038_v32  ;;  %s2833_s8 = smul.f32 %s4907_s1, %s8035_s24  ;;  %s8042_s24 = sld [smem:[#allocation134_spill]] }
 0x6bd   : > { %s2867_s10 = smul.f32 %s4907_s1, %s8036_s27  ;;  %s8043_s27 = sld [smem:[#allocation135_spill]] }
 0x6be   : > { %v4138_v47 = vsub.f32 %v7082_v35, %v7085_v51  ;;  %s2834_s7 = sadd.f32 1e-08, %s2833_s8 }
 0x6bf   : > { %s2868_s6 = sadd.f32 1e-08, %s2867_s10 }
 0x6c0   : > { %v2835_v6 = vstv %s2834_s7  ;;  %s8041_s7 = sld [smem:[#allocation84_spill]] }
 0x6c1   : > { %5100 = vrcp.f32 %v2835_v6  ;;  %v2869_v25 = vstv %s2868_s6  ;;  %v2847_v58 = vand.u32 2147483648, %v2835_v6  ;;  %v2845_v53 = vand.u32 2147483647, %v2835_v6 }
 0x6c2   : > { %5102 = vrcp.f32 %v2869_v25  ;;  %v2881_v29 = vand.u32 2147483648, %v2869_v25  ;;  %v2879_v24 = vand.u32 2147483647, %v2869_v25  ;;  %vm2841_vm13 = vweird.f32 %v2835_v6 }
 0x6c3   : > { %v2848_v23 = vor.u32 1.1754944e-38, %v2847_v58  ;;  %vm2875_vm15 = vweird.f32 %v2869_v25  ;;  %vm2846_vm2 = vcmp.eq.f32.partialorder %v2845_v53, 8.507059e+37 }
 0x6c4   : > { %v2882_v40 = vor.u32 1.1754944e-38, %v2881_v29  ;;  %vm2880_vm5 = vcmp.eq.f32.partialorder %v2879_v24, 8.507059e+37 }
 0x6c6   : > { %s2960_s14 = sadd.f32 1e-10, %s8041_s7 }
 0x6c7   : > { %v5101_v16 = vpop.eup %5100 }
 0x6c8   : > { %v5103_v44 = vpop.eup %5102  ;;  %v2837_v45 = vmul.f32 %v5101_v16, %v2835_v6  ;;  %vm2842_vm10 = vweird.f32 %v5101_v16  ;;  %v2961_v26 = vstv %s2960_s14 }
 0x6c9   : > { %v2871_v55 = vmul.f32 %v5103_v44, %v2869_v25  ;;  %vm2876_vm12 = vweird.f32 %v5103_v44  ;;  %vm2843_vm14 = vmor %vm2841_vm13, %vm2842_vm10  ;;  %5104 = vrcp.f32 %v2961_v26  ;;  %vm2967_vm6 = vweird.f32 %v2961_v26 }
 0x6ca   : > { %v2838_v12 = vsub.f32 1.0, %v2837_v45  ;;  %vm2877_vm3 = vmor %vm2875_vm15, %vm2876_vm12  ;;  %v2971_v34 = vand.u32 2147483647, %v2961_v26 }
 0x6cb   : > { %v2872_v46 = vsub.f32 1.0, %v2871_v55 }
 0x6cc   : > { %v2839_v62 = vmul.f32 %v5101_v16, %v2838_v12 }
 0x6cd   : > { %v2873_v0 = vmul.f32 %v5103_v44, %v2872_v46 }
 0x6ce   : > { %v2840_v36 = vadd.f32 %v5101_v16, %v2839_v62  ;;  %v2973_v62 = vand.u32 2147483648, %v2961_v26 }
 0x6cf   : > { %v2874_v38 = vadd.f32 %v5103_v44, %v2873_v0  ;;  %v5105_v49 = vpop.eup %5104 }
 0x6d0   : > { %v2844_v52 = vsel %vm2843_vm14, %v5101_v16, %v2840_v36  ;;  %v2963_v15 = vmul.f32 %v5105_v49, %v2961_v26  ;;  %vm2968_vm7 = vweird.f32 %v5105_v49 }
 0x6d1   : > { %v2849_v3 = vsel %vm2846_vm2, %v2848_v23, %v2844_v52  ;;  %v2878_v43 = vsel %vm2877_vm3, %v5103_v44, %v2874_v38  ;;  %vm7109_vm11 = vmor %vm2967_vm6, %vm2968_vm7  ;;  %v2974_v52 = vor.u32 1.1754944e-38, %v2973_v62  ;;  %vm2972_vm3 = vcmp.eq.f32.partialorder %v2971_v34, 8.507059e+37 }
 0x6d2   : > { %4908 = vpush %v2849_v3  ;;  %v2883_v27 = vsel %vm2880_vm5, %v2882_v40, %v2878_v43  ;;  %v2964_v60 = vsub.f32 1.0, %v2963_v15 }
 0x6d3   : > { %4910 = vpush %v2883_v27 }
 0x6d4   : > { %4912 = vpush %v2903_v8  ;;  %v2965_v25 = vmul.f32 %v5105_v49, %v2964_v60  ;;  %v8051_v8 = vld [vmem:[#allocation65_spill] sm:$0xff] }
 0x6d6   : > { %v2966_v12 = vadd.f32 %v5105_v49, %v2965_v25 }
 0x6d8   : > { %v2970_v23 = vsel %vm7109_vm11, %v5105_v49, %v2966_v12 }
 0x6d9   : > { %v2975_v3 = vsel %vm2972_vm3, %v2974_v52, %v2970_v23 }
 0x703   : > { %s4909_s21 = spop %4908 }
 0x704   : > { %v4168_v7 = vstv %s4909_s21  ;;  %s4911_s1 = spop %4910 }
 0x705   : > { %v7099_v20 = vmul.f32 %v4168_v7, %v8044_v10  ;;  %v4170_v48 = vstv %s4911_s1  ;;  %s4913_s8 = spop %4912 }
 0x706   : > { %v7102_v9 = vmul.f32 %v4170_v48, %v8045_v59  ;;  %s2905_s10 = smul.f32 %s4913_s8, %s8042_s24  ;;  %s8049_s24 = sld [smem:[#allocation138_spill]]  ;;  %v8052_v48 = vld [vmem:[#allocation19_spill] sm:$0xff] }
 0x707   : > { %s2939_s6 = smul.f32 %s4913_s8, %s8043_s27  ;;  %s8050_s27 = sld [smem:[#allocation139_spill]] }
 0x708   : > { %v4172_v41 = vsub.f32 %v7099_v20, %v7102_v9  ;;  %s2906_s19 = sadd.f32 1e-08, %s2905_s10 }
 0x709   : > { %s2940_s14 = sadd.f32 1e-08, %s2939_s6 }
 0x70a   : > { %v2907_v22 = vstv %s2906_s19  ;;  %s8048_s19 = sld [smem:[#allocation85_spill]] }
 0x70b   : > { %5106 = vrcp.f32 %v2907_v22  ;;  %v2941_v32 = vstv %s2940_s14  ;;  %v2919_v55 = vand.u32 2147483648, %v2907_v22  ;;  %v2917_v46 = vand.u32 2147483647, %v2907_v22 }
 0x70c   : > { %5108 = vrcp.f32 %v2941_v32  ;;  %v2953_v58 = vand.u32 2147483648, %v2941_v32  ;;  %v2951_v50 = vand.u32 2147483647, %v2941_v32  ;;  %vm2913_vm10 = vweird.f32 %v2907_v22 }
 0x70d   : > { %v2920_v0 = vor.u32 1.1754944e-38, %v2919_v55  ;;  %vm2947_vm13 = vweird.f32 %v2941_v32  ;;  %vm2918_vm14 = vcmp.eq.f32.partialorder %v2917_v46, 8.507059e+37 }
 0x70e   : > { %v2954_v21 = vor.u32 1.1754944e-38, %v2953_v58  ;;  %vm2952_vm2 = vcmp.eq.f32.partialorder %v2951_v50, 8.507059e+37 }
 0x710   : > { %s3032_s21 = sadd.f32 1e-10, %s8048_s19 }
 0x711   : > { %v5107_v6 = vpop.eup %5106 }
 0x712   : > { %v5109_v31 = vpop.eup %5108  ;;  %v2909_v16 = vmul.f32 %v5107_v6, %v2907_v22  ;;  %vm2914_vm8 = vweird.f32 %v5107_v6  ;;  %v3033_v43 = vstv %s3032_s21 }
 0x713   : > { %v2943_v5 = vmul.f32 %v5109_v31, %v2941_v32  ;;  %vm2948_vm9 = vweird.f32 %v5109_v31  ;;  %vm2915_vm12 = vmor %vm2913_vm10, %vm2914_vm8  ;;  %5110 = vrcp.f32 %v3033_v43  ;;  %vm3039_vm4 = vweird.f32 %v3033_v43 }
 0x714   : > { %v2910_v44 = vsub.f32 1.0, %v2909_v16  ;;  %vm2949_vm15 = vmor %vm2947_vm13, %vm2948_vm9  ;;  %v3045_v62 = vand.u32 2147483648, %v3033_v43  ;;  %v3043_v34 = vand.u32 2147483647, %v3033_v43 }
 0x715   : > { %v2944_v45 = vsub.f32 1.0, %v2943_v5 }
 0x716   : > { %v2911_v33 = vmul.f32 %v5107_v6, %v2910_v44  ;;  %v3046_v52 = vor.u32 1.1754944e-38, %v3045_v62 }
 0x717   : > { %v2945_v17 = vmul.f32 %v5109_v31, %v2944_v45 }
 0x718   : > { %v2912_v53 = vadd.f32 %v5107_v6, %v2911_v33 }
 0x719   : > { %v2946_v24 = vadd.f32 %v5109_v31, %v2945_v17  ;;  %v5111_v10 = vpop.eup %5110 }
 0x71a   : > { %v2916_v36 = vsel %vm2915_vm12, %v5107_v6, %v2912_v53  ;;  %v3035_v15 = vmul.f32 %v5111_v10, %v3033_v43  ;;  %vm3040_vm5 = vweird.f32 %v5111_v10 }
 0x71b   : > { %v2921_v38 = vsel %vm2918_vm14, %v2920_v0, %v2916_v36  ;;  %v2950_v39 = vsel %vm2949_vm15, %v5109_v31, %v2946_v24  ;;  %vm7127_vm9 = vmor %vm3039_vm4, %vm3040_vm5  ;;  %vm3044_vm15 = vcmp.eq.f32.partialorder %v3043_v34, 8.507059e+37 }
 0x71c   : > { %4914 = vpush %v2921_v38  ;;  %v2955_v40 = vsel %vm2952_vm2, %v2954_v21, %v2950_v39  ;;  %v3036_v60 = vsub.f32 1.0, %v3035_v15  ;;  %v8059_v15 = vld [vmem:[#allocation110_spill] sm:$0xff] }
 0x71d   : > { %4916 = vpush %v2955_v40 }
 0x71e   : > { %4918 = vpush %v2975_v3  ;;  %v3037_v25 = vmul.f32 %v5111_v10, %v3036_v60 }
 0x720   : > { %v3038_v12 = vadd.f32 %v5111_v10, %v3037_v25 }
 0x722   : > { %v3042_v23 = vsel %vm7127_vm9, %v5111_v10, %v3038_v12 }
 0x723   : > { %v3047_v3 = vsel %vm3044_vm15, %v3046_v52, %v3042_v23 }
 0x74d   : > { %s4915_s1 = spop %4914 }
 0x74e   : > { %v4202_v27 = vstv %s4915_s1  ;;  %s4917_s8 = spop %4916 }
 0x74f   : > { %v7117_v26 = vmul.f32 %v4202_v27, %v8051_v8  ;;  %v4204_v7 = vstv %s4917_s8  ;;  %s4919_s10 = spop %4918  ;;  %v8058_v8 = vld [vmem:[#allocation104_spill] sm:$0xff] }
 0x750   : > { %v7120_v49 = vmul.f32 %v4204_v7, %v8052_v48  ;;  %s2977_s6 = smul.f32 %s4919_s10, %s8049_s24  ;;  %s8056_s24 = sld [smem:[#allocation140_spill]] }
 0x751   : > { %s3011_s14 = smul.f32 %s4919_s10, %s8050_s27  ;;  %s8057_s27 = sld [smem:[#allocation141_spill]] }
 0x752   : > { %v4206_v59 = vsub.f32 %v7117_v26, %v7120_v49  ;;  %s2978_s18 = sadd.f32 1e-08, %s2977_s6 }
 0x753   : > { %s3012_s21 = sadd.f32 1e-08, %s3011_s14 }
 0x754   : > { %v2979_v22 = vstv %s2978_s18  ;;  %s8055_s18 = sld [smem:[#allocation86_spill]] }
 0x755   : > { %5112 = vrcp.f32 %v2979_v22  ;;  %v3013_v32 = vstv %s3012_s21  ;;  %v2991_v55 = vand.u32 2147483648, %v2979_v22  ;;  %v2989_v46 = vand.u32 2147483647, %v2979_v22 }
 0x756   : > { %5114 = vrcp.f32 %v3013_v32  ;;  %v3025_v58 = vand.u32 2147483648, %v3013_v32  ;;  %v3023_v50 = vand.u32 2147483647, %v3013_v32  ;;  %vm2985_vm8 = vweird.f32 %v2979_v22 }
 0x757   : > { %v2992_v0 = vor.u32 1.1754944e-38, %v2991_v55  ;;  %vm3019_vm11 = vweird.f32 %v3013_v32  ;;  %vm2990_vm12 = vcmp.eq.f32.partialorder %v2989_v46, 8.507059e+37 }
 0x758   : > { %v3026_v21 = vor.u32 1.1754944e-38, %v3025_v58  ;;  %vm3024_vm14 = vcmp.eq.f32.partialorder %v3023_v50, 8.507059e+37 }
 0x75a   : > { %s3104_s1 = sadd.f32 1e-10, %s8055_s18 }
 0x75b   : > { %v5113_v6 = vpop.eup %5112 }
 0x75c   : > { %v5115_v31 = vpop.eup %5114  ;;  %v2981_v16 = vmul.f32 %v5113_v6, %v2979_v22  ;;  %vm2986_vm6 = vweird.f32 %v5113_v6  ;;  %v3105_v43 = vstv %s3104_s1 }
 0x75d   : > { %v3015_v5 = vmul.f32 %v5115_v31, %v3013_v32  ;;  %vm3020_vm7 = vweird.f32 %v5115_v31  ;;  %vm2987_vm10 = vmor %vm2985_vm8, %vm2986_vm6  ;;  %5116 = vrcp.f32 %v3105_v43  ;;  %vm3111_vm2 = vweird.f32 %v3105_v43 }
 0x75e   : > { %v2982_v44 = vsub.f32 1.0, %v2981_v16  ;;  %vm3021_vm13 = vmor %vm3019_vm11, %vm3020_vm7  ;;  %v3115_v50 = vand.u32 2147483647, %v3105_v43 }
 0x75f   : > { %v3016_v45 = vsub.f32 1.0, %v3015_v5 }
 0x760   : > { %v2983_v33 = vmul.f32 %v5113_v6, %v2982_v44 }
 0x761   : > { %v3017_v17 = vmul.f32 %v5115_v31, %v3016_v45 }
 0x762   : > { %v2984_v53 = vadd.f32 %v5113_v6, %v2983_v33  ;;  %v3117_v33 = vand.u32 2147483648, %v3105_v43 }
 0x763   : > { %v3018_v24 = vadd.f32 %v5115_v31, %v3017_v17  ;;  %v5117_v48 = vpop.eup %5116 }
 0x764   : > { %v2988_v36 = vsel %vm2987_vm10, %v5113_v6, %v2984_v53  ;;  %v3107_v60 = vmul.f32 %v5117_v48, %v3105_v43  ;;  %vm3112_vm3 = vweird.f32 %v5117_v48 }
 0x765   : > { %v2993_v38 = vsel %vm2990_vm12, %v2992_v0, %v2988_v36  ;;  %v3022_v39 = vsel %vm3021_vm13, %v5115_v31, %v3018_v24  ;;  %vm7144_vm5 = vmor %vm3111_vm2, %vm3112_vm3  ;;  %vm3116_vm12 = vcmp.eq.f32.partialorder %v3115_v50, 8.507059e+37 }
 0x766   : > { %4920 = vpush %v2993_v38  ;;  %v3027_v40 = vsel %vm3024_vm14, %v3026_v21, %v3022_v39  ;;  %v3108_v31 = vsub.f32 1.0, %v3107_v60  ;;  %v3118_v21 = vor.u32 1.1754944e-38, %v3117_v33 }
 0x767   : > { %4922 = vpush %v3027_v40 }
 0x768   : > { %4924 = vpush %v3047_v3  ;;  %v3109_v5 = vmul.f32 %v5117_v48, %v3108_v31  ;;  %v8066_v31 = vld [vmem:[#allocation22_spill] sm:$0xff] }
 0x76a   : > { %v3110_v17 = vadd.f32 %v5117_v48, %v3109_v5 }
 0x76c   : > { %v3114_v39 = vsel %vm7144_vm5, %v5117_v48, %v3110_v17 }
 0x797   : > { %s4921_s8 = spop %4920 }
 0x798   : > { %v4236_v27 = vstv %s4921_s8  ;;  %s4923_s10 = spop %4922 }
 0x799   : > { %v7135_v7 = vmul.f32 %v4236_v27, %v8058_v8  ;;  %v4238_v10 = vstv %s4923_s10  ;;  %s4925_s6 = spop %4924  ;;  %v3119_v8 = vsel %vm3116_vm12, %v3118_v21, %v3114_v39 }
 0x79a   : > { %v7138_v22 = vmul.f32 %v4238_v10, %v8059_v15  ;;  %s3049_s14 = smul.f32 %s4925_s6, %s8056_s24  ;;  %s8063_s24 = sld [smem:[#allocation142_spill]]  ;;  %v8065_v15 = vld [vmem:[#allocation70_spill] sm:$0xff] }
 0x79b   : > { %s3083_s21 = smul.f32 %s4925_s6, %s8057_s27  ;;  %s8064_s27 = sld [smem:[#allocation143_spill]] }
 0x79c   : > { %s3050_s20 = sadd.f32 1e-08, %s3049_s14 }
 0x79d   : > { %s3084_s1 = sadd.f32 1e-08, %s3083_s21 }
 0x79e   : > { %v3051_v6 = vstv %s3050_s20  ;;  %s8062_s20 = sld [smem:[#allocation89_spill]] }
 0x79f   : > { %5118 = vrcp.f32 %v3051_v6  ;;  %v3085_v25 = vstv %s3084_s1  ;;  %v3063_v58 = vand.u32 2147483648, %v3051_v6  ;;  %v3061_v53 = vand.u32 2147483647, %v3051_v6 }
 0x7a0   : > { %5120 = vrcp.f32 %v3085_v25  ;;  %v3097_v29 = vand.u32 2147483648, %v3085_v25  ;;  %v3095_v24 = vand.u32 2147483647, %v3085_v25  ;;  %vm3057_vm7 = vweird.f32 %v3051_v6 }
 0x7a1   : > { %v3064_v23 = vor.u32 1.1754944e-38, %v3063_v58  ;;  %vm3091_vm9 = vweird.f32 %v3085_v25  ;;  %vm3062_vm10 = vcmp.eq.f32.partialorder %v3061_v53, 8.507059e+37 }
 0x7a2   : > { %v3098_v40 = vor.u32 1.1754944e-38, %v3097_v29  ;;  %vm3096_vm13 = vcmp.eq.f32.partialorder %v3095_v24, 8.507059e+37 }
 0x7a4   : > { %s3176_s8 = sadd.f32 1e-10, %s8062_s20 }
 0x7a5   : > { %v5119_v16 = vpop.eup %5118 }
 0x7a6   : > { %v5121_v44 = vpop.eup %5120  ;;  %v3053_v45 = vmul.f32 %v5119_v16, %v3051_v6  ;;  %vm3058_vm4 = vweird.f32 %v5119_v16  ;;  %v3177_v10 = vstv %s3176_s8 }
 0x7a7   : > { %v3087_v55 = vmul.f32 %v5121_v44, %v3085_v25  ;;  %vm3092_vm6 = vweird.f32 %v5121_v44  ;;  %vm3059_vm8 = vmor %vm3057_vm7, %vm3058_vm4  ;;  %5122 = vrcp.f32 %v3177_v10  ;;  %vm3183_vm14 = vweird.f32 %v3177_v10 }
 0x7a8   : > { %v3054_v12 = vsub.f32 1.0, %v3053_v45  ;;  %vm3093_vm11 = vmor %vm3091_vm9, %vm3092_vm6 }
 0x7a9   : > { %v3088_v46 = vsub.f32 1.0, %v3087_v55 }
 0x7aa   : > { %v3055_v62 = vmul.f32 %v5119_v16, %v3054_v12 }
 0x7ab   : > { %v3089_v0 = vmul.f32 %v5121_v44, %v3088_v46 }
 0x7ac   : > { %v3056_v36 = vadd.f32 %v5119_v16, %v3055_v62 }
 0x7ad   : > { %v3090_v38 = vadd.f32 %v5121_v44, %v3089_v0  ;;  %v5123_v25 = vpop.eup %5122 }
 0x7ae   : > { %v3060_v52 = vsel %vm3059_vm8, %v5119_v16, %v3056_v36  ;;  %vm3184_vm15 = vweird.f32 %v5123_v25 }
 0x7af   : > { %v3065_v3 = vsel %vm3062_vm10, %v3064_v23, %v3060_v52  ;;  %v3094_v43 = vsel %vm3093_vm11, %v5121_v44, %v3090_v38  ;;  %v3179_v44 = vmul.f32 %v5123_v25, %v3177_v10  ;;  %v3189_v38 = vand.u32 2147483648, %v3177_v10  ;;  %vm7162_vm5 = vmor %vm3183_vm14, %vm3184_vm15 }
 0x7b0   : > { %4926 = vpush %v3065_v3  ;;  %v3099_v27 = vsel %vm3096_vm13, %v3098_v40, %v3094_v43  ;;  %v3187_v40 = vand.u32 2147483647, %v3177_v10 }
 0x7b1   : > { %4928 = vpush %v3099_v27  ;;  %v3180_v12 = vsub.f32 1.0, %v3179_v44 }
 0x7b2   : > { %4930 = vpush %v3119_v8  ;;  %vm3188_vm11 = vcmp.eq.f32.partialorder %v3187_v40, 8.507059e+37 }
 0x7b3   : > { %v3181_v46 = vmul.f32 %v5123_v25, %v3180_v12  ;;  %v8072_v12 = vld [vmem:[#allocation73_spill] sm:$0xff] }
 0x7b5   : > { %v3182_v34 = vadd.f32 %v5123_v25, %v3181_v46 }
 0x7e1   : > { %s4927_s10 = spop %4926 }
 0x7e2   : > { %v4267_v48 = vstv %s4927_s10  ;;  %s4929_s6 = spop %4928 }
 0x7e3   : > { %v7152_v60 = vmul.f32 %v4267_v48, %v8065_v15  ;;  %v4269_v6 = vstv %s4929_s6  ;;  %s4931_s14 = spop %4930  ;;  %v3186_v48 = vsel %vm7162_vm5, %v5123_v25, %v3182_v34 }
 0x7e4   : > { %v7155_v16 = vmul.f32 %v4269_v6, %v8066_v31  ;;  %s3121_s21 = smul.f32 %s4931_s14, %s8063_s24  ;;  %v3190_v31 = vor.u32 1.1754944e-38, %v3189_v38  ;;  %s8070_s24 = sld [smem:[#allocation144_spill]] }
 0x7e5   : > { %s3155_s1 = smul.f32 %s4931_s14, %s8064_s27  ;;  %s8071_s27 = sld [smem:[#allocation145_spill]] }
 0x7e6   : > { %v4271_v5 = vsub.f32 %v7152_v60, %v7155_v16  ;;  %s3122_s28 = sadd.f32 1e-08, %s3121_s21  ;;  %v3191_v10 = vsel %vm3188_vm11, %v3190_v31, %v3186_v48 }
 0x7e7   : > { %s3156_s8 = sadd.f32 1e-08, %s3155_s1 }
 0x7e8   : > { %v3123_v45 = vstv %s3122_s28  ;;  %s8069_s28 = sld [smem:[#allocation90_spill]] }
 0x7e9   : > { %5124 = vrcp.f32 %v3123_v45  ;;  %v3157_v55 = vstv %s3156_s8  ;;  %v3135_v29 = vand.u32 2147483648, %v3123_v45  ;;  %v3133_v24 = vand.u32 2147483647, %v3123_v45 }
 0x7ea   : > { %5126 = vrcp.f32 %v3157_v55  ;;  %v3169_v36 = vand.u32 2147483648, %v3157_v55  ;;  %v3167_v23 = vand.u32 2147483647, %v3157_v55  ;;  %vm3129_vm4 = vweird.f32 %v3123_v45 }
 0x7eb   : > { %v3136_v3 = vor.u32 1.1754944e-38, %v3135_v29  ;;  %vm3163_vm7 = vweird.f32 %v3157_v55  ;;  %vm3134_vm8 = vcmp.eq.f32.partialorder %v3133_v24, 8.507059e+37 }
 0x7ec   : > { %v3170_v8 = vor.u32 1.1754944e-38, %v3169_v36  ;;  %vm3168_vm10 = vcmp.eq.f32.partialorder %v3167_v23, 8.507059e+37 }
 0x7ee   : > { %s3248_s10 = sadd.f32 1e-10, %s8069_s28 }
 0x7ef   : > { %v5125_v33 = vpop.eup %5124 }
 0x7f0   : > { %v5127_v58 = vpop.eup %5126  ;;  %v3125_v17 = vmul.f32 %v5125_v33, %v3123_v45  ;;  %vm3130_vm2 = vweird.f32 %v5125_v33  ;;  %v3249_v45 = vstv %s3248_s10 }
 0x7f1   : > { %v3159_v50 = vmul.f32 %v5127_v58, %v3157_v55  ;;  %vm3164_vm3 = vweird.f32 %v5127_v58  ;;  %vm3131_vm6 = vmor %vm3129_vm4, %vm3130_vm2  ;;  %5128 = vrcp.f32 %v3249_v45  ;;  %vm3255_vm12 = vweird.f32 %v3249_v45 }
 0x7f2   : > { %v3126_v62 = vsub.f32 1.0, %v3125_v17  ;;  %vm3165_vm9 = vmor %vm3163_vm7, %vm3164_vm3 }
 0x7f3   : > { %v3160_v53 = vsub.f32 1.0, %v3159_v50 }
 0x7f4   : > { %v3127_v0 = vmul.f32 %v5125_v33, %v3126_v62 }
 0x7f5   : > { %v3161_v21 = vmul.f32 %v5127_v58, %v3160_v53 }
 0x7f6   : > { %v3128_v39 = vadd.f32 %v5125_v33, %v3127_v0 }
 0x7f7   : > { %v3162_v43 = vadd.f32 %v5127_v58, %v3161_v21  ;;  %v5129_v46 = vpop.eup %5128 }
 0x7f8   : > { %v3132_v27 = vsel %vm3131_vm6, %v5125_v33, %v3128_v39  ;;  %v3251_v62 = vmul.f32 %v5129_v46, %v3249_v45  ;;  %vm3256_vm13 = vweird.f32 %v5129_v46  ;;  %v3261_v39 = vand.u32 2147483648, %v3249_v45 }
 0x7f9   : > { %v3137_v15 = vsel %vm3134_vm8, %v3136_v3, %v3132_v27  ;;  %v3166_v6 = vsel %vm3165_vm9, %v5127_v58, %v3162_v43  ;;  %v8073_v58 = vld [vmem:[#allocation25_spill] sm:$0xff]  ;;  %v3259_v43 = vand.u32 2147483647, %v3249_v45  ;;  %vm7179_vm15 = vmor %vm3255_vm12, %vm3256_vm13 }
 0x7fa   : > { %4932 = vpush %v3137_v15  ;;  %v3171_v44 = vsel %vm3168_vm10, %v3170_v8, %v3166_v6  ;;  %v3252_v34 = vsub.f32 1.0, %v3251_v62 }
 0x7fb   : > { %4934 = vpush %v3171_v44  ;;  %vm3260_vm8 = vcmp.eq.f32.partialorder %v3259_v43, 8.507059e+37 }
 0x7fc   : > { %4936 = vpush %v3191_v10  ;;  %v3253_v24 = vmul.f32 %v5129_v46, %v3252_v34  ;;  %v3262_v10 = vor.u32 1.1754944e-38, %v3261_v39 }
 0x7fe   : > { %v3254_v3 = vadd.f32 %v5129_v46, %v3253_v24 }
 0x800   : > { %v3258_v45 = vsel %vm7179_vm15, %v5129_v46, %v3254_v3 }
 0x801   : > { %v3263_v24 = vsel %vm3260_vm8, %v3262_v10, %v3258_v45 }
 0x82b   : > { %s4933_s6 = spop %4932 }
 0x82c   : > { %v4300_v55 = vstv %s4933_s6  ;;  %s4935_s14 = spop %4934 }
 0x82d   : > { %v7170_v25 = vmul.f32 %v4300_v55, %v8072_v12  ;;  %v4302_v33 = vstv %s4935_s14  ;;  %s4937_s21 = spop %4936 }
 0x82e   : > { %v7173_v17 = vmul.f32 %v4302_v33, %v8073_v58  ;;  %s3193_s1 = smul.f32 %s4937_s21, %s8070_s24  ;;  %s8077_s24 = sld [smem:[#allocation146_spill]] }
 0x82f   : > { %s3227_s8 = smul.f32 %s4937_s21, %s8071_s27  ;;  %s8078_s27 = sld [smem:[#allocation147_spill]] }
 0x830   : > { %s3194_s29 = sadd.f32 1e-08, %s3193_s1 }
 0x831   : > { %s3228_s10 = sadd.f32 1e-08, %s3227_s8 }
 0x832   : > { %v3195_v53 = vstv %s3194_s29  ;;  %s8076_s29 = sld [smem:[#allocation92_spill]] }
 0x833   : > { %5130 = vrcp.f32 %v3195_v53  ;;  %v3229_v29 = vstv %s3228_s10  ;;  %v3207_v40 = vand.u32 2147483648, %v3195_v53  ;;  %v3205_v8 = vand.u32 2147483647, %v3195_v53 }
 0x834   : > { %5132 = vrcp.f32 %v3229_v29  ;;  %v3241_v48 = vand.u32 2147483648, %v3229_v29  ;;  %v3239_v31 = vand.u32 2147483647, %v3229_v29  ;;  %vm3201_vm3 = vweird.f32 %v3195_v53 }
 0x835   : > { %v3208_v55 = vor.u32 1.1754944e-38, %v3207_v40  ;;  %vm3235_vm5 = vweird.f32 %v3229_v29  ;;  %vm3206_vm6 = vcmp.eq.f32.partialorder %v3205_v8, 8.507059e+37 }
 0x836   : > { %v3242_v58 = vor.u32 1.1754944e-38, %v3241_v48  ;;  %vm3240_vm9 = vcmp.eq.f32.partialorder %v3239_v31, 8.507059e+37 }
 0x838   : > { %s3320_s6 = sadd.f32 1e-10, %s8076_s29 }
 0x839   : > { %v5131_v0 = vpop.eup %5130 }
 0x83a   : > { %v5133_v36 = vpop.eup %5132  ;;  %v3197_v21 = vmul.f32 %v5131_v0, %v3195_v53  ;;  %vm3202_vm14 = vweird.f32 %v5131_v0 }
 0x83b   : > { %v3231_v23 = vmul.f32 %v5133_v36, %v3229_v29  ;;  %vm3236_vm2 = vweird.f32 %v5133_v36  ;;  %vm3203_vm4 = vmor %vm3201_vm3, %vm3202_vm14  ;;  %v3321_v29 = vstv %s3320_s6 }
 0x83c   : > { %v3198_v38 = vsub.f32 1.0, %v3197_v21  ;;  %vm3237_vm7 = vmor %vm3235_vm5, %vm3236_vm2  ;;  %5134 = vrcp.f32 %v3321_v29  ;;  %vm3327_vm10 = vweird.f32 %v3321_v29 }
 0x83d   : > { %v3232_v52 = vsub.f32 1.0, %v3231_v23 }
 0x83e   : > { %v3199_v27 = vmul.f32 %v5131_v0, %v3198_v38  ;;  %v8080_v38 = vld [vmem:[#allocation29_spill] sm:$0xff] }
 0x83f   : > { %v3233_v6 = vmul.f32 %v5133_v36, %v3232_v52 }
 0x840   : > { %v3200_v44 = vadd.f32 %v5131_v0, %v3199_v27 }
 0x841   : > { %v3234_v12 = vadd.f32 %v5133_v36, %v3233_v6 }
 0x842   : > { %v3204_v33 = vsel %vm3203_vm4, %v5131_v0, %v3200_v44  ;;  %v8079_v0 = vld [vmem:[#allocation75_spill] sm:$0xff] }
 0x843   : > { %v3209_v62 = vsel %vm3206_vm6, %v3208_v55, %v3204_v33  ;;  %v3238_v34 = vsel %vm3237_vm7, %v5133_v36, %v3234_v12  ;;  %v5135_v36 = vpop.eup %5134 }
 0x844   : > { %4938 = vpush %v3209_v62  ;;  %v3243_v53 = vsel %vm3240_vm9, %v3242_v58, %v3238_v34  ;;  %v3323_v40 = vmul.f32 %v5135_v36, %v3321_v29  ;;  %vm3328_vm11 = vweird.f32 %v5135_v36 }
 0x845   : > { %4940 = vpush %v3243_v53  ;;  %v3333_v53 = vand.u32 2147483648, %v3321_v29  ;;  %vm7197_vm15 = vmor %vm3327_vm10, %vm3328_vm11 }
 0x846   : > { %4942 = vpush %v3263_v24  ;;  %v3324_v27 = vsub.f32 1.0, %v3323_v40 }
 0x848   : > { %v3325_v48 = vmul.f32 %v5135_v36, %v3324_v27 }
 0x84a   : > { %v3326_v12 = vadd.f32 %v5135_v36, %v3325_v48 }
 0x84c   : > { %v3330_v48 = vsel %vm7197_vm15, %v5135_v36, %v3326_v12 }
 0x875   : > { %s4939_s14 = spop %4938 }
 0x876   : > { %v4335_v46 = vstv %s4939_s14  ;;  %s4941_s21 = spop %4940 }
 0x877   : > { %v7187_v21 = vmul.f32 %v4335_v46, %v8079_v0  ;;  %v4337_v23 = vstv %s4941_s21  ;;  %s4943_s1 = spop %4942  ;;  %v3331_v0 = vand.u32 2147483647, %v3321_v29 }
 0x878   : > { %v7190_v39 = vmul.f32 %v4337_v23, %v8080_v38  ;;  %s3265_s8 = smul.f32 %s4943_s1, %s8077_s24  ;;  %s8084_s24 = sld [smem:[#allocation150_spill]] }
 0x879   : > { %s3299_s10 = smul.f32 %s4943_s1, %s8078_s27  ;;  %vm3332_vm7 = vcmp.eq.f32.partialorder %v3331_v0, 8.507059e+37  ;;  %s8085_s27 = sld [smem:[#allocation151_spill]] }
 0x87a   : > { %s3266_s4 = sadd.f32 1e-08, %s3265_s8 }
 0x87b   : > { %s3300_s6 = sadd.f32 1e-08, %s3299_s10 }
 0x87c   : > { %v3267_v3 = vstv %s3266_s4  ;;  %s8083_s4 = sld [smem:[#allocation93_spill]] }
 0x87d   : > { %5136 = vrcp.f32 %v3267_v3  ;;  %v3301_v43 = vstv %s3300_s6  ;;  %v3279_v55 = vand.u32 2147483648, %v3267_v3  ;;  %v3277_v33 = vand.u32 2147483647, %v3267_v3 }
 0x87e   : > { %5138 = vrcp.f32 %v3301_v43  ;;  %v3313_v58 = vand.u32 2147483648, %v3301_v43  ;;  %v3311_v34 = vand.u32 2147483647, %v3301_v43  ;;  %vm3273_vm14 = vweird.f32 %v3267_v3 }
 0x87f   : > { %v3280_v23 = vor.u32 1.1754944e-38, %v3279_v55  ;;  %vm3307_vm3 = vweird.f32 %v3301_v43  ;;  %vm3278_vm4 = vcmp.eq.f32.partialorder %v3277_v33, 8.507059e+37 }
 0x880   : > { %v3314_v27 = vor.u32 1.1754944e-38, %v3313_v58  ;;  %vm3312_vm6 = vcmp.eq.f32.partialorder %v3311_v34, 8.507059e+37 }
 0x882   : > { %s3392_s14 = sadd.f32 1e-10, %s8083_s4 }
 0x883   : > { %v5137_v8 = vpop.eup %5136 }
 0x884   : > { %v5139_v15 = vpop.eup %5138  ;;  %v3269_v6 = vmul.f32 %v5137_v8, %v3267_v3  ;;  %vm3274_vm12 = vweird.f32 %v5137_v8 }
 0x885   : > { %v3303_v31 = vmul.f32 %v5139_v15, %v3301_v43  ;;  %vm3308_vm13 = vweird.f32 %v5139_v15  ;;  %vm3275_vm2 = vmor %vm3273_vm14, %vm3274_vm12  ;;  %v3393_v43 = vstv %s3392_s14 }
 0x886   : > { %v3270_v44 = vsub.f32 1.0, %v3269_v6  ;;  %vm3309_vm5 = vmor %vm3307_vm3, %vm3308_vm13  ;;  %5140 = vrcp.f32 %v3393_v43  ;;  %vm3399_vm8 = vweird.f32 %v3393_v43 }
 0x887   : > { %v3304_v10 = vsub.f32 1.0, %v3303_v31  ;;  %v3334_v31 = vor.u32 1.1754944e-38, %v3333_v53 }
 0x888   : > { %v3271_v45 = vmul.f32 %v5137_v8, %v3270_v44 }
 0x889   : > { %v3305_v62 = vmul.f32 %v5139_v15, %v3304_v10  ;;  %v3335_v29 = vsel %vm3332_vm7, %v3334_v31, %v3330_v48  ;;  %v8086_v10 = vld [vmem:[#allocation108_spill] sm:$0xff] }
 0x88a   : > { %v3272_v24 = vadd.f32 %v5137_v8, %v3271_v45 }
 0x88b   : > { %v3306_v38 = vadd.f32 %v5139_v15, %v3305_v62 }
 0x88c   : > { %v3276_v40 = vsel %vm3275_vm2, %v5137_v8, %v3272_v24  ;;  %v5141_v55 = vpop.eup %5140 }
 0x88d   : > { %v3281_v6 = vsel %vm3278_vm4, %v3280_v23, %v3276_v40  ;;  %v3310_v3 = vsel %vm3309_vm5, %v5139_v15, %v3306_v38  ;;  %v3395_v33 = vmul.f32 %v5141_v55, %v3393_v43  ;;  %vm3400_vm9 = vweird.f32 %v5141_v55 }
 0x88e   : > { %4944 = vpush %v3281_v6  ;;  %v3315_v44 = vsel %vm3312_vm6, %v3314_v27, %v3310_v3  ;;  %vm7215_vm13 = vmor %vm3399_vm8, %vm3400_vm9 }
 0x88f   : > { %4946 = vpush %v3315_v44  ;;  %v3396_v34 = vsub.f32 1.0, %v3395_v33 }
 0x890   : > { %4948 = vpush %v3335_v29  ;;  %v3405_v29 = vand.u32 2147483648, %v3393_v43 }
 0x891   : > { %v3397_v24 = vmul.f32 %v5141_v55, %v3396_v34 }
 0x893   : > { %v3398_v27 = vadd.f32 %v5141_v55, %v3397_v24 }
 0x8bf   : > { %s4945_s21 = spop %4944 }
 0x8c0   : > { %v4368_v8 = vstv %s4945_s21  ;;  %s4947_s1 = spop %4946 }
 0x8c1   : > { %v7205_v36 = vmul.f32 %v4368_v8, %v8086_v10  ;;  %v4370_v15 = vstv %s4947_s1  ;;  %s4949_s8 = spop %4948 }
 0x8c2   : > { %v7208_v12 = vmul.f32 %v4370_v15, %v6564_v11  ;;  %s3337_s10 = smul.f32 %s4949_s8, %s8084_s24  ;;  %v3403_v15 = vand.u32 2147483647, %v3393_v43 }
 0x8c3   : > { %s3371_s6 = smul.f32 %s4949_s8, %s8085_s27 }
 0x8c4   : > { %s3338_s12 = sadd.f32 1e-08, %s3337_s10  ;;  %vm3404_vm5 = vcmp.eq.f32.partialorder %v3403_v15, 8.507059e+37  ;;  %v8161_v60 = vsub.f32 %v7205_v36, %v7208_v12 }
 0x8c5   : > { %s3372_s14 = sadd.f32 1e-08, %s3371_s6 }
 0x8c6   : > { %v3339_v58 = vstv %s3338_s12  ;;  %s8089_s12 = sld [smem:[#allocation95_spill]]  ;;  %v4373_v16 = vand.u32 2147483647, %v8161_v60 }
 0x8c7   : > { %5142 = vrcp.f32 %v3339_v58  ;;  %v3373_v62 = vstv %s3372_s14  ;;  %v3351_v40 = vand.u32 2147483648, %v3339_v58  ;;  %v3349_v6 = vand.u32 2147483647, %v3339_v58 }
 0x8c8   : > { %5144 = vrcp.f32 %v3373_v62  ;;  %v3385_v3 = vand.u32 2147483648, %v3373_v62  ;;  %v3383_v44 = vand.u32 2147483647, %v3373_v62  ;;  %vm3345_vm12 = vweird.f32 %v3339_v58 }
 0x8c9   : > { %v3352_v33 = vor.u32 1.1754944e-38, %v3351_v40  ;;  %vm3379_vm15 = vweird.f32 %v3373_v62  ;;  %vm3350_vm2 = vcmp.eq.f32.partialorder %v3349_v6, 8.507059e+37  ;;  %v8091_v6 = vld [vmem:[#allocation34_spill] sm:$0xff] }
 0x8ca   : > { %vm3384_vm4 = vcmp.eq.f32.partialorder %v3383_v44, 8.507059e+37 }
 0x8cc   : > { %s3464_s24 = sadd.f32 1e-10, %s8089_s12 }
 0x8cd   : > { %v5143_v53 = vpop.eup %5142 }
 0x8ce   : > { %v5145_v46 = vpop.eup %5144  ;;  %v3341_v0 = vmul.f32 %v5143_v53, %v3339_v58  ;;  %vm3346_vm10 = vweird.f32 %v5143_v53 }
 0x8cf   : > { %v3375_v23 = vmul.f32 %v5145_v46, %v3373_v62  ;;  %vm3380_vm11 = vweird.f32 %v5145_v46  ;;  %vm3347_vm14 = vmor %vm3345_vm12, %vm3346_vm10  ;;  %v3465_v62 = vstv %s3464_s24 }
 0x8d0   : > { %v3342_v11 = vsub.f32 1.0, %v3341_v0  ;;  %vm3381_vm3 = vmor %vm3379_vm15, %vm3380_vm11  ;;  %v3386_v0 = vor.u32 1.1754944e-38, %v3385_v3  ;;  %5146 = vrcp.f32 %v3465_v62  ;;  %vm3471_vm6 = vweird.f32 %v3465_v62 }
 0x8d1   : > { %v3376_v38 = vsub.f32 1.0, %v3375_v23  ;;  %v3402_v23 = vsel %vm7215_vm13, %v5141_v55, %v3398_v27  ;;  %v8090_v55 = vld [vmem:[#allocation79_spill] sm:$0xff] }
 0x8d2   : > { %v3343_v48 = vmul.f32 %v5143_v53, %v3342_v11 }
 0x8d3   : > { %v3377_v31 = vmul.f32 %v5145_v46, %v3376_v38  ;;  %v3406_v38 = vor.u32 1.1754944e-38, %v3405_v29 }
 0x8d4   : > { %v3344_v8 = vadd.f32 %v5143_v53, %v3343_v48 }
 0x8d5   : > { %v3378_v34 = vadd.f32 %v5145_v46, %v3377_v31  ;;  %v3407_v43 = vsel %vm3404_vm5, %v3406_v38, %v3402_v23 }
 0x8d6   : > { %v3348_v24 = vsel %vm3347_vm14, %v5143_v53, %v3344_v8  ;;  %v5147_v40 = vpop.eup %5146 }
 0x8d7   : > { %v3353_v11 = vsel %vm3350_vm2, %v3352_v33, %v3348_v24  ;;  %v3382_v58 = vsel %vm3381_vm3, %v5145_v46, %v3378_v34  ;;  %v3467_v31 = vmul.f32 %v5147_v40, %v3465_v62  ;;  %vm3472_vm7 = vweird.f32 %v5147_v40 }
 0x8d8   : > { %4950 = vpush %v3353_v11  ;;  %v3387_v48 = vsel %vm3384_vm4, %v3386_v0, %v3382_v58  ;;  %vm7232_vm8 = vmor %vm3471_vm6, %vm3472_vm7 }
 0x8d9   : > { %4952 = vpush %v3387_v48  ;;  %v3468_v10 = vsub.f32 1.0, %v3467_v31 }
 0x8da   : > { %4954 = vpush %v3407_v43  ;;  %v3475_v43 = vand.u32 2147483647, %v3465_v62 }
 0x8db   : > { %v3469_v15 = vmul.f32 %v5147_v40, %v3468_v10 }
 0x8dc   : > { %vm3476_vm2 = vcmp.eq.f32.partialorder %v3475_v43, 8.507059e+37 }
 0x8dd   : > { %v3470_v11 = vadd.f32 %v5147_v40, %v3469_v15 }
 0x8df   : > { %v3474_v15 = vsel %vm7232_vm8, %v5147_v40, %v3470_v11 }
 0x909   : > { %s4951_s27 = spop %4950 }
 0x90a   : > { %v4400_v53 = vstv %s4951_s27  ;;  %s4953_s21 = spop %4952 }
 0x90b   : > { %v7223_v27 = vmul.f32 %v4400_v53, %v8090_v55  ;;  %v4402_v46 = vstv %s4953_s21  ;;  %s4955_s1 = spop %4954  ;;  %v3477_v53 = vand.u32 2147483648, %v3465_v62 }
 0x90c   : > { %v7226_v3 = vmul.f32 %v4402_v46, %v8091_v6  ;;  %s3409_s8 = smul.f32 %s4955_s1, %s6944_s17  ;;  %s8094_s17 = sld [smem:[#allocation76_spill]] }
 0x90d   : > { %s3443_s10 = smul.f32 %s4955_s1, %s6946_s13  ;;  %v3478_v62 = vor.u32 1.1754944e-38, %v3477_v53 }
 0x90e   : > { %s3410_s6 = sadd.f32 1e-08, %s3409_s8 }
 0x90f   : > { %s3444_s14 = sadd.f32 1e-08, %s3443_s10  ;;  %v3479_v40 = vsel %vm3476_vm2, %v3478_v62, %v3474_v15 }
 0x910   : > { %v3411_v29 = vstv %s3410_s6 }
 0x911   : > { %5148 = vrcp.f32 %v3411_v29  ;;  %v3445_v8 = vstv %s3444_s14  ;;  %v3423_v38 = vand.u32 2147483648, %v3411_v29  ;;  %v3421_v46 = vand.u32 2147483647, %v3411_v29  ;;  %s8101_s14 = sld [smem:[#allocation113_spill]] }
 0x912   : > { %5150 = vrcp.f32 %v3445_v8  ;;  %v3457_v6 = vand.u32 2147483648, %v3445_v8  ;;  %v3455_v10 = vand.u32 2147483647, %v3445_v8  ;;  %vm3417_vm11 = vweird.f32 %v3411_v29  ;;  %s3534_s13 = sadd.f32 %s8016_s11, %s8094_s17 }
 0x913   : > { %vm3451_vm13 = vweird.f32 %v3445_v8  ;;  %vm3422_vm14 = vcmp.eq.f32.partialorder %v3421_v46, 8.507059e+37  ;;  %s8102_s17 = sld [smem:[#allocation115_spill]] }
 0x914   : > { %v3458_v50 = vor.u32 1.1754944e-38, %v3457_v6  ;;  %vm3456_vm3 = vcmp.eq.f32.partialorder %v3455_v10, 8.507059e+37  ;;  %s3535_s24 = sadd.f32 %s8021_s2, %s3534_s13 }
 0x915   : > { %s8103_s13 = sld [smem:[#allocation124_spill]] }
 0x916   : > { %s3544_s27 = sadd.f32 1e-10, %s3535_s24 }
 0x917   : > { %v5149_v33 = vpop.eup %5148  ;;  %s8104_s24 = sld [smem:[#allocation125_spill]] }
 0x918   : > { %v5151_v34 = vpop.eup %5150  ;;  %v3413_v24 = vmul.f32 %v5149_v33, %v3411_v29  ;;  %vm3418_vm9 = vweird.f32 %v5149_v33 }
 0x919   : > { %v3447_v0 = vmul.f32 %v5151_v34, %v3445_v8  ;;  %vm3452_vm10 = vweird.f32 %v5151_v34  ;;  %vm3419_vm12 = vmor %vm3417_vm11, %vm3418_vm9  ;;  %v3545_v8 = vstv %s3544_s27  ;;  %s8105_s27 = sld [smem:[#allocation128_spill]] }
 0x91a   : > { %v3414_v23 = vsub.f32 1.0, %v3413_v24  ;;  %v3424_v24 = vor.u32 1.1754944e-38, %v3423_v38  ;;  %vm3453_vm15 = vmor %vm3451_vm13, %vm3452_vm10  ;;  %5152 = vrcp.f32 %v3545_v8  ;;  %vm3551_vm4 = vweird.f32 %v3545_v8 }
 0x91b   : > { %v3448_v58 = vsub.f32 1.0, %v3447_v0 }
 0x91c   : > { %v3415_v55 = vmul.f32 %v5149_v33, %v3414_v23 }
 0x91d   : > { %v3449_v31 = vmul.f32 %v5151_v34, %v3448_v58 }
 0x91e   : > { %v3416_v52 = vadd.f32 %v5149_v33, %v3415_v55 }
 0x91f   : > { %v3450_v0 = vadd.f32 %v5151_v34, %v3449_v31 }
 0x920   : > { %v3420_v23 = vsel %vm3419_vm12, %v5149_v33, %v3416_v52  ;;  %v8095_v33 = vld [vmem:[#allocation87_spill] sm:$0xff]  ;;  %v5153_v38 = vpop.eup %5152 }
 0x921   : > { %v3425_v58 = vsel %vm3422_vm14, %v3424_v24, %v3420_v23  ;;  %v3454_v45 = vsel %vm3453_vm15, %v5151_v34, %v3450_v0  ;;  %v3547_v43 = vmul.f32 %v5153_v38, %v3545_v8  ;;  %vm3552_vm5 = vweird.f32 %v5153_v38 }
 0x922   : > { %4956 = vpush %v3425_v58  ;;  %v3459_v29 = vsel %vm3456_vm3, %v3458_v50, %v3454_v45  ;;  %v8096_v50 = vld [vmem:[#allocation40_spill] sm:$0xff]  ;;  %vm7252_vm9 = vmor %vm3551_vm4, %vm3552_vm5 }
 0x923   : > { %4958 = vpush %v3459_v29  ;;  %v3548_v46 = vsub.f32 1.0, %v3547_v43 }
 0x924   : > { %4960 = vpush %v3479_v40 }
 0x925   : > { %v3549_v31 = vmul.f32 %v5153_v38, %v3548_v46 }
 0x927   : > { %v3550_v58 = vadd.f32 %v5153_v38, %v3549_v31 }
 0x953   : > { %s4957_s21 = spop %4956 }
 0x954   : > { %v4434_v52 = vstv %s4957_s21  ;;  %s4959_s1 = spop %4958  ;;  %s8106_s21 = sld [smem:[#allocation129_spill]] }
 0x955   : > { %v7242_v11 = vmul.f32 %v4434_v52, %v8095_v33  ;;  %v4436_v34 = vstv %s4959_s1  ;;  %s4961_s8 = spop %4960  ;;  %s3613_s1 = sadd.f32 %s6116_s9, %s6103_s25 }
 0x956   : > { %v7245_v45 = vmul.f32 %v4436_v34, %v8096_v50  ;;  %s3481_s10 = smul.f32 %s4961_s8, %s6963_s26  ;;  %v3557_v50 = vand.u32 2147483648, %v3545_v8  ;;  %s8099_s26 = sld [smem:[#allocation112_spill]] }
 0x957   : > { %s3515_s6 = smul.f32 %s4961_s8, %s6965_s16  ;;  %s8100_s16 = sld [smem:[#allocation114_spill]] }
 0x958   : > { %s3482_s11 = sadd.f32 1e-08, %s3481_s10 }
 0x959   : > { %s3516_s2 = sadd.f32 1e-08, %s3515_s6 }
 0x95a   : > { %v3483_v53 = vstv %s3482_s11  ;;  %s3614_s8 = sadd.f32 %s8027_s15, %s3613_s1 }
 0x95b   : > { %5154 = vrcp.f32 %v3483_v53  ;;  %v3517_v55 = vstv %s3516_s2  ;;  %v3495_v23 = vand.u32 2147483648, %v3483_v53  ;;  %v3493_v40 = vand.u32 2147483647, %v3483_v53  ;;  %s3541_s2 = sadd.f32 %s8102_s17, %s8101_s14 }
 0x95c   : > { %5156 = vrcp.f32 %v3517_v55  ;;  %v3529_v52 = vand.u32 2147483648, %v3517_v55  ;;  %v3527_v34 = vand.u32 2147483647, %v3517_v55  ;;  %vm3489_vm8 = vweird.f32 %v3483_v53  ;;  %s3615_s10 = sadd.f32 %s8034_s3, %s3614_s8 }
 0x95d   : > { %vm3523_vm11 = vweird.f32 %v3517_v55  ;;  %vm3494_vm12 = vcmp.eq.f32.partialorder %v3493_v40, 8.507059e+37  ;;  %s3537_s11 = sadd.f32 %s8100_s16, %s8099_s26 }
 0x95e   : > { %vm3528_vm14 = vcmp.eq.f32.partialorder %v3527_v34, 8.507059e+37  ;;  %s3624_s6 = sadd.f32 1e-10, %s3615_s10 }
 0x95f   : > { %s3538_s5 = sadd.f32 %s8103_s13, %s3537_s11 }
 0x960   : > { %s3542_s22 = sadd.f32 %s8104_s24, %s3541_s2 }
 0x961   : > { %v5155_v6 = vpop.eup %5154  ;;  %s3539_s23 = sadd.f32 %s8105_s27, %s3538_s5 }
 0x962   : > { %v5157_v10 = vpop.eup %5156  ;;  %v3485_v15 = vmul.f32 %v5155_v6, %v3483_v53  ;;  %vm3490_vm6 = vweird.f32 %v5155_v6  ;;  %v3554_v53 = vsel %vm7252_vm9, %v5153_v38, %v3550_v58  ;;  %v7262_v38 = vstv %s3624_s6  ;;  %s3543_s12 = sadd.f32 %s8106_s21, %s3542_s22 }
 0x963   : > { %v3519_v24 = vmul.f32 %v5157_v10, %v3517_v55  ;;  %vm3524_vm7 = vweird.f32 %v5157_v10  ;;  %vm3491_vm10 = vmor %vm3489_vm8, %vm3490_vm6  ;;  %5158 = vrcp.f32 %v7262_v38  ;;  %vm3631_vm2 = vweird.f32 %v7262_v38  ;;  %s8113_s22 = sld [smem:[#allocation117_spill]] }
 0x964   : > { %v3486_v0 = vsub.f32 1.0, %v3485_v15  ;;  %v3555_v15 = vand.u32 2147483647, %v3545_v8  ;;  %vm3525_vm13 = vmor %vm3523_vm11, %vm3524_vm7  ;;  %v3558_v8 = vor.u32 1.1754944e-38, %v3557_v50  ;;  %s8115_s5 = sld [smem:[#allocation132_spill]] }
 0x965   : > { %v3520_v62 = vsub.f32 1.0, %v3519_v24  ;;  %v3496_v24 = vor.u32 1.1754944e-38, %v3495_v23  ;;  %s8117_s16 = sld [smem:[#allocation136_spill]] }
 0x966   : > { %v3487_v29 = vmul.f32 %v5155_v6, %v3486_v0  ;;  %vm3556_vm15 = vcmp.eq.f32.partialorder %v3555_v15, 8.507059e+37  ;;  %s8118_s14 = sld [smem:[#allocation137_spill]] }
 0x967   : > { %v3521_v33 = vmul.f32 %v5157_v10, %v3520_v62  ;;  %v3530_v62 = vor.u32 1.1754944e-38, %v3529_v52  ;;  %v8108_v52 = vld [vmem:[#allocation44_spill] sm:$0xff]  ;;  %s3693_s17 = sadd.f32 %s8048_s19, %s8041_s7 }
 0x968   : > { %v3488_v43 = vadd.f32 %v5155_v6, %v3487_v29 }
 0x969   : > { %v3522_v31 = vadd.f32 %v5157_v10, %v3521_v33  ;;  %v5159_v40 = vpop.eup %5158  ;;  %s3694_s13 = sadd.f32 %s8069_s28, %s3693_s17 }
 0x96a   : > { %v3492_v0 = vsel %vm3491_vm10, %v5155_v6, %v3488_v43  ;;  %v3559_v6 = vsel %vm3556_vm15, %v3558_v8, %v3554_v53  ;;  %v3627_v50 = vmul.f32 %v5159_v40, %v7262_v38  ;;  %vm3632_vm3 = vweird.f32 %v5159_v40 }
 0x96b   : > { %v3497_v29 = vsel %vm3494_vm12, %v3496_v24, %v3492_v0  ;;  %v3526_v48 = vsel %vm3525_vm13, %v5157_v10, %v3522_v31  ;;  %v8107_v10 = vld [vmem:[#allocation96_spill] sm:$0xff]  ;;  %vm7286_vm7 = vmor %vm3631_vm2, %vm3632_vm3  ;;  %s3695_s24 = sadd.f32 %s8076_s29, %s3694_s13 }
 0x96c   : > { %4962 = vpush %v3497_v29  ;;  %v3531_v55 = vsel %vm3528_vm14, %v3530_v62, %v3526_v48  ;;  %v3628_v15 = vsub.f32 1.0, %v3627_v50  ;;  %v3637_v50 = vand.u32 2147483648, %v7262_v38 }
 0x96d   : > { %4964 = vpush %v3531_v55  ;;  %s3704_s27 = sadd.f32 1e-10, %s3695_s24 }
 0x96e   : > { %4966 = vpush %v3559_v6  ;;  %v3629_v31 = vmul.f32 %v5159_v40, %v3628_v15 }
 0x970   : > { %v3630_v6 = vadd.f32 %v5159_v40, %v3629_v31  ;;  %v3635_v31 = vand.u32 2147483647, %v7262_v38  ;;  %v3638_v38 = vor.u32 1.1754944e-38, %v3637_v50 }
 0x972   : > { %vm3636_vm13 = vcmp.eq.f32.partialorder %v3635_v31, 8.507059e+37 }
 0x99d   : > { %s4963_s30 = spop %4962 }
 0x99e   : > { %v4468_v48 = vstv %s4963_s30  ;;  %s4965_s0 = spop %4964  ;;  %s8114_s30 = sld [smem:[#allocation121_spill]] }
 0x99f   : > { %v7274_v23 = vmul.f32 %v4468_v48, %v8107_v10  ;;  %v4470_v58 = vstv %s4965_s0  ;;  %s4967_s25 = spop %4966  ;;  %s8111_s0 = sld [smem:[#allocation116_spill]] }
 0x9a0   : > { %v7277_v33 = vmul.f32 %v4470_v58, %v8108_v52  ;;  %s3561_s9 = smul.f32 %s4967_s25, %s3539_s23  ;;  %s8112_s23 = sld [smem:[#allocation120_spill]] }
 0x9a1   : > { %s3595_s15 = smul.f32 %s4967_s25, %s3543_s12  ;;  %s8116_s12 = sld [smem:[#allocation133_spill]] }
 0x9a2   : > { %s3562_s3 = sadd.f32 1e-08, %s3561_s9 }
 0x9a3   : > { %s3596_s26 = sadd.f32 1e-08, %s3595_s15 }
 0x9a4   : > { %v3563_v43 = vstv %s3562_s3  ;;  %s3621_s1 = sadd.f32 %s8114_s30, %s8113_s22 }
 0x9a5   : > { %5160 = vrcp.f32 %v3563_v43  ;;  %v3597_v46 = vstv %s3596_s26  ;;  %v3575_v55 = vand.u32 2147483648, %v3563_v43  ;;  %v3573_v10 = vand.u32 2147483647, %v3563_v43  ;;  %s8127_s15 = sld [smem:[#allocation95_spill]] }
 0x9a6   : > { %5162 = vrcp.f32 %v3597_v46  ;;  %v3609_v58 = vand.u32 2147483648, %v3597_v46  ;;  %v3607_v34 = vand.u32 2147483647, %v3597_v46  ;;  %vm3569_vm6 = vweird.f32 %v3563_v43  ;;  %s3617_s21 = sadd.f32 %s8112_s23, %s8111_s0 }
 0x9a7   : > { %vm3603_vm9 = vweird.f32 %v3597_v46  ;;  %vm3574_vm10 = vcmp.eq.f32.partialorder %v3573_v10, 8.507059e+37  ;;  %s3622_s10 = sadd.f32 %s8116_s12, %s3621_s1 }
 0x9a8   : > { %vm3608_vm12 = vcmp.eq.f32.partialorder %v3607_v34, 8.507059e+37  ;;  %s3618_s8 = sadd.f32 %s8115_s5, %s3617_s21 }
 0x9a9   : > { %s3623_s25 = sadd.f32 %s8118_s14, %s3622_s10 }
 0x9aa   : > { %s3619_s11 = sadd.f32 %s8117_s16, %s3618_s8 }
 0x9ab   : > { %v5161_v24 = vpop.eup %5160  ;;  %s3773_s3 = sadd.f32 %s8062_s20, %s8055_s18 }
 0x9ac   : > { %v5163_v0 = vpop.eup %5162  ;;  %v3565_v62 = vmul.f32 %v5161_v24, %v3563_v43  ;;  %vm3570_vm4 = vweird.f32 %v5161_v24  ;;  %v3610_v43 = vor.u32 1.1754944e-38, %v3609_v58  ;;  %v8122_v58 = vld [vmem:[#allocation33_spill] sm:$0xff]  ;;  %s8128_s22 = sld [smem:[#allocation152_spill]] }
 0x9ad   : > { %v3599_v53 = vmul.f32 %v5163_v0, %v3597_v46  ;;  %vm3604_vm5 = vweird.f32 %v5163_v0  ;;  %vm3571_vm8 = vmor %vm3569_vm6, %vm3570_vm4  ;;  %s3774_s26 = sadd.f32 %s8083_s4, %s3773_s3 }
 0x9ae   : > { %v3566_v29 = vsub.f32 1.0, %v3565_v62  ;;  %vm3605_vm11 = vmor %vm3603_vm9, %vm3604_vm5  ;;  %v8123_v62 = vld [vmem:[#allocation39_spill] sm:$0xff]  ;;  %s8129_s30 = sld [smem:[#allocation148_spill]] }
 0x9af   : > { %v3600_v8 = vsub.f32 1.0, %v3599_v53  ;;  %v3576_v53 = vor.u32 1.1754944e-38, %v3575_v55  ;;  %s3775_s0 = sadd.f32 %s8127_s15, %s3774_s26 }
 0x9b0   : > { %v3567_v48 = vmul.f32 %v5161_v24, %v3566_v29  ;;  %s8130_s12 = sld [smem:[#allocation153_spill]] }
 0x9b1   : > { %v3601_v52 = vmul.f32 %v5163_v0, %v3600_v8  ;;  %s3784_s23 = sadd.f32 1e-10, %s3775_s0 }
 0x9b2   : > { %v3568_v15 = vadd.f32 %v5161_v24, %v3567_v48  ;;  %v3634_v48 = vsel %vm7286_vm7, %v5159_v40, %v3630_v6  ;;  %v7297_v40 = vstv %s3704_s27  ;;  %v8121_v6 = vld [vmem:[#allocation69_spill] sm:$0xff]  ;;  %s8131_s16 = sld [smem:[#allocation149_spill]] }
 0x9b3   : > { %v3602_v29 = vadd.f32 %v5163_v0, %v3601_v52  ;;  %5164 = vrcp.f32 %v7297_v40  ;;  %v3717_v30 = vand.u32 2147483648, %v7297_v40  ;;  %vm3711_vm5 = vweird.f32 %v7297_v40  ;;  %s8144_s21 = sld [smem:[#allocation97_spill]] }
 0x9b4   : > { %v3572_v8 = vsel %vm3571_vm8, %v5161_v24, %v3568_v15  ;;  %v3639_v24 = vsel %vm3636_vm13, %v3638_v38, %v3634_v48  ;;  %v8126_v48 = vld [vmem:[#allocation59_spill] sm:$0xff]  ;;  %s8140_s4 = sadd.f32 %s8128_s22, %s8129_s30 }
 0x9b5   : > { %v3577_v32 = vsel %vm3574_vm10, %v3576_v53, %v3572_v8  ;;  %v3606_v44 = vsel %vm3605_vm11, %v5163_v0, %v3602_v29  ;;  %v8120_v0 = vld [vmem:[#allocation11_spill] sm:$0xff]  ;;  %v8124_v53 = vld [vmem:[#allocation21_spill] sm:$0xff]  ;;  %v8125_v8 = vld [vmem:[#allocation100_spill] sm:$0xff]  ;;  %s8145_s1 = sld [smem:[#allocation158_spill]] }
 0x9b6   : > { %4968 = vpush %v3577_v32  ;;  %v3611_v46 = vsel %vm3608_vm12, %v3610_v43, %v3606_v44  ;;  %v8119_v44 = vld [vmem:[#allocation37_spill] sm:$0xff]  ;;  %s8146_s8 = sld [smem:[#allocation154_spill]] }
 0x9b7   : > { %4970 = vpush %v3611_v46  ;;  %s8162_s26 = sld [smem:[#allocation160_spill]] }
 0x9b8   : > { %4972 = vpush %v3639_v24  ;;  %s8141_s17 = sadd.f32 %s8130_s12, %s8131_s16 }
 0x9b9   : > { %v7312_v15 = vpop.eup %5164  ;;  %s3899_s10 = sadd.f32 1e-10, %s8144_s21  ;;  %s8193_s21 = smov 116  }
 0x9ba   : > { %vm3712_vm2 = vweird.f32 %v7312_v15  ;;  %s8163_s0 = sld [smem:[#allocation156_spill]] }
 0x9bb   : > { %vm3713_vm8 = vmor %vm3711_vm5, %vm3712_vm2  ;;  %s8165_s22 = sld [smem:[#allocation157_spill]] }
 0x9c0   : > { %s8174_s16 = sadd.f32 %s8162_s26, %s8163_s0 }
 0x9e7   : > { %s4969_s6 = spop %4968 }
 0x9e8   : > { %v3975_v32 = vstv %s4969_s6  ;;  %s4971_s2 = spop %4970  ;;  %s8147_s6 = sld [smem:[#allocation159_spill]] }
 0x9e9   : > { %v3976_v34 = vmul.f32 %v3975_v32, %v8119_v44  ;;  %v4008_v55 = vmul.f32 %v3975_v32, %v8120_v0  ;;  %v4109_v10 = vmul.f32 %v3975_v32, %v8121_v6  ;;  %v4141_v52 = vmul.f32 %v3975_v32, %v8122_v58  ;;  %s4973_s7 = spop %4972 }
 0x9ea   : > { %v3977_v50 = vstv %s4971_s2  ;;  %s3641_s19 = smul.f32 %s4973_s7, %s3619_s11  ;;  %v4006_v32 = vand.u32 2147483647, %v4005_v14  ;;  %v3707_v58 = vmul.f32 %v7312_v15, %v7297_v40  ;;  %s8148_s11 = sld [smem:[#allocation155_spill]] }
 0x9eb   : > { %v3978_v31 = vmul.f32 %v3977_v50, %v8123_v62  ;;  %v4009_v29 = vmul.f32 %v3977_v50, %v8124_v53  ;;  %v4110_v43 = vmul.f32 %v3977_v50, %v8125_v8  ;;  %v4142_v38 = vmul.f32 %v3977_v50, %v8126_v48  ;;  %s3675_s28 = smul.f32 %s4973_s7, %s3623_s25 }
 0x9ec   : > { %s3642_s29 = sadd.f32 1e-08, %s3641_s19  ;;  %v3708_v50 = vsub.f32 1.0, %v3707_v58  ;;  %v3715_v58 = vand.u32 2147483647, %v7297_v40 }
 0x9ed   : > { %v3979_v46 = vsub.f32 %v3976_v34, %v3978_v31  ;;  %v4010_v24 = vsub.f32 %v4008_v55, %v4009_v29  ;;  %v4111_v44 = vsub.f32 %v4109_v10, %v4110_v43  ;;  %v4143_v0 = vsub.f32 %v4141_v52, %v4142_v38  ;;  %s3676_s9 = sadd.f32 1e-08, %s3675_s28 }
 0x9ee   : > { %v3643_v6 = vstv %s3642_s29  ;;  %v4139_v34 = vand.u32 2147483647, %v4138_v47  ;;  %v3973_v52 = vand.u32 2147483647, %v3972_v54  ;;  %v3709_v1 = vmul.f32 %v7312_v15, %v3708_v50  ;;  %v8132_v50 = vld [vmem:[#allocation26_spill] sm:$0xff]  ;;  %s8153_s19 = sadd.f32 %s8145_s1, %s8146_s8  ;;  %s8194_s1 = smov 120  }
 0x9ef   : > { %v3980_v62 = vand.u32 2147483647, %v3979_v46  ;;  %v4011_v53 = vand.u32 2147483647, %v4010_v24  ;;  %v4112_v8 = vand.u32 2147483647, %v4111_v44  ;;  %5166 = vrcp.f32 %v3643_v6 }
 0x9f0   : > { %v4144_v55 = vand.u32 2147483647, %v4143_v0  ;;  %v3677_v10 = vstv %s3676_s9  ;;  %v3655_v43 = vand.u32 2147483648, %v3643_v6  ;;  %v3653_v48 = vand.u32 2147483647, %v3643_v6  ;;  %s8158_s29 = sadd.f32 %s8147_s6, %s8148_s11  ;;  %s8197_s8 = smov 124  }
 0x9f1   : > { %v7332_v56 = vadd.f32 %v4011_v53, %v4006_v32  ;;  %5168 = vrcp.f32 %v3677_v10  ;;  %v7336_v31 = vadd.f32 %v3980_v62, %v3973_v52  ;;  %v7338_v35 = vadd.f32 %v4112_v8, %v4107_v37 }
 0x9f2   : > { %v7334_v14 = vadd.f32 %v4144_v55, %v4139_v34  ;;  %vm3649_vm15 = vweird.f32 %v3643_v6  ;;  %v3689_v38 = vand.u32 2147483648, %v3677_v10  ;;  %v3710_v46 = vadd.f32 %v7312_v15, %v3709_v1  ;;  %v8134_v1 = vld [vmem:[#allocation38_spill] sm:$0xff] }
 0x9f3   : > { %v3687_v0 = vand.u32 2147483647, %v3677_v10  ;;  %v3656_v32 = vor.u32 1.1754944e-38, %v3655_v43  ;;  %vm3654_vm6 = vcmp.eq.f32.partialorder %v3653_v48, 8.507059e+37  ;;  %vm3683_vm7 = vweird.f32 %v3677_v10 }
 0x9f4   : > { %v3690_v8 = vor.u32 1.1754944e-38, %v3689_v38  ;;  %v3714_v34 = vsel %vm3713_vm8, %v7312_v15, %v3710_v46  ;;  %v3718_v52 = vor.u32 1.1754944e-38, %v3717_v30  ;;  %vm3716_vm11 = vcmp.eq.f32.partialorder %v3715_v58, 8.507059e+37  ;;  %v8137_v38 = vld [vmem:[#allocation55_spill] sm:$0xff] }
 0x9f5   : > { %v5167_v51 = vpop.eup %5166  ;;  %vm3688_vm10 = vcmp.eq.f32.partialorder %v3687_v0, 8.507059e+37  ;;  %v8139_v0 = vld [vmem:[#allocation67_spill] sm:$0xff]  ;;  %v4039_v58 = vand.u32 2147483647, %v4038_v18 }
 0x9f6   : > { %v3645_v47 = vmul.f32 %v5167_v51, %v3643_v6  ;;  %vm3650_vm14 = vweird.f32 %v5167_v51  ;;  %v3719_v40 = vsel %vm3716_vm11, %v3718_v52, %v3714_v34  ;;  %v4074_v34 = vand.u32 2147483647, %v4073_v61 }
 0x9f7   : > { %v5169_v29 = vpop.eup %5168  ;;  %vm3651_vm4 = vmor %vm3649_vm15, %vm3650_vm14 }
 0x9f8   : > { %v3646_v13 = vsub.f32 1.0, %v3645_v47  ;;  %v3679_v54 = vmul.f32 %v5169_v29, %v3677_v10  ;;  %vm3684_vm3 = vweird.f32 %v5169_v29  ;;  %v7351_v10 = vstv %s3784_s23  ;;  %v8133_v47 = vld [vmem:[#allocation30_spill] sm:$0xff]  ;;  %s8164_s23 = sld [smem:[#allocation161_spill]] }
 0x9f9   : > { %vm3685_vm9 = vmor %vm3683_vm7, %vm3684_vm3  ;;  %5170 = vrcp.f32 %v7351_v10  ;;  %vm3791_vm12 = vweird.f32 %v7351_v10 }
 0x9fa   : > { %v3680_v57 = vsub.f32 1.0, %v3679_v54  ;;  %v3647_v19 = vmul.f32 %v5167_v51, %v3646_v13  ;;  %v8135_v54 = vld [vmem:[#allocation43_spill] sm:$0xff] }
 0x9fc   : > { %v3648_v24 = vadd.f32 %v5167_v51, %v3647_v19  ;;  %v3681_v44 = vmul.f32 %v5169_v29, %v3680_v57  ;;  %v8136_v19 = vld [vmem:[#allocation51_spill] sm:$0xff] }
 0x9fe   : > { %v3652_v62 = vsel %vm3651_vm4, %v5167_v51, %v3648_v24  ;;  %v3682_v53 = vadd.f32 %v5169_v29, %v3681_v44  ;;  %v8138_v24 = vld [vmem:[#allocation63_spill] sm:$0xff] }
 0x9ff   : > { %v3657_v6 = vsel %vm3654_vm6, %v3656_v32, %v3652_v62  ;;  %v7358_v57 = vpop.eup %5170 }
 0xa00   : > { %4974 = vpush %v3657_v6  ;;  %v3686_v55 = vsel %vm3685_vm9, %v5169_v29, %v3682_v53  ;;  %v3787_v4 = vmul.f32 %v7358_v57, %v7351_v10  ;;  %vm3792_vm13 = vweird.f32 %v7358_v57 }
 0xa01   : > { %v3691_v37 = vsel %vm3688_vm10, %v3690_v8, %v3686_v55  ;;  %v4173_v55 = vand.u32 2147483647, %v4172_v41  ;;  %vm7399_vm3 = vmor %vm3791_vm12, %vm3792_vm13 }
 0xa02   : > { %4976 = vpush %v3691_v37  ;;  %v3788_v41 = vsub.f32 1.0, %v3787_v4  ;;  %v7408_v4 = vstv %s3899_s10 }
 0xa03   : > { %4978 = vpush %v3719_v40  ;;  %v4207_v40 = vand.u32 2147483647, %v4206_v59 }
 0xa31   : > { %s4975_s5 = spop %4974 }
 0xa32   : > { %v4041_v15 = vstv %s4975_s5 }
 0xa33   : > { %v4042_v51 = vmul.f32 %v4041_v15, %v8132_v50  ;;  %v4076_v29 = vmul.f32 %v4041_v15, %v8133_v47  ;;  %v4175_v13 = vmul.f32 %v4041_v15, %v8134_v1  ;;  %v4209_v43 = vmul.f32 %v4041_v15, %v8135_v54  ;;  %s4977_s18 = spop %4976 }
 0xa34   : > { %v4043_v30 = vstv %s4977_s18  ;;  %s4979_s20 = spop %4978 }
 0xa35   : > { %v4044_v48 = vmul.f32 %v4043_v30, %v8136_v19  ;;  %v4077_v46 = vmul.f32 %v4043_v30, %v8137_v38  ;;  %v4176_v44 = vmul.f32 %v4043_v30, %v8138_v24  ;;  %v4210_v32 = vmul.f32 %v4043_v30, %v8139_v0  ;;  %s3721_s14 = smul.f32 %s4979_s20, %s8140_s4 }
 0xa36   : > { %s3755_s13 = smul.f32 %s4979_s20, %s8141_s17  ;;  %v3797_v38 = vand.u32 2147483648, %v7351_v10  ;;  %s8176_s20 = sadd.f32 %s8164_s23, %s8165_s22 }
 0xa37   : > { %v4045_v62 = vsub.f32 %v4042_v51, %v4044_v48  ;;  %v4078_v53 = vsub.f32 %v4076_v29, %v4077_v46  ;;  %v4177_v6 = vsub.f32 %v4175_v13, %v4176_v44  ;;  %v4211_v8 = vsub.f32 %v4209_v43, %v4210_v32  ;;  %s3722_s24 = sadd.f32 1e-08, %s3721_s14 }
 0xa38   : > { %s3756_s27 = sadd.f32 1e-08, %s3755_s13  ;;  %v3789_v51 = vmul.f32 %v7358_v57, %v3788_v41  ;;  %v3795_v44 = vand.u32 2147483647, %v7351_v10 }
 0xa39   : > { %v4046_v63 = vand.u32 2147483647, %v4045_v62  ;;  %v4079_v18 = vand.u32 2147483647, %v4078_v53  ;;  %v4178_v52 = vand.u32 2147483647, %v4177_v6  ;;  %v3723_v37 = vstv %s3722_s24 }
 0xa3a   : > { %v4212_v15 = vand.u32 2147483647, %v4211_v8  ;;  %5172 = vrcp.f32 %v3723_v37  ;;  %v3757_v42 = vstv %s3756_s27  ;;  %v3735_v1 = vand.u32 2147483648, %v3723_v37  ;;  %s8187_s27 = sld [smem:[#allocation10_spill]] }
 0xa3b   : > { %v7384_v28 = vadd.f32 %v4046_v63, %v4039_v58  ;;  %v7386_v61 = vadd.f32 %v4079_v18, %v4074_v34  ;;  %v7388_v20 = vadd.f32 %v4178_v52, %v4173_v55  ;;  %5174 = vrcp.f32 %v3757_v42  ;;  %v8149_v63 = vld [vmem:[#allocation88_spill] sm:$0xff]  ;;  %v8150_v52 = vld [vmem:[#allocation47_spill] sm:$0xff]  ;;  %s8215_s22 = sld [smem:[#allocation9_spill]] }
 0xa3c   : > { %v7390_v9 = vadd.f32 %v4212_v15, %v4207_v40  ;;  %v3790_v13 = vadd.f32 %v7358_v57, %v3789_v51  ;;  %v3733_v43 = vand.u32 2147483647, %v3723_v37  ;;  %v3769_v30 = vand.u32 2147483648, %v3757_v42  ;;  %v8151_v40 = vld [vmem:[#allocation102_spill] sm:$0xff] }
 0xa3d   : > { %v3767_v48 = vand.u32 2147483647, %v3757_v42  ;;  %vm3729_vm2 = vweird.f32 %v3723_v37  ;;  %v3736_v0 = vor.u32 1.1754944e-38, %v3735_v1  ;;  %vm3763_vm5 = vweird.f32 %v3757_v42 }
 0xa3e   : > { %vm3734_vm6 = vcmp.eq.f32.partialorder %v3733_v43, 8.507059e+37  ;;  %v3770_v62 = vor.u32 1.1754944e-38, %v3769_v30  ;;  %v3794_v53 = vsel %vm7399_vm3, %v7358_v57, %v3790_v13  ;;  %v3798_v34 = vor.u32 1.1754944e-38, %v3797_v38  ;;  %v8157_v13 = vld [vmem:[#allocation83_spill] sm:$0xff] }
 0xa3f   : > { %vm3768_vm8 = vcmp.eq.f32.partialorder %v3767_v48, 8.507059e+37  ;;  %vm3796_vm9 = vcmp.eq.f32.partialorder %v3795_v44, 8.507059e+37  ;;  %5176 = vrcp.f32 %v7408_v4  ;;  %v4272_v38 = vand.u32 2147483647, %v4271_v5 }
 0xa40   : > { %v5173_v50 = vpop.eup %5172  ;;  %v3799_v10 = vsel %vm3796_vm9, %v3798_v34, %v3794_v53 }
 0xa41   : > { %v5175_v47 = vpop.eup %5174  ;;  %v3725_v29 = vmul.f32 %v5173_v50, %v3723_v37  ;;  %vm3730_vm14 = vweird.f32 %v5173_v50 }
 0xa42   : > { %v3759_v26 = vmul.f32 %v5175_v47, %v3757_v42  ;;  %vm3764_vm15 = vweird.f32 %v5175_v47  ;;  %vm3731_vm4 = vmor %vm3729_vm2, %vm3730_vm14  ;;  %v8152_v42 = vld [vmem:[#allocation58_spill] sm:$0xff] }
 0xa43   : > { %v3726_v49 = vsub.f32 1.0, %v3725_v29  ;;  %vm3765_vm7 = vmor %vm3763_vm5, %vm3764_vm15  ;;  %vm3906_vm15 = vweird.f32 %v7408_v4 }
 0xa44   : > { %v3760_v59 = vsub.f32 1.0, %v3759_v26  ;;  %v8155_v26 = vld [vmem:[#allocation72_spill] sm:$0xff] }
 0xa45   : > { %v3727_v54 = vmul.f32 %v5173_v50, %v3726_v49  ;;  %v7418_v51 = vpop.eup %5176 }
 0xa46   : > { %v3761_v19 = vmul.f32 %v5175_v47, %v3760_v59  ;;  %v8156_v59 = vld [vmem:[#allocation109_spill] sm:$0xff]  ;;  %v3902_v24 = vmul.f32 %v7418_v51, %v7408_v4  ;;  %vm3907_vm10 = vweird.f32 %v7418_v51 }
 0xa47   : > { %v3728_v46 = vadd.f32 %v5173_v50, %v3727_v54 }
 0xa48   : > { %v3762_v32 = vadd.f32 %v5175_v47, %v3761_v19 }
 0xa49   : > { %v3732_v58 = vsel %vm3731_vm4, %v5173_v50, %v3728_v46  ;;  %vm3908_vm4 = vmor %vm3906_vm15, %vm3907_vm10 }
 0xa4a   : > { %v3737_v6 = vsel %vm3734_vm6, %v3736_v0, %v3732_v58  ;;  %v3766_v8 = vsel %vm3765_vm7, %v5175_v47, %v3762_v32  ;;  %v8154_v47 = vld [vmem:[#allocation105_spill] sm:$0xff]  ;;  %v8159_v58 = vsub.f32 %v7223_v27, %v7226_v3 }
 0xa4b   : > { %4980 = vpush %v3737_v6  ;;  %v3771_v55 = vsel %vm3768_vm8, %v3770_v62, %v3766_v8  ;;  %v8160_v8 = vsub.f32 %v7135_v7, %v7138_v22 }
 0xa4c   : > { %4982 = vpush %v3771_v55  ;;  %v4405_v62 = vand.u32 2147483647, %v8159_v58  ;;  %v8169_v58 = vld [vmem:[#allocation66_spill] sm:$0xff] }
 0xa4d   : > { %4984 = vpush %v3799_v10  ;;  %v4241_v34 = vand.u32 2147483647, %v8160_v8  ;;  %v3903_v10 = vsub.f32 1.0, %v3902_v24 }
 0xa4f   : > { %v3904_v7 = vmul.f32 %v7418_v51, %v3903_v10 }
 0xa7c   : > { %s4981_s2 = spop %4980 }
 0xa7d   : > { %v4243_v57 = vstv %s4981_s2  ;;  %s4983_s25 = spop %4982 }
 0xa7e   : > { %v4244_v18 = vmul.f32 %v4243_v57, %v8149_v63  ;;  %v4274_v37 = vmul.f32 %v4243_v57, %v8150_v52  ;;  %v4375_v15 = vmul.f32 %v4243_v57, %v8151_v40  ;;  %v4407_v41 = vmul.f32 %v4243_v57, %v8152_v42  ;;  %s4985_s7 = spop %4984 }
 0xa7f   : > { %v4245_v50 = vstv %s4983_s25  ;;  %s3801_s28 = smul.f32 %s4985_s7, %s8153_s19  ;;  %v3905_v42 = vadd.f32 %v7418_v51, %v3904_v7 }
 0xa80   : > { %v4246_v29 = vmul.f32 %v4245_v50, %v8154_v47  ;;  %v4275_v49 = vmul.f32 %v4245_v50, %v8155_v26  ;;  %v4376_v1 = vmul.f32 %v4245_v50, %v8156_v59  ;;  %v4408_v54 = vmul.f32 %v4245_v50, %v8157_v13  ;;  %s3835_s9 = smul.f32 %s4985_s7, %s8158_s29 }
 0xa81   : > { %s3802_s15 = sadd.f32 1e-08, %s3801_s28 }
 0xa82   : > { %v4247_v43 = vsub.f32 %v4244_v18, %v4246_v29  ;;  %v4276_v30 = vsub.f32 %v4274_v37, %v4275_v49  ;;  %v4377_v19 = vsub.f32 %v4375_v15, %v4376_v1  ;;  %v4409_v48 = vsub.f32 %v4407_v41, %v4408_v54  ;;  %s3836_s3 = sadd.f32 1e-08, %s3835_s9 }
 0xa83   : > { %v3803_v46 = vstv %s3802_s15  ;;  %v3912_v41 = vand.u32 2147483648, %v7408_v4  ;;  %v3910_v49 = vand.u32 2147483647, %v7408_v4 }
 0xa84   : > { %v4248_v44 = vand.u32 2147483647, %v4247_v43  ;;  %v4277_v0 = vand.u32 2147483647, %v4276_v30  ;;  %v4378_v32 = vand.u32 2147483647, %v4377_v19  ;;  %5178 = vrcp.f32 %v3803_v46 }
 0xa85   : > { %v4410_v53 = vand.u32 2147483647, %v4409_v48  ;;  %v3837_v6 = vstv %s3836_s3  ;;  %v3815_v37 = vand.u32 2147483648, %v3803_v46  ;;  %v3813_v40 = vand.u32 2147483647, %v3803_v46 }
 0xa86   : > { %v7441_v5 = vadd.f32 %v4277_v0, %v4272_v38  ;;  %5180 = vrcp.f32 %v3837_v6  ;;  %v7445_v57 = vadd.f32 %v4248_v44, %v4241_v34  ;;  %v7447_v27 = vadd.f32 %v4378_v32, %v4373_v16  ;;  %v8167_v44 = vld [vmem:[#allocation54_spill] sm:$0xff]  ;;  %v8171_v34 = vld [vmem:[#allocation77_spill] sm:$0xff]  ;;  %v8172_v16 = vld [vmem:[#allocation91_spill] sm:$0xff] }
 0xa87   : > { %v7443_v55 = vadd.f32 %v4410_v53, %v4405_v62  ;;  %vm3809_vm12 = vweird.f32 %v3803_v46  ;;  %v3849_v15 = vand.u32 2147483648, %v3837_v6  ;;  %v3847_v29 = vand.u32 2147483647, %v3837_v6 }
 0xa88   : > { %v3816_v26 = vor.u32 1.1754944e-38, %v3815_v37  ;;  %vm3814_vm2 = vcmp.eq.f32.partialorder %v3813_v40, 8.507059e+37  ;;  %vm3843_vm3 = vweird.f32 %v3837_v6  ;;  %v3909_v43 = vsel %vm3908_vm4, %v7418_v51, %v3905_v42  ;;  %v8168_v51 = vld [vmem:[#allocation62_spill] sm:$0xff] }
 0xa89   : > { %v3850_v54 = vor.u32 1.1754944e-38, %v3849_v15  ;;  %vm3848_vm6 = vcmp.eq.f32.partialorder %v3847_v29, 8.507059e+37  ;;  %v3913_v19 = vor.u32 1.1754944e-38, %v3912_v41  ;;  %vm3911_vm7 = vcmp.eq.f32.partialorder %v3910_v49, 8.507059e+37 }
 0xa8a   : > { %v5179_v3 = vpop.eup %5178  ;;  %v8178_v15 = vsub.f32 %v7242_v11, %v7245_v45 }
 0xa8b   : > { %v3805_v63 = vmul.f32 %v5179_v3, %v3803_v46  ;;  %vm3810_vm11 = vweird.f32 %v5179_v3  ;;  %v3914_v4 = vsel %vm3911_vm7, %v3913_v19, %v3909_v43  ;;  %v8166_v46 = vld [vmem:[#allocation50_spill] sm:$0xff] }
 0xa8c   : > { %v5181_v18 = vpop.eup %5180  ;;  %vm3811_vm14 = vmor %vm3809_vm12, %vm3810_vm11  ;;  %v4439_v42 = vand.u32 2147483647, %v8178_v15 }
 0xa8d   : > { %v3806_v22 = vsub.f32 1.0, %v3805_v63  ;;  %v3839_v52 = vmul.f32 %v5181_v18, %v3837_v6  ;;  %vm3844_vm13 = vweird.f32 %v5181_v18  ;;  %v8170_v6 = vld [vmem:[#allocation74_spill] sm:$0xff] }
 0xa8e   : > { %vm3845_vm5 = vmor %vm3843_vm3, %vm3844_vm13 }
 0xa8f   : > { %v3840_v36 = vsub.f32 1.0, %v3839_v52  ;;  %v3807_v12 = vmul.f32 %v5179_v3, %v3806_v22 }
 0xa91   : > { %v3808_v50 = vadd.f32 %v5179_v3, %v3807_v12  ;;  %v3841_v47 = vmul.f32 %v5181_v18, %v3840_v36  ;;  %v8177_v12 = vsub.f32 %v7187_v21, %v7190_v39 }
 0xa93   : > { %v3812_v59 = vsel %vm3811_vm14, %v5179_v3, %v3808_v50  ;;  %v3842_v1 = vadd.f32 %v5181_v18, %v3841_v47  ;;  %v8173_v3 = vld [vmem:[#allocation99_spill] sm:$0xff]  ;;  %v4340_v40 = vand.u32 2147483647, %v8177_v12  ;;  %v8179_v47 = vsub.f32 %v7274_v23, %v7277_v33 }
 0xa94   : > { %v3817_v13 = vsel %vm3814_vm2, %v3816_v26, %v3812_v59 }
 0xa95   : > { %4986 = vpush %v3817_v13  ;;  %v3846_v30 = vsel %vm3845_vm5, %v5181_v18, %v3842_v1  ;;  %v8175_v18 = vsub.f32 %v7170_v25, %v7173_v17  ;;  %v4473_v29 = vand.u32 2147483647, %v8179_v47 }
 0xa96   : > { %v3851_v48 = vsel %vm3848_vm6, %v3850_v54, %v3846_v30 }
 0xa97   : > { %4988 = vpush %v3851_v48  ;;  %v4305_v7 = vand.u32 2147483647, %v8175_v18 }
 0xa98   : > { %4990 = vpush %v3914_v4 }
 0xac6   : > { %s4987_s30 = spop %4986 }
 0xac7   : > { %v4307_v38 = vstv %s4987_s30 }
 0xac8   : > { %v4308_v24 = vmul.f32 %v4307_v38, %v8166_v46  ;;  %v4342_v0 = vmul.f32 %v4307_v38, %v8167_v44  ;;  %v4441_v32 = vmul.f32 %v4307_v38, %v8168_v51  ;;  %v4475_v62 = vmul.f32 %v4307_v38, %v8169_v58  ;;  %s4989_s5 = spop %4988 }
 0xac9   : > { %v4309_v53 = vstv %s4989_s5  ;;  %s4991_s12 = spop %4990 }
 0xaca   : > { %v4310_v8 = vmul.f32 %v4309_v53, %v8170_v6  ;;  %v4343_v60 = vmul.f32 %v4309_v53, %v8171_v34  ;;  %v4442_v10 = vmul.f32 %v4309_v53, %v8172_v16  ;;  %v4476_v63 = vmul.f32 %v4309_v53, %v8173_v3  ;;  %s3916_s18 = smul.f32 %s4991_s12, %s8174_s16 }
 0xacb   : > { %s3950_s4 = smul.f32 %s4991_s12, %s8176_s20 }
 0xacc   : > { %v4311_v22 = vsub.f32 %v4308_v24, %v4310_v8  ;;  %v4344_v52 = vsub.f32 %v4342_v0, %v4343_v60  ;;  %v4443_v37 = vsub.f32 %v4441_v32, %v4442_v10  ;;  %v4477_v36 = vsub.f32 %v4475_v62, %v4476_v63  ;;  %s3917_s14 = sadd.f32 1e-08, %s3916_s18  ;;  %v8180_v8 = vld [vmem:[#allocation14_spill] sm:$0xff]  ;;  %v8181_v60 = vld [vmem:[#allocation12_spill] sm:$0xff] }
 0xacd   : > { %s3951_s17 = sadd.f32 1e-08, %s3950_s4  ;;  %v8182_v10 = vld [vmem:[#allocation48_spill] sm:$0xff] }
 0xace   : > { %v4312_v41 = vand.u32 2147483647, %v4311_v22  ;;  %v4345_v50 = vand.u32 2147483647, %v4344_v52  ;;  %v4444_v25 = vand.u32 2147483647, %v4443_v37  ;;  %v3918_v17 = vstv %s3917_s14 }
 0xacf   : > { %v4478_v26 = vand.u32 2147483647, %v4477_v36  ;;  %5182 = vrcp.f32 %v3918_v17  ;;  %v3952_v49 = vstv %s3951_s17  ;;  %v3930_v23 = vand.u32 2147483648, %v3918_v17  ;;  %v8183_v63 = vld [vmem:[#allocation32_spill] sm:$0xff]  ;;  %v8185_v52 = vld [vmem:[#allocation23_spill] sm:$0xff] }
 0xad0   : > { %v7484_v59 = vadd.f32 %v4312_v41, %v4305_v7  ;;  %v7486_v21 = vadd.f32 %v4345_v50, %v4340_v40  ;;  %v7488_v39 = vadd.f32 %v4444_v25, %v4439_v42  ;;  %5184 = vrcp.f32 %v3952_v49  ;;  %v8184_v7 = vld [vmem:[#allocation28_spill] sm:$0xff]  ;;  %v8188_v40 = vld [vmem:[#allocation49_spill] sm:$0xff] }
 0xad1   : > { %v7490_v11 = vadd.f32 %v4478_v26, %v4473_v29  ;;  %v3928_v19 = vand.u32 2147483647, %v3918_v17  ;;  %v3964_v48 = vand.u32 2147483648, %v3952_v49  ;;  %v3962_v38 = vand.u32 2147483647, %v3952_v49  ;;  %v8186_v36 = vld [vmem:[#allocation24_spill] sm:$0xff] }
 0xad2   : > { %vm3924_vm10 = vweird.f32 %v3918_v17  ;;  %v3931_v24 = vor.u32 1.1754944e-38, %v3930_v23  ;;  %vm3958_vm12 = vweird.f32 %v3952_v49  ;;  %v8189_v26 = vld [vmem:[#allocation27_spill] sm:$0xff] }
 0xad3   : > { %vm3929_vm13 = vcmp.eq.f32.partialorder %v3928_v19, 8.507059e+37  ;;  %v3965_v51 = vor.u32 1.1754944e-38, %v3964_v48  ;;  %vm3963_vm15 = vcmp.eq.f32.partialorder %v3962_v38, 8.507059e+37  ;;  %v7520_v23 = vld [vmem:[%s8187_s27] sm:$0xff]  ;;  %v8191_v38 = vld [vmem:[#allocation16_spill] sm:$0xff] }
 0xad5   : > { %v5183_v45 = vpop.eup %5182 }
 0xad6   : > { %v5185_v1 = vpop.eup %5184  ;;  %v3920_v13 = vmul.f32 %v5183_v45, %v3918_v17  ;;  %vm3925_vm8 = vweird.f32 %v5183_v45 }
 0xad7   : > { %v3954_v54 = vmul.f32 %v5185_v1, %v3952_v49  ;;  %vm3959_vm9 = vweird.f32 %v5185_v1  ;;  %vm3926_vm11 = vmor %vm3924_vm10, %vm3925_vm8 }
 0xad8   : > { %v3921_v43 = vsub.f32 1.0, %v3920_v13  ;;  %vm3960_vm14 = vmor %vm3958_vm12, %vm3959_vm9 }
 0xad9   : > { %v3955_v30 = vsub.f32 1.0, %v3954_v54 }
 0xada   : > { %v3922_v33 = vmul.f32 %v5183_v45, %v3921_v43 }
 0xadb   : > { %v3956_v4 = vmul.f32 %v5185_v1, %v3955_v30 }
 0xadc   : > { %v3923_v46 = vadd.f32 %v5183_v45, %v3922_v33 }
 0xadd   : > { %v3957_v44 = vadd.f32 %v5185_v1, %v3956_v4 }
 0xade   : > { %v3927_v0 = vsel %vm3926_vm11, %v5183_v45, %v3923_v46  ;;  %v8190_v45 = vld [vmem:[#allocation52_spill] sm:$0xff] }
 0xadf   : > { %v3932_v32 = vsel %vm3929_vm13, %v3931_v24, %v3927_v0  ;;  %v3961_v58 = vsel %vm3960_vm14, %v5185_v1, %v3957_v44  ;;  %v8192_v24 = vld [vmem:[#allocation35_spill] sm:$0xff]  ;;  %v8196_v44 = vld [vmem:[#allocation41_spill] sm:$0xff] }
 0xae0   : > { %4992 = vpush %v3932_v32  ;;  %v3966_v62 = vsel %vm3963_vm15, %v3965_v51, %v3961_v58  ;;  %v8198_v32 = vld [vmem:[#allocation20_spill] sm:$0xff] }
 0xae1   : > { %4994 = vpush %v3966_v62  ;;  %v8199_v62 = vld [vmem:[#allocation45_spill] sm:$0xff] }
 0xb11   : > { %s4993_s13 = spop %4992 }
 0xb12   : > { %v7492_v53 = vstv %s4993_s13  ;;  %s4995_s24 = spop %4994 }
 0xb13   : > { %v7494_v6 = vstv %s4995_s24  ;;  %v4081_v34 = vmul.f32 %v7492_v53, %v8180_v8  ;;  %v4048_v16 = vmul.f32 %v7492_v53, %v8181_v60  ;;  %v4013_v3 = vmul.f32 %v7492_v53, %v8182_v10  ;;  %v8200_v60 = vld [vmem:[#allocation107_spill] sm:$0xff]  ;;  %v8201_v10 = vld [vmem:[#allocation71_spill] sm:$0xff] }
 0xb14   : > { %v4082_v18 = vmul.f32 %v7494_v6, %v8183_v63  ;;  %v4049_v22 = vmul.f32 %v7494_v6, %v8184_v7  ;;  %v4014_v37 = vmul.f32 %v7494_v6, %v8185_v52  ;;  %v4279_v12 = vmul.f32 %v7492_v53, %v8186_v36  ;;  %v8203_v36 = vld [vmem:[#allocation57_spill] sm:$0xff] }
 0xb15   : > { %v4280_v15 = vmul.f32 %v7494_v6, %v8188_v40  ;;  %v4314_v49 = vmul.f32 %v7492_v53, %v8189_v26  ;;  %v4315_v1 = vmul.f32 %v7494_v6, %v8190_v45  ;;  %v4146_v46 = vmul.f32 %v7492_v53, %v8191_v38  ;;  %v8204_v40 = vld [vmem:[#allocation42_spill] sm:$0xff]  ;;  %v8206_v45 = vld [vmem:[#allocation103_spill] sm:$0xff] }
 0xb16   : > { %v4083_v42 = vsub.f32 %v4081_v34, %v4082_v18  ;;  %v4050_v41 = vsub.f32 %v4048_v16, %v4049_v22  ;;  %v4015_v50 = vsub.f32 %v4013_v3, %v4014_v37  ;;  %v4181_v0 = vmul.f32 %v7494_v6, %v8196_v44  ;;  %v8202_v22 = vld [vmem:[#allocation31_spill] sm:$0xff]  ;;  %v8209_v38 = vld [vmem:[#allocation46_spill] sm:$0xff] }
 0xb17   : > { %v4281_v25 = vsub.f32 %v4279_v12, %v4280_v15  ;;  %v4316_v4 = vsub.f32 %v4314_v49, %v4315_v1  ;;  %v4214_v58 = vmul.f32 %v7492_v53, %v8198_v32  ;;  %v4215_v8 = vmul.f32 %v7494_v6, %v8199_v62 }
 0xb18   : > { %v4084_v17 = vand.u32 2147483647, %v4083_v42  ;;  %v4051_v47 = vand.u32 2147483647, %v4050_v41  ;;  %v4016_v29 = vand.u32 2147483647, %v4015_v50  ;;  %v4114_v16 = vmul.f32 %v7492_v53, %v8200_v60 }
 0xb19   : > { %v4282_v30 = vand.u32 2147483647, %v4281_v25  ;;  %v4115_v3 = vmul.f32 %v7494_v6, %v8201_v10  ;;  %v4317_v63 = vand.u32 2147483647, %v4316_v4  ;;  %v4216_v7 = vsub.f32 %v4214_v58, %v4215_v8  ;;  %v7552_v42 = vld [vmem:[%s8187_s27 + $0x8] sm:$0xff]  ;;  %v8211_v60 = vld [vmem:[#allocation111_spill] sm:$0xff] }
 0xb1a   : > { %v4085_v13 = vadd.f32 %v4084_v17, %v7386_v61  ;;  %v4052_v54 = vadd.f32 %v4051_v47, %v7384_v28  ;;  %v4017_v43 = vadd.f32 %v4016_v29, %v7332_v56  ;;  %v4147_v61 = vmul.f32 %v7494_v6, %v8192_v24  ;;  %v8195_v56 = vld [vmem:[#allocation18_spill] sm:$0xff]  ;;  %v8205_v25 = vld [vmem:[#allocation64_spill] sm:$0xff] }
 0xb1b   : > { %v4180_v28 = vmul.f32 %v7492_v53, %v8195_v56  ;;  %v4283_v51 = vadd.f32 %v4282_v30, %v7441_v5  ;;  %v4347_v52 = vmul.f32 %v7492_v53, %v8202_v22  ;;  %v4116_v37 = vsub.f32 %v4114_v16, %v4115_v3  ;;  %v8208_v4 = vld [vmem:[#allocation60_spill] sm:$0xff]  ;;  %v8212_v16 = vld [vmem:[#allocation94_spill] sm:$0xff]  ;;  %v8213_v3 = vld [vmem:[#allocation101_spill] sm:$0xff] }
 0xb1c   : > { %v4086_v33 = vmul.f32 %v7520_v23, %v4085_v13  ;;  %v4053_v19 = vmul.f32 %v7520_v23, %v4052_v54  ;;  %v4018_v48 = vmul.f32 %v7520_v23, %v4017_v43  ;;  %v4148_v18 = vsub.f32 %v4146_v46, %v4147_v61  ;;  %v8207_v43 = vld [vmem:[#allocation36_spill] sm:$0xff] }
 0xb1d   : > { %v4182_v34 = vsub.f32 %v4180_v28, %v4181_v0  ;;  %v4348_v12 = vmul.f32 %v7494_v6, %v8203_v36  ;;  %v4446_v15 = vmul.f32 %v7492_v53, %v8204_v40  ;;  %v4284_v41 = vmul.f32 %v7552_v42, %v4283_v51  ;;  %v8210_v0 = vld [vmem:[#allocation68_spill] sm:$0xff] }
 0xb1e   : > { %4088 = vrot.lane.b32.xlu0 %v4086_v33, %s8193_s21  ;;  %4055 = vrot.lane.b32.xlu1 %v4053_v19, %s8194_s1  ;;  %v4217_v50 = vand.u32 2147483647, %v4216_v7  ;;  %v4447_v17 = vmul.f32 %v7494_v6, %v8205_v25  ;;  %v4380_v47 = vmul.f32 %v7492_v53, %v6579_v2  ;;  %v4117_v26 = vand.u32 2147483647, %v4116_v37 }
 0xb1f   : > { %4020 = vrot.lane.b32.xlu2 %v4018_v48, %s8197_s8  ;;  %v4183_v5 = vand.u32 2147483647, %v4182_v34  ;;  %v4349_v49 = vsub.f32 %v4347_v52, %v4348_v12  ;;  %v4381_v1 = vmul.f32 %v7494_v6, %v8206_v45  ;;  %v4412_v30 = vmul.f32 %v7492_v53, %v8207_v43 }
 0xb20   : > { %v4218_v13 = vadd.f32 %v4217_v50, %v7390_v9  ;;  %v4448_v54 = vsub.f32 %v4446_v15, %v4447_v17  ;;  %v4118_v33 = vadd.f32 %v4117_v26, %v7338_v35  ;;  %v4480_v46 = vmul.f32 %v7492_v53, %v8209_v38 }
 0xb21   : > { %v4184_v29 = vadd.f32 %v4183_v5, %v7388_v20  ;;  %v4350_v19 = vand.u32 2147483647, %v4349_v49  ;;  %v4382_v48 = vsub.f32 %v4380_v47, %v4381_v1  ;;  %v4413_v20 = vmul.f32 %v7494_v6, %v8208_v4 }
 0xb22   : > { %v4449_v2 = vand.u32 2147483647, %v4448_v54  ;;  %v4318_v24 = vadd.f32 %v4317_v63, %v7484_v59  ;;  %v4149_v9 = vand.u32 2147483647, %v4148_v18  ;;  %v4481_v35 = vmul.f32 %v7494_v6, %v8210_v0  ;;  %v8214_v63 = vld [vmem:[#allocation53_spill] sm:$0xff] }
 0xb23   : > { %v4351_v61 = vadd.f32 %v4350_v19, %v7486_v21  ;;  %v4383_v56 = vand.u32 2147483647, %v4382_v48  ;;  %v4414_v44 = vsub.f32 %v4412_v30, %v4413_v20  ;;  %v4251_v10 = vmul.f32 %v7494_v6, %v8212_v16 }
 0xb24   : > { %v4450_v28 = vadd.f32 %v4449_v2, %v7488_v39  ;;  %v4482_v58 = vsub.f32 %v4480_v46, %v4481_v35  ;;  %v4319_v62 = vmul.f32 %v7552_v42, %v4318_v24  ;;  %v4150_v8 = vadd.f32 %v4149_v9, %v7334_v14 }
 0xb25   : > { %v7577_v51 = vadd.f32 %v4383_v56, %v7447_v27  ;;  %v4415_v32 = vand.u32 2147483647, %v4414_v44  ;;  %v4250_v27 = vmul.f32 %v7492_v53, %v8211_v60  ;;  %v3983_v14 = vmul.f32 %v7492_v53, %v8213_v3 }
 0xb26   : > { %4286 = vrot.lane.b32.xlu0 %v4284_v41, %s8197_s8  ;;  %v4483_v21 = vand.u32 2147483647, %v4482_v58  ;;  %v4151_v34 = vmul.f32 %v7520_v23, %v4150_v8  ;;  %v4219_v15 = vmul.f32 %v7520_v23, %v4218_v13  ;;  %v4119_v25 = vmul.f32 %v7520_v23, %v4118_v33 }
 0xb27   : > { %v7582_v59 = vadd.f32 %v4415_v32, %v7443_v55  ;;  %v3985_v55 = vmul.f32 %v7494_v6, %v8214_v63  ;;  %v4252_v7 = vsub.f32 %v4250_v27, %v4251_v10  ;;  %v4185_v6 = vmul.f32 %v7520_v23, %v4184_v29 }
 0xb28   : > { %v7586_v39 = vadd.f32 %v4483_v21, %v7490_v11  ;;  %v4153_v18 = vrot.slane %v4151_v34, 4  ;;  %v4221_v50 = vrot.slane %v4219_v15, 4  ;;  %v4121_v17 = vrot.slane %v4119_v25, 4 }
 0xb29   : > { %v3986_v11 = vsub.f32 %v3983_v14, %v3985_v55  ;;  %v4253_v22 = vand.u32 2147483647, %v4252_v7  ;;  %v4187_v41 = vrot.slane %v4185_v6, 4  ;;  %v4352_v30 = vmul.f32 %v7552_v42, %v4351_v61 }
 0xb2a   : > { %v4123_v47 = vsel %vm330_vm0, %v4121_v17, 0.0  ;;  %v4451_v19 = vmul.f32 %v7552_v42, %v4450_v28  ;;  %v4385_v61 = vmul.f32 %v7552_v42, %v7577_v51 }
 0xb2b   : > { %v3987_v52 = vand.u32 2147483647, %v3986_v11  ;;  %v4254_v5 = vadd.f32 %v4253_v22, %v7445_v57 }
 0xb2c   : > { %v4453_v4 = vrot.slane %v4451_v19, 4  ;;  %v4387_v56 = vrot.slane %v4385_v61, 4 }
 0xb2d   : > { %v3988_v37 = vadd.f32 %v3987_v52, %v7336_v31  ;;  %v4255_v36 = vmul.f32 %v7552_v42, %v4254_v5 }
 0xb2e   : > { %4321 = vrot.lane.b32.xlu0 %v4319_v62, %s8194_s1  ;;  %v4389_v44 = vsel %vm330_vm0, %v4387_v56, 0.0 }
 0xb2f   : > { %v3989_v12 = vmul.f32 %v7520_v23, %v3988_v37  ;;  %v4256_v53 = vsel %vm330_vm0, %v4255_v36, 0.0 }
 0xb31   : > { %v3990_v40 = vsel %vm330_vm0, %v3989_v12, 0.0 }
 0xb36   : > { %4154 = vrot.lane.b32.xlu0 %v4153_v18, %s8197_s8 }
 0xb48   : > { %4257 = vadd.xlane.f32.xlu2 %v4256_v53  ;;  %3991 = vadd.xlane.f32.xlu1 %v3990_v40 }
 0xb60   : > { %4188 = vrot.lane.b32.xlu2 %v4187_v41, %s8194_s1 }
 0xb61   : > { %4222 = vrot.lane.b32.xlu1 %v4221_v50, %s8193_s21 }
 0xb79   : > { %v4021_v31 = vpop.permute.xlu2 %4020 }
 0xb7a   : > { %v4023_v57 = vsel %vm330_vm0, %v4021_v31, 0.0 }
 0xb7b   : > { %4024 = vadd.xlane.f32.xlu0 %v4023_v57 }
 0xb8b   : > { %4124 = vadd.xlane.f32.xlu1 %v4123_v47 }
 0xb90   : > { %v4089_v26 = vpop.permute.xlu0 %4088  ;;  %v4056_v29 = vpop.permute.xlu1 %4055 }
 0xb91   : > { %v4091_v49 = vsel %vm330_vm0, %v4089_v26, 0.0  ;;  %v4058_v45 = vsel %vm330_vm0, %v4056_v29, 0.0 }
 0xb92   : > { %4092 = vadd.xlane.f32.xlu2 %v4091_v49  ;;  %4059 = vadd.xlane.f32.xlu0 %v4058_v45 }
 0xb98   : > { %v4287_v1 = vpop.permute.xlu0 %4286 }
 0xb99   : > { %v4289_v13 = vsel %vm330_vm0, %v4287_v1, 0.0 }
 0xb9a   : > { %4290 = vadd.xlane.f32.xlu1 %v4289_v13  ;;  %v4417_v13 = vmul.f32 %v7552_v42, %v7582_v59 }
 0xba0   : > { %v4322_v54 = vpop.permute.xlu0 %4321 }
 0xba1   : > { %v4324_v43 = vsel %vm330_vm0, %v4322_v54, 0.0  ;;  %v4419_v54 = vrot.slane %v4417_v13, 4 }
 0xba2   : > { %4325 = vadd.xlane.f32.xlu0 %v4324_v43 }
 0xba8   : > { %v4155_v23 = vpop.permute.xlu0 %4154 }
 0xba9   : > { %v4157_v33 = vsel %vm330_vm0, %v4155_v23, 0.0 }
 0xbaa   : > { %4354 = vrot.lane.b32.xlu2 %v4352_v30, %s8193_s21  ;;  %4158 = vadd.xlane.f32.xlu0 %v4157_v33 }
 0xbbb   : > { %v3992_v48 = vpop.xlane.xlu1 %3991  ;;  %v4258_v62 = vpop.xlane.xlu2 %4257 }
 0xbbc   : > { %v3993_v2 = vrot.slane %v3992_v48, 4 }
 0xbbe   : > { %v3994_v20 = vadd.f32 %v3993_v2, %v3992_v48  ;;  %4454 = vrot.lane.b32.xlu0 %v4453_v4, %s8194_s1  ;;  %v4259_v2 = vrot.slane %v4258_v62, 4 }
 0xbc0   : > { %v3995_v38 = vrot.slane %v3994_v20, 2 }
 0xbc2   : > { %v3996_v46 = vadd.f32 %v3995_v38, %v3994_v20 }
 0xbc3   : > { %v4189_v27 = vpop.permute.xlu2 %4188 }
 0xbc4   : > { %v3997_v24 = vrot.slane %v3996_v46, 1  ;;  %v4191_v25 = vsel %vm330_vm0, %v4189_v27, 0.0 }
 0xbc6   : > { %v3998_v9 = vadd.f32 %v3997_v24, %v3996_v46 }
 0xbc8   : > { %4996 = vpush %v3998_v9  ;;  %v4260_v9 = vadd.f32 %v4259_v2, %v4258_v62 }
 0xbd3   : > { %4390 = vadd.xlane.f32.xlu2 %v4389_v44  ;;  %v4223_v0 = vpop.permute.xlu1 %4222 }
 0xbd4   : > { %v4225_v28 = vsel %vm330_vm0, %v4223_v0, 0.0 }
 0xbe8   : > { %4226 = vadd.xlane.f32.xlu0 %v4225_v28 }
 0xbee   : > { %v4025_v35 = vpop.xlane.xlu0 %4024 }
 0xbef   : > { %v4026_v32 = vrot.slane %v4025_v35, 4 }
 0xbf1   : > { %v4027_v58 = vadd.f32 %v4026_v32, %v4025_v35  ;;  %v4261_v35 = vrot.slane %v4260_v9, 2 }
 0xbf3   : > { %v4028_v8 = vrot.slane %v4027_v58, 2 }
 0xbf5   : > { %v4029_v21 = vadd.f32 %v4028_v8, %v4027_v58 }
 0xbf7   : > { %v4030_v34 = vrot.slane %v4029_v21, 1 }
 0xbf9   : > { %v4031_v60 = vadd.f32 %v4030_v34, %v4029_v21  ;;  %s4997_s10 = spop %4996 }
 0xbfb   : > { %4998 = vpush %v4031_v60 }
 0xbfe   : > { %v4125_v16 = vpop.xlane.xlu1 %4124 }
 0xbff   : > { %v4126_v51 = vrot.slane %v4125_v16, 4 }
 0xc01   : > { %v4127_v10 = vadd.f32 %v4126_v51, %v4125_v16  ;;  %v4262_v16 = vadd.f32 %v4261_v35, %v4260_v9 }
 0xc03   : > { %v4128_v63 = vrot.slane %v4127_v10, 2 }
 0xc05   : > { %v4060_v3 = vpop.xlane.xlu0 %4059  ;;  %v4093_v14 = vpop.xlane.xlu2 %4092  ;;  %v4129_v22 = vadd.f32 %v4128_v63, %v4127_v10 }
 0xc06   : > { %v4061_v55 = vrot.slane %v4060_v3, 4  ;;  %v4094_v18 = vrot.slane %v4093_v14, 4 }
 0xc07   : > { %v4130_v53 = vrot.slane %v4129_v22, 1 }
 0xc08   : > { %v4062_v7 = vadd.f32 %v4061_v55, %v4060_v3  ;;  %v4095_v11 = vadd.f32 %v4094_v18, %v4093_v14  ;;  %v4263_v18 = vrot.slane %v4262_v16, 1 }
 0xc09   : > { %v4131_v31 = vadd.f32 %v4130_v53, %v4129_v22 }
 0xc0a   : > { %v4063_v52 = vrot.slane %v4062_v7, 2  ;;  %v4096_v5 = vrot.slane %v4095_v11, 2  ;;  %v4264_v53 = vadd.f32 %v4263_v18, %v4262_v16 }
 0xc0c   : > { %v4064_v37 = vadd.f32 %v4063_v52, %v4062_v7  ;;  %v4097_v36 = vadd.f32 %v4096_v5, %v4095_v11 }
 0xc0d   : > { %v4355_v12 = vpop.permute.xlu2 %4354  ;;  %v4291_v30 = vpop.xlane.xlu1 %4290 }
 0xc0e   : > { %v4065_v40 = vrot.slane %v4064_v37, 1  ;;  %v4098_v6 = vrot.slane %v4097_v36, 1  ;;  %v4357_v15 = vsel %vm330_vm0, %v4355_v12, 0.0  ;;  %v4292_v4 = vrot.slane %v4291_v30, 4 }
 0xc0f   : > { %4358 = vadd.xlane.f32.xlu1 %v4357_v15 }
 0xc10   : > { %v4066_v41 = vadd.f32 %v4065_v40, %v4064_v37  ;;  %v4099_v50 = vadd.f32 %v4098_v6, %v4097_v36  ;;  %v4293_v59 = vadd.f32 %v4292_v4, %v4291_v30 }
 0xc12   : > { %5000 = vpush %v4066_v41  ;;  %v4294_v8 = vrot.slane %v4293_v59, 2 }
 0xc13   : > { %5002 = vpush %v4099_v50 }
 0xc14   : > { %5004 = vpush %v4131_v31  ;;  %v4295_v3 = vadd.f32 %v4294_v8, %v4293_v59 }
 0xc15   : > { %v4326_v57 = vpop.xlane.xlu0 %4325 }
 0xc16   : > { %v4327_v38 = vrot.slane %v4326_v57, 4  ;;  %v4296_v22 = vrot.slane %v4295_v3, 1 }
 0xc17   : > { %4192 = vadd.xlane.f32.xlu1 %v4191_v25 }
 0xc18   : > { %v4328_v56 = vadd.f32 %v4327_v38, %v4326_v57  ;;  %v4297_v40 = vadd.f32 %v4296_v22, %v4295_v3  ;;  %v4485_v57 = vmul.f32 %v7552_v42, %v7586_v39 }
 0xc1a   : > { %v4329_v21 = vrot.slane %v4328_v56, 2  ;;  %v4487_v25 = vrot.slane %v4485_v57, 4 }
 0xc1c   : > { %v4330_v14 = vadd.f32 %v4329_v21, %v4328_v56 }
 0xc1d   : > { %v4159_v17 = vpop.xlane.xlu0 %4158 }
 0xc1e   : > { %v4160_v47 = vrot.slane %v4159_v17, 4  ;;  %v4331_v52 = vrot.slane %v4330_v14, 1 }
 0xc20   : > { %v4161_v26 = vadd.f32 %v4160_v47, %v4159_v17  ;;  %v4332_v6 = vadd.f32 %v4331_v52, %v4330_v14 }
 0xc22   : > { %v4162_v29 = vrot.slane %v4161_v26, 2 }
 0xc24   : > { %v4163_v49 = vadd.f32 %v4162_v29, %v4161_v26 }
 0xc26   : > { %v4164_v45 = vrot.slane %v4163_v49, 1 }
 0xc28   : > { %v4165_v1 = vadd.f32 %v4164_v45, %v4163_v49 }
 0xc2a   : > { %5006 = vpush %v4165_v1 }
 0xc2c   : > { %s4999_s6 = spop %4998 }
 0xc2d   : > { %s4033_s2 = sadd.f32 %s4999_s6, %s4997_s10 }
 0xc30   : > { %4420 = vrot.lane.b32.xlu1 %v4419_v54, %s8197_s8  ;;  %v4455_v43 = vpop.permute.xlu0 %4454 }
 0xc31   : > { %v4457_v23 = vsel %vm330_vm0, %v4455_v43, 0.0 }
 0xc43   : > { %s5001_s11 = spop %5000 }
 0xc44   : > { %s4068_s25 = sadd.f32 %s5001_s11, %s4033_s2  ;;  %s5003_s7 = spop %5002 }
 0xc45   : > { %s5005_s28 = spop %5004  ;;  %s8216_s11 = sld [smem:[#allocation167_spill]] }
 0xc46   : > { %v4391_v20 = vpop.xlane.xlu2 %4390  ;;  %s4101_s19 = sadd.f32 %s5003_s7, %s4068_s25 }
 0xc47   : > { %v4392_v61 = vrot.slane %v4391_v20, 4 }
 0xc48   : > { %s4133_s9 = sadd.f32 %s5005_s28, %s4101_s19 }
 0xc49   : > { %v4393_v32 = vadd.f32 %v4392_v61, %v4391_v20 }
 0xc4b   : > { %v4394_v51 = vrot.slane %v4393_v32, 2  ;;  %s320_s2 = scalar_lea.vmem %s8216_s11, %s8215_s22 }
 0xc4d   : > { %v4395_v7 = vadd.f32 %v4394_v51, %v4393_v32 }
 0xc4f   : > { %v4396_v12 = vrot.slane %v4395_v7, 1 }
 0xc51   : > { %v4397_v41 = vadd.f32 %v4396_v12, %v4395_v7 }
 0xc5a   : > { %4458 = vadd.xlane.f32.xlu1 %v4457_v23 }
 0xc5b   : > { %v4227_v33 = vpop.xlane.xlu0 %4226  ;;  %s5007_s29 = spop %5006 }
 0xc5c   : > { %v4228_v19 = vrot.slane %v4227_v33, 4  ;;  %s4167_s3 = sadd.f32 %s5007_s29, %s4133_s9 }
 0xc5e   : > { %v4229_v46 = vadd.f32 %v4228_v19, %v4227_v33 }
 0xc60   : > { %v4230_v44 = vrot.slane %v4229_v46, 2 }
 0xc62   : > { %v4231_v60 = vadd.f32 %v4230_v44, %v4229_v46 }
 0xc64   : > { %v4232_v63 = vrot.slane %v4231_v60, 1 }
 0xc66   : > { %v4233_v36 = vadd.f32 %v4232_v63, %v4231_v60 }
 0xc82   : > { %v4359_v48 = vpop.xlane.xlu1 %4358 }
 0xc83   : > { %v4360_v24 = vrot.slane %v4359_v48, 4 }
 0xc85   : > { %v4361_v0 = vadd.f32 %v4360_v24, %v4359_v48 }
 0xc87   : > { %v4362_v27 = vrot.slane %v4361_v0, 2 }
 0xc89   : > { %v4363_v55 = vadd.f32 %v4362_v27, %v4361_v0 }
 0xc8a   : > { %v4193_v28 = vpop.xlane.xlu1 %4192 }
 0xc8b   : > { %v4194_v58 = vrot.slane %v4193_v28, 4  ;;  %v4364_v37 = vrot.slane %v4363_v55, 1 }
 0xc8d   : > { %v4195_v34 = vadd.f32 %v4194_v58, %v4193_v28  ;;  %v4365_v15 = vadd.f32 %v4364_v37, %v4363_v55 }
 0xc8f   : > { %v4196_v10 = vrot.slane %v4195_v34, 2 }
 0xc91   : > { %v4197_v62 = vadd.f32 %v4196_v10, %v4195_v34 }
 0xc93   : > { %v4198_v11 = vrot.slane %v4197_v62, 1 }
 0xc95   : > { %v4199_v5 = vadd.f32 %v4198_v11, %v4197_v62 }
 0xc97   : > { %5008 = vpush %v4199_v5 }
 0xc98   : > { %5010 = vpush %v4233_v36 }
 0xc99   : > { %5012 = vpush %v4264_v53 }
 0xc9a   : > { %5014 = vpush %v4297_v40 }
 0xc9b   : > { %5016 = vpush %v4332_v6 }
 0xc9c   : > { %5018 = vpush %v4365_v15 }
 0xc9d   : > { %5020 = vpush %v4397_v41 }
 0xca2   : > { %v4421_v50 = vpop.permute.xlu1 %4420 }
 0xca3   : > { %v4423_v31 = vsel %vm330_vm0, %v4421_v50, 0.0 }
 0xca4   : > { %4424 = vadd.xlane.f32.xlu0 %v4423_v31 }
 0xcb8   : > { %4488 = vrot.lane.b32.xlu0 %v4487_v25, %s8193_s21 }
 0xcc8   : > { %s5009_s15 = spop %5008 }
 0xcc9   : > { %s4201_s26 = sadd.f32 %s5009_s15, %s4167_s3  ;;  %s5011_s0 = spop %5010 }
 0xcca   : > { %s5013_s30 = spop %5012 }
 0xccb   : > { %s4235_s23 = sadd.f32 %s5011_s0, %s4201_s26  ;;  %s5015_s12 = spop %5014 }
 0xccc   : > { %s5017_s18 = spop %5016 }
 0xccd   : > { %v4459_v17 = vpop.xlane.xlu1 %4458  ;;  %s4266_s5 = sadd.f32 %s5013_s30, %s4235_s23  ;;  %s5019_s4 = spop %5018 }
 0xcce   : > { %v4460_v47 = vrot.slane %v4459_v17, 4  ;;  %s5021_s17 = spop %5020 }
 0xccf   : > { %s4299_s16 = sadd.f32 %s5015_s12, %s4266_s5 }
 0xcd0   : > { %v4461_v26 = vadd.f32 %v4460_v47, %v4459_v17 }
 0xcd1   : > { %s4334_s20 = sadd.f32 %s5017_s18, %s4299_s16 }
 0xcd2   : > { %v4462_v29 = vrot.slane %v4461_v26, 2 }
 0xcd3   : > { %s4367_s14 = sadd.f32 %s5019_s4, %s4334_s20 }
 0xcd4   : > { %v4463_v13 = vadd.f32 %v4462_v29, %v4461_v26 }
 0xcd5   : > { %s4399_s24 = sadd.f32 %s5021_s17, %s4367_s14 }
 0xcd6   : > { %v4464_v23 = vrot.slane %v4463_v13, 1 }
 0xcd8   : > { %v4465_v19 = vadd.f32 %v4464_v23, %v4463_v13 }
 0xd17   : > { %v4425_v49 = vpop.xlane.xlu0 %4424 }
 0xd18   : > { %v4426_v45 = vrot.slane %v4425_v49, 4 }
 0xd1a   : > { %v4427_v1 = vadd.f32 %v4426_v45, %v4425_v49 }
 0xd1c   : > { %v4428_v54 = vrot.slane %v4427_v1, 2 }
 0xd1e   : > { %v4429_v43 = vadd.f32 %v4428_v54, %v4427_v1 }
 0xd20   : > { %v4430_v30 = vrot.slane %v4429_v43, 1 }
 0xd22   : > { %v4431_v33 = vadd.f32 %v4430_v30, %v4429_v43 }
 0xd24   : > { %5022 = vpush %v4431_v33 }
 0xd25   : > { %5024 = vpush %v4465_v19 }
 0xd2a   : > { %v4489_v42 = vpop.permute.xlu0 %4488 }
 0xd2b   : > { %v4491_v39 = vsel %vm330_vm0, %v4489_v42, 0.0 }
 0xd2c   : > { %4492 = vadd.xlane.f32.xlu2 %v4491_v39 }
 0xd55   : > { %s5023_s13 = spop %5022 }
 0xd56   : > { %s4433_s27 = sadd.f32 %s5023_s13, %s4399_s24  ;;  %s5025_s21 = spop %5024 }
 0xd58   : > { %s4467_s1 = sadd.f32 %s5025_s21, %s4433_s27 }
 0xd9f   : > { %v4493_v48 = vpop.xlane.xlu2 %4492 }
 0xda0   : > { %v4494_v2 = vrot.slane %v4493_v48, 4 }
 0xda2   : > { %v4495_v4 = vadd.f32 %v4494_v2, %v4493_v48 }
 0xda4   : > { %v4496_v20 = vrot.slane %v4495_v4, 2 }
 0xda6   : > { %v4497_v38 = vadd.f32 %v4496_v20, %v4495_v4 }
 0xda8   : > { %v4498_v46 = vrot.slane %v4497_v38, 1 }
 0xdaa   : > { %v4499_v24 = vadd.f32 %v4498_v46, %v4497_v38 }
 0xdac   : > { %5026 = vpush %v4499_v24 }
 0xddd   : > { %s5027_s8 = spop %5026 }
 0xdde   : > { %s4501_s25 = sadd.f32 %s5027_s8, %s4467_s1 }
 0xde0   : > { %v4502_v9 = vstv %s4501_s25 }
 0xde1   : > { %4504 = vst.msk [vmem:[%s320_s2] sm:$0x1] %vm4503_vm1, %v4502_v9 }
 0xde2 PF: > { %s8217_s7 = sld [smem:[#allocation8_spill]] }
 0xde8   : > { %s19_s21 = sadd.s32 1, %s8217_s7  }
 0xde9   : > { %p16_p7 = scmp.ge.s32.totalorder %s19_s21, 4  }
 0xdeb   :  { %18 = sbr.rel (!%p16_p7) target bundleno = 10 (0xa), region = 97 }
 0xdf0   :  { %4536 = vsyncpa [#allocation3], 1 }
 0xdf1   :  { %4538 = vsyncpa [#allocation3 + $0x1], 1 }
 0xdf2   :  { %4539 = vsyncpa [#allocation5], 1 }

</bundles_post_ra>
